<compile_context>
chip_gen: v7x
topology: tpu7x:2x2x1
jax: 0.10.0
libtpu: 0.0.40
codegen_flags: <defaults>
</compile_context>

<pallas_src>
import functools

import jax
import jax.numpy as jnp
from jax.experimental import pallas as pl
from jax.experimental.pallas import tpu as pltpu


# -----------------------------------------------------------------------------
# helpers
# -----------------------------------------------------------------------------
_LANE = 128
_BN_EPS = 1e-3  # torchvision EfficientNetV2 uses eps=1e-3


def _round_up(x, m):
    return (x + m - 1) // m * m


def _cpad(c):
    """Pad channel counts to a multiple of the 128-lane width."""
    return _round_up(c, _LANE)


def _silu(y):
    return y * jax.nn.sigmoid(y)


# -----------------------------------------------------------------------------
# Pallas kernels
# -----------------------------------------------------------------------------
def _mm_bias_act_kernel(x_ref, w_ref, b_ref, o_ref, *, act):
    """(tm, K)bf16 @ (K, N)bf16 -> f32 acc -> +bias (BN folded) -> optional SiLU."""
    y = jnp.dot(x_ref[...], w_ref[...], preferred_element_type=jnp.float32)
    y = y + b_ref[...]
    if act:
        y = _silu(y)
    o_ref[...] = y.astype(o_ref.dtype)


def _conv3x3_wide_kernel(*refs, offsets, cin, residual):
    """3x3 conv on the wide-flat layout (one image per grid step).

    x_ref : (1, Mx, Cx)    flattened padded input (parity planes for stride 2)
    w_ref : (9, Cin, Cout) BN scale folded in, bf16
    b_ref : (1, Cout)      folded BN bias, f32
    r_ref : (1, Mo, Cout)  optional residual (wide layout), bf16
    o_ref : (1, Mo, Cout)  wide output (garbage cols dropped by the wrapper)

    `offsets` is a static tuple of 9 (row_offset, channel_offset) ints, so every
    tap load is a static slab and every tap is a single MXU matmul.
    """
    if residual:
        x_ref, w_ref, b_ref, r_ref, o_ref = refs
    else:
        x_ref, w_ref, b_ref, o_ref = refs
        r_ref = None
    mo = o_ref.shape[1]
    cout = o_ref.shape[2]
    acc = jnp.zeros((mo, cout), jnp.float32)
    for t, (roff, coff) in enumerate(offsets):
        xs = x_ref[0, pl.ds(roff, mo), pl.ds(coff, cin)]          # (Mo, Cin) bf16
        acc = acc + jnp.dot(xs, w_ref[t], preferred_element_type=jnp.float32)
    y = _silu(acc + b_ref[...])
    if residual:
        y = y + r_ref[0].astype(jnp.float32)                      # fused residual
    o_ref[0] = y.astype(o_ref.dtype)


def _dwconv3x3_wide_kernel(x_ref, w_ref, b_ref, o_ref, *, offsets, c):
    """Depthwise 3x3 stride-2 conv on wide-flat parity planes (VPU, f32 math)."""
    mo = o_ref.shape[1]
    acc = jnp.zeros((mo, c), jnp.float32)
    for t, (roff, coff) in enumerate(offsets):
        xs = x_ref[0, pl.ds(roff, mo), pl.ds(coff, c)].astype(jnp.float32)
        acc = acc + xs * w_ref[pl.ds(t, 1), :]
    y = _silu(acc + b_ref[...])
    o_ref[0] = y.astype(o_ref.dtype)


def _se_project_kernel(x_ref, w1_ref, b1_ref, w2_ref, b2_ref, wp_ref, bp_ref,
                       o_ref):
    """Squeeze-Excitation (mean -> fc1+SiLU -> fc2+sigmoid) fused with the
    gated 1x1 projection conv (no activation).  One image per grid step."""
    xv = x_ref[0].astype(jnp.float32)                              # (HW, C)
    s = jnp.mean(xv, axis=0, keepdims=True)                        # (1, C)
    h = _silu(jnp.dot(s.astype(jnp.bfloat16), w1_ref[...],
                      preferred_element_type=jnp.float32) + b1_ref[...])
    g = jax.nn.sigmoid(jnp.dot(h.astype(jnp.bfloat16), w2_ref[...],
                               preferred_element_type=jnp.float32) + b2_ref[...])
    xg = (xv * g).astype(jnp.bfloat16)                             # (HW, C)
    y = jnp.dot(xg, wp_ref[...], preferred_element_type=jnp.float32) + bp_ref[...]
    o_ref[0] = y.astype(o_ref.dtype)


def _head_kernel(x_ref, wh_ref, bh_ref, wc_ref, bc_ref, o_ref):
    """1x1 head conv + SiLU + AdaptiveAvgPool2d(1) + flatten + Linear, fused."""
    h = jnp.dot(x_ref[0], wh_ref[...],
                preferred_element_type=jnp.float32) + bh_ref[...]
    h = _silu(h)                                                   # (HW, Chead)
    pooled = jnp.mean(h, axis=0, keepdims=True)                    # (1, Chead)
    y = jnp.dot(pooled.astype(jnp.bfloat16), wc_ref[...],
                preferred_element_type=jnp.float32) + bc_ref[...]
    o_ref[0] = y                                                   # (1, N) f32


# -----------------------------------------------------------------------------
# Pallas wrappers
# -----------------------------------------------------------------------------
def conv1x1(x, w, b, *, act):
    """1x1 conv + folded-BN bias (+ SiLU). NHWC, channel-padded, bf16."""
    B, H, W, C = x.shape
    Cout = w.shape[-1]
    M = B * H * W
    tm = min(512, _round_up(M, 128))
    num_m = pl.cdiv(M, tm)
    Mp = num_m * tm
    x2 = x.reshape(M, C)
    if Mp != M:
        x2 = jnp.pad(x2, ((0, Mp - M), (0, 0)))
    out = pl.pallas_call(
        functools.partial(_mm_bias_act_kernel, act=act),
        out_shape=jax.ShapeDtypeStruct((Mp, Cout), jnp.bfloat16),
        grid=(num_m,),
        in_specs=[
            pl.BlockSpec((tm, C), lambda m: (m, 0)),
            pl.BlockSpec((C, Cout), lambda m: (0, 0)),
            pl.BlockSpec((1, Cout), lambda m: (0, 0)),
        ],
        out_specs=pl.BlockSpec((tm, Cout), lambda m: (m, 0)),
        compiler_params=pltpu.CompilerParams(
            dimension_semantics=("parallel",)),
    )(x2, w, b)
    return out[:M].reshape(B, H, W, Cout)


def conv3x3_s1_residual(x, w, b, residual):
    """3x3 stride-1 conv + BN(bias) + SiLU + fused residual add (wide-flat)."""
    B, H, W, C = x.shape
    Cout = w.shape[-1]
    Wp = W + 2
    # 1 top / 2 bottom / 1 left / 1 right padding; the extra bottom row keeps
    # the static tap-offset slabs in-bounds for the garbage wide columns.
    xp = jnp.pad(x, ((0, 0), (1, 2), (1, 1), (0, 0)))
    Mx = (H + 3) * Wp
    xf = xp.reshape(B, Mx, C)
    Mo = H * Wp
    rp = jnp.pad(residual, ((0, 0), (0, 0), (0, Wp - W), (0, 0))).reshape(B, Mo, Cout)
    offsets = tuple((kh * Wp + kw, 0) for kh in range(3) for kw in range(3))
    out = pl.pallas_call(
        functools.partial(_conv3x3_wide_kernel, offsets=offsets, cin=C,
                          residual=True),
        out_shape=jax.ShapeDtypeStruct((B, Mo, Cout), jnp.bfloat16),
        grid=(B,),
        in_specs=[
            pl.BlockSpec((1, Mx, C), lambda bb: (bb, 0, 0)),
            pl.BlockSpec((9, C, Cout), lambda bb: (0, 0, 0)),
            pl.BlockSpec((1, Cout), lambda bb: (0, 0)),
            pl.BlockSpec((1, Mo, Cout), lambda bb: (bb, 0, 0)),
        ],
        out_specs=pl.BlockSpec((1, Mo, Cout), lambda bb: (bb, 0, 0)),
        compiler_params=pltpu.CompilerParams(
            dimension_semantics=("parallel",)),
    )(xf, w, b, rp)
    return out.reshape(B, H, Wp, Cout)[:, :, :W, :]


def _parity_planes_flat(x):
    """Pad + space-to-depth (2x2 parity) + flatten; ~1x data movement in XLA."""
    B, H, W, C = x.shape
    Hp2, Wp2 = H // 2 + 1, W // 2 + 1
    xp = jnp.pad(x, ((0, 0), (1, 1), (1, 1), (0, 0)))              # (B,H+2,W+2,C)
    planes = jnp.concatenate(
        [xp[:, a::2, c::2, :] for a in (0, 1) for c in (0, 1)], axis=-1)
    planes = jnp.pad(planes, ((0, 0), (0, 1), (0, 0), (0, 0)))     # extra row
    Mx = (Hp2 + 1) * Wp2
    return planes.reshape(B, Mx, 4 * C), Mx, Hp2, Wp2


def _s2_offsets(Wp2, C):
    return tuple(((kh // 2) * Wp2 + (kw // 2), ((kh % 2) * 2 + (kw % 2)) * C)
                 for kh in range(3) for kw in range(3))


def conv3x3_s2(x, w, b):
    """3x3 stride-2 conv + BN(bias) + SiLU via wide-flat parity planes."""
    B, H, W, C = x.shape
    Cout = w.shape[-1]
    Ho, Wo = H // 2, W // 2
    xf, Mx, Hp2, Wp2 = _parity_planes_flat(x)
    Mo = Ho * Wp2
    offsets = _s2_offsets(Wp2, C)
    out = pl.pallas_call(
        functools.partial(_conv3x3_wide_kernel, offsets=offsets, cin=C,
                          residual=False),
        out_shape=jax.ShapeDtypeStruct((B, Mo, Cout), jnp.bfloat16),
        grid=(B,),
        in_specs=[
            pl.BlockSpec((1, Mx, 4 * C), lambda bb: (bb, 0, 0)),
            pl.BlockSpec((9, C, Cout), lambda bb: (0, 0, 0)),
            pl.BlockSpec((1, Cout), lambda bb: (0, 0)),
        ],
        out_specs=pl.BlockSpec((1, Mo, Cout), lambda bb: (bb, 0, 0)),
        compiler_params=pltpu.CompilerParams(
            dimension_semantics=("parallel",)),
    )(xf, w, b)
    return out.reshape(B, Ho, Wp2, Cout)[:, :, :Wo, :]


def dwconv3x3_s2(x, w, b):
    """Depthwise 3x3 stride-2 conv + BN(bias) + SiLU via wide-flat planes."""
    B, H, W, C = x.shape
    Ho, Wo = H // 2, W // 2
    xf, Mx, Hp2, Wp2 = _parity_planes_flat(x)
    Mo = Ho * Wp2
    offsets = _s2_offsets(Wp2, C)
    out = pl.pallas_call(
        functools.partial(_dwconv3x3_wide_kernel, offsets=offsets, c=C),
        out_shape=jax.ShapeDtypeStruct((B, Mo, C), jnp.bfloat16),
        grid=(B,),
        in_specs=[
            pl.BlockSpec((1, Mx, 4 * C), lambda bb: (bb, 0, 0)),
            pl.BlockSpec((9, C), lambda bb: (0, 0)),
            pl.BlockSpec((1, C), lambda bb: (0, 0)),
        ],
        out_specs=pl.BlockSpec((1, Mo, C), lambda bb: (bb, 0, 0)),
        compiler_params=pltpu.CompilerParams(
            dimension_semantics=("parallel",)),
    )(xf, w, b)
    return out.reshape(B, Ho, Wp2, C)[:, :, :Wo, :]


def se_project(x, w1, b1, w2, b2, wp, bp):
    """SE gate + gating + 1x1 projection, fused into one per-batch kernel."""
    B, H, W, C = x.shape
    Cout = wp.shape[-1]
    csq = w1.shape[-1]
    x3 = x.reshape(B, H * W, C)
    out = pl.pallas_call(
        _se_project_kernel,
        out_shape=jax.ShapeDtypeStruct((B, H * W, Cout), jnp.bfloat16),
        grid=(B,),
        in_specs=[
            pl.BlockSpec((1, H * W, C), lambda bb: (bb, 0, 0)),
            pl.BlockSpec((C, csq), lambda bb: (0, 0)),
            pl.BlockSpec((1, csq), lambda bb: (0, 0)),
            pl.BlockSpec((csq, C), lambda bb: (0, 0)),
            pl.BlockSpec((1, C), lambda bb: (0, 0)),
            pl.BlockSpec((C, Cout), lambda bb: (0, 0)),
            pl.BlockSpec((1, Cout), lambda bb: (0, 0)),
        ],
        out_specs=pl.BlockSpec((1, H * W, Cout), lambda bb: (bb, 0, 0)),
        compiler_params=pltpu.CompilerParams(
            dimension_semantics=("parallel",)),
    )(x3, w1, b1, w2, b2, wp, bp)
    return out.reshape(B, H, W, Cout)


def head_pool_classifier(x, wh, bh, wc, bc):
    """1x1 head conv + SiLU + AdaptiveAvgPool2d(1) + flatten + Linear."""
    B, H, W, C = x.shape
    Ch = wh.shape[-1]
    N = wc.shape[-1]
    x3 = x.reshape(B, H * W, C)
    out = pl.pallas_call(
        _head_kernel,
        out_shape=jax.ShapeDtypeStruct((B, 1, N), jnp.float32),
        grid=(B,),
        in_specs=[
            pl.BlockSpec((1, H * W, C), lambda bb: (bb, 0, 0)),
            pl.BlockSpec((C, Ch), lambda bb: (0, 0)),
            pl.BlockSpec((1, Ch), lambda bb: (0, 0)),
            pl.BlockSpec((Ch, N), lambda bb: (0, 0)),
            pl.BlockSpec((1, N), lambda bb: (0, 0)),
        ],
        out_specs=pl.BlockSpec((1, 1, N), lambda bb: (bb, 0, 0)),
        compiler_params=pltpu.CompilerParams(
            dimension_semantics=("parallel",)),
    )(x3, wh, bh, wc, bc)
    return out.reshape(B, N)


# -----------------------------------------------------------------------------
# Deterministic synthetic parameters (BN folded into weights, lane-padded)
# -----------------------------------------------------------------------------
def _fold_bn(key, cout):
    kg, kb, km, kv = jax.random.split(key, 4)
    gamma = 1.0 + 0.1 * jax.random.normal(kg, (cout,), jnp.float32)
    beta = 0.1 * jax.random.normal(kb, (cout,), jnp.float32)
    mean = 0.1 * jax.random.normal(km, (cout,), jnp.float32)
    var = 1.0 + 0.1 * jax.random.uniform(kv, (cout,), jnp.float32)
    scale = gamma / jnp.sqrt(var + _BN_EPS)
    bias = beta - mean * scale
    return scale, bias


def make_conv3x3(key, cin, cout):
    kw_, kbn = jax.random.split(key)
    w = jax.random.normal(kw_, (3, 3, cin, cout), jnp.float32) * (2.0 / (9 * cin)) ** 0.5
    scale, bias = _fold_bn(kbn, cout)
    w = w * scale                                   # fold BN scale into weights
    wp = jnp.zeros((9, _cpad(cin), _cpad(cout)), jnp.float32)
    wp = wp.at[:, :cin, :cout].set(w.reshape(9, cin, cout))
    bp = jnp.zeros((1, _cpad(cout)), jnp.float32).at[0, :cout].set(bias)
    return wp.astype(jnp.bfloat16), bp


def make_conv1x1(key, cin, cout):
    kw_, kbn = jax.random.split(key)
    w = jax.random.normal(kw_, (cin, cout), jnp.float32) * (2.0 / cin) ** 0.5
    scale, bias = _fold_bn(kbn, cout)
    w = w * scale
    wp = jnp.zeros((_cpad(cin), _cpad(cout)), jnp.float32).at[:cin, :cout].set(w)
    bp = jnp.zeros((1, _cpad(cout)), jnp.float32).at[0, :cout].set(bias)
    return wp.astype(jnp.bfloat16), bp


def make_dw(key, c):
    kw_, kbn = jax.random.split(key)
    w = jax.random.normal(kw_, (3, 3, c), jnp.float32) * (2.0 / 9.0) ** 0.5
    scale, bias = _fold_bn(kbn, c)
    w = w * scale
    wp = jnp.zeros((9, _cpad(c)), jnp.float32).at[:, :c].set(w.reshape(9, c))
    bp = jnp.zeros((1, _cpad(c)), jnp.float32).at[0, :c].set(bias)
    return wp, bp                                   # depthwise taps stay f32 (VPU)


def make_se(key, c, c_sq):
    k1, k2, k3, k4 = jax.random.split(key, 4)
    w1 = jax.random.normal(k1, (c, c_sq), jnp.float32) * (2.0 / c) ** 0.5
    b1 = 0.05 * jax.random.normal(k2, (c_sq,), jnp.float32)
    w2 = jax.random.normal(k3, (c_sq, c), jnp.float32) * (2.0 / c_sq) ** 0.5
    b2 = 0.05 * jax.random.normal(k4, (c,), jnp.float32)
    w1p = jnp.zeros((_cpad(c), _cpad(c_sq)), jnp.float32).at[:c, :c_sq].set(w1)
    b1p = jnp.zeros((1, _cpad(c_sq)), jnp.float32).at[0, :c_sq].set(b1)
    w2p = jnp.zeros((_cpad(c_sq), _cpad(c)), jnp.float32).at[:c_sq, :c].set(w2)
    b2p = jnp.zeros((1, _cpad(c)), jnp.float32).at[0, :c].set(b2)
    return w1p.astype(jnp.bfloat16), b1p, w2p.astype(jnp.bfloat16), b2p


def make_cls(key, cin, ncls):
    k1, k2 = jax.random.split(key)
    w = 0.05 * jax.random.normal(k1, (cin, ncls), jnp.float32)
    b = 0.05 * jax.random.normal(k2, (ncls,), jnp.float32)
    wp = jnp.zeros((_cpad(cin), _cpad(ncls)), jnp.float32).at[:cin, :ncls].set(w)
    bp = jnp.zeros((1, _cpad(ncls)), jnp.float32).at[0, :ncls].set(b)
    return wp.astype(jnp.bfloat16), bp


def init_params(key, num_classes=2):
    ks = jax.random.split(key, 10)
    p = {}
    p["stem"] = make_conv3x3(ks[0], 3, 24)       # Conv 3x3 s2 + BN + SiLU
    p["b1"] = make_conv3x3(ks[1], 24, 24)        # FusedMBConv e1 (residual)
    p["b2_exp"] = make_conv3x3(ks[2], 24, 96)    # FusedMBConv e4 expand 3x3 s2
    p["b2_prj"] = make_conv1x1(ks[3], 96, 48)    # project 1x1 (no act)
    p["b3_exp"] = make_conv1x1(ks[4], 48, 192)   # MBConv e4 expand 1x1
    p["b3_dw"] = make_dw(ks[5], 192)             # depthwise 3x3 s2
    p["b3_se"] = make_se(ks[6], 192, 12)         # SE (squeeze = block_in // 4)
    p["b3_prj"] = make_conv1x1(ks[7], 192, 64)   # project 1x1 (no act)
    p["head"] = make_conv1x1(ks[8], 64, 128)     # 1x1 head conv + BN + SiLU
    p["cls"] = make_cls(ks[9], 128, num_classes)
    return p


# -----------------------------------------------------------------------------
# Forward pass: features(x) -> avgpool -> flatten -> classifier
# -----------------------------------------------------------------------------
def viewpoint_forward(params, x_nchw, num_classes=2):
    # PyTorch input is NCHW; kernels use NHWC (channels on the 128-lane axis).
    x = jnp.transpose(x_nchw, (0, 2, 3, 1)).astype(jnp.float32)
    B, H, W, Cin = x.shape
    x = jnp.pad(x, ((0, 0), (0, 0), (0, 0), (0, _cpad(Cin) - Cin)))
    x = x.astype(jnp.bfloat16)

    # ---- self.model.features(x)  (EfficientNetV2-style, reduced) ----
    x = conv3x3_s2(x, *params["stem"])                              # (B,16,16,128)

    # FusedMBConv, expand=1, stride=1 (residual fused into the conv epilogue)
    x = conv3x3_s1_residual(x, *params["b1"], residual=x)           # (B,16,16,128)

    # FusedMBConv, expand=4, stride=2
    y = conv3x3_s2(x, *params["b2_exp"])                            # (B,8,8,128)
    x = conv1x1(y, *params["b2_prj"], act=False)                    # (B,8,8,128)

    # MBConv, expand=4, stride=2, with squeeze-excitation
    y = conv1x1(x, *params["b3_exp"], act=True)                     # (B,8,8,256)
    y = dwconv3x3_s2(y, *params["b3_dw"])                           # (B,4,4,256)
    x = se_project(y, *params["b3_se"], *params["b3_prj"])          # (B,4,4,128)

    # ---- 1x1 head conv + avgpool(1) -> flatten -> classifier (Dropout=identity)
    logits_padded = head_pool_classifier(x, *params["head"], *params["cls"])
    return logits_padded[:, :num_classes]                           # (B, 2)


if __name__ == "__main__":
    key = jax.random.PRNGKey(0)
    pkey, xkey = jax.random.split(key)
    params = init_params(pkey, num_classes=2)
    x = jax.random.normal(xkey, (2, 3, 32, 32), jnp.float32)  # NCHW like PyTorch
    fwd = jax.jit(viewpoint_forward)
    out = jax.block_until_ready(fwd(params, x))
    assert out.shape == (2, 2) and out.dtype == jnp.float32
    print("KERNEL_OK")
</pallas_src>

<mosaic_0001>
module attributes {stable_mosaic.version = 11 : i64} {
  func.func @_conv3x3_wide_kernel(%arg0: i32, %arg1: memref<1x306x512xbf16, #tpu.memory_space<vmem>>, %arg2: memref<9x128x128xbf16, #tpu.memory_space<vmem>>, %arg3: memref<1x128xf32, #tpu.memory_space<vmem>>, %arg4: memref<1x272x128xbf16, #tpu.memory_space<vmem>>) attributes {dimension_semantics = [#tpu.dimension_semantics<parallel>], iteration_bounds = array<i64: 2>, scalar_prefetch = 0 : i64, scratch_operands = 0 : i64, tpu.core_type = #tpu.core_type<tc>, window_params = [{transform_indices = @transform_0, window_bounds = array<i64: 1, 306, 512>}, {pipeline_mode = #tpu.pipeline_mode<synchronous>, transform_indices = @transform_1, window_bounds = array<i64: 9, 128, 128>}, {pipeline_mode = #tpu.pipeline_mode<synchronous>, transform_indices = @transform_2, window_bounds = array<i64: 1, 128>}, {transform_indices = @transform_3, window_bounds = array<i64: 1, 272, 128>}]} {
    %cst = arith.constant 0.000000e+00 : f32
    %0 = vector.broadcast %cst : f32 to vector<272x128xf32>
    %c0 = arith.constant 0 : index
    %c0_0 = arith.constant 0 : index
    %c0_1 = arith.constant 0 : index
    %1 = vector.load %arg1[%c0, %c0_0, %c0_1] : memref<1x306x512xbf16, #tpu.memory_space<vmem>>, vector<1x272x128xbf16>
    %2 = vector.shape_cast %1 : vector<1x272x128xbf16> to vector<272x128xbf16>
    %c0_2 = arith.constant 0 : index
    %c0_3 = arith.constant 0 : index
    %c0_4 = arith.constant 0 : index
    %3 = vector.load %arg2[%c0_2, %c0_3, %c0_4] : memref<9x128x128xbf16, #tpu.memory_space<vmem>>, vector<1x128x128xbf16>
    %4 = vector.shape_cast %3 : vector<1x128x128xbf16> to vector<128x128xbf16>
    %cst_5 = arith.constant dense<0.000000e+00> : vector<272x128xf32>
    %5 = tpu.matmul %2, %4, %cst_5 {dimension_numbers = #tpu.dot_dimension_numbers<[1], [0], [0], [1], [0, 0, 1, 1], [], []>} : vector<272x128xbf16>, vector<128x128xbf16>, vector<272x128xf32> -> vector<272x128xf32>
    %6 = arith.addf %0, %5 : vector<272x128xf32>
    %c0_6 = arith.constant 0 : index
    %c0_7 = arith.constant 0 : index
    %c128 = arith.constant 128 : index
    %7 = vector.load %arg1[%c0_6, %c0_7, %c128] : memref<1x306x512xbf16, #tpu.memory_space<vmem>>, vector<1x272x128xbf16>
    %8 = vector.shape_cast %7 : vector<1x272x128xbf16> to vector<272x128xbf16>
    %c1 = arith.constant 1 : index
    %c0_8 = arith.constant 0 : index
    %c0_9 = arith.constant 0 : index
    %9 = vector.load %arg2[%c1, %c0_8, %c0_9] : memref<9x128x128xbf16, #tpu.memory_space<vmem>>, vector<1x128x128xbf16>
    %10 = vector.shape_cast %9 : vector<1x128x128xbf16> to vector<128x128xbf16>
    %cst_10 = arith.constant dense<0.000000e+00> : vector<272x128xf32>
    %11 = tpu.matmul %8, %10, %cst_10 {dimension_numbers = #tpu.dot_dimension_numbers<[1], [0], [0], [1], [0, 0, 1, 1], [], []>} : vector<272x128xbf16>, vector<128x128xbf16>, vector<272x128xf32> -> vector<272x128xf32>
    %12 = arith.addf %6, %11 : vector<272x128xf32>
    %c0_11 = arith.constant 0 : index
    %c1_12 = arith.constant 1 : index
    %c0_13 = arith.constant 0 : index
    %13 = vector.load %arg1[%c0_11, %c1_12, %c0_13] : memref<1x306x512xbf16, #tpu.memory_space<vmem>>, vector<1x272x128xbf16>
    %14 = vector.shape_cast %13 : vector<1x272x128xbf16> to vector<272x128xbf16>
    %c2 = arith.constant 2 : index
    %c0_14 = arith.constant 0 : index
    %c0_15 = arith.constant 0 : index
    %15 = vector.load %arg2[%c2, %c0_14, %c0_15] : memref<9x128x128xbf16, #tpu.memory_space<vmem>>, vector<1x128x128xbf16>
    %16 = vector.shape_cast %15 : vector<1x128x128xbf16> to vector<128x128xbf16>
    %cst_16 = arith.constant dense<0.000000e+00> : vector<272x128xf32>
    %17 = tpu.matmul %14, %16, %cst_16 {dimension_numbers = #tpu.dot_dimension_numbers<[1], [0], [0], [1], [0, 0, 1, 1], [], []>} : vector<272x128xbf16>, vector<128x128xbf16>, vector<272x128xf32> -> vector<272x128xf32>
    %18 = arith.addf %12, %17 : vector<272x128xf32>
    %c0_17 = arith.constant 0 : index
    %c0_18 = arith.constant 0 : index
    %c256 = arith.constant 256 : index
    %19 = vector.load %arg1[%c0_17, %c0_18, %c256] : memref<1x306x512xbf16, #tpu.memory_space<vmem>>, vector<1x272x128xbf16>
    %20 = vector.shape_cast %19 : vector<1x272x128xbf16> to vector<272x128xbf16>
    %c3 = arith.constant 3 : index
    %c0_19 = arith.constant 0 : index
    %c0_20 = arith.constant 0 : index
    %21 = vector.load %arg2[%c3, %c0_19, %c0_20] : memref<9x128x128xbf16, #tpu.memory_space<vmem>>, vector<1x128x128xbf16>
    %22 = vector.shape_cast %21 : vector<1x128x128xbf16> to vector<128x128xbf16>
    %cst_21 = arith.constant dense<0.000000e+00> : vector<272x128xf32>
    %23 = tpu.matmul %20, %22, %cst_21 {dimension_numbers = #tpu.dot_dimension_numbers<[1], [0], [0], [1], [0, 0, 1, 1], [], []>} : vector<272x128xbf16>, vector<128x128xbf16>, vector<272x128xf32> -> vector<272x128xf32>
    %24 = arith.addf %18, %23 : vector<272x128xf32>
    %c0_22 = arith.constant 0 : index
    %c0_23 = arith.constant 0 : index
    %c384 = arith.constant 384 : index
    %25 = vector.load %arg1[%c0_22, %c0_23, %c384] : memref<1x306x512xbf16, #tpu.memory_space<vmem>>, vector<1x272x128xbf16>
    %26 = vector.shape_cast %25 : vector<1x272x128xbf16> to vector<272x128xbf16>
    %c4 = arith.constant 4 : index
    %c0_24 = arith.constant 0 : index
    %c0_25 = arith.constant 0 : index
    %27 = vector.load %arg2[%c4, %c0_24, %c0_25] : memref<9x128x128xbf16, #tpu.memory_space<vmem>>, vector<1x128x128xbf16>
    %28 = vector.shape_cast %27 : vector<1x128x128xbf16> to vector<128x128xbf16>
    %cst_26 = arith.constant dense<0.000000e+00> : vector<272x128xf32>
    %29 = tpu.matmul %26, %28, %cst_26 {dimension_numbers = #tpu.dot_dimension_numbers<[1], [0], [0], [1], [0, 0, 1, 1], [], []>} : vector<272x128xbf16>, vector<128x128xbf16>, vector<272x128xf32> -> vector<272x128xf32>
    %30 = arith.addf %24, %29 : vector<272x128xf32>
    %c0_27 = arith.constant 0 : index
    %c1_28 = arith.constant 1 : index
    %c256_29 = arith.constant 256 : index
    %31 = vector.load %arg1[%c0_27, %c1_28, %c256_29] : memref<1x306x512xbf16, #tpu.memory_space<vmem>>, vector<1x272x128xbf16>
    %32 = vector.shape_cast %31 : vector<1x272x128xbf16> to vector<272x128xbf16>
    %c5 = arith.constant 5 : index
    %c0_30 = arith.constant 0 : index
    %c0_31 = arith.constant 0 : index
    %33 = vector.load %arg2[%c5, %c0_30, %c0_31] : memref<9x128x128xbf16, #tpu.memory_space<vmem>>, vector<1x128x128xbf16>
    %34 = vector.shape_cast %33 : vector<1x128x128xbf16> to vector<128x128xbf16>
    %cst_32 = arith.constant dense<0.000000e+00> : vector<272x128xf32>
    %35 = tpu.matmul %32, %34, %cst_32 {dimension_numbers = #tpu.dot_dimension_numbers<[1], [0], [0], [1], [0, 0, 1, 1], [], []>} : vector<272x128xbf16>, vector<128x128xbf16>, vector<272x128xf32> -> vector<272x128xf32>
    %36 = arith.addf %30, %35 : vector<272x128xf32>
    %c0_33 = arith.constant 0 : index
    %c17 = arith.constant 17 : index
    %c0_34 = arith.constant 0 : index
    %37 = vector.load %arg1[%c0_33, %c17, %c0_34] : memref<1x306x512xbf16, #tpu.memory_space<vmem>>, vector<1x272x128xbf16>
    %38 = vector.shape_cast %37 : vector<1x272x128xbf16> to vector<272x128xbf16>
    %c6 = arith.constant 6 : index
    %c0_35 = arith.constant 0 : index
    %c0_36 = arith.constant 0 : index
    %39 = vector.load %arg2[%c6, %c0_35, %c0_36] : memref<9x128x128xbf16, #tpu.memory_space<vmem>>, vector<1x128x128xbf16>
    %40 = vector.shape_cast %39 : vector<1x128x128xbf16> to vector<128x128xbf16>
    %cst_37 = arith.constant dense<0.000000e+00> : vector<272x128xf32>
    %41 = tpu.matmul %38, %40, %cst_37 {dimension_numbers = #tpu.dot_dimension_numbers<[1], [0], [0], [1], [0, 0, 1, 1], [], []>} : vector<272x128xbf16>, vector<128x128xbf16>, vector<272x128xf32> -> vector<272x128xf32>
    %42 = arith.addf %36, %41 : vector<272x128xf32>
    %c0_38 = arith.constant 0 : index
    %c17_39 = arith.constant 17 : index
    %c128_40 = arith.constant 128 : index
    %43 = vector.load %arg1[%c0_38, %c17_39, %c128_40] : memref<1x306x512xbf16, #tpu.memory_space<vmem>>, vector<1x272x128xbf16>
    %44 = vector.shape_cast %43 : vector<1x272x128xbf16> to vector<272x128xbf16>
    %c7 = arith.constant 7 : index
    %c0_41 = arith.constant 0 : index
    %c0_42 = arith.constant 0 : index
    %45 = vector.load %arg2[%c7, %c0_41, %c0_42] : memref<9x128x128xbf16, #tpu.memory_space<vmem>>, vector<1x128x128xbf16>
    %46 = vector.shape_cast %45 : vector<1x128x128xbf16> to vector<128x128xbf16>
    %cst_43 = arith.constant dense<0.000000e+00> : vector<272x128xf32>
    %47 = tpu.matmul %44, %46, %cst_43 {dimension_numbers = #tpu.dot_dimension_numbers<[1], [0], [0], [1], [0, 0, 1, 1], [], []>} : vector<272x128xbf16>, vector<128x128xbf16>, vector<272x128xf32> -> vector<272x128xf32>
    %48 = arith.addf %42, %47 : vector<272x128xf32>
    %c0_44 = arith.constant 0 : index
    %c18 = arith.constant 18 : index
    %c0_45 = arith.constant 0 : index
    %49 = vector.load %arg1[%c0_44, %c18, %c0_45] : memref<1x306x512xbf16, #tpu.memory_space<vmem>>, vector<1x272x128xbf16>
    %50 = vector.shape_cast %49 : vector<1x272x128xbf16> to vector<272x128xbf16>
    %c8 = arith.constant 8 : index
    %c0_46 = arith.constant 0 : index
    %c0_47 = arith.constant 0 : index
    %51 = vector.load %arg2[%c8, %c0_46, %c0_47] : memref<9x128x128xbf16, #tpu.memory_space<vmem>>, vector<1x128x128xbf16>
    %52 = vector.shape_cast %51 : vector<1x128x128xbf16> to vector<128x128xbf16>
    %cst_48 = arith.constant dense<0.000000e+00> : vector<272x128xf32>
    %53 = tpu.matmul %50, %52, %cst_48 {dimension_numbers = #tpu.dot_dimension_numbers<[1], [0], [0], [1], [0, 0, 1, 1], [], []>} : vector<272x128xbf16>, vector<128x128xbf16>, vector<272x128xf32> -> vector<272x128xf32>
    %54 = arith.addf %48, %53 : vector<272x128xf32>
    %c0_49 = arith.constant 0 : index
    %c0_50 = arith.constant 0 : index
    %55 = vector.load %arg3[%c0_49, %c0_50] : memref<1x128xf32, #tpu.memory_space<vmem>>, vector<1x128xf32>
    %56 = vector.broadcast %55 : vector<1x128xf32> to vector<272x128xf32>
    %57 = arith.addf %54, %56 : vector<272x128xf32>
    %58 = arith.negf %57 : vector<272x128xf32>
    %59 = math.exp %58 : vector<272x128xf32>
    %cst_51 = arith.constant 1.000000e+00 : f32
    %60 = vector.broadcast %cst_51 : f32 to vector<272x128xf32>
    %61 = arith.addf %60, %59 : vector<272x128xf32>
    %62 = arith.divf %60, %61 : vector<272x128xf32>
    %63 = arith.mulf %57, %62 : vector<272x128xf32>
    %64 = arith.truncf %63 : vector<272x128xf32> to vector<272x128xbf16>
    %c0_52 = arith.constant 0 : index
    %c0_53 = arith.constant 0 : index
    %c0_54 = arith.constant 0 : index
    %65 = vector.load %arg4[%c0_52, %c0_53, %c0_54] : memref<1x272x128xbf16, #tpu.memory_space<vmem>>, vector<1x272x128xbf16>
    %66 = vector.shape_cast %65 : vector<1x272x128xbf16> to vector<272x128xbf16>
    %67 = vector.shape_cast %64 : vector<272x128xbf16> to vector<1x272x128xbf16>
    tpu.vector_store %arg4[%c0_52, %c0_53, %c0_54], %67 {strides = array<i32>} : memref<1x272x128xbf16, #tpu.memory_space<vmem>>, vector<1x272x128xbf16>,
    return
  }
  func.func @transform_0(%arg0: i32) -> (i32, i32, i32) {
    %c0_i32 = arith.constant 0 : i32
    %c0_i32_0 = arith.constant 0 : i32
    %c0_i32_1 = arith.constant 0 : i32
    return %arg0, %c0_i32, %c0_i32_0 : i32, i32, i32
  }
  func.func @transform_1(%arg0: i32) -> (i32, i32, i32) {
    %c0_i32 = arith.constant 0 : i32
    %c0_i32_0 = arith.constant 0 : i32
    %c0_i32_1 = arith.constant 0 : i32
    %c0_i32_2 = arith.constant 0 : i32
    return %c0_i32, %c0_i32_0, %c0_i32_1 : i32, i32, i32
  }
  func.func @transform_2(%arg0: i32) -> (i32, i32) {
    %c0_i32 = arith.constant 0 : i32
    %c0_i32_0 = arith.constant 0 : i32
    %c0_i32_1 = arith.constant 0 : i32
    return %c0_i32, %c0_i32_0 : i32, i32
  }
  func.func @transform_3(%arg0: i32) -> (i32, i32, i32) {
    %c0_i32 = arith.constant 0 : i32
    %c0_i32_0 = arith.constant 0 : i32
    %c0_i32_1 = arith.constant 0 : i32
    return %arg0, %c0_i32, %c0_i32_0 : i32, i32, i32
  }
}

module attributes {stable_mosaic.version = 11 : i64} {
  func.func @_conv3x3_wide_kernel(%arg0: i32, %arg1: memref<1x342x128xbf16, #tpu.memory_space<vmem>>, %arg2: memref<9x128x128xbf16, #tpu.memory_space<vmem>>, %arg3: memref<1x128xf32, #tpu.memory_space<vmem>>, %arg4: memref<1x288x128xbf16, #tpu.memory_space<vmem>>, %arg5: memref<1x288x128xbf16, #tpu.memory_space<vmem>>) attributes {dimension_semantics = [#tpu.dimension_semantics<parallel>], iteration_bounds = array<i64: 2>, scalar_prefetch = 0 : i64, scratch_operands = 0 : i64, tpu.core_type = #tpu.core_type<tc>, window_params = [{transform_indices = @transform_0, window_bounds = array<i64: 1, 342, 128>}, {pipeline_mode = #tpu.pipeline_mode<synchronous>, transform_indices = @transform_1, window_bounds = array<i64: 9, 128, 128>}, {pipeline_mode = #tpu.pipeline_mode<synchronous>, transform_indices = @transform_2, window_bounds = array<i64: 1, 128>}, {transform_indices = @transform_3, window_bounds = array<i64: 1, 288, 128>}, {transform_indices = @transform_4, window_bounds = array<i64: 1, 288, 128>}]} {
    %cst = arith.constant 0.000000e+00 : f32
    %0 = vector.broadcast %cst : f32 to vector<288x128xf32>
    %c0 = arith.constant 0 : index
    %c0_0 = arith.constant 0 : index
    %c0_1 = arith.constant 0 : index
    %1 = vector.load %arg1[%c0, %c0_0, %c0_1] : memref<1x342x128xbf16, #tpu.memory_space<vmem>>, vector<1x288x128xbf16>
    %2 = vector.shape_cast %1 : vector<1x288x128xbf16> to vector<288x128xbf16>
    %c0_2 = arith.constant 0 : index
    %c0_3 = arith.constant 0 : index
    %c0_4 = arith.constant 0 : index
    %3 = vector.load %arg2[%c0_2, %c0_3, %c0_4] : memref<9x128x128xbf16, #tpu.memory_space<vmem>>, vector<1x128x128xbf16>
    %4 = vector.shape_cast %3 : vector<1x128x128xbf16> to vector<128x128xbf16>
    %cst_5 = arith.constant dense<0.000000e+00> : vector<288x128xf32>
    %5 = tpu.matmul %2, %4, %cst_5 {dimension_numbers = #tpu.dot_dimension_numbers<[1], [0], [0], [1], [0, 0, 1, 1], [], []>} : vector<288x128xbf16>, vector<128x128xbf16>, vector<288x128xf32> -> vector<288x128xf32>
    %6 = arith.addf %0, %5 : vector<288x128xf32>
    %c0_6 = arith.constant 0 : index
    %c1 = arith.constant 1 : index
    %c0_7 = arith.constant 0 : index
    %7 = vector.load %arg1[%c0_6, %c1, %c0_7] : memref<1x342x128xbf16, #tpu.memory_space<vmem>>, vector<1x288x128xbf16>
    %8 = vector.shape_cast %7 : vector<1x288x128xbf16> to vector<288x128xbf16>
    %c1_8 = arith.constant 1 : index
    %c0_9 = arith.constant 0 : index
    %c0_10 = arith.constant 0 : index
    %9 = vector.load %arg2[%c1_8, %c0_9, %c0_10] : memref<9x128x128xbf16, #tpu.memory_space<vmem>>, vector<1x128x128xbf16>
    %10 = vector.shape_cast %9 : vector<1x128x128xbf16> to vector<128x128xbf16>
    %cst_11 = arith.constant dense<0.000000e+00> : vector<288x128xf32>
    %11 = tpu.matmul %8, %10, %cst_11 {dimension_numbers = #tpu.dot_dimension_numbers<[1], [0], [0], [1], [0, 0, 1, 1], [], []>} : vector<288x128xbf16>, vector<128x128xbf16>, vector<288x128xf32> -> vector<288x128xf32>
    %12 = arith.addf %6, %11 : vector<288x128xf32>
    %c0_12 = arith.constant 0 : index
    %c2 = arith.constant 2 : index
    %c0_13 = arith.constant 0 : index
    %13 = vector.load %arg1[%c0_12, %c2, %c0_13] : memref<1x342x128xbf16, #tpu.memory_space<vmem>>, vector<1x288x128xbf16>
    %14 = vector.shape_cast %13 : vector<1x288x128xbf16> to vector<288x128xbf16>
    %c2_14 = arith.constant 2 : index
    %c0_15 = arith.constant 0 : index
    %c0_16 = arith.constant 0 : index
    %15 = vector.load %arg2[%c2_14, %c0_15, %c0_16] : memref<9x128x128xbf16, #tpu.memory_space<vmem>>, vector<1x128x128xbf16>
    %16 = vector.shape_cast %15 : vector<1x128x128xbf16> to vector<128x128xbf16>
    %cst_17 = arith.constant dense<0.000000e+00> : vector<288x128xf32>
    %17 = tpu.matmul %14, %16, %cst_17 {dimension_numbers = #tpu.dot_dimension_numbers<[1], [0], [0], [1], [0, 0, 1, 1], [], []>} : vector<288x128xbf16>, vector<128x128xbf16>, vector<288x128xf32> -> vector<288x128xf32>
    %18 = arith.addf %12, %17 : vector<288x128xf32>
    %c0_18 = arith.constant 0 : index
    %c18 = arith.constant 18 : index
    %c0_19 = arith.constant 0 : index
    %19 = vector.load %arg1[%c0_18, %c18, %c0_19] : memref<1x342x128xbf16, #tpu.memory_space<vmem>>, vector<1x288x128xbf16>
    %20 = vector.shape_cast %19 : vector<1x288x128xbf16> to vector<288x128xbf16>
    %c3 = arith.constant 3 : index
    %c0_20 = arith.constant 0 : index
    %c0_21 = arith.constant 0 : index
    %21 = vector.load %arg2[%c3, %c0_20, %c0_21] : memref<9x128x128xbf16, #tpu.memory_space<vmem>>, vector<1x128x128xbf16>
    %22 = vector.shape_cast %21 : vector<1x128x128xbf16> to vector<128x128xbf16>
    %cst_22 = arith.constant dense<0.000000e+00> : vector<288x128xf32>
    %23 = tpu.matmul %20, %22, %cst_22 {dimension_numbers = #tpu.dot_dimension_numbers<[1], [0], [0], [1], [0, 0, 1, 1], [], []>} : vector<288x128xbf16>, vector<128x128xbf16>, vector<288x128xf32> -> vector<288x128xf32>
    %24 = arith.addf %18, %23 : vector<288x128xf32>
    %c0_23 = arith.constant 0 : index
    %c19 = arith.constant 19 : index
    %c0_24 = arith.constant 0 : index
    %25 = vector.load %arg1[%c0_23, %c19, %c0_24] : memref<1x342x128xbf16, #tpu.memory_space<vmem>>, vector<1x288x128xbf16>
    %26 = vector.shape_cast %25 : vector<1x288x128xbf16> to vector<288x128xbf16>
    %c4 = arith.constant 4 : index
    %c0_25 = arith.constant 0 : index
    %c0_26 = arith.constant 0 : index
    %27 = vector.load %arg2[%c4, %c0_25, %c0_26] : memref<9x128x128xbf16, #tpu.memory_space<vmem>>, vector<1x128x128xbf16>
    %28 = vector.shape_cast %27 : vector<1x128x128xbf16> to vector<128x128xbf16>
    %cst_27 = arith.constant dense<0.000000e+00> : vector<288x128xf32>
    %29 = tpu.matmul %26, %28, %cst_27 {dimension_numbers = #tpu.dot_dimension_numbers<[1], [0], [0], [1], [0, 0, 1, 1], [], []>} : vector<288x128xbf16>, vector<128x128xbf16>, vector<288x128xf32> -> vector<288x128xf32>
    %30 = arith.addf %24, %29 : vector<288x128xf32>
    %c0_28 = arith.constant 0 : index
    %c20 = arith.constant 20 : index
    %c0_29 = arith.constant 0 : index
    %31 = vector.load %arg1[%c0_28, %c20, %c0_29] : memref<1x342x128xbf16, #tpu.memory_space<vmem>>, vector<1x288x128xbf16>
    %32 = vector.shape_cast %31 : vector<1x288x128xbf16> to vector<288x128xbf16>
    %c5 = arith.constant 5 : index
    %c0_30 = arith.constant 0 : index
    %c0_31 = arith.constant 0 : index
    %33 = vector.load %arg2[%c5, %c0_30, %c0_31] : memref<9x128x128xbf16, #tpu.memory_space<vmem>>, vector<1x128x128xbf16>
    %34 = vector.shape_cast %33 : vector<1x128x128xbf16> to vector<128x128xbf16>
    %cst_32 = arith.constant dense<0.000000e+00> : vector<288x128xf32>
    %35 = tpu.matmul %32, %34, %cst_32 {dimension_numbers = #tpu.dot_dimension_numbers<[1], [0], [0], [1], [0, 0, 1, 1], [], []>} : vector<288x128xbf16>, vector<128x128xbf16>, vector<288x128xf32> -> vector<288x128xf32>
    %36 = arith.addf %30, %35 : vector<288x128xf32>
    %c0_33 = arith.constant 0 : index
    %c36 = arith.constant 36 : index
    %c0_34 = arith.constant 0 : index
    %37 = vector.load %arg1[%c0_33, %c36, %c0_34] : memref<1x342x128xbf16, #tpu.memory_space<vmem>>, vector<1x288x128xbf16>
    %38 = vector.shape_cast %37 : vector<1x288x128xbf16> to vector<288x128xbf16>
    %c6 = arith.constant 6 : index
    %c0_35 = arith.constant 0 : index
    %c0_36 = arith.constant 0 : index
    %39 = vector.load %arg2[%c6, %c0_35, %c0_36] : memref<9x128x128xbf16, #tpu.memory_space<vmem>>, vector<1x128x128xbf16>
    %40 = vector.shape_cast %39 : vector<1x128x128xbf16> to vector<128x128xbf16>
    %cst_37 = arith.constant dense<0.000000e+00> : vector<288x128xf32>
    %41 = tpu.matmul %38, %40, %cst_37 {dimension_numbers = #tpu.dot_dimension_numbers<[1], [0], [0], [1], [0, 0, 1, 1], [], []>} : vector<288x128xbf16>, vector<128x128xbf16>, vector<288x128xf32> -> vector<288x128xf32>
    %42 = arith.addf %36, %41 : vector<288x128xf32>
    %c0_38 = arith.constant 0 : index
    %c37 = arith.constant 37 : index
    %c0_39 = arith.constant 0 : index
    %43 = vector.load %arg1[%c0_38, %c37, %c0_39] : memref<1x342x128xbf16, #tpu.memory_space<vmem>>, vector<1x288x128xbf16>
    %44 = vector.shape_cast %43 : vector<1x288x128xbf16> to vector<288x128xbf16>
    %c7 = arith.constant 7 : index
    %c0_40 = arith.constant 0 : index
    %c0_41 = arith.constant 0 : index
    %45 = vector.load %arg2[%c7, %c0_40, %c0_41] : memref<9x128x128xbf16, #tpu.memory_space<vmem>>, vector<1x128x128xbf16>
    %46 = vector.shape_cast %45 : vector<1x128x128xbf16> to vector<128x128xbf16>
    %cst_42 = arith.constant dense<0.000000e+00> : vector<288x128xf32>
    %47 = tpu.matmul %44, %46, %cst_42 {dimension_numbers = #tpu.dot_dimension_numbers<[1], [0], [0], [1], [0, 0, 1, 1], [], []>} : vector<288x128xbf16>, vector<128x128xbf16>, vector<288x128xf32> -> vector<288x128xf32>
    %48 = arith.addf %42, %47 : vector<288x128xf32>
    %c0_43 = arith.constant 0 : index
    %c38 = arith.constant 38 : index
    %c0_44 = arith.constant 0 : index
    %49 = vector.load %arg1[%c0_43, %c38, %c0_44] : memref<1x342x128xbf16, #tpu.memory_space<vmem>>, vector<1x288x128xbf16>
    %50 = vector.shape_cast %49 : vector<1x288x128xbf16> to vector<288x128xbf16>
    %c8 = arith.constant 8 : index
    %c0_45 = arith.constant 0 : index
    %c0_46 = arith.constant 0 : index
    %51 = vector.load %arg2[%c8, %c0_45, %c0_46] : memref<9x128x128xbf16, #tpu.memory_space<vmem>>, vector<1x128x128xbf16>
    %52 = vector.shape_cast %51 : vector<1x128x128xbf16> to vector<128x128xbf16>
    %cst_47 = arith.constant dense<0.000000e+00> : vector<288x128xf32>
    %53 = tpu.matmul %50, %52, %cst_47 {dimension_numbers = #tpu.dot_dimension_numbers<[1], [0], [0], [1], [0, 0, 1, 1], [], []>} : vector<288x128xbf16>, vector<128x128xbf16>, vector<288x128xf32> -> vector<288x128xf32>
    %54 = arith.addf %48, %53 : vector<288x128xf32>
    %c0_48 = arith.constant 0 : index
    %c0_49 = arith.constant 0 : index
    %55 = vector.load %arg3[%c0_48, %c0_49] : memref<1x128xf32, #tpu.memory_space<vmem>>, vector<1x128xf32>
    %56 = vector.broadcast %55 : vector<1x128xf32> to vector<288x128xf32>
    %57 = arith.addf %54, %56 : vector<288x128xf32>
    %58 = arith.negf %57 : vector<288x128xf32>
    %59 = math.exp %58 : vector<288x128xf32>
    %cst_50 = arith.constant 1.000000e+00 : f32
    %60 = vector.broadcast %cst_50 : f32 to vector<288x128xf32>
    %61 = arith.addf %60, %59 : vector<288x128xf32>
    %62 = arith.divf %60, %61 : vector<288x128xf32>
    %63 = arith.mulf %57, %62 : vector<288x128xf32>
    %c0_51 = arith.constant 0 : index
    %c0_52 = arith.constant 0 : index
    %c0_53 = arith.constant 0 : index
    %64 = vector.load %arg4[%c0_51, %c0_52, %c0_53] : memref<1x288x128xbf16, #tpu.memory_space<vmem>>, vector<1x288x128xbf16>
    %65 = vector.shape_cast %64 : vector<1x288x128xbf16> to vector<288x128xbf16>
    %66 = arith.extf %65 : vector<288x128xbf16> to vector<288x128xf32>
    %67 = arith.addf %63, %66 : vector<288x128xf32>
    %68 = arith.truncf %67 : vector<288x128xf32> to vector<288x128xbf16>
    %c0_54 = arith.constant 0 : index
    %c0_55 = arith.constant 0 : index
    %c0_56 = arith.constant 0 : index
    %69 = vector.load %arg5[%c0_54, %c0_55, %c0_56] : memref<1x288x128xbf16, #tpu.memory_space<vmem>>, vector<1x288x128xbf16>
    %70 = vector.shape_cast %69 : vector<1x288x128xbf16> to vector<288x128xbf16>
    %71 = vector.shape_cast %68 : vector<288x128xbf16> to vector<1x288x128xbf16>
    tpu.vector_store %arg5[%c0_54, %c0_55, %c0_56], %71 {strides = array<i32>} : memref<1x288x128xbf16, #tpu.memory_space<vmem>>, vector<1x288x128xbf16>,
    return
  }
  func.func @transform_0(%arg0: i32) -> (i32, i32, i32) {
    %c0_i32 = arith.constant 0 : i32
    %c0_i32_0 = arith.constant 0 : i32
    %c0_i32_1 = arith.constant 0 : i32
    return %arg0, %c0_i32, %c0_i32_0 : i32, i32, i32
  }
  func.func @transform_1(%arg0: i32) -> (i32, i32, i32) {
    %c0_i32 = arith.constant 0 : i32
    %c0_i32_0 = arith.constant 0 : i32
    %c0_i32_1 = arith.constant 0 : i32
    %c0_i32_2 = arith.constant 0 : i32
    return %c0_i32, %c0_i32_0, %c0_i32_1 : i32, i32, i32
  }
  func.func @transform_2(%arg0: i32) -> (i32, i32) {
    %c0_i32 = arith.constant 0 : i32
    %c0_i32_0 = arith.constant 0 : i32
    %c0_i32_1 = arith.constant 0 : i32
    return %c0_i32, %c0_i32_0 : i32, i32
  }
  func.func @transform_3(%arg0: i32) -> (i32, i32, i32) {
    %c0_i32 = arith.constant 0 : i32
    %c0_i32_0 = arith.constant 0 : i32
    %c0_i32_1 = arith.constant 0 : i32
    return %arg0, %c0_i32, %c0_i32_0 : i32, i32, i32
  }
  func.func @transform_4(%arg0: i32) -> (i32, i32, i32) {
    %c0_i32 = arith.constant 0 : i32
    %c0_i32_0 = arith.constant 0 : i32
    %c0_i32_1 = arith.constant 0 : i32
    return %arg0, %c0_i32, %c0_i32_0 : i32, i32, i32
  }
}

module attributes {stable_mosaic.version = 11 : i64} {
  func.func @_conv3x3_wide_kernel(%arg0: i32, %arg1: memref<1x90x512xbf16, #tpu.memory_space<vmem>>, %arg2: memref<9x128x128xbf16, #tpu.memory_space<vmem>>, %arg3: memref<1x128xf32, #tpu.memory_space<vmem>>, %arg4: memref<1x72x128xbf16, #tpu.memory_space<vmem>>) attributes {dimension_semantics = [#tpu.dimension_semantics<parallel>], iteration_bounds = array<i64: 2>, scalar_prefetch = 0 : i64, scratch_operands = 0 : i64, tpu.core_type = #tpu.core_type<tc>, window_params = [{transform_indices = @transform_0, window_bounds = array<i64: 1, 90, 512>}, {pipeline_mode = #tpu.pipeline_mode<synchronous>, transform_indices = @transform_1, window_bounds = array<i64: 9, 128, 128>}, {pipeline_mode = #tpu.pipeline_mode<synchronous>, transform_indices = @transform_2, window_bounds = array<i64: 1, 128>}, {transform_indices = @transform_3, window_bounds = array<i64: 1, 72, 128>}]} {
    %cst = arith.constant 0.000000e+00 : f32
    %0 = vector.broadcast %cst : f32 to vector<72x128xf32>
    %c0 = arith.constant 0 : index
    %c0_0 = arith.constant 0 : index
    %c0_1 = arith.constant 0 : index
    %1 = vector.load %arg1[%c0, %c0_0, %c0_1] : memref<1x90x512xbf16, #tpu.memory_space<vmem>>, vector<1x72x128xbf16>
    %2 = vector.shape_cast %1 : vector<1x72x128xbf16> to vector<72x128xbf16>
    %c0_2 = arith.constant 0 : index
    %c0_3 = arith.constant 0 : index
    %c0_4 = arith.constant 0 : index
    %3 = vector.load %arg2[%c0_2, %c0_3, %c0_4] : memref<9x128x128xbf16, #tpu.memory_space<vmem>>, vector<1x128x128xbf16>
    %4 = vector.shape_cast %3 : vector<1x128x128xbf16> to vector<128x128xbf16>
    %cst_5 = arith.constant dense<0.000000e+00> : vector<72x128xf32>
    %5 = tpu.matmul %2, %4, %cst_5 {dimension_numbers = #tpu.dot_dimension_numbers<[1], [0], [0], [1], [0, 0, 1, 1], [], []>} : vector<72x128xbf16>, vector<128x128xbf16>, vector<72x128xf32> -> vector<72x128xf32>
    %6 = arith.addf %0, %5 : vector<72x128xf32>
    %c0_6 = arith.constant 0 : index
    %c0_7 = arith.constant 0 : index
    %c128 = arith.constant 128 : index
    %7 = vector.load %arg1[%c0_6, %c0_7, %c128] : memref<1x90x512xbf16, #tpu.memory_space<vmem>>, vector<1x72x128xbf16>
    %8 = vector.shape_cast %7 : vector<1x72x128xbf16> to vector<72x128xbf16>
    %c1 = arith.constant 1 : index
    %c0_8 = arith.constant 0 : index
    %c0_9 = arith.constant 0 : index
    %9 = vector.load %arg2[%c1, %c0_8, %c0_9] : memref<9x128x128xbf16, #tpu.memory_space<vmem>>, vector<1x128x128xbf16>
    %10 = vector.shape_cast %9 : vector<1x128x128xbf16> to vector<128x128xbf16>
    %cst_10 = arith.constant dense<0.000000e+00> : vector<72x128xf32>
    %11 = tpu.matmul %8, %10, %cst_10 {dimension_numbers = #tpu.dot_dimension_numbers<[1], [0], [0], [1], [0, 0, 1, 1], [], []>} : vector<72x128xbf16>, vector<128x128xbf16>, vector<72x128xf32> -> vector<72x128xf32>
    %12 = arith.addf %6, %11 : vector<72x128xf32>
    %c0_11 = arith.constant 0 : index
    %c1_12 = arith.constant 1 : index
    %c0_13 = arith.constant 0 : index
    %13 = vector.load %arg1[%c0_11, %c1_12, %c0_13] : memref<1x90x512xbf16, #tpu.memory_space<vmem>>, vector<1x72x128xbf16>
    %14 = vector.shape_cast %13 : vector<1x72x128xbf16> to vector<72x128xbf16>
    %c2 = arith.constant 2 : index
    %c0_14 = arith.constant 0 : index
    %c0_15 = arith.constant 0 : index
    %15 = vector.load %arg2[%c2, %c0_14, %c0_15] : memref<9x128x128xbf16, #tpu.memory_space<vmem>>, vector<1x128x128xbf16>
    %16 = vector.shape_cast %15 : vector<1x128x128xbf16> to vector<128x128xbf16>
    %cst_16 = arith.constant dense<0.000000e+00> : vector<72x128xf32>
    %17 = tpu.matmul %14, %16, %cst_16 {dimension_numbers = #tpu.dot_dimension_numbers<[1], [0], [0], [1], [0, 0, 1, 1], [], []>} : vector<72x128xbf16>, vector<128x128xbf16>, vector<72x128xf32> -> vector<72x128xf32>
    %18 = arith.addf %12, %17 : vector<72x128xf32>
    %c0_17 = arith.constant 0 : index
    %c0_18 = arith.constant 0 : index
    %c256 = arith.constant 256 : index
    %19 = vector.load %arg1[%c0_17, %c0_18, %c256] : memref<1x90x512xbf16, #tpu.memory_space<vmem>>, vector<1x72x128xbf16>
    %20 = vector.shape_cast %19 : vector<1x72x128xbf16> to vector<72x128xbf16>
    %c3 = arith.constant 3 : index
    %c0_19 = arith.constant 0 : index
    %c0_20 = arith.constant 0 : index
    %21 = vector.load %arg2[%c3, %c0_19, %c0_20] : memref<9x128x128xbf16, #tpu.memory_space<vmem>>, vector<1x128x128xbf16>
    %22 = vector.shape_cast %21 : vector<1x128x128xbf16> to vector<128x128xbf16>
    %cst_21 = arith.constant dense<0.000000e+00> : vector<72x128xf32>
    %23 = tpu.matmul %20, %22, %cst_21 {dimension_numbers = #tpu.dot_dimension_numbers<[1], [0], [0], [1], [0, 0, 1, 1], [], []>} : vector<72x128xbf16>, vector<128x128xbf16>, vector<72x128xf32> -> vector<72x128xf32>
    %24 = arith.addf %18, %23 : vector<72x128xf32>
    %c0_22 = arith.constant 0 : index
    %c0_23 = arith.constant 0 : index
    %c384 = arith.constant 384 : index
    %25 = vector.load %arg1[%c0_22, %c0_23, %c384] : memref<1x90x512xbf16, #tpu.memory_space<vmem>>, vector<1x72x128xbf16>
    %26 = vector.shape_cast %25 : vector<1x72x128xbf16> to vector<72x128xbf16>
    %c4 = arith.constant 4 : index
    %c0_24 = arith.constant 0 : index
    %c0_25 = arith.constant 0 : index
    %27 = vector.load %arg2[%c4, %c0_24, %c0_25] : memref<9x128x128xbf16, #tpu.memory_space<vmem>>, vector<1x128x128xbf16>
    %28 = vector.shape_cast %27 : vector<1x128x128xbf16> to vector<128x128xbf16>
    %cst_26 = arith.constant dense<0.000000e+00> : vector<72x128xf32>
    %29 = tpu.matmul %26, %28, %cst_26 {dimension_numbers = #tpu.dot_dimension_numbers<[1], [0], [0], [1], [0, 0, 1, 1], [], []>} : vector<72x128xbf16>, vector<128x128xbf16>, vector<72x128xf32> -> vector<72x128xf32>
    %30 = arith.addf %24, %29 : vector<72x128xf32>
    %c0_27 = arith.constant 0 : index
    %c1_28 = arith.constant 1 : index
    %c256_29 = arith.constant 256 : index
    %31 = vector.load %arg1[%c0_27, %c1_28, %c256_29] : memref<1x90x512xbf16, #tpu.memory_space<vmem>>, vector<1x72x128xbf16>
    %32 = vector.shape_cast %31 : vector<1x72x128xbf16> to vector<72x128xbf16>
    %c5 = arith.constant 5 : index
    %c0_30 = arith.constant 0 : index
    %c0_31 = arith.constant 0 : index
    %33 = vector.load %arg2[%c5, %c0_30, %c0_31] : memref<9x128x128xbf16, #tpu.memory_space<vmem>>, vector<1x128x128xbf16>
    %34 = vector.shape_cast %33 : vector<1x128x128xbf16> to vector<128x128xbf16>
    %cst_32 = arith.constant dense<0.000000e+00> : vector<72x128xf32>
    %35 = tpu.matmul %32, %34, %cst_32 {dimension_numbers = #tpu.dot_dimension_numbers<[1], [0], [0], [1], [0, 0, 1, 1], [], []>} : vector<72x128xbf16>, vector<128x128xbf16>, vector<72x128xf32> -> vector<72x128xf32>
    %36 = arith.addf %30, %35 : vector<72x128xf32>
    %c0_33 = arith.constant 0 : index
    %c9 = arith.constant 9 : index
    %c0_34 = arith.constant 0 : index
    %37 = vector.load %arg1[%c0_33, %c9, %c0_34] : memref<1x90x512xbf16, #tpu.memory_space<vmem>>, vector<1x72x128xbf16>
    %38 = vector.shape_cast %37 : vector<1x72x128xbf16> to vector<72x128xbf16>
    %c6 = arith.constant 6 : index
    %c0_35 = arith.constant 0 : index
    %c0_36 = arith.constant 0 : index
    %39 = vector.load %arg2[%c6, %c0_35, %c0_36] : memref<9x128x128xbf16, #tpu.memory_space<vmem>>, vector<1x128x128xbf16>
    %40 = vector.shape_cast %39 : vector<1x128x128xbf16> to vector<128x128xbf16>
    %cst_37 = arith.constant dense<0.000000e+00> : vector<72x128xf32>
    %41 = tpu.matmul %38, %40, %cst_37 {dimension_numbers = #tpu.dot_dimension_numbers<[1], [0], [0], [1], [0, 0, 1, 1], [], []>} : vector<72x128xbf16>, vector<128x128xbf16>, vector<72x128xf32> -> vector<72x128xf32>
    %42 = arith.addf %36, %41 : vector<72x128xf32>
    %c0_38 = arith.constant 0 : index
    %c9_39 = arith.constant 9 : index
    %c128_40 = arith.constant 128 : index
    %43 = vector.load %arg1[%c0_38, %c9_39, %c128_40] : memref<1x90x512xbf16, #tpu.memory_space<vmem>>, vector<1x72x128xbf16>
    %44 = vector.shape_cast %43 : vector<1x72x128xbf16> to vector<72x128xbf16>
    %c7 = arith.constant 7 : index
    %c0_41 = arith.constant 0 : index
    %c0_42 = arith.constant 0 : index
    %45 = vector.load %arg2[%c7, %c0_41, %c0_42] : memref<9x128x128xbf16, #tpu.memory_space<vmem>>, vector<1x128x128xbf16>
    %46 = vector.shape_cast %45 : vector<1x128x128xbf16> to vector<128x128xbf16>
    %cst_43 = arith.constant dense<0.000000e+00> : vector<72x128xf32>
    %47 = tpu.matmul %44, %46, %cst_43 {dimension_numbers = #tpu.dot_dimension_numbers<[1], [0], [0], [1], [0, 0, 1, 1], [], []>} : vector<72x128xbf16>, vector<128x128xbf16>, vector<72x128xf32> -> vector<72x128xf32>
    %48 = arith.addf %42, %47 : vector<72x128xf32>
    %c0_44 = arith.constant 0 : index
    %c10 = arith.constant 10 : index
    %c0_45 = arith.constant 0 : index
    %49 = vector.load %arg1[%c0_44, %c10, %c0_45] : memref<1x90x512xbf16, #tpu.memory_space<vmem>>, vector<1x72x128xbf16>
    %50 = vector.shape_cast %49 : vector<1x72x128xbf16> to vector<72x128xbf16>
    %c8 = arith.constant 8 : index
    %c0_46 = arith.constant 0 : index
    %c0_47 = arith.constant 0 : index
    %51 = vector.load %arg2[%c8, %c0_46, %c0_47] : memref<9x128x128xbf16, #tpu.memory_space<vmem>>, vector<1x128x128xbf16>
    %52 = vector.shape_cast %51 : vector<1x128x128xbf16> to vector<128x128xbf16>
    %cst_48 = arith.constant dense<0.000000e+00> : vector<72x128xf32>
    %53 = tpu.matmul %50, %52, %cst_48 {dimension_numbers = #tpu.dot_dimension_numbers<[1], [0], [0], [1], [0, 0, 1, 1], [], []>} : vector<72x128xbf16>, vector<128x128xbf16>, vector<72x128xf32> -> vector<72x128xf32>
    %54 = arith.addf %48, %53 : vector<72x128xf32>
    %c0_49 = arith.constant 0 : index
    %c0_50 = arith.constant 0 : index
    %55 = vector.load %arg3[%c0_49, %c0_50] : memref<1x128xf32, #tpu.memory_space<vmem>>, vector<1x128xf32>
    %56 = vector.broadcast %55 : vector<1x128xf32> to vector<72x128xf32>
    %57 = arith.addf %54, %56 : vector<72x128xf32>
    %58 = arith.negf %57 : vector<72x128xf32>
    %59 = math.exp %58 : vector<72x128xf32>
    %cst_51 = arith.constant 1.000000e+00 : f32
    %60 = vector.broadcast %cst_51 : f32 to vector<72x128xf32>
    %61 = arith.addf %60, %59 : vector<72x128xf32>
    %62 = arith.divf %60, %61 : vector<72x128xf32>
    %63 = arith.mulf %57, %62 : vector<72x128xf32>
    %64 = arith.truncf %63 : vector<72x128xf32> to vector<72x128xbf16>
    %c0_52 = arith.constant 0 : index
    %c0_53 = arith.constant 0 : index
    %c0_54 = arith.constant 0 : index
    %65 = vector.load %arg4[%c0_52, %c0_53, %c0_54] : memref<1x72x128xbf16, #tpu.memory_space<vmem>>, vector<1x72x128xbf16>
    %66 = vector.shape_cast %65 : vector<1x72x128xbf16> to vector<72x128xbf16>
    %67 = vector.shape_cast %64 : vector<72x128xbf16> to vector<1x72x128xbf16>
    tpu.vector_store %arg4[%c0_52, %c0_53, %c0_54], %67 {strides = array<i32>} : memref<1x72x128xbf16, #tpu.memory_space<vmem>>, vector<1x72x128xbf16>,
    return
  }
  func.func @transform_0(%arg0: i32) -> (i32, i32, i32) {
    %c0_i32 = arith.constant 0 : i32
    %c0_i32_0 = arith.constant 0 : i32
    %c0_i32_1 = arith.constant 0 : i32
    return %arg0, %c0_i32, %c0_i32_0 : i32, i32, i32
  }
  func.func @transform_1(%arg0: i32) -> (i32, i32, i32) {
    %c0_i32 = arith.constant 0 : i32
    %c0_i32_0 = arith.constant 0 : i32
    %c0_i32_1 = arith.constant 0 : i32
    %c0_i32_2 = arith.constant 0 : i32
    return %c0_i32, %c0_i32_0, %c0_i32_1 : i32, i32, i32
  }
  func.func @transform_2(%arg0: i32) -> (i32, i32) {
    %c0_i32 = arith.constant 0 : i32
    %c0_i32_0 = arith.constant 0 : i32
    %c0_i32_1 = arith.constant 0 : i32
    return %c0_i32, %c0_i32_0 : i32, i32
  }
  func.func @transform_3(%arg0: i32) -> (i32, i32, i32) {
    %c0_i32 = arith.constant 0 : i32
    %c0_i32_0 = arith.constant 0 : i32
    %c0_i32_1 = arith.constant 0 : i32
    return %arg0, %c0_i32, %c0_i32_0 : i32, i32, i32
  }
}

module attributes {stable_mosaic.version = 11 : i64} {
  func.func @_mm_bias_act_kernel(%arg0: i32, %arg1: memref<128x128xbf16, #tpu.memory_space<vmem>>, %arg2: memref<128x128xbf16, #tpu.memory_space<vmem>>, %arg3: memref<1x128xf32, #tpu.memory_space<vmem>>, %arg4: memref<128x128xbf16, #tpu.memory_space<vmem>>) attributes {dimension_semantics = [#tpu.dimension_semantics<parallel>], iteration_bounds = array<i64: 1>, scalar_prefetch = 0 : i64, scratch_operands = 0 : i64, tpu.core_type = #tpu.core_type<tc>, window_params = [{transform_indices = @transform_0, window_bounds = array<i64: 128, 128>}, {pipeline_mode = #tpu.pipeline_mode<synchronous>, transform_indices = @transform_1, window_bounds = array<i64: 128, 128>}, {pipeline_mode = #tpu.pipeline_mode<synchronous>, transform_indices = @transform_2, window_bounds = array<i64: 1, 128>}, {transform_indices = @transform_3, window_bounds = array<i64: 128, 128>}]} {
    %c0 = arith.constant 0 : index
    %c0_0 = arith.constant 0 : index
    %0 = vector.load %arg1[%c0, %c0_0] : memref<128x128xbf16, #tpu.memory_space<vmem>>, vector<128x128xbf16>
    %c0_1 = arith.constant 0 : index
    %c0_2 = arith.constant 0 : index
    %1 = vector.load %arg2[%c0_1, %c0_2] : memref<128x128xbf16, #tpu.memory_space<vmem>>, vector<128x128xbf16>
    %cst = arith.constant dense<0.000000e+00> : vector<128x128xf32>
    %2 = tpu.matmul %0, %1, %cst {dimension_numbers = #tpu.dot_dimension_numbers<[1], [0], [0], [1], [0, 0, 1, 1], [], []>} : vector<128x128xbf16>, vector<128x128xbf16>, vector<128x128xf32> -> vector<128x128xf32>
    %c0_3 = arith.constant 0 : index
    %c0_4 = arith.constant 0 : index
    %3 = vector.load %arg3[%c0_3, %c0_4] : memref<1x128xf32, #tpu.memory_space<vmem>>, vector<1x128xf32>
    %4 = vector.broadcast %3 : vector<1x128xf32> to vector<128x128xf32>
    %5 = arith.addf %2, %4 : vector<128x128xf32>
    %6 = arith.truncf %5 : vector<128x128xf32> to vector<128x128xbf16>
    %c0_5 = arith.constant 0 : index
    %c0_6 = arith.constant 0 : index
    %7 = vector.load %arg4[%c0_5, %c0_6] : memref<128x128xbf16, #tpu.memory_space<vmem>>, vector<128x128xbf16>
    tpu.vector_store %arg4[%c0_5, %c0_6], %6 {strides = array<i32>} : memref<128x128xbf16, #tpu.memory_space<vmem>>, vector<128x128xbf16>,
    return
  }
  func.func @transform_0(%arg0: i32) -> (i32, i32) {
    %c0_i32 = arith.constant 0 : i32
    %c0_i32_0 = arith.constant 0 : i32
    return %arg0, %c0_i32 : i32, i32
  }
  func.func @transform_1(%arg0: i32) -> (i32, i32) {
    %c0_i32 = arith.constant 0 : i32
    %c0_i32_0 = arith.constant 0 : i32
    %c0_i32_1 = arith.constant 0 : i32
    return %c0_i32, %c0_i32_0 : i32, i32
  }
  func.func @transform_2(%arg0: i32) -> (i32, i32) {
    %c0_i32 = arith.constant 0 : i32
    %c0_i32_0 = arith.constant 0 : i32
    %c0_i32_1 = arith.constant 0 : i32
    return %c0_i32, %c0_i32_0 : i32, i32
  }
  func.func @transform_3(%arg0: i32) -> (i32, i32) {
    %c0_i32 = arith.constant 0 : i32
    %c0_i32_0 = arith.constant 0 : i32
    return %arg0, %c0_i32 : i32, i32
  }
}

module attributes {stable_mosaic.version = 11 : i64} {
  func.func @_mm_bias_act_kernel(%arg0: i32, %arg1: memref<128x128xbf16, #tpu.memory_space<vmem>>, %arg2: memref<128x256xbf16, #tpu.memory_space<vmem>>, %arg3: memref<1x256xf32, #tpu.memory_space<vmem>>, %arg4: memref<128x256xbf16, #tpu.memory_space<vmem>>) attributes {dimension_semantics = [#tpu.dimension_semantics<parallel>], iteration_bounds = array<i64: 1>, scalar_prefetch = 0 : i64, scratch_operands = 0 : i64, tpu.core_type = #tpu.core_type<tc>, window_params = [{transform_indices = @transform_0, window_bounds = array<i64: 128, 128>}, {pipeline_mode = #tpu.pipeline_mode<synchronous>, transform_indices = @transform_1, window_bounds = array<i64: 128, 256>}, {pipeline_mode = #tpu.pipeline_mode<synchronous>, transform_indices = @transform_2, window_bounds = array<i64: 1, 256>}, {transform_indices = @transform_3, window_bounds = array<i64: 128, 256>}]} {
    %c0 = arith.constant 0 : index
    %c0_0 = arith.constant 0 : index
    %0 = vector.load %arg1[%c0, %c0_0] : memref<128x128xbf16, #tpu.memory_space<vmem>>, vector<128x128xbf16>
    %c0_1 = arith.constant 0 : index
    %c0_2 = arith.constant 0 : index
    %1 = vector.load %arg2[%c0_1, %c0_2] : memref<128x256xbf16, #tpu.memory_space<vmem>>, vector<128x256xbf16>
    %cst = arith.constant dense<0.000000e+00> : vector<128x256xf32>
    %2 = tpu.matmul %0, %1, %cst {dimension_numbers = #tpu.dot_dimension_numbers<[1], [0], [0], [1], [0, 0, 1, 1], [], []>} : vector<128x128xbf16>, vector<128x256xbf16>, vector<128x256xf32> -> vector<128x256xf32>
    %c0_3 = arith.constant 0 : index
    %c0_4 = arith.constant 0 : index
    %3 = vector.load %arg3[%c0_3, %c0_4] : memref<1x256xf32, #tpu.memory_space<vmem>>, vector<1x256xf32>
    %4 = vector.broadcast %3 : vector<1x256xf32> to vector<128x256xf32>
    %5 = arith.addf %2, %4 : vector<128x256xf32>
    %6 = arith.negf %5 : vector<128x256xf32>
    %7 = math.exp %6 : vector<128x256xf32>
    %cst_5 = arith.constant 1.000000e+00 : f32
    %8 = vector.broadcast %cst_5 : f32 to vector<128x256xf32>
    %9 = arith.addf %8, %7 : vector<128x256xf32>
    %10 = arith.divf %8, %9 : vector<128x256xf32>
    %11 = arith.mulf %5, %10 : vector<128x256xf32>
    %12 = arith.truncf %11 : vector<128x256xf32> to vector<128x256xbf16>
    %c0_6 = arith.constant 0 : index
    %c0_7 = arith.constant 0 : index
    %13 = vector.load %arg4[%c0_6, %c0_7] : memref<128x256xbf16, #tpu.memory_space<vmem>>, vector<128x256xbf16>
    tpu.vector_store %arg4[%c0_6, %c0_7], %12 {strides = array<i32>} : memref<128x256xbf16, #tpu.memory_space<vmem>>, vector<128x256xbf16>,
    return
  }
  func.func @transform_0(%arg0: i32) -> (i32, i32) {
    %c0_i32 = arith.constant 0 : i32
    %c0_i32_0 = arith.constant 0 : i32
    return %arg0, %c0_i32 : i32, i32
  }
  func.func @transform_1(%arg0: i32) -> (i32, i32) {
    %c0_i32 = arith.constant 0 : i32
    %c0_i32_0 = arith.constant 0 : i32
    %c0_i32_1 = arith.constant 0 : i32
    return %c0_i32, %c0_i32_0 : i32, i32
  }
  func.func @transform_2(%arg0: i32) -> (i32, i32) {
    %c0_i32 = arith.constant 0 : i32
    %c0_i32_0 = arith.constant 0 : i32
    %c0_i32_1 = arith.constant 0 : i32
    return %c0_i32, %c0_i32_0 : i32, i32
  }
  func.func @transform_3(%arg0: i32) -> (i32, i32) {
    %c0_i32 = arith.constant 0 : i32
    %c0_i32_0 = arith.constant 0 : i32
    return %arg0, %c0_i32 : i32, i32
  }
}

module attributes {stable_mosaic.version = 11 : i64} {
  func.func @_dwconv3x3_wide_kernel(%arg0: i32, %arg1: memref<1x30x1024xbf16, #tpu.memory_space<vmem>>, %arg2: memref<9x256xf32, #tpu.memory_space<vmem>>, %arg3: memref<1x256xf32, #tpu.memory_space<vmem>>, %arg4: memref<1x20x256xbf16, #tpu.memory_space<vmem>>) attributes {dimension_semantics = [#tpu.dimension_semantics<parallel>], iteration_bounds = array<i64: 2>, scalar_prefetch = 0 : i64, scratch_operands = 0 : i64, tpu.core_type = #tpu.core_type<tc>, window_params = [{transform_indices = @transform_0, window_bounds = array<i64: 1, 30, 1024>}, {pipeline_mode = #tpu.pipeline_mode<synchronous>, transform_indices = @transform_1, window_bounds = array<i64: 9, 256>}, {pipeline_mode = #tpu.pipeline_mode<synchronous>, transform_indices = @transform_2, window_bounds = array<i64: 1, 256>}, {transform_indices = @transform_3, window_bounds = array<i64: 1, 20, 256>}]} {
    %cst = arith.constant 0.000000e+00 : f32
    %0 = vector.broadcast %cst : f32 to vector<20x256xf32>
    %c0 = arith.constant 0 : index
    %c0_0 = arith.constant 0 : index
    %c0_1 = arith.constant 0 : index
    %1 = vector.load %arg1[%c0, %c0_0, %c0_1] : memref<1x30x1024xbf16, #tpu.memory_space<vmem>>, vector<1x20x256xbf16>
    %2 = vector.shape_cast %1 : vector<1x20x256xbf16> to vector<20x256xbf16>
    %3 = arith.extf %2 : vector<20x256xbf16> to vector<20x256xf32>
    %c0_2 = arith.constant 0 : index
    %c0_3 = arith.constant 0 : index
    %4 = vector.load %arg2[%c0_2, %c0_3] : memref<9x256xf32, #tpu.memory_space<vmem>>, vector<1x256xf32>
    %5 = vector.broadcast %4 : vector<1x256xf32> to vector<20x256xf32>
    %6 = arith.mulf %3, %5 : vector<20x256xf32>
    %7 = arith.addf %0, %6 : vector<20x256xf32>
    %c0_4 = arith.constant 0 : index
    %c0_5 = arith.constant 0 : index
    %c256 = arith.constant 256 : index
    %8 = vector.load %arg1[%c0_4, %c0_5, %c256] : memref<1x30x1024xbf16, #tpu.memory_space<vmem>>, vector<1x20x256xbf16>
    %9 = vector.shape_cast %8 : vector<1x20x256xbf16> to vector<20x256xbf16>
    %10 = arith.extf %9 : vector<20x256xbf16> to vector<20x256xf32>
    %c1 = arith.constant 1 : index
    %c0_6 = arith.constant 0 : index
    %11 = vector.load %arg2[%c1, %c0_6] : memref<9x256xf32, #tpu.memory_space<vmem>>, vector<1x256xf32>
    %12 = vector.broadcast %11 : vector<1x256xf32> to vector<20x256xf32>
    %13 = arith.mulf %10, %12 : vector<20x256xf32>
    %14 = arith.addf %7, %13 : vector<20x256xf32>
    %c0_7 = arith.constant 0 : index
    %c1_8 = arith.constant 1 : index
    %c0_9 = arith.constant 0 : index
    %15 = vector.load %arg1[%c0_7, %c1_8, %c0_9] : memref<1x30x1024xbf16, #tpu.memory_space<vmem>>, vector<1x20x256xbf16>
    %16 = vector.shape_cast %15 : vector<1x20x256xbf16> to vector<20x256xbf16>
    %17 = arith.extf %16 : vector<20x256xbf16> to vector<20x256xf32>
    %c2 = arith.constant 2 : index
    %c0_10 = arith.constant 0 : index
    %18 = vector.load %arg2[%c2, %c0_10] : memref<9x256xf32, #tpu.memory_space<vmem>>, vector<1x256xf32>
    %19 = vector.broadcast %18 : vector<1x256xf32> to vector<20x256xf32>
    %20 = arith.mulf %17, %19 : vector<20x256xf32>
    %21 = arith.addf %14, %20 : vector<20x256xf32>
    %c0_11 = arith.constant 0 : index
    %c0_12 = arith.constant 0 : index
    %c512 = arith.constant 512 : index
    %22 = vector.load %arg1[%c0_11, %c0_12, %c512] : memref<1x30x1024xbf16, #tpu.memory_space<vmem>>, vector<1x20x256xbf16>
    %23 = vector.shape_cast %22 : vector<1x20x256xbf16> to vector<20x256xbf16>
    %24 = arith.extf %23 : vector<20x256xbf16> to vector<20x256xf32>
    %c3 = arith.constant 3 : index
    %c0_13 = arith.constant 0 : index
    %25 = vector.load %arg2[%c3, %c0_13] : memref<9x256xf32, #tpu.memory_space<vmem>>, vector<1x256xf32>
    %26 = vector.broadcast %25 : vector<1x256xf32> to vector<20x256xf32>
    %27 = arith.mulf %24, %26 : vector<20x256xf32>
    %28 = arith.addf %21, %27 : vector<20x256xf32>
    %c0_14 = arith.constant 0 : index
    %c0_15 = arith.constant 0 : index
    %c768 = arith.constant 768 : index
    %29 = vector.load %arg1[%c0_14, %c0_15, %c768] : memref<1x30x1024xbf16, #tpu.memory_space<vmem>>, vector<1x20x256xbf16>
    %30 = vector.shape_cast %29 : vector<1x20x256xbf16> to vector<20x256xbf16>
    %31 = arith.extf %30 : vector<20x256xbf16> to vector<20x256xf32>
    %c4 = arith.constant 4 : index
    %c0_16 = arith.constant 0 : index
    %32 = vector.load %arg2[%c4, %c0_16] : memref<9x256xf32, #tpu.memory_space<vmem>>, vector<1x256xf32>
    %33 = vector.broadcast %32 : vector<1x256xf32> to vector<20x256xf32>
    %34 = arith.mulf %31, %33 : vector<20x256xf32>
    %35 = arith.addf %28, %34 : vector<20x256xf32>
    %c0_17 = arith.constant 0 : index
    %c1_18 = arith.constant 1 : index
    %c512_19 = arith.constant 512 : index
    %36 = vector.load %arg1[%c0_17, %c1_18, %c512_19] : memref<1x30x1024xbf16, #tpu.memory_space<vmem>>, vector<1x20x256xbf16>
    %37 = vector.shape_cast %36 : vector<1x20x256xbf16> to vector<20x256xbf16>
    %38 = arith.extf %37 : vector<20x256xbf16> to vector<20x256xf32>
    %c5 = arith.constant 5 : index
    %c0_20 = arith.constant 0 : index
    %39 = vector.load %arg2[%c5, %c0_20] : memref<9x256xf32, #tpu.memory_space<vmem>>, vector<1x256xf32>
    %40 = vector.broadcast %39 : vector<1x256xf32> to vector<20x256xf32>
    %41 = arith.mulf %38, %40 : vector<20x256xf32>
    %42 = arith.addf %35, %41 : vector<20x256xf32>
    %c0_21 = arith.constant 0 : index
    %c5_22 = arith.constant 5 : index
    %c0_23 = arith.constant 0 : index
    %43 = vector.load %arg1[%c0_21, %c5_22, %c0_23] : memref<1x30x1024xbf16, #tpu.memory_space<vmem>>, vector<1x20x256xbf16>
    %44 = vector.shape_cast %43 : vector<1x20x256xbf16> to vector<20x256xbf16>
    %45 = arith.extf %44 : vector<20x256xbf16> to vector<20x256xf32>
    %c6 = arith.constant 6 : index
    %c0_24 = arith.constant 0 : index
    %46 = vector.load %arg2[%c6, %c0_24] : memref<9x256xf32, #tpu.memory_space<vmem>>, vector<1x256xf32>
    %47 = vector.broadcast %46 : vector<1x256xf32> to vector<20x256xf32>
    %48 = arith.mulf %45, %47 : vector<20x256xf32>
    %49 = arith.addf %42, %48 : vector<20x256xf32>
    %c0_25 = arith.constant 0 : index
    %c5_26 = arith.constant 5 : index
    %c256_27 = arith.constant 256 : index
    %50 = vector.load %arg1[%c0_25, %c5_26, %c256_27] : memref<1x30x1024xbf16, #tpu.memory_space<vmem>>, vector<1x20x256xbf16>
    %51 = vector.shape_cast %50 : vector<1x20x256xbf16> to vector<20x256xbf16>
    %52 = arith.extf %51 : vector<20x256xbf16> to vector<20x256xf32>
    %c7 = arith.constant 7 : index
    %c0_28 = arith.constant 0 : index
    %53 = vector.load %arg2[%c7, %c0_28] : memref<9x256xf32, #tpu.memory_space<vmem>>, vector<1x256xf32>
    %54 = vector.broadcast %53 : vector<1x256xf32> to vector<20x256xf32>
    %55 = arith.mulf %52, %54 : vector<20x256xf32>
    %56 = arith.addf %49, %55 : vector<20x256xf32>
    %c0_29 = arith.constant 0 : index
    %c6_30 = arith.constant 6 : index
    %c0_31 = arith.constant 0 : index
    %57 = vector.load %arg1[%c0_29, %c6_30, %c0_31] : memref<1x30x1024xbf16, #tpu.memory_space<vmem>>, vector<1x20x256xbf16>
    %58 = vector.shape_cast %57 : vector<1x20x256xbf16> to vector<20x256xbf16>
    %59 = arith.extf %58 : vector<20x256xbf16> to vector<20x256xf32>
    %c8 = arith.constant 8 : index
    %c0_32 = arith.constant 0 : index
    %60 = vector.load %arg2[%c8, %c0_32] : memref<9x256xf32, #tpu.memory_space<vmem>>, vector<1x256xf32>
    %61 = vector.broadcast %60 : vector<1x256xf32> to vector<20x256xf32>
    %62 = arith.mulf %59, %61 : vector<20x256xf32>
    %63 = arith.addf %56, %62 : vector<20x256xf32>
    %c0_33 = arith.constant 0 : index
    %c0_34 = arith.constant 0 : index
    %64 = vector.load %arg3[%c0_33, %c0_34] : memref<1x256xf32, #tpu.memory_space<vmem>>, vector<1x256xf32>
    %65 = vector.broadcast %64 : vector<1x256xf32> to vector<20x256xf32>
    %66 = arith.addf %63, %65 : vector<20x256xf32>
    %67 = arith.negf %66 : vector<20x256xf32>
    %68 = math.exp %67 : vector<20x256xf32>
    %cst_35 = arith.constant 1.000000e+00 : f32
    %69 = vector.broadcast %cst_35 : f32 to vector<20x256xf32>
    %70 = arith.addf %69, %68 : vector<20x256xf32>
    %71 = arith.divf %69, %70 : vector<20x256xf32>
    %72 = arith.mulf %66, %71 : vector<20x256xf32>
    %73 = arith.truncf %72 : vector<20x256xf32> to vector<20x256xbf16>
    %c0_36 = arith.constant 0 : index
    %c0_37 = arith.constant 0 : index
    %c0_38 = arith.constant 0 : index
    %74 = vector.load %arg4[%c0_36, %c0_37, %c0_38] : memref<1x20x256xbf16, #tpu.memory_space<vmem>>, vector<1x20x256xbf16>
    %75 = vector.shape_cast %74 : vector<1x20x256xbf16> to vector<20x256xbf16>
    %76 = vector.shape_cast %73 : vector<20x256xbf16> to vector<1x20x256xbf16>
    tpu.vector_store %arg4[%c0_36, %c0_37, %c0_38], %76 {strides = array<i32>} : memref<1x20x256xbf16, #tpu.memory_space<vmem>>, vector<1x20x256xbf16>,
    return
  }
  func.func @transform_0(%arg0: i32) -> (i32, i32, i32) {
    %c0_i32 = arith.constant 0 : i32
    %c0_i32_0 = arith.constant 0 : i32
    %c0_i32_1 = arith.constant 0 : i32
    return %arg0, %c0_i32, %c0_i32_0 : i32, i32, i32
  }
  func.func @transform_1(%arg0: i32) -> (i32, i32) {
    %c0_i32 = arith.constant 0 : i32
    %c0_i32_0 = arith.constant 0 : i32
    %c0_i32_1 = arith.constant 0 : i32
    return %c0_i32, %c0_i32_0 : i32, i32
  }
  func.func @transform_2(%arg0: i32) -> (i32, i32) {
    %c0_i32 = arith.constant 0 : i32
    %c0_i32_0 = arith.constant 0 : i32
    %c0_i32_1 = arith.constant 0 : i32
    return %c0_i32, %c0_i32_0 : i32, i32
  }
  func.func @transform_3(%arg0: i32) -> (i32, i32, i32) {
    %c0_i32 = arith.constant 0 : i32
    %c0_i32_0 = arith.constant 0 : i32
    %c0_i32_1 = arith.constant 0 : i32
    return %arg0, %c0_i32, %c0_i32_0 : i32, i32, i32
  }
}

module attributes {stable_mosaic.version = 11 : i64} {
  func.func @_se_project_kernel(%arg0: i32, %arg1: memref<1x16x256xbf16, #tpu.memory_space<vmem>>, %arg2: memref<256x128xbf16, #tpu.memory_space<vmem>>, %arg3: memref<1x128xf32, #tpu.memory_space<vmem>>, %arg4: memref<128x256xbf16, #tpu.memory_space<vmem>>, %arg5: memref<1x256xf32, #tpu.memory_space<vmem>>, %arg6: memref<256x128xbf16, #tpu.memory_space<vmem>>, %arg7: memref<1x128xf32, #tpu.memory_space<vmem>>, %arg8: memref<1x16x128xbf16, #tpu.memory_space<vmem>>) attributes {dimension_semantics = [#tpu.dimension_semantics<parallel>], iteration_bounds = array<i64: 2>, scalar_prefetch = 0 : i64, scratch_operands = 0 : i64, tpu.core_type = #tpu.core_type<tc>, window_params = [{transform_indices = @transform_0, window_bounds = array<i64: 1, 16, 256>}, {pipeline_mode = #tpu.pipeline_mode<synchronous>, transform_indices = @transform_1, window_bounds = array<i64: 256, 128>}, {pipeline_mode = #tpu.pipeline_mode<synchronous>, transform_indices = @transform_2, window_bounds = array<i64: 1, 128>}, {pipeline_mode = #tpu.pipeline_mode<synchronous>, transform_indices = @transform_3, window_bounds = array<i64: 128, 256>}, {pipeline_mode = #tpu.pipeline_mode<synchronous>, transform_indices = @transform_4, window_bounds = array<i64: 1, 256>}, {pipeline_mode = #tpu.pipeline_mode<synchronous>, transform_indices = @transform_5, window_bounds = array<i64: 256, 128>}, {pipeline_mode = #tpu.pipeline_mode<synchronous>, transform_indices = @transform_6, window_bounds = array<i64: 1, 128>}, {transform_indices = @transform_7, window_bounds = array<i64: 1, 16, 128>}]} {
    %c0 = arith.constant 0 : index
    %c0_0 = arith.constant 0 : index
    %c0_1 = arith.constant 0 : index
    %0 = vector.load %arg1[%c0, %c0_0, %c0_1] : memref<1x16x256xbf16, #tpu.memory_space<vmem>>, vector<1x16x256xbf16>
    %1 = vector.shape_cast %0 : vector<1x16x256xbf16> to vector<16x256xbf16>
    %2 = arith.extf %1 : vector<16x256xbf16> to vector<16x256xf32>
    %cst = arith.constant dense<0.000000e+00> : vector<256xf32>
    %3 = vector.multi_reduction <add>, %2, %cst [0] : vector<16x256xf32> to vector<256xf32>
    %4 = vector.shape_cast %3 : vector<256xf32> to vector<1x256xf32>
    %cst_2 = arith.constant 1.600000e+01 : f32
    %5 = vector.broadcast %cst_2 : f32 to vector<1x256xf32>
    %6 = arith.divf %4, %5 : vector<1x256xf32>
    %7 = arith.truncf %6 : vector<1x256xf32> to vector<1x256xbf16>
    %c0_3 = arith.constant 0 : index
    %c0_4 = arith.constant 0 : index
    %8 = vector.load %arg2[%c0_3, %c0_4] : memref<256x128xbf16, #tpu.memory_space<vmem>>, vector<256x128xbf16>
    %cst_5 = arith.constant dense<0.000000e+00> : vector<1x128xf32>
    %9 = tpu.matmul %7, %8, %cst_5 {dimension_numbers = #tpu.dot_dimension_numbers<[1], [0], [0], [1], [0, 0, 1, 1], [], []>} : vector<1x256xbf16>, vector<256x128xbf16>, vector<1x128xf32> -> vector<1x128xf32>
    %c0_6 = arith.constant 0 : index
    %c0_7 = arith.constant 0 : index
    %10 = vector.load %arg3[%c0_6, %c0_7] : memref<1x128xf32, #tpu.memory_space<vmem>>, vector<1x128xf32>
    %11 = arith.addf %9, %10 : vector<1x128xf32>
    %12 = arith.negf %11 : vector<1x128xf32>
    %13 = math.exp %12 : vector<1x128xf32>
    %cst_8 = arith.constant 1.000000e+00 : f32
    %14 = vector.broadcast %cst_8 : f32 to vector<1x128xf32>
    %15 = arith.addf %14, %13 : vector<1x128xf32>
    %16 = arith.divf %14, %15 : vector<1x128xf32>
    %17 = arith.mulf %11, %16 : vector<1x128xf32>
    %18 = arith.truncf %17 : vector<1x128xf32> to vector<1x128xbf16>
    %c0_9 = arith.constant 0 : index
    %c0_10 = arith.constant 0 : index
    %19 = vector.load %arg4[%c0_9, %c0_10] : memref<128x256xbf16, #tpu.memory_space<vmem>>, vector<128x256xbf16>
    %cst_11 = arith.constant dense<0.000000e+00> : vector<1x256xf32>
    %20 = tpu.matmul %18, %19, %cst_11 {dimension_numbers = #tpu.dot_dimension_numbers<[1], [0], [0], [1], [0, 0, 1, 1], [], []>} : vector<1x128xbf16>, vector<128x256xbf16>, vector<1x256xf32> -> vector<1x256xf32>
    %c0_12 = arith.constant 0 : index
    %c0_13 = arith.constant 0 : index
    %21 = vector.load %arg5[%c0_12, %c0_13] : memref<1x256xf32, #tpu.memory_space<vmem>>, vector<1x256xf32>
    %22 = arith.addf %20, %21 : vector<1x256xf32>
    %23 = arith.negf %22 : vector<1x256xf32>
    %24 = math.exp %23 : vector<1x256xf32>
    %cst_14 = arith.constant 1.000000e+00 : f32
    %25 = vector.broadcast %cst_14 : f32 to vector<1x256xf32>
    %26 = arith.addf %25, %24 : vector<1x256xf32>
    %27 = arith.divf %25, %26 : vector<1x256xf32>
    %28 = vector.broadcast %27 : vector<1x256xf32> to vector<16x256xf32>
    %29 = arith.mulf %2, %28 : vector<16x256xf32>
    %30 = arith.truncf %29 : vector<16x256xf32> to vector<16x256xbf16>
    %c0_15 = arith.constant 0 : index
    %c0_16 = arith.constant 0 : index
    %31 = vector.load %arg6[%c0_15, %c0_16] : memref<256x128xbf16, #tpu.memory_space<vmem>>, vector<256x128xbf16>
    %cst_17 = arith.constant dense<0.000000e+00> : vector<16x128xf32>
    %32 = tpu.matmul %30, %31, %cst_17 {dimension_numbers = #tpu.dot_dimension_numbers<[1], [0], [0], [1], [0, 0, 1, 1], [], []>} : vector<16x256xbf16>, vector<256x128xbf16>, vector<16x128xf32> -> vector<16x128xf32>
    %c0_18 = arith.constant 0 : index
    %c0_19 = arith.constant 0 : index
    %33 = vector.load %arg7[%c0_18, %c0_19] : memref<1x128xf32, #tpu.memory_space<vmem>>, vector<1x128xf32>
    %34 = vector.broadcast %33 : vector<1x128xf32> to vector<16x128xf32>
    %35 = arith.addf %32, %34 : vector<16x128xf32>
    %36 = arith.truncf %35 : vector<16x128xf32> to vector<16x128xbf16>
    %c0_20 = arith.constant 0 : index
    %c0_21 = arith.constant 0 : index
    %c0_22 = arith.constant 0 : index
    %37 = vector.load %arg8[%c0_20, %c0_21, %c0_22] : memref<1x16x128xbf16, #tpu.memory_space<vmem>>, vector<1x16x128xbf16>
    %38 = vector.shape_cast %37 : vector<1x16x128xbf16> to vector<16x128xbf16>
    %39 = vector.shape_cast %36 : vector<16x128xbf16> to vector<1x16x128xbf16>
    tpu.vector_store %arg8[%c0_20, %c0_21, %c0_22], %39 {strides = array<i32>} : memref<1x16x128xbf16, #tpu.memory_space<vmem>>, vector<1x16x128xbf16>,
    return
  }
  func.func @transform_0(%arg0: i32) -> (i32, i32, i32) {
    %c0_i32 = arith.constant 0 : i32
    %c0_i32_0 = arith.constant 0 : i32
    %c0_i32_1 = arith.constant 0 : i32
    return %arg0, %c0_i32, %c0_i32_0 : i32, i32, i32
  }
  func.func @transform_1(%arg0: i32) -> (i32, i32) {
    %c0_i32 = arith.constant 0 : i32
    %c0_i32_0 = arith.constant 0 : i32
    %c0_i32_1 = arith.constant 0 : i32
    return %c0_i32, %c0_i32_0 : i32, i32
  }
  func.func @transform_2(%arg0: i32) -> (i32, i32) {
    %c0_i32 = arith.constant 0 : i32
    %c0_i32_0 = arith.constant 0 : i32
    %c0_i32_1 = arith.constant 0 : i32
    return %c0_i32, %c0_i32_0 : i32, i32
  }
  func.func @transform_3(%arg0: i32) -> (i32, i32) {
    %c0_i32 = arith.constant 0 : i32
    %c0_i32_0 = arith.constant 0 : i32
    %c0_i32_1 = arith.constant 0 : i32
    return %c0_i32, %c0_i32_0 : i32, i32
  }
  func.func @transform_4(%arg0: i32) -> (i32, i32) {
    %c0_i32 = arith.constant 0 : i32
    %c0_i32_0 = arith.constant 0 : i32
    %c0_i32_1 = arith.constant 0 : i32
    return %c0_i32, %c0_i32_0 : i32, i32
  }
  func.func @transform_5(%arg0: i32) -> (i32, i32) {
    %c0_i32 = arith.constant 0 : i32
    %c0_i32_0 = arith.constant 0 : i32
    %c0_i32_1 = arith.constant 0 : i32
    return %c0_i32, %c0_i32_0 : i32, i32
  }
  func.func @transform_6(%arg0: i32) -> (i32, i32) {
    %c0_i32 = arith.constant 0 : i32
    %c0_i32_0 = arith.constant 0 : i32
    %c0_i32_1 = arith.constant 0 : i32
    return %c0_i32, %c0_i32_0 : i32, i32
  }
  func.func @transform_7(%arg0: i32) -> (i32, i32, i32) {
    %c0_i32 = arith.constant 0 : i32
    %c0_i32_0 = arith.constant 0 : i32
    %c0_i32_1 = arith.constant 0 : i32
    return %arg0, %c0_i32, %c0_i32_0 : i32, i32, i32
  }
}

module attributes {stable_mosaic.version = 11 : i64} {
  func.func @_head_kernel(%arg0: i32, %arg1: memref<1x16x128xbf16, #tpu.memory_space<vmem>>, %arg2: memref<128x128xbf16, #tpu.memory_space<vmem>>, %arg3: memref<1x128xf32, #tpu.memory_space<vmem>>, %arg4: memref<128x128xbf16, #tpu.memory_space<vmem>>, %arg5: memref<1x128xf32, #tpu.memory_space<vmem>>, %arg6: memref<1x1x128xf32, #tpu.memory_space<vmem>>) attributes {dimension_semantics = [#tpu.dimension_semantics<parallel>], iteration_bounds = array<i64: 2>, scalar_prefetch = 0 : i64, scratch_operands = 0 : i64, tpu.core_type = #tpu.core_type<tc>, window_params = [{transform_indices = @transform_0, window_bounds = array<i64: 1, 16, 128>}, {pipeline_mode = #tpu.pipeline_mode<synchronous>, transform_indices = @transform_1, window_bounds = array<i64: 128, 128>}, {pipeline_mode = #tpu.pipeline_mode<synchronous>, transform_indices = @transform_2, window_bounds = array<i64: 1, 128>}, {pipeline_mode = #tpu.pipeline_mode<synchronous>, transform_indices = @transform_3, window_bounds = array<i64: 128, 128>}, {pipeline_mode = #tpu.pipeline_mode<synchronous>, transform_indices = @transform_4, window_bounds = array<i64: 1, 128>}, {transform_indices = @transform_5, window_bounds = array<i64: 1, 1, 128>}]} {
    %c0 = arith.constant 0 : index
    %c0_0 = arith.constant 0 : index
    %c0_1 = arith.constant 0 : index
    %0 = vector.load %arg1[%c0, %c0_0, %c0_1] : memref<1x16x128xbf16, #tpu.memory_space<vmem>>, vector<1x16x128xbf16>
    %1 = vector.shape_cast %0 : vector<1x16x128xbf16> to vector<16x128xbf16>
    %c0_2 = arith.constant 0 : index
    %c0_3 = arith.constant 0 : index
    %2 = vector.load %arg2[%c0_2, %c0_3] : memref<128x128xbf16, #tpu.memory_space<vmem>>, vector<128x128xbf16>
    %cst = arith.constant dense<0.000000e+00> : vector<16x128xf32>
    %3 = tpu.matmul %1, %2, %cst {dimension_numbers = #tpu.dot_dimension_numbers<[1], [0], [0], [1], [0, 0, 1, 1], [], []>} : vector<16x128xbf16>, vector<128x128xbf16>, vector<16x128xf32> -> vector<16x128xf32>
    %c0_4 = arith.constant 0 : index
    %c0_5 = arith.constant 0 : index
    %4 = vector.load %arg3[%c0_4, %c0_5] : memref<1x128xf32, #tpu.memory_space<vmem>>, vector<1x128xf32>
    %5 = vector.broadcast %4 : vector<1x128xf32> to vector<16x128xf32>
    %6 = arith.addf %3, %5 : vector<16x128xf32>
    %7 = arith.negf %6 : vector<16x128xf32>
    %8 = math.exp %7 : vector<16x128xf32>
    %cst_6 = arith.constant 1.000000e+00 : f32
    %9 = vector.broadcast %cst_6 : f32 to vector<16x128xf32>
    %10 = arith.addf %9, %8 : vector<16x128xf32>
    %11 = arith.divf %9, %10 : vector<16x128xf32>
    %12 = arith.mulf %6, %11 : vector<16x128xf32>
    %cst_7 = arith.constant dense<0.000000e+00> : vector<128xf32>
    %13 = vector.multi_reduction <add>, %12, %cst_7 [0] : vector<16x128xf32> to vector<128xf32>
    %14 = vector.shape_cast %13 : vector<128xf32> to vector<1x128xf32>
    %cst_8 = arith.constant 1.600000e+01 : f32
    %15 = vector.broadcast %cst_8 : f32 to vector<1x128xf32>
    %16 = arith.divf %14, %15 : vector<1x128xf32>
    %17 = arith.truncf %16 : vector<1x128xf32> to vector<1x128xbf16>
    %c0_9 = arith.constant 0 : index
    %c0_10 = arith.constant 0 : index
    %18 = vector.load %arg4[%c0_9, %c0_10] : memref<128x128xbf16, #tpu.memory_space<vmem>>, vector<128x128xbf16>
    %cst_11 = arith.constant dense<0.000000e+00> : vector<1x128xf32>
    %19 = tpu.matmul %17, %18, %cst_11 {dimension_numbers = #tpu.dot_dimension_numbers<[1], [0], [0], [1], [0, 0, 1, 1], [], []>} : vector<1x128xbf16>, vector<128x128xbf16>, vector<1x128xf32> -> vector<1x128xf32>
    %c0_12 = arith.constant 0 : index
    %c0_13 = arith.constant 0 : index
    %20 = vector.load %arg5[%c0_12, %c0_13] : memref<1x128xf32, #tpu.memory_space<vmem>>, vector<1x128xf32>
    %21 = arith.addf %19, %20 : vector<1x128xf32>
    %c0_14 = arith.constant 0 : index
    %c0_15 = arith.constant 0 : index
    %c0_16 = arith.constant 0 : index
    %22 = vector.load %arg6[%c0_14, %c0_15, %c0_16] : memref<1x1x128xf32, #tpu.memory_space<vmem>>, vector<1x1x128xf32>
    %23 = vector.shape_cast %22 : vector<1x1x128xf32> to vector<1x128xf32>
    %24 = vector.shape_cast %21 : vector<1x128xf32> to vector<1x1x128xf32>
    tpu.vector_store %arg6[%c0_14, %c0_15, %c0_16], %24 {strides = array<i32>} : memref<1x1x128xf32, #tpu.memory_space<vmem>>, vector<1x1x128xf32>,
    return
  }
  func.func @transform_0(%arg0: i32) -> (i32, i32, i32) {
    %c0_i32 = arith.constant 0 : i32
    %c0_i32_0 = arith.constant 0 : i32
    %c0_i32_1 = arith.constant 0 : i32
    return %arg0, %c0_i32, %c0_i32_0 : i32, i32, i32
  }
  func.func @transform_1(%arg0: i32) -> (i32, i32) {
    %c0_i32 = arith.constant 0 : i32
    %c0_i32_0 = arith.constant 0 : i32
    %c0_i32_1 = arith.constant 0 : i32
    return %c0_i32, %c0_i32_0 : i32, i32
  }
  func.func @transform_2(%arg0: i32) -> (i32, i32) {
    %c0_i32 = arith.constant 0 : i32
    %c0_i32_0 = arith.constant 0 : i32
    %c0_i32_1 = arith.constant 0 : i32
    return %c0_i32, %c0_i32_0 : i32, i32
  }
  func.func @transform_3(%arg0: i32) -> (i32, i32) {
    %c0_i32 = arith.constant 0 : i32
    %c0_i32_0 = arith.constant 0 : i32
    %c0_i32_1 = arith.constant 0 : i32
    return %c0_i32, %c0_i32_0 : i32, i32
  }
  func.func @transform_4(%arg0: i32) -> (i32, i32) {
    %c0_i32 = arith.constant 0 : i32
    %c0_i32_0 = arith.constant 0 : i32
    %c0_i32_1 = arith.constant 0 : i32
    return %c0_i32, %c0_i32_0 : i32, i32
  }
  func.func @transform_5(%arg0: i32) -> (i32, i32, i32) {
    %c0_i32 = arith.constant 0 : i32
    %c0_i32_0 = arith.constant 0 : i32
    %c0_i32_1 = arith.constant 0 : i32
    return %arg0, %c0_i32, %c0_i32_0 : i32, i32, i32
  }
}

</mosaic_0001>

<bundles_post_ra>
// kernel: viewpoint_forward.8
= control target key start
LH: loop header
LB: loop body
LE: loop exit
PB: predicated region body
PF: predicated region fallthrough
CT: control target
= control target key end

     0   :  { %s6689_s12 = smov 0   ;;  %s8297_s0 = inlined_call_operand.vmem [shape: bf16[2,306,512], index: 0, kind: input, shape index: {}]   ;;  %s8298_s1 = inlined_call_operand.vmem [shape: bf16[9,128,128], index: 1, kind: input, shape index: {}]   ;;  %s8299_s2 = inlined_call_operand.vmem [shape: f32[1,128], index: 2, kind: input, shape index: {}]   ;;  %s8300_s3 = inlined_call_operand.vmem [shape: bf16[2,272,128], index: 3, kind: output, shape index: {}]  }
   0x1 LB: > { %s4741_s13 = sadd.s32 4294967295, %s6665_s12   ;;  %p4745_p0 = scmp.ge.s32.totalorder %s6665_s12, 1  ;;  %s6665_s12 = sphi %s6689_s12, %s13_s12  }
   0x2   : > { %p137_p1 = scmp.lt.s32.totalorder %s6665_s12, 3 }
   0x4   : > { %p138_p2 = pnand %p4745_p0, %p137_p1 }
   0x6   : > { %141 = sbr.rel (%p138_p2) target bundleno = 903 (0x387), region = 32 }
   0xd   : > { %v6304_v0 = vld [vmem:[%s8298_s1 + $0x40] sm:$0xff]   ;;  %v8302_v1 = vmov 0.0   ;;  %v6305_v2 = vld [vmem:[%s8298_s1 + $0x48] sm:$0xff]   ;;  %p161_p3 = scmp.lt.s32.totalorder %s4741_s13, 1  ;;  %vm6668_vm0 = vmmov 0   ;;  %v6306_v3 = vld [vmem:[%s8298_s1 + $0x50] sm:$0xff]  }
   0xe   : > { %5520 = vmatprep.subr.bf16.mxu0 %v8302_v1  ;;  %6276 = vmatprep.subr.bf16.mxu1 %v8302_v1  ;;  %v6307_v4 = vld [vmem:[%s8298_s1 + $0x58] sm:$0xff]   ;;  %v6308_v5 = vld [vmem:[%s8298_s1 + $0x60] sm:$0xff]   ;;  %v6309_v6 = vld [vmem:[%s8298_s1 + $0x68] sm:$0xff]   ;;  %vm1051_vm1 = vsmask.f32 7424  ;;  %vm3933_vm2 = vcmask 1046528  }
   0xf   : > { %5521 = vmatpush3.bf16.msra.mxu0 %v6304_v0  ;;  %6284 = vmatpush3.bf16.msra.mxu1 %v6304_v0  ;;  %s8321_s13 = smov (!%p161_p3, %s4741_s13), 1  ;;  %v6310_v7 = vld [vmem:[%s8298_s1 + $0x70] sm:$0xff]   ;;  %v6311_v8 = vld [vmem:[%s8298_s1 + $0x78] sm:$0xff]   ;;  %v6314_v11 = vld [vmem:[%s8298_s1 + $0x80] sm:$0xff]  }
  0x10   : > { %5522 = vmatprep.subr.bf16.mxu0 %v8302_v1  ;;  %6277 = vmatprep.subr.bf16.mxu1 %v8302_v1  ;;  %s6292_s20 = smul.u32 624, %s8321_s13  ;;  %v6315_v12 = vld [vmem:[%s8298_s1] sm:$0xff]   ;;  %v6318_v13 = vld [vmem:[%s8298_s1 + $0x88] sm:$0xff]   ;;  %v6322_v17 = vld [vmem:[%s8298_s1 + $0x90] sm:$0xff]  }
  0x11   : > { %5536 = vmatprep.mubr.msk.bf16.mxu0 %vm6668_vm0, %v8302_v1  ;;  %5572 = vmatprep.mubr.msk.bf16.mxu1 %vm6668_vm0, %v8302_v1  ;;  %v6319_v14 = vld [vmem:[%s8298_s1 + $0x8] sm:$0xff]   ;;  %v6323_v18 = vld [vmem:[%s8298_s1 + $0x10] sm:$0xff]   ;;  %v6326_v19 = vld [vmem:[%s8298_s1 + $0x98] sm:$0xff]   ;;  %s6293_s18 = smul.u32 136, %s8321_s13 }
  0x12   : > { %s6722_s23 = scalar_lea.vmem %s8297_s0, %s6292_s20  ;;  %v6327_v20 = vld [vmem:[%s8298_s1 + $0x18] sm:$0xff]   ;;  %v6330_v23 = vld [vmem:[%s8298_s1 + $0xa0] sm:$0xff]   ;;  %v6334_v25 = vld [vmem:[%s8298_s1 + $0xa8] sm:$0xff]  }
  0x13   : > { %5523 = vmatpush3.bf16.msra.mxu0 %v6305_v2  ;;  %6285 = vmatpush3.bf16.msra.mxu1 %v6305_v2  ;;  %v6312_v9 = vld [vmem:[%s6722_s23 + $0x4] ss:$16 sps:$4 sm:$0xff]   ;;  %v6335_v26 = vld [vmem:[%s8298_s1 + $0x28] sm:$0xff]   ;;  %v6342_v31 = vld [vmem:[%s8298_s1 + $0x38] sm:$0xff]   ;;  %s8128_s20 = scalar_lea.vmem %s8300_s3, %s6293_s18 }
  0x14   : > { %5524 = vmatprep.subr.bf16.mxu0 %v8302_v1  ;;  %6278 = vmatprep.subr.bf16.mxu1 %v8302_v1  ;;  %v6313_v10 = vld [vmem:[%s6722_s23 + $0x124] ss:$16 sps:$4 sm:$0xff]   ;;  %v6345_v32 = vld [vmem:[%s8298_s1 + $0xb8] sm:$0xff]   ;;  %v6348_v41 = vld [vmem:[%s6722_s23] ss:$16 sps:$4 sm:$0xff]  }
  0x15   : > { %v6316_v15 = vld [vmem:[%s6722_s23 + $0x24] ss:$16 sps:$4 sm:$0xff]   ;;  %v6349_v42 = vld [vmem:[%s6722_s23 + $0x20] ss:$16 sps:$4 sm:$0xff]   ;;  %v1055_v43 = vshll.u32 %v6348_v41, 16  ;;  %v1053_v46 = vshrl.u32 %v6348_v41, 16 }
  0x16   : > { %v6317_v16 = vld [vmem:[%s6722_s23 + $0x144] ss:$16 sps:$4 sm:$0xff]   ;;  %v6344_v45 = vld [vmem:[%s6722_s23] ss:$16 sps:$4 sm:$0xff]   ;;  %v1060_v48 = vshll.u32 %v6349_v42, 16  ;;  %v6355_v56 = vld [vmem:[%s8298_s1 + $0xc8] sm:$0xff]  }
  0x17   : > { %5525 = vmatpush3.bf16.msra.mxu0 %v6306_v3  ;;  %6286 = vmatpush3.bf16.msra.mxu1 %v6306_v3  ;;  %v6320_v21 = vld [vmem:[%s6722_s23 + $0x44] ss:$16 sps:$4 sm:$0xff]   ;;  %v1057_v47 = vrot.slane %v1055_v43, 1  ;;  %v6352_v49 = vld [vmem:[%s6722_s23 + $0x40] ss:$16 sps:$4 sm:$0xff]   ;;  %v1064_v58 = vshrl.u32 %v6349_v42, 16 }
  0x18   : > { %5526 = vmatprep.subr.bf16.mxu0 %v8302_v1  ;;  %6279 = vmatprep.subr.bf16.mxu1 %v8302_v1  ;;  %v6321_v22 = vld [vmem:[%s6722_s23 + $0x164] ss:$16 sps:$4 sm:$0xff]   ;;  %v1062_v52 = vrot.slane %v1060_v48, 1  ;;  %v1068_v53 = vshll.u32 %v6352_v49, 16  ;;  %v6876_v54 = vld [vmem:[%s6722_s23 + $0x60] ss:$16 sps:$4 sm:$0xff]  }
  0x19   : > { %v6331_v24 = vld [vmem:[%s8298_s1 + $0x20] sm:$0xff]   ;;  %v6338_v29 = vld [vmem:[%s8298_s1 + $0x30] sm:$0xff]   ;;  %v1058_v51 = vor.u32 %v1057_v47, %v1053_v46  ;;  %v1072_v59 = vshrl.u32 %v6352_v49, 16  ;;  %v1076_v62 = vshll.u32 %v6876_v54, 16  ;;  %v1080_v63 = vshrl.u32 %v6876_v54, 16  ;;  %v6356_v2 = vld [vmem:[%s8298_s1 + $0x108] sm:$0xff]  }
  0x1a   : > { %v6324_v27 = vld [vmem:[%s6722_s23 + $0x64] ss:$16 sps:$4 sm:$0xff]   ;;  %v6347_v55 = vld [vmem:[%s6722_s23 + $0x20] ss:$16 sps:$4 sm:$0xff]   ;;  %v1070_v61 = vrot.slane %v1068_v53, 1  ;;  %v1066_v3 = vor.u32 %v1064_v58, %v1062_v52 }
  0x1b   : > { %5527 = vmatpush3.bf16.msra.mxu0 %v6307_v4  ;;  %6287 = vmatpush3.bf16.msra.mxu1 %v6307_v4  ;;  %v6325_v28 = vld [vmem:[%s6722_s23 + $0x184] ss:$16 sps:$4 sm:$0xff]   ;;  %v1063_v60 = vsel %vm1051_vm1, %v1058_v51, %v1062_v52  ;;  %v6899_v4 = vld [vmem:[%s6722_s23 + $0x80] ss:$16 sps:$4 sm:$0xff]  }
  0x1c   : > { %5528 = vmatprep.subr.bf16.mxu0 %v8302_v1  ;;  %6280 = vmatprep.subr.bf16.mxu1 %v8302_v1  ;;  %v6339_v30 = vld [vmem:[%s8298_s1 + $0xb0] sm:$0xff]   ;;  %v6346_v50 = vld [vmem:[%s8298_s1 + $0xc0] sm:$0xff]  }
  0x1d   : > { %v6328_v33 = vld [vmem:[%s6722_s23 + $0x84] ss:$16 sps:$4 sm:$0xff]   ;;  %v6370_v41 = vld [vmem:[%s6722_s23 + $0x100] ss:$16 sps:$4 sm:$0xff]  }
  0x1e   : > { %v6329_v34 = vld [vmem:[%s6722_s23 + $0x1a4] ss:$16 sps:$4 sm:$0xff]   ;;  %v6363_v43 = vld [vmem:[%s6722_s23 + $0xc0] ss:$16 sps:$4 sm:$0xff]   ;;  %v1116_v46 = vshll.u32 %v6370_v41, 16  ;;  %v1120_v53 = vshrl.u32 %v6370_v41, 16 }
  0x1f   : > { %5529 = vmatpush3.bf16.msra.mxu0 %v6308_v5  ;;  %6288 = vmatpush3.bf16.msra.mxu1 %v6308_v5  ;;  %v6332_v35 = vld [vmem:[%s6722_s23 + $0xa4] ss:$16 sps:$4 sm:$0xff]   ;;  %v6351_v5 = vld [vmem:[%s6722_s23 + $0x40] ss:$16 sps:$4 sm:$0xff]  }
  0x20   : > { %5530 = vmatprep.subr.bf16.mxu0 %v8302_v1  ;;  %6281 = vmatprep.subr.bf16.mxu1 %v8302_v1  ;;  %v6333_v36 = vld [vmem:[%s6722_s23 + $0x1c4] ss:$16 sps:$4 sm:$0xff]   ;;  %v6372_v47 = vld [vmem:[%s6722_s23 + $0x120] ss:$16 sps:$4 sm:$0xff]   ;;  %v1118_v52 = vrot.slane %v1116_v46, 1 }
  0x21   : > { %v6336_v37 = vld [vmem:[%s6722_s23 + $0xc4] ss:$16 sps:$4 sm:$0xff]   ;;  %v6365_v49 = vld [vmem:[%s6722_s23 + $0xe0] ss:$16 sps:$4 sm:$0xff]   ;;  %v1124_v54 = vshll.u32 %v6372_v47, 16 }
  0x22   : > { %v6337_v38 = vld [vmem:[%s6722_s23 + $0x1e4] ss:$16 sps:$4 sm:$0xff]   ;;  %v6395_v46 = vld [vmem:[%s6722_s23 + $0x220] ss:$0 sps:$4 sm:$0x11]  }
  0x23   : > { %5531 = vmatpush3.bf16.msra.mxu0 %v6309_v6  ;;  %6289 = vmatpush3.bf16.msra.mxu1 %v6309_v6  ;;  %v6340_v39 = vld [vmem:[%s6722_s23 + $0xe4] ss:$16 sps:$4 sm:$0xff]   ;;  %v1078_v6 = vrot.slane %v1076_v62, 1  ;;  %v1122_v62 = vor.u32 %v1120_v53, %v1118_v52  ;;  %v6396_v53 = vld [vmem:[%s6722_s23 + $0x8] ss:$16 sps:$4 sm:$0xff]  }
  0x24   : > { %5532 = vmatprep.subr.bf16.mxu0 %v8302_v1  ;;  %6282 = vmatprep.subr.bf16.mxu1 %v8302_v1  ;;  %v6341_v40 = vld [vmem:[%s6722_s23 + $0x204] ss:$16 sps:$4 sm:$0xff]  }
  0x25   : > { %v6343_v44 = vld [vmem:[%s6722_s23 + $0x104] ss:$16 sps:$4 sm:$0xff]  }
  0x26   : > { %v6350_v57 = vld [vmem:[%s8298_s1 + $0x100] sm:$0xff]   ;;  %v6361_v0 = vld [vmem:[%s8298_s1 + $0xd0] sm:$0xff]  }
  0x27   : > { %5533 = vmatpush3.bf16.msra.mxu0 %v6310_v7  ;;  %6290 = vmatpush3.bf16.msra.mxu1 %v6310_v7  ;;  %v6367_v7 = vld [vmem:[%s8298_s1 + $0xd8] sm:$0xff]  }
  0x28   : > { %5534 = vmatprep.subr.bf16.mxu0 %v8302_v1  ;;  %6283 = vmatprep.subr.bf16.mxu1 %v8302_v1 }
  0x2b   : > { %5535 = vmatpush3.bf16.msra.mxu0 %v6311_v8  ;;  %6291 = vmatpush3.bf16.msra.mxu1 %v6311_v8  ;;  %v6362_v8 = vld [vmem:[%s8298_s1 + $0x110] sm:$0xff]  }
  0x2c   : > { %5688 = vmatprep.subr.bf16.mxu0 %v8302_v1  ;;  %5604 = vmatprep.subr.bf16.mxu1 %v8302_v1 }
  0x2e   : > { %5537 = vmatmul.mubr.bf16.vlgmr.msra.gmra.mrb[0].mxu0 %v6312_v9  ;;  %5573 = vmatmul.mubr.bf16.vlgmr.msra.gmra.mrb[0].mxu1 %v6313_v10  ;;  %v1071_v9 = vsel %vm1051_vm1, %v1066_v3, %v1070_v61  ;;  %v1084_v10 = vshll.u32 %v6899_v4, 16 }
  0x2f   : > { %5689 = vmatpush3.bf16.msra.mxu0 %v6314_v11  ;;  %5540 = vmatprep.mubr.msk.bf16.mxu0 %vm6668_vm0, %v8302_v1  ;;  %v6373_v11 = vld [vmem:[%s8298_s1 + $0xe0] sm:$0xff]  }
  0x30   : > { %5576 = vmatprep.mubr.msk.bf16.mxu1 %vm6668_vm0, %v8302_v1  ;;  %5605 = vmatpush3.bf16.msra.mxu1 %v6315_v12  ;;  %v6919_v12 = vld [vmem:[%s6722_s23 + $0xa0] ss:$16 sps:$4 sm:$0xff]  }
  0x31   : > { %5690 = vmatprep.subr.bf16.mxu0 %v8302_v1  ;;  %5606 = vmatprep.subr.bf16.mxu1 %v8302_v1 }
  0x33   : > { %5691 = vmatpush3.bf16.msra.mxu0 %v6318_v13  ;;  %v1088_v13 = vshrl.u32 %v6899_v4, 16 }
  0x34   : > { %5607 = vmatpush3.bf16.msra.mxu1 %v6319_v14  ;;  %5692 = vmatprep.subr.bf16.mxu0 %v8302_v1  ;;  %v6368_v14 = vld [vmem:[%s8298_s1 + $0x118] sm:$0xff]  }
  0x35   : > { %5608 = vmatprep.subr.bf16.mxu1 %v8302_v1 }
  0x36   : > { %5541 = vmatmul.mubr.bf16.gmra.mrb[4].mxu0 %v6316_v15  ;;  %5577 = vmatmul.mubr.bf16.gmra.mrb[4].mxu1 %v6317_v16  ;;  %v1074_v15 = vor.u32 %v1072_v59, %v1070_v61  ;;  %v6379_v16 = vld [vmem:[%s8298_s1 + $0xe8] sm:$0xff]   ;;  %v1126_v59 = vrot.slane %v1124_v54, 1  ;;  %v6378_v61 = vld [vmem:[%s6722_s23 + $0x160] ss:$16 sps:$4 sm:$0xff]  }
  0x37   : > { %5544 = vmatprep.mubr.msk.bf16.mxu0 %vm6668_vm0, %v8302_v1  ;;  %5580 = vmatprep.mubr.msk.bf16.mxu1 %vm6668_vm0, %v8302_v1 }
  0x38   : > { %5693 = vmatpush3.bf16.msra.mxu0 %v6322_v17  ;;  %5609 = vmatpush3.bf16.msra.mxu1 %v6323_v18  ;;  %v6353_v17 = vld [vmem:[%s6722_s23 + $0x60] ss:$16 sps:$4 sm:$0xff]   ;;  %v1079_v18 = vsel %vm1051_vm1, %v1074_v15, %v1078_v6 }
  0x39   : > { %5694 = vmatprep.subr.bf16.mxu0 %v8302_v1  ;;  %5610 = vmatprep.subr.bf16.mxu1 %v8302_v1 }
  0x3c   : > { %5695 = vmatpush3.bf16.msra.mxu0 %v6326_v19  ;;  %5611 = vmatpush3.bf16.msra.mxu1 %v6327_v20  ;;  %v1086_v19 = vrot.slane %v1084_v10, 1  ;;  %v1092_v20 = vshll.u32 %v6919_v12, 16 }
  0x3d   : > { %5696 = vmatprep.subr.bf16.mxu0 %v8302_v1  ;;  %5612 = vmatprep.subr.bf16.mxu1 %v8302_v1 }
  0x3e   : > { %5545 = vmatmul.mubr.bf16.gmra.mrb[8].mxu0 %v6320_v21  ;;  %5581 = vmatmul.mubr.bf16.gmra.mrb[8].mxu1 %v6321_v22  ;;  %v6374_v21 = vld [vmem:[%s8298_s1 + $0x120] sm:$0xff]   ;;  %v6385_v22 = vld [vmem:[%s8298_s1 + $0xf0] sm:$0xff]  }
  0x3f   : > { %5548 = vmatprep.mubr.msk.bf16.mxu0 %vm6668_vm0, %v8302_v1  ;;  %5584 = vmatprep.mubr.msk.bf16.mxu1 %vm6668_vm0, %v8302_v1 }
  0x40   : > { %5697 = vmatpush3.bf16.msra.mxu0 %v6330_v23  ;;  %5613 = vmatpush3.bf16.msra.mxu1 %v6331_v24  ;;  %v6380_v23 = vld [vmem:[%s8298_s1 + $0x128] sm:$0xff]   ;;  %v1082_v24 = vor.u32 %v1080_v63, %v1078_v6  ;;  %v6371_v63 = vld [vmem:[%s6722_s23 + $0x120] ss:$16 sps:$4 sm:$0xff]  }
  0x41   : > { %5698 = vmatprep.subr.bf16.mxu0 %v8302_v1  ;;  %5614 = vmatprep.subr.bf16.mxu1 %v8302_v1  ;;  %v6382_v6 = vld [vmem:[%s6722_s23 + $0x180] ss:$16 sps:$4 sm:$0xff]  }
  0x44   : > { %5699 = vmatpush3.bf16.msra.mxu0 %v6334_v25  ;;  %5615 = vmatpush3.bf16.msra.mxu1 %v6335_v26  ;;  %v6391_v25 = vld [vmem:[%s8298_s1 + $0xf8] sm:$0xff]   ;;  %v6357_v26 = vld [vmem:[%s6722_s23 + $0x80] ss:$16 sps:$4 sm:$0xff]  }
  0x45   : > { %5616 = vmatprep.subr.bf16.mxu1 %v8302_v1  ;;  %5700 = vmatprep.subr.bf16.mxu0 %v8302_v1 }
  0x46   : > { %5549 = vmatmul.mubr.bf16.gmra.mrb[12].mxu0 %v6324_v27  ;;  %5585 = vmatmul.mubr.bf16.gmra.mrb[12].mxu1 %v6325_v28  ;;  %v6364_v27 = vld [vmem:[%s6722_s23 + $0xc0] ss:$16 sps:$4 sm:$0xff]   ;;  %v1087_v28 = vsel %vm1051_vm1, %v1082_v24, %v1086_v19 }
  0x47   : > { %5552 = vmatprep.mubr.msk.bf16.mxu0 %vm6668_vm0, %v8302_v1  ;;  %5588 = vmatprep.mubr.msk.bf16.mxu1 %vm6668_vm0, %v8302_v1 }
  0x48   : > { %5617 = vmatpush3.bf16.msra.mxu1 %v6338_v29  ;;  %5701 = vmatpush3.bf16.msra.mxu0 %v6339_v30  ;;  %v1094_v29 = vrot.slane %v1092_v20, 1  ;;  %v1096_v30 = vshrl.u32 %v6919_v12, 16 }
  0x49   : > { %5618 = vmatprep.subr.bf16.mxu1 %v8302_v1  ;;  %5702 = vmatprep.subr.bf16.mxu0 %v8302_v1 }
  0x4a   : > { %v1098_v42 = vor.u32 %v1096_v30, %v1094_v29 }
  0x4c   : > { %5619 = vmatpush3.bf16.msra.mxu1 %v6342_v31  ;;  %5703 = vmatpush3.bf16.msra.mxu0 %v6345_v32  ;;  %v6386_v31 = vld [vmem:[%s8298_s1 + $0x130] sm:$0xff]   ;;  %v1100_v32 = vshll.u32 %v6364_v27, 16 }
  0x4d   : > { %5772 = vmatprep.subr.bf16.mxu1 %v8302_v1  ;;  %5856 = vmatprep.subr.bf16.mxu0 %v8302_v1 }
  0x4e   : > { %5553 = vmatmul.mubr.bf16.gmra.mrb[16].mxu0 %v6328_v33  ;;  %5589 = vmatmul.mubr.bf16.gmra.mrb[16].mxu1 %v6329_v34  ;;  %v6366_v33 = vld [vmem:[%s6722_s23 + $0xe0] ss:$16 sps:$4 sm:$0xff]   ;;  %v6394_v34 = vld [vmem:[%s8298_s1 + $0x138] sm:$0xff]  }
  0x4f   : > { %5556 = vmatprep.mubr.msk.bf16.mxu0 %vm6668_vm0, %v8302_v1  ;;  %5592 = vmatprep.mubr.msk.bf16.mxu1 %vm6668_vm0, %v8302_v1 }
  0x56   : > { %5557 = vmatmul.mubr.bf16.gmra.mrb[20].mxu0 %v6332_v35  ;;  %5593 = vmatmul.mubr.bf16.gmra.mrb[20].mxu1 %v6333_v36  ;;  %v1090_v35 = vor.u32 %v1088_v13, %v1086_v19  ;;  %v6359_v36 = vld [vmem:[%s6722_s23 + $0xa0] ss:$16 sps:$4 sm:$0xff]  }
  0x57   : > { %5560 = vmatprep.mubr.msk.bf16.mxu0 %vm6668_vm0, %v8302_v1  ;;  %5596 = vmatprep.mubr.msk.bf16.mxu1 %vm6668_vm0, %v8302_v1  ;;  %v6377_v13 = vld [vmem:[%s6722_s23 + $0x160] ss:$16 sps:$4 sm:$0xff]  }
  0x58   : > { %v6381_v19 = vld [vmem:[%s6722_s23 + $0x180] ss:$16 sps:$4 sm:$0xff]  }
  0x5e   : > { %5561 = vmatmul.mubr.bf16.gmra.mrb[24].mxu0 %v6336_v37  ;;  %5597 = vmatmul.mubr.bf16.gmra.mrb[24].mxu1 %v6337_v38  ;;  %v1095_v37 = vsel %vm1051_vm1, %v1090_v35, %v1094_v29  ;;  %v1102_v38 = vrot.slane %v1100_v32, 1  ;;  %v6390_v32 = vld [vmem:[%s6722_s23 + $0x1e0] ss:$16 sps:$4 sm:$0xff]  }
  0x5f   : > { %5564 = vmatprep.mubr.msk.bf16.mxu0 %vm6668_vm0, %v8302_v1  ;;  %5600 = vmatprep.mubr.msk.bf16.mxu1 %vm6668_vm0, %v8302_v1 }
  0x66   : > { %5565 = vmatmul.mubr.bf16.gmra.mrb[28].mxu0 %v6340_v39  ;;  %5601 = vmatmul.mubr.bf16.gmra.mrb[28].mxu1 %v6341_v40  ;;  %v1104_v39 = vshrl.u32 %v6364_v27, 16  ;;  %v1108_v40 = vshll.u32 %v6366_v33, 16 }
  0x67   : > { %5568 = vmatprep.mubr.msk.bf16.mxu0 %vm6668_vm0, %v8302_v1  ;;  %5620 = vmatprep.mubr.msk.bf16.mxu1 %vm6668_vm0, %v8302_v1 }
  0x68   : > { %v1106_v48 = vor.u32 %v1104_v39, %v1102_v38  ;;  %v6393_v39 = vld [vmem:[%s6722_s23 + $0x200] ss:$16 sps:$4 sm:$0xff]  }
  0x6e   : > { %5569 = vmatmul.mubr.bf16.gmra.mrb[32].mxu0 %v6343_v44  ;;  %5621 = vmatmul.mubr.bf16.vlgmr.msra.gmra.mrb[32].mxu1 %v6344_v45  ;;  %v1103_v44 = vsel %vm1051_vm1, %v1098_v42, %v1102_v38  ;;  %v1110_v45 = vrot.slane %v1108_v40, 1  ;;  %v6389_v40 = vld [vmem:[%s6722_s23 + $0x1e0] ss:$16 sps:$4 sm:$0xff]   ;;  %v1176_v42 = vshrl.u32 %v6390_v32, 16 }
  0x6f   : > { %5624 = vmatprep.mubr.msk.bf16.mxu1 %vm6668_vm0, %v8302_v1  ;;  %5704 = vmatprep.mubr.msk.bf16.mxu0 %vm6668_vm0, %v8302_v1 }
  0x70   : > { %5773 = vmatpush3.bf16.msra.mxu1 %v6346_v50  ;;  %v1112_v50 = vshrl.u32 %v6366_v33, 16  ;;  %v1111_v51 = vsel %vm1051_vm1, %v1106_v48, %v1110_v45  ;;  %v6387_v33 = vld [vmem:[%s6722_s23 + $0x1c0] ss:$16 sps:$4 sm:$0xff]  }
  0x71   : > { %5774 = vmatprep.subr.bf16.mxu1 %v8302_v1 }
  0x74   : > { %5775 = vmatpush3.bf16.msra.mxu1 %v6355_v56  ;;  %v1114_v56 = vor.u32 %v1112_v50, %v1110_v45  ;;  %v1188_v50 = vshll.u32 %v6395_v46, 16 }
  0x75   : > { %5776 = vmatprep.subr.bf16.mxu1 %v8302_v1 }
  0x76   : > { %5625 = vmatmul.mubr.bf16.gmra.mrb[36].mxu1 %v6347_v55  ;;  %5705 = vmatmul.mubr.bf16.vlgmr.msra.gmra.mrb[36].mxu0 %v1063_v60  ;;  %v6376_v55 = vld [vmem:[%s6722_s23 + $0x140] ss:$16 sps:$4 sm:$0xff]   ;;  %v1119_v58 = vsel %vm1051_vm1, %v1114_v56, %v1118_v52  ;;  %v1190_v52 = vrot.slane %v1188_v50, 1  ;;  %v6405_v56 = vld [vmem:[%s8298_s1 + $0x148] sm:$0xff]  }
  0x77   : > { %5857 = vmatpush3.bf16.msra.mxu0 %v6350_v57  ;;  %5628 = vmatprep.mubr.msk.bf16.mxu1 %vm6668_vm0, %v8302_v1  ;;  %v6369_v57 = vld [vmem:[%s6722_s23 + $0x100] ss:$16 sps:$4 sm:$0xff]   ;;  %v1132_v60 = vshll.u32 %v6376_v55, 16  ;;  %v1136_v4 = vshrl.u32 %v6376_v55, 16 }
  0x78   : > { %5708 = vmatprep.mubr.msk.bf16.mxu0 %vm6668_vm0, %v8302_v1  ;;  %5858 = vmatprep.subr.bf16.mxu0 %v8302_v1  ;;  %v6397_v55 = vld [vmem:[%s8298_s1 + $0x140] sm:$0xff]  }
  0x79   : > { %5777 = vmatpush3.bf16.msra.mxu1 %v6361_v0  ;;  %v1128_v0 = vshrl.u32 %v6372_v47, 16  ;;  %v1134_v3 = vrot.slane %v1132_v60, 1  ;;  %v6392_v47 = vld [vmem:[%s6722_s23 + $0x200] ss:$16 sps:$4 sm:$0xff]  }
  0x7a   : > { %5778 = vmatprep.subr.bf16.mxu1 %v8302_v1  ;;  %v6411_v60 = vld [vmem:[%s8298_s1 + $0x150] sm:$0xff]  }
  0x7b   : > { %5859 = vmatpush3.bf16.msra.mxu0 %v6356_v2  ;;  %v1127_v2 = vsel %vm1051_vm1, %v1122_v62, %v1126_v59  ;;  %v1138_v12 = vor.u32 %v1136_v4, %v1134_v3  ;;  %v6401_v4 = vld [vmem:[%s6722_s23 + $0x48] ss:$16 sps:$4 sm:$0xff]  }
  0x7c   : > { %5860 = vmatprep.subr.bf16.mxu0 %v8302_v1 }
  0x7d   : > { %5779 = vmatpush3.bf16.msra.mxu1 %v6367_v7  ;;  %v1130_v7 = vor.u32 %v1128_v0, %v1126_v59  ;;  %v6400_v59 = vld [vmem:[%s8298_s1 + $0x180] sm:$0xff]   ;;  %v6417_v0 = vld [vmem:[%s8298_s1 + $0x158] sm:$0xff]  }
  0x7e   : > { %5629 = vmatmul.mubr.bf16.gmra.mrb[40].mxu1 %v6351_v5  ;;  %5709 = vmatmul.mubr.bf16.gmra.mrb[40].mxu0 %v1071_v9  ;;  %v1140_v5 = vshll.u32 %v6378_v61, 16 }
  0x7f   : > { %5632 = vmatprep.mubr.msk.bf16.mxu1 %vm6668_vm0, %v8302_v1  ;;  %5712 = vmatprep.mubr.msk.bf16.mxu0 %vm6668_vm0, %v8302_v1  ;;  %v1135_v9 = vsel %vm1051_vm1, %v1130_v7, %v1134_v3 }
  0x80   : > { %5861 = vmatpush3.bf16.msra.mxu0 %v6362_v8  ;;  %5780 = vmatprep.subr.bf16.mxu1 %v8302_v1  ;;  %v6375_v8 = vld [vmem:[%s6722_s23 + $0x140] ss:$16 sps:$4 sm:$0xff]   ;;  %v1142_v10 = vrot.slane %v1140_v5, 1  ;;  %v6402_v5 = vld [vmem:[%s6722_s23 + $0x2c] ss:$16 sps:$4 sm:$0xff]  }
  0x81   : > { %5862 = vmatprep.subr.bf16.mxu0 %v8302_v1  ;;  %5781 = vmatpush3.bf16.msra.mxu1 %v6373_v11  ;;  %v1148_v11 = vshll.u32 %v6382_v6, 16 }
  0x82   : > { %5782 = vmatprep.subr.bf16.mxu1 %v8302_v1  ;;  %v1143_v15 = vsel %vm1051_vm1, %v1138_v12, %v1142_v10  ;;  %v6418_v12 = vld [vmem:[%s8298_s1 + $0x198] sm:$0xff]  }
  0x84   : > { %5863 = vmatpush3.bf16.msra.mxu0 %v6368_v14  ;;  %v1144_v14 = vshrl.u32 %v6378_v61, 16  ;;  %v6406_v61 = vld [vmem:[%s8298_s1 + $0x188] sm:$0xff]  }
  0x85   : > { %5864 = vmatprep.subr.bf16.mxu0 %v8302_v1  ;;  %5783 = vmatpush3.bf16.msra.mxu1 %v6379_v16  ;;  %v1150_v16 = vrot.slane %v1148_v11, 1  ;;  %v6423_v11 = vld [vmem:[%s8298_s1 + $0x160] sm:$0xff]  }
  0x86   : > { %5633 = vmatmul.mubr.bf16.gmra.mrb[44].mxu1 %v6353_v17  ;;  %5713 = vmatmul.mubr.bf16.gmra.mrb[44].mxu0 %v1079_v18  ;;  %v6384_v17 = vld [vmem:[%s6722_s23 + $0x1a0] ss:$16 sps:$4 sm:$0xff]   ;;  %v1146_v18 = vor.u32 %v1144_v14, %v1142_v10 }
  0x87   : > { %5636 = vmatprep.mubr.msk.bf16.mxu1 %vm6668_vm0, %v8302_v1  ;;  %5716 = vmatprep.mubr.msk.bf16.mxu0 %vm6668_vm0, %v8302_v1  ;;  %v6412_v10 = vld [vmem:[%s8298_s1 + $0x190] sm:$0xff]  }
  0x88   : > { %5865 = vmatpush3.bf16.msra.mxu0 %v6374_v21  ;;  %5784 = vmatprep.subr.bf16.mxu1 %v8302_v1  ;;  %v1151_v20 = vsel %vm1051_vm1, %v1146_v18, %v1150_v16  ;;  %v1152_v21 = vshrl.u32 %v6382_v6, 16  ;;  %v6403_v18 = vld [vmem:[%s6722_s23 + $0x68] ss:$16 sps:$4 sm:$0xff]  }
  0x89   : > { %5866 = vmatprep.subr.bf16.mxu0 %v8302_v1  ;;  %5785 = vmatpush3.bf16.msra.mxu1 %v6385_v22  ;;  %v1156_v22 = vshll.u32 %v6384_v17, 16 }
  0x8a   : > { %5786 = vmatprep.subr.bf16.mxu1 %v8302_v1 }
  0x8b   : > { %v1158_v24 = vrot.slane %v1156_v22, 1 }
  0x8c   : > { %5867 = vmatpush3.bf16.msra.mxu0 %v6380_v23  ;;  %v1154_v23 = vor.u32 %v1152_v21, %v1150_v16 }
  0x8d   : > { %5868 = vmatprep.subr.bf16.mxu0 %v8302_v1  ;;  %5787 = vmatpush3.bf16.msra.mxu1 %v6391_v25  ;;  %v6388_v25 = vld [vmem:[%s6722_s23 + $0x1c0] ss:$16 sps:$4 sm:$0xff]  }
  0x8e   : > { %5637 = vmatmul.mubr.bf16.gmra.mrb[48].mxu1 %v6357_v26  ;;  %5717 = vmatmul.mubr.bf16.gmra.mrb[48].mxu0 %v1087_v28  ;;  %v6383_v26 = vld [vmem:[%s6722_s23 + $0x1a0] ss:$16 sps:$4 sm:$0xff]   ;;  %v1159_v27 = vsel %vm1051_vm1, %v1154_v23, %v1158_v24  ;;  %v1160_v28 = vshrl.u32 %v6384_v17, 16  ;;  %v1164_v29 = vshll.u32 %v6388_v25, 16  ;;  %v1168_v35 = vshrl.u32 %v6388_v25, 16 }
  0x8f   : > { %5640 = vmatprep.mubr.msk.bf16.mxu1 %vm6668_vm0, %v8302_v1  ;;  %5720 = vmatprep.mubr.msk.bf16.mxu0 %vm6668_vm0, %v8302_v1  ;;  %v6435_v25 = vld [vmem:[%s8298_s1 + $0x170] sm:$0xff]  }
  0x90   : > { %5869 = vmatpush3.bf16.msra.mxu0 %v6386_v31  ;;  %5940 = vmatprep.subr.bf16.mxu1 %v8302_v1  ;;  %v1162_v30 = vor.u32 %v1160_v28, %v1158_v24  ;;  %v1166_v31 = vrot.slane %v1164_v29, 1  ;;  %v6424_v24 = vld [vmem:[%s8298_s1 + $0x1a0] sm:$0xff]   ;;  %v6441_v29 = vld [vmem:[%s8298_s1 + $0x178] sm:$0xff]  }
  0x91   : > { %5870 = vmatprep.subr.bf16.mxu0 %v8302_v1 }
  0x94   : > { %5871 = vmatpush3.bf16.msra.mxu0 %v6394_v34  ;;  %v1167_v34 = vsel %vm1051_vm1, %v1162_v30, %v1166_v31 }
  0x95   : > { %6024 = vmatprep.subr.bf16.mxu0 %v8302_v1 }
  0x96   : > { %5641 = vmatmul.mubr.bf16.gmra.mrb[52].mxu1 %v6359_v36  ;;  %5721 = vmatmul.mubr.bf16.gmra.mrb[52].mxu0 %v1095_v37  ;;  %v1172_v36 = vshll.u32 %v6390_v32, 16  ;;  %v1170_v37 = vor.u32 %v1168_v35, %v1166_v31  ;;  %v6407_v32 = vld [vmem:[%s6722_s23 + $0x88] ss:$16 sps:$4 sm:$0xff]  }
  0x97   : > { %5644 = vmatprep.mubr.msk.bf16.mxu1 %vm6668_vm0, %v8302_v1  ;;  %5724 = vmatprep.mubr.msk.bf16.mxu0 %vm6668_vm0, %v8302_v1 }
  0x98   : > { %v1174_v38 = vrot.slane %v1172_v36, 1 }
  0x9a   : > { %v1175_v41 = vsel %vm1051_vm1, %v1170_v37, %v1174_v38 }
  0x9e   : > { %5645 = vmatmul.mubr.bf16.gmra.mrb[56].mxu1 %v6363_v43  ;;  %5725 = vmatmul.mubr.bf16.gmra.mrb[56].mxu0 %v1103_v44  ;;  %v1180_v43 = vshll.u32 %v6393_v39, 16  ;;  %v1178_v44 = vor.u32 %v1176_v42, %v1174_v38  ;;  %v6436_v38 = vld [vmem:[%s8298_s1 + $0x1b0] sm:$0xff]  }
  0x9f   : > { %5648 = vmatprep.mubr.msk.bf16.mxu1 %vm6668_vm0, %v8302_v1  ;;  %5728 = vmatprep.mubr.msk.bf16.mxu0 %vm6668_vm0, %v8302_v1 }
  0xa0   : > { %v1182_v45 = vrot.slane %v1180_v43, 1 }
  0xa2   : > { %v1183_v48 = vsel %vm1051_vm1, %v1178_v44, %v1182_v45  ;;  %v6409_v44 = vld [vmem:[%s6722_s23 + $0xa8] ss:$16 sps:$4 sm:$0xff]  }
  0xa6   : > { %5649 = vmatmul.mubr.bf16.gmra.mrb[60].mxu1 %v6365_v49  ;;  %5729 = vmatmul.mubr.bf16.gmra.mrb[60].mxu0 %v1111_v51  ;;  %v1184_v49 = vshrl.u32 %v6393_v39, 16  ;;  %v6444_v39 = vld [vmem:[%s8298_s1 + $0x1b8] sm:$0xff]  }
  0xa7   : > { %5652 = vmatprep.mubr.msk.bf16.mxu1 %vm6668_vm0, %v8302_v1  ;;  %5732 = vmatprep.mubr.msk.bf16.mxu0 %vm6668_vm0, %v8302_v1 }
  0xa8   : > { %v1186_v51 = vor.u32 %v1184_v49, %v1182_v45  ;;  %v6410_v45 = vld [vmem:[%s6722_s23 + $0x8c] ss:$16 sps:$4 sm:$0xff]  }
  0xaa   : > { %v1191_v54 = vsel %vm1051_vm1, %v1186_v51, %v1190_v52 }
  0xae   : > { %5653 = vmatmul.mubr.bf16.gmra.mrb[64].mxu1 %v6369_v57  ;;  %5733 = vmatmul.mubr.bf16.gmra.mrb[64].mxu0 %v1119_v58  ;;  %v6398_v57 = vld [vmem:[%s6722_s23 + $0x28] ss:$16 sps:$4 sm:$0xff]   ;;  %v6399_v58 = vld [vmem:[%s6722_s23 + $0xc] ss:$16 sps:$4 sm:$0xff]  }
  0xaf   : > { %5656 = vmatprep.mubr.msk.bf16.mxu1 %vm6668_vm0, %v8302_v1  ;;  %5736 = vmatprep.mubr.msk.bf16.mxu0 %vm6668_vm0, %v8302_v1 }
  0xb6   : > { %5657 = vmatmul.mubr.bf16.gmra.mrb[68].mxu1 %v6371_v63  ;;  %5737 = vmatmul.mubr.bf16.gmra.mrb[68].mxu0 %v1127_v2 }
  0xb7   : > { %5660 = vmatprep.mubr.msk.bf16.mxu1 %vm6668_vm0, %v8302_v1  ;;  %5740 = vmatprep.mubr.msk.bf16.mxu0 %vm6668_vm0, %v8302_v1 }
  0xbe   : > { %5661 = vmatmul.mubr.bf16.gmra.mrb[72].mxu1 %v6375_v8  ;;  %5741 = vmatmul.mubr.bf16.gmra.mrb[72].mxu0 %v1135_v9 }
  0xbf   : > { %5664 = vmatprep.mubr.msk.bf16.mxu1 %vm6668_vm0, %v8302_v1  ;;  %5744 = vmatprep.mubr.msk.bf16.mxu0 %vm6668_vm0, %v8302_v1 }
  0xc6   : > { %5665 = vmatmul.mubr.bf16.gmra.mrb[76].mxu1 %v6377_v13  ;;  %5745 = vmatmul.mubr.bf16.gmra.mrb[76].mxu0 %v1143_v15  ;;  %v6429_v15 = vld [vmem:[%s8298_s1 + $0x168] sm:$0xff]  }
  0xc7   : > { %5668 = vmatprep.mubr.msk.bf16.mxu1 %vm6668_vm0, %v8302_v1  ;;  %5748 = vmatprep.mubr.msk.bf16.mxu0 %vm6668_vm0, %v8302_v1 }
  0xce   : > { %5669 = vmatmul.mubr.bf16.gmra.mrb[80].mxu1 %v6381_v19  ;;  %5749 = vmatmul.mubr.bf16.gmra.mrb[80].mxu0 %v1151_v20  ;;  %v6404_v19 = vld [vmem:[%s6722_s23 + $0x4c] ss:$16 sps:$4 sm:$0xff]  }
  0xcf   : > { %5672 = vmatprep.mubr.msk.bf16.mxu1 %vm6668_vm0, %v8302_v1  ;;  %5752 = vmatprep.mubr.msk.bf16.mxu0 %vm6668_vm0, %v8302_v1 }
  0xd6   : > { %5673 = vmatmul.mubr.bf16.gmra.mrb[84].mxu1 %v6383_v26  ;;  %5753 = vmatmul.mubr.bf16.gmra.mrb[84].mxu0 %v1159_v27  ;;  %v6430_v26 = vld [vmem:[%s8298_s1 + $0x1a8] sm:$0xff]  }
  0xd7   : > { %5676 = vmatprep.mubr.msk.bf16.mxu1 %vm6668_vm0, %v8302_v1  ;;  %5756 = vmatprep.mubr.msk.bf16.mxu0 %vm6668_vm0, %v8302_v1 }
  0xde   : > { %5677 = vmatmul.mubr.bf16.gmra.mrb[88].mxu1 %v6387_v33  ;;  %5757 = vmatmul.mubr.bf16.gmra.mrb[88].mxu0 %v1167_v34  ;;  %v6408_v33 = vld [vmem:[%s6722_s23 + $0x6c] ss:$16 sps:$4 sm:$0xff]  }
  0xdf   : > { %5680 = vmatprep.mubr.msk.bf16.mxu1 %vm6668_vm0, %v8302_v1  ;;  %5760 = vmatprep.mubr.msk.bf16.mxu0 %vm6668_vm0, %v8302_v1 }
  0xe6   : > { %5681 = vmatmul.mubr.bf16.gmra.mrb[92].mxu1 %v6389_v40  ;;  %5761 = vmatmul.mubr.bf16.gmra.mrb[92].mxu0 %v1175_v41 }
  0xe7   : > { %5684 = vmatprep.mubr.msk.bf16.mxu1 %vm6668_vm0, %v8302_v1  ;;  %5764 = vmatprep.mubr.msk.bf16.mxu0 %vm6668_vm0, %v8302_v1 }
  0xee   : > { %5685 = vmatmul.mubr.bf16.gmra.mrb[96].mxu1 %v6392_v47  ;;  %5765 = vmatmul.mubr.bf16.gmra.mrb[96].mxu0 %v1183_v48 }
  0xef   : > { %5768 = vmatprep.mubr.msk.bf16.mxu0 %vm6668_vm0, %v8302_v1  ;;  %5788 = vmatprep.mubr.msk.bf16.mxu1 %vm6668_vm0, %v8302_v1 }
  0xf6   : > { %5769 = vmatmul.mubr.bf16.gmra.mrb[100].mxu0 %v1191_v54  ;;  %5789 = vmatmul.mubr.bf16.vlgmr.msra.gmra.mrb[100].mxu1 %v6396_v53  ;;  %v6413_v54 = vld [vmem:[%s6722_s23 + $0xc8] ss:$16 sps:$4 sm:$0xff]  }
  0xf7   : > { %5792 = vmatprep.mubr.msk.bf16.mxu1 %vm6668_vm0, %v8302_v1  ;;  %5872 = vmatprep.mubr.msk.bf16.mxu0 %vm6668_vm0, %v8302_v1 }
  0xf8   : > { %5941 = vmatpush3.bf16.msra.mxu1 %v6397_v55  ;;  %v6414_v55 = vld [vmem:[%s6722_s23 + $0xac] ss:$16 sps:$4 sm:$0xff]  }
  0xf9   : > { %5942 = vmatprep.subr.bf16.mxu1 %v8302_v1 }
  0xfc   : > { %5943 = vmatpush3.bf16.msra.mxu1 %v6405_v56 }
  0xfd   : > { %5944 = vmatprep.subr.bf16.mxu1 %v8302_v1 }
  0xfe   : > { %5793 = vmatmul.mubr.bf16.gmra.mrb[104].mxu1 %v6398_v57  ;;  %5873 = vmatmul.mubr.bf16.vlgmr.msra.gmra.mrb[104].mxu0 %v6399_v58 }
  0xff   : > { %6025 = vmatpush3.bf16.msra.mxu0 %v6400_v59  ;;  %5796 = vmatprep.mubr.msk.bf16.mxu1 %vm6668_vm0, %v8302_v1 }
 0x100   : > { %5876 = vmatprep.mubr.msk.bf16.mxu0 %vm6668_vm0, %v8302_v1  ;;  %6026 = vmatprep.subr.bf16.mxu0 %v8302_v1 }
 0x101   : > { %v7089_v62 = vpop.f32.mrb[0].mxu0  ;;  %v7091_v63 = vpop.f32.mrb[0].mxu1  ;;  %5945 = vmatpush3.bf16.msra.mxu1 %v6411_v60 }
 0x102   : > { %v5538_v2 = vpop.f32.mrb[1].mxu0  ;;  %v5574_v3 = vpop.f32.mrb[1].mxu1  ;;  %5946 = vmatprep.subr.bf16.mxu1 %v8302_v1 }
 0x103   : > { %v7099_v6 = vpop.f32.mrb[2].mxu0  ;;  %v7101_v7 = vpop.f32.mrb[2].mxu1  ;;  %6027 = vmatpush3.bf16.msra.mxu0 %v6406_v61  ;;  %v6415_v3 = vld [vmem:[%s6722_s23 + $0xe8] ss:$16 sps:$4 sm:$0xff]  }
 0x104   : > { %v5539_v8 = vpop.f32.mrb[3].mxu0  ;;  %v5575_v9 = vpop.f32.mrb[3].mxu1  ;;  %6028 = vmatprep.subr.bf16.mxu0 %v8302_v1 }
 0x105   : > { %5947 = vmatpush3.bf16.msra.mxu1 %v6417_v0 }
 0x106   : > { %5797 = vmatmul.mubr.bf16.gmra.mrb[108].mxu1 %v6401_v4  ;;  %5877 = vmatmul.mubr.bf16.gmra.mrb[108].mxu0 %v6402_v5  ;;  %v6416_v4 = vld [vmem:[%s6722_s23 + $0xcc] ss:$16 sps:$4 sm:$0xff]  }
 0x107   : > { %5800 = vmatprep.mubr.msk.bf16.mxu1 %vm6668_vm0, %v8302_v1  ;;  %5880 = vmatprep.mubr.msk.bf16.mxu0 %vm6668_vm0, %v8302_v1 }
 0x108   : > { %6029 = vmatpush3.bf16.msra.mxu0 %v6412_v10  ;;  %5948 = vmatprep.subr.bf16.mxu1 %v8302_v1 }
 0x109   : > { %v7118_v13 = vpop.f32.mrb[4].mxu0  ;;  %v7120_v14 = vpop.f32.mrb[4].mxu1  ;;  %6030 = vmatprep.subr.bf16.mxu0 %v8302_v1  ;;  %5949 = vmatpush3.bf16.msra.mxu1 %v6423_v11 }
 0x10a   : > { %v5542_v16 = vpop.f32.mrb[5].mxu0  ;;  %v5578_v17 = vpop.f32.mrb[5].mxu1  ;;  %5950 = vmatprep.subr.bf16.mxu1 %v8302_v1 }
 0x10b   : > { %v7129_v20 = vpop.f32.mrb[6].mxu0  ;;  %v7131_v21 = vpop.f32.mrb[6].mxu1  ;;  %v6419_v17 = vld [vmem:[%s6722_s23 + $0x108] ss:$16 sps:$4 sm:$0xff]  }
 0x10c   : > { %v5543_v22 = vpop.f32.mrb[7].mxu0  ;;  %v5579_v23 = vpop.f32.mrb[7].mxu1  ;;  %6031 = vmatpush3.bf16.msra.mxu0 %v6418_v12 }
 0x10d   : > { %6032 = vmatprep.subr.bf16.mxu0 %v8302_v1  ;;  %5951 = vmatpush3.bf16.msra.mxu1 %v6429_v15 }
 0x10e   : > { %5801 = vmatmul.mubr.bf16.gmra.mrb[112].mxu1 %v6403_v18  ;;  %5881 = vmatmul.mubr.bf16.gmra.mrb[112].mxu0 %v6404_v19  ;;  %v6420_v18 = vld [vmem:[%s6722_s23 + $0xec] ss:$16 sps:$4 sm:$0xff]  }
 0x10f   : > { %5804 = vmatprep.mubr.msk.bf16.mxu1 %vm6668_vm0, %v8302_v1  ;;  %5884 = vmatprep.mubr.msk.bf16.mxu0 %vm6668_vm0, %v8302_v1 }
 0x110   : > { %6033 = vmatpush3.bf16.msra.mxu0 %v6424_v24  ;;  %5952 = vmatprep.subr.bf16.mxu1 %v8302_v1 }
 0x111   : > { %v7148_v27 = vpop.f32.mrb[8].mxu0  ;;  %v7150_v28 = vpop.f32.mrb[8].mxu1  ;;  %6034 = vmatprep.subr.bf16.mxu0 %v8302_v1  ;;  %5953 = vmatpush3.bf16.msra.mxu1 %v6435_v25 }
 0x112   : > { %v5546_v30 = vpop.f32.mrb[9].mxu0  ;;  %v5582_v31 = vpop.f32.mrb[9].mxu1  ;;  %5954 = vmatprep.subr.bf16.mxu1 %v8302_v1 }
 0x113   : > { %v7159_v34 = vpop.f32.mrb[10].mxu0  ;;  %v7161_v35 = vpop.f32.mrb[10].mxu1  ;;  %v6421_v31 = vld [vmem:[%s6722_s23 + $0x128] ss:$16 sps:$4 sm:$0xff]  }
 0x114   : > { %v5547_v36 = vpop.f32.mrb[11].mxu0  ;;  %v5583_v37 = vpop.f32.mrb[11].mxu1  ;;  %6035 = vmatpush3.bf16.msra.mxu0 %v6430_v26 }
 0x115   : > { %6036 = vmatprep.subr.bf16.mxu0 %v8302_v1  ;;  %5955 = vmatpush3.bf16.msra.mxu1 %v6441_v29 }
 0x116   : > { %5805 = vmatmul.mubr.bf16.gmra.mrb[116].mxu1 %v6407_v32  ;;  %5885 = vmatmul.mubr.bf16.gmra.mrb[116].mxu0 %v6408_v33  ;;  %v6422_v32 = vld [vmem:[%s6722_s23 + $0x10c] ss:$16 sps:$4 sm:$0xff]  }
 0x117   : > { %5808 = vmatprep.mubr.msk.bf16.mxu1 %vm6668_vm0, %v8302_v1  ;;  %5888 = vmatprep.mubr.msk.bf16.mxu0 %vm6668_vm0, %v8302_v1 }
 0x118   : > { %6037 = vmatpush3.bf16.msra.mxu0 %v6436_v38  ;;  %6108 = vmatprep.subr.bf16.mxu1 %v8302_v1 }
 0x119   : > { %v7175_v40 = vpop.f32.mrb[12].mxu0  ;;  %v7177_v41 = vpop.f32.mrb[12].mxu1  ;;  %6038 = vmatprep.subr.bf16.mxu0 %v8302_v1 }
 0x11a   : > { %v5550_v42 = vpop.f32.mrb[13].mxu0  ;;  %v5586_v43 = vpop.f32.mrb[13].mxu1 }
 0x11b   : > { %v7182_v46 = vpop.f32.mrb[14].mxu0  ;;  %v7184_v47 = vpop.f32.mrb[14].mxu1 }
 0x11c   : > { %v5551_v48 = vpop.f32.mrb[15].mxu0  ;;  %v5587_v49 = vpop.f32.mrb[15].mxu1  ;;  %6039 = vmatpush3.bf16.msra.mxu0 %v6444_v39 }
 0x11d   : > { %6192 = vmatprep.subr.bf16.mxu0 %v8302_v1  ;;  %v6425_v48 = vld [vmem:[%s6722_s23 + $0x148] ss:$16 sps:$4 sm:$0xff]   ;;  %v6426_v49 = vld [vmem:[%s6722_s23 + $0x12c] ss:$16 sps:$4 sm:$0xff]  }
 0x11e   : > { %5809 = vmatmul.mubr.bf16.gmra.mrb[120].mxu1 %v6409_v44  ;;  %5889 = vmatmul.mubr.bf16.gmra.mrb[120].mxu0 %v6410_v45 }
 0x11f   : > { %5812 = vmatprep.mubr.msk.bf16.mxu1 %vm6668_vm0, %v8302_v1  ;;  %5892 = vmatprep.mubr.msk.bf16.mxu0 %vm6668_vm0, %v8302_v1 }
 0x121   : > { %v7191_v50 = vpop.f32.mrb[16].mxu0  ;;  %v7193_v51 = vpop.f32.mrb[16].mxu1 }
 0x122   : > { %v5554_v52 = vpop.f32.mrb[17].mxu0  ;;  %v5590_v53 = vpop.f32.mrb[17].mxu1 }
 0x123   : > { %v7197_v56 = vpop.f32.mrb[18].mxu0  ;;  %v7199_v57 = vpop.f32.mrb[18].mxu1 }
 0x124   : > { %v5555_v58 = vpop.f32.mrb[19].mxu0  ;;  %v5591_v59 = vpop.f32.mrb[19].mxu1 }
 0x126   : > { %5813 = vmatmul.mubr.bf16.gmra.mrb[124].mxu1 %v6413_v54  ;;  %5893 = vmatmul.mubr.bf16.gmra.mrb[124].mxu0 %v6414_v55 }
 0x127   : > { %5816 = vmatprep.mubr.msk.bf16.mxu1 %vm6668_vm0, %v8302_v1  ;;  %5896 = vmatprep.mubr.msk.bf16.mxu0 %vm6668_vm0, %v8302_v1 }
 0x129   : > { %v7205_v60 = vpop.f32.mrb[20].mxu0  ;;  %v7207_v61 = vpop.f32.mrb[20].mxu1 }
 0x12a   : > { %v5558_v0 = vpop.f32.mrb[21].mxu0  ;;  %v5594_v2 = vpop.f32.mrb[21].mxu1 }
 0x12b   : > { %v7211_v5 = vpop.f32.mrb[22].mxu0  ;;  %v7213_v8 = vpop.f32.mrb[22].mxu1 }
 0x12c   : > { %v5559_v9 = vpop.f32.mrb[23].mxu0  ;;  %v5595_v10 = vpop.f32.mrb[23].mxu1 }
 0x12d   : > { %v6428_v9 = vld [vmem:[%s6722_s23 + $0x14c] ss:$16 sps:$4 sm:$0xff]  }
 0x12e   : > { %5817 = vmatmul.mubr.bf16.gmra.mrb[128].mxu1 %v6415_v3  ;;  %5897 = vmatmul.mubr.bf16.gmra.mrb[128].mxu0 %v6416_v4  ;;  %v6427_v4 = vld [vmem:[%s6722_s23 + $0x168] ss:$16 sps:$4 sm:$0xff]  }
 0x12f   : > { %5820 = vmatprep.mubr.msk.bf16.mxu1 %vm6668_vm0, %v8302_v1  ;;  %5900 = vmatprep.mubr.msk.bf16.mxu0 %vm6668_vm0, %v8302_v1 }
 0x131   : > { %v7219_v11 = vpop.f32.mrb[24].mxu0  ;;  %v7221_v12 = vpop.f32.mrb[24].mxu1 }
 0x132   : > { %v5562_v15 = vpop.f32.mrb[25].mxu0  ;;  %v5598_v16 = vpop.f32.mrb[25].mxu1 }
 0x133   : > { %v7225_v19 = vpop.f32.mrb[26].mxu0  ;;  %v7227_v22 = vpop.f32.mrb[26].mxu1 }
 0x134   : > { %v5563_v23 = vpop.f32.mrb[27].mxu0  ;;  %v5599_v24 = vpop.f32.mrb[27].mxu1 }
 0x136   : > { %5821 = vmatmul.mubr.bf16.gmra.mrb[132].mxu1 %v6419_v17  ;;  %5901 = vmatmul.mubr.bf16.gmra.mrb[132].mxu0 %v6420_v18 }
 0x137   : > { %5824 = vmatprep.mubr.msk.bf16.mxu1 %vm6668_vm0, %v8302_v1  ;;  %5904 = vmatprep.mubr.msk.bf16.mxu0 %vm6668_vm0, %v8302_v1 }
 0x139   : > { %v7233_v25 = vpop.f32.mrb[28].mxu0  ;;  %v7235_v26 = vpop.f32.mrb[28].mxu1 }
 0x13a   : > { %v5566_v29 = vpop.f32.mrb[29].mxu0  ;;  %v5602_v30 = vpop.f32.mrb[29].mxu1 }
 0x13b   : > { %v7239_v33 = vpop.f32.mrb[30].mxu0  ;;  %v7241_v36 = vpop.f32.mrb[30].mxu1 }
 0x13c   : > { %v5567_v37 = vpop.f32.mrb[31].mxu0  ;;  %v5603_v38 = vpop.f32.mrb[31].mxu1 }
 0x13e   : > { %5825 = vmatmul.mubr.bf16.gmra.mrb[136].mxu1 %v6421_v31  ;;  %5905 = vmatmul.mubr.bf16.gmra.mrb[136].mxu0 %v6422_v32  ;;  %v6431_v32 = vld [vmem:[%s6722_s23 + $0x188] ss:$16 sps:$4 sm:$0xff]  }
 0x13f   : > { %5828 = vmatprep.mubr.msk.bf16.mxu1 %vm6668_vm0, %v8302_v1  ;;  %5908 = vmatprep.mubr.msk.bf16.mxu0 %vm6668_vm0, %v8302_v1 }
 0x141   : > { %v7247_v39 = vpop.f32.mrb[32].mxu0  ;;  %v776_v42 = vpop.f32.mrb[32].mxu1 }
 0x142   : > { %v777_v43 = vadd.f32 %v776_v42, %v7089_v62  ;;  %v5570_v44 = vpop.f32.mrb[33].mxu0  ;;  %v5622_v45 = vpop.f32.mrb[33].mxu1 }
 0x143   : > { %v7252_v52 = vpop.f32.mrb[34].mxu0  ;;  %v779_v53 = vpop.f32.mrb[34].mxu1 }
 0x144   : > { %v780_v54 = vadd.f32 %v779_v53, %v7099_v6  ;;  %v5571_v55 = vpop.f32.mrb[35].mxu0  ;;  %v5623_v58 = vpop.f32.mrb[35].mxu1 }
 0x145   : > { %v6433_v58 = vld [vmem:[%s6722_s23 + $0x1a8] ss:$16 sps:$4 sm:$0xff]  }
 0x146   : > { %5829 = vmatmul.mubr.bf16.gmra.mrb[140].mxu1 %v6425_v48  ;;  %5909 = vmatmul.mubr.bf16.gmra.mrb[140].mxu0 %v6426_v49 }
 0x147   : > { %5832 = vmatprep.mubr.msk.bf16.mxu1 %vm6668_vm0, %v8302_v1  ;;  %5912 = vmatprep.mubr.msk.bf16.mxu0 %vm6668_vm0, %v8302_v1 }
 0x149   : > { %v784_v62 = vpop.f32.mrb[36].mxu1  ;;  %v1291_v59 = vpop.f32.mrb[36].mxu0 }
 0x14a   : > { %v785_v0 = vadd.f32 %v784_v62, %v7118_v13  ;;  %v5626_v2 = vpop.f32.mrb[37].mxu1  ;;  %v5706_v3 = vpop.f32.mrb[37].mxu0  ;;  %v7262_v10 = vadd.f32 %v1291_v59, %v777_v43 }
 0x14b   : > { %v787_v6 = vpop.f32.mrb[38].mxu1  ;;  %v1294_v15 = vpop.f32.mrb[38].mxu0 }
 0x14c   : > { %v788_v16 = vadd.f32 %v787_v6, %v7129_v20  ;;  %v5707_v17 = vpop.f32.mrb[39].mxu0  ;;  %v5627_v18 = vpop.f32.mrb[39].mxu1  ;;  %v7265_v23 = vadd.f32 %v1294_v15, %v780_v54  ;;  %v6432_v20 = vld [vmem:[%s6722_s23 + $0x16c] ss:$16 sps:$4 sm:$0xff]  }
 0x14d   : > { %v6438_v18 = vld [vmem:[%s6722_s23 + $0x1ac] ss:$16 sps:$4 sm:$0xff]  }
 0x14e   : > { %5833 = vmatmul.mubr.bf16.gmra.mrb[144].mxu1 %v6427_v4  ;;  %5913 = vmatmul.mubr.bf16.gmra.mrb[144].mxu0 %v6428_v9 }
 0x14f   : > { %5836 = vmatprep.mubr.msk.bf16.mxu1 %vm6668_vm0, %v8302_v1  ;;  %5916 = vmatprep.mubr.msk.bf16.mxu0 %vm6668_vm0, %v8302_v1 }
 0x151   : > { %v792_v13 = vpop.f32.mrb[40].mxu1  ;;  %v1299_v24 = vpop.f32.mrb[40].mxu0 }
 0x152   : > { %v793_v29 = vadd.f32 %v792_v13, %v7148_v27  ;;  %v5630_v30 = vpop.f32.mrb[41].mxu1  ;;  %v5710_v31 = vpop.f32.mrb[41].mxu0  ;;  %v7274_v37 = vadd.f32 %v1299_v24, %v785_v0 }
 0x153   : > { %v795_v38 = vpop.f32.mrb[42].mxu1  ;;  %v1302_v42 = vpop.f32.mrb[42].mxu0 }
 0x154   : > { %v796_v43 = vadd.f32 %v795_v38, %v7159_v34  ;;  %v5711_v44 = vpop.f32.mrb[43].mxu0  ;;  %v5631_v45 = vpop.f32.mrb[43].mxu1  ;;  %v7277_v48 = vadd.f32 %v1302_v42, %v788_v16  ;;  %v6434_v34 = vld [vmem:[%s6722_s23 + $0x18c] ss:$16 sps:$4 sm:$0xff]   ;;  %v6439_v42 = vld [vmem:[%s6722_s23 + $0x1e8] ss:$16 sps:$4 sm:$0xff]  }
 0x156   : > { %5837 = vmatmul.mubr.bf16.gmra.mrb[148].mxu1 %v6431_v32  ;;  %5917 = vmatmul.mubr.bf16.gmra.mrb[148].mxu0 %v6432_v20 }
 0x157   : > { %5840 = vmatprep.mubr.msk.bf16.mxu1 %vm6668_vm0, %v8302_v1  ;;  %5920 = vmatprep.mubr.msk.bf16.mxu0 %vm6668_vm0, %v8302_v1 }
 0x159   : > { %v800_v27 = vpop.f32.mrb[44].mxu1  ;;  %v1307_v49 = vpop.f32.mrb[44].mxu0 }
 0x15a   : > { %v801_v53 = vadd.f32 %v800_v27, %v7175_v40  ;;  %v5634_v54 = vpop.f32.mrb[45].mxu1  ;;  %v5714_v55 = vpop.f32.mrb[45].mxu0  ;;  %v7286_v62 = vadd.f32 %v1307_v49, %v793_v29  ;;  %v6440_v27 = vld [vmem:[%s6722_s23 + $0x1cc] ss:$16 sps:$4 sm:$0xff]   ;;  %v6446_v49 = vld [vmem:[%s6722_s23 + $0x8] ss:$16 sps:$4 sm:$0xff]  }
 0x15b   : > { %v803_v59 = vpop.f32.mrb[46].mxu1  ;;  %v1310_v0 = vpop.f32.mrb[46].mxu0 }
 0x15c   : > { %v804_v2 = vadd.f32 %v803_v59, %v7182_v46  ;;  %v5715_v3 = vpop.f32.mrb[47].mxu0  ;;  %v5635_v4 = vpop.f32.mrb[47].mxu1  ;;  %v7289_v9 = vadd.f32 %v1310_v0, %v796_v43  ;;  %v6437_v46 = vld [vmem:[%s6722_s23 + $0x1c8] ss:$16 sps:$4 sm:$0xff]   ;;  %v2411_v0 = vshll.u32 %v6446_v49, 16 }
 0x15d   : > { %v2817_v3 = vld [vmem:[%s6722_s23 + $0x30] sm:$0xf] }
 0x15e   : > { %5841 = vmatmul.mubr.bf16.gmra.mrb[152].mxu1 %v6433_v58  ;;  %5921 = vmatmul.mubr.bf16.gmra.mrb[152].mxu0 %v6434_v34 }
 0x15f   : > { %5844 = vmatprep.mubr.msk.bf16.mxu1 %vm6668_vm0, %v8302_v1  ;;  %5924 = vmatprep.mubr.msk.bf16.mxu0 %vm6668_vm0, %v8302_v1 }
 0x161   : > { %v808_v40 = vpop.f32.mrb[48].mxu1  ;;  %v1315_v6 = vpop.f32.mrb[48].mxu0 }
 0x162   : > { %v809_v15 = vadd.f32 %v808_v40, %v7191_v50  ;;  %v5638_v16 = vpop.f32.mrb[49].mxu1  ;;  %v5718_v17 = vpop.f32.mrb[49].mxu0  ;;  %v7298_v13 = vadd.f32 %v1315_v6, %v801_v53  ;;  %v2409_v6 = vshrl.u32 %v6446_v49, 16 }
 0x163   : > { %v811_v24 = vpop.f32.mrb[50].mxu1  ;;  %v1318_v29 = vpop.f32.mrb[50].mxu0 }
 0x164   : > { %v812_v30 = vadd.f32 %v811_v24, %v7197_v56  ;;  %v5719_v31 = vpop.f32.mrb[51].mxu0  ;;  %v5639_v32 = vpop.f32.mrb[51].mxu1  ;;  %v7301_v20 = vadd.f32 %v1318_v29, %v804_v2  ;;  %v2816_v2 = vld [vmem:[%s6722_s23 + $0x20] sm:$0xf]  ;;  %v2413_v24 = vrot.slane %v2411_v0, 1 }
 0x165   : > { %v4996_v32 = vcombine.low %v2816_v2, %v2817_v3  ;;  %v6445_v0 = vld [vmem:[%s6722_s23 + $0x20c] ss:$16 sps:$4 sm:$0xff]  }
 0x166   : > { %5845 = vmatmul.mubr.bf16.gmra.mrb[156].mxu1 %v6437_v46  ;;  %5925 = vmatmul.mubr.bf16.gmra.mrb[156].mxu0 %v6438_v18  ;;  %v6443_v18 = vld [vmem:[%s6722_s23 + $0x1ec] ss:$16 sps:$4 sm:$0xff]  }
 0x167   : > { %5848 = vmatprep.mubr.msk.bf16.mxu1 %vm6668_vm0, %v8302_v1  ;;  %5928 = vmatprep.mubr.msk.bf16.mxu0 %vm6668_vm0, %v8302_v1  ;;  %v2959_v49 = vshll.u32 %v4996_v32, 16 }
 0x169   : > { %v816_v50 = vpop.f32.mrb[52].mxu1  ;;  %v1323_v38 = vpop.f32.mrb[52].mxu0 }
 0x16a   : > { %v817_v43 = vadd.f32 %v816_v50, %v7205_v60  ;;  %v7309_v56 = vadd.f32 %v1323_v38, %v809_v15  ;;  %v5642_v44 = vpop.f32.mrb[53].mxu1  ;;  %v5722_v45 = vpop.f32.mrb[53].mxu0  ;;  %v6447_v60 = vld [vmem:[%s6722_s23 + $0x28] ss:$16 sps:$4 sm:$0xff]  }
 0x16b   : > { %v819_v53 = vpop.f32.mrb[54].mxu1  ;;  %v1326_v54 = vpop.f32.mrb[54].mxu0  ;;  %v2416_v29 = vshll.u32 %v6447_v60, 16  ;;  %v6449_v45 = vld [vmem:[%s6722_s23 + $0x48] ss:$16 sps:$4 sm:$0xff]   ;;  %v2420_v3 = vshrl.u32 %v6447_v60, 16 }
 0x16c   : > { %v820_v55 = vadd.f32 %v819_v53, %v7211_v5  ;;  %v7314_v58 = vadd.f32 %v1326_v54, %v812_v30  ;;  %v5723_v34 = vpop.f32.mrb[55].mxu0  ;;  %v5643_v59 = vpop.f32.mrb[55].mxu1  ;;  %v6442_v5 = vld [vmem:[%s6722_s23 + $0x208] ss:$16 sps:$4 sm:$0xff]   ;;  %v7352_v60 = vld [vmem:[%s6722_s23 + $0x60] ss:$16 sps:$4 sm:$0xff]  }
 0x16e   : > { %5849 = vmatmul.mubr.bf16.gmra.mrb[160].mxu1 %v6439_v42  ;;  %5929 = vmatmul.mubr.bf16.gmra.mrb[160].mxu0 %v6440_v27  ;;  %v6451_v27 = vld [vmem:[%s6722_s23 + $0x40] ss:$16 sps:$4 sm:$0xff]  }
 0x16f   : > { %5852 = vmatprep.mubr.msk.bf16.mxu1 %vm6668_vm0, %v8302_v1  ;;  %5932 = vmatprep.mubr.msk.bf16.mxu0 %vm6668_vm0, %v8302_v1 }
 0x171   : > { %v824_v4 = vpop.f32.mrb[56].mxu1  ;;  %v1331_v40 = vpop.f32.mrb[56].mxu0 }
 0x172   : > { %v825_v15 = vadd.f32 %v824_v4, %v7219_v11  ;;  %v7325_v16 = vadd.f32 %v1331_v40, %v817_v43  ;;  %v5646_v17 = vpop.f32.mrb[57].mxu1  ;;  %v5726_v46 = vpop.f32.mrb[57].mxu0  ;;  %v2414_v11 = vor.u32 %v2413_v24, %v2409_v6  ;;  %v2418_v43 = vrot.slane %v2416_v29, 1  ;;  %v6448_v29 = vld [vmem:[%s8298_s1 + $0x1c0] sm:$0xff]  }
 0x173   : > { %v827_v30 = vpop.f32.mrb[58].mxu1  ;;  %v1334_v31 = vpop.f32.mrb[58].mxu0  ;;  %v2957_v6 = vshrl.u32 %v4996_v32, 16  ;;  %v2961_v17 = vrot.slane %v2959_v49, 1  ;;  %v2964_v46 = vshll.u32 %v6451_v27, 16  ;;  %v2428_v49 = vshrl.u32 %v6449_v45, 16 }
 0x174   : > { %v828_v50 = vadd.f32 %v827_v30, %v7225_v19  ;;  %v7329_v38 = vadd.f32 %v1334_v31, %v820_v55  ;;  %v5727_v42 = vpop.f32.mrb[59].mxu0  ;;  %v5647_v44 = vpop.f32.mrb[59].mxu1  ;;  %v2419_v2 = vsel %vm1051_vm1, %v2414_v11, %v2418_v43  ;;  %v7349_v30 = vld [vmem:[%s6722_s23 + $0x68] ss:$16 sps:$4 sm:$0xff]  }
 0x175   : > { %v2962_v32 = vor.u32 %v2961_v17, %v2957_v6  ;;  %v6457_v42 = vld [vmem:[%s8298_s1 + $0x1c8] sm:$0xff]   ;;  %v6463_v17 = vld [vmem:[%s8298_s1 + $0x1d0] sm:$0xff]  }
 0x176   : > { %5853 = vmatmul.mubr.bf16.gmra.mrb[164].mxu1 %v6442_v5  ;;  %5933 = vmatmul.mubr.bf16.gmra.mrb[164].mxu0 %v6443_v18  ;;  %v2424_v5 = vshll.u32 %v6449_v45, 16  ;;  %v6452_v45 = vld [vmem:[%s8298_s1 + $0x200] sm:$0xff]  }
 0x177   : > { %5936 = vmatprep.mubr.msk.bf16.mxu0 %vm6668_vm0, %v8302_v1  ;;  %5956 = vmatprep.mubr.msk.bf16.mxu1 %vm6668_vm0, %v8302_v1 }
 0x178   : > { %v2426_v31 = vrot.slane %v2424_v5, 1 }
 0x179   : > { %v832_v53 = vpop.f32.mrb[60].mxu1  ;;  %v1339_v19 = vpop.f32.mrb[60].mxu0 }
 0x17a   : > { %v833_v54 = vadd.f32 %v832_v53, %v7233_v25  ;;  %v7338_v55 = vadd.f32 %v1339_v19, %v825_v15  ;;  %v5650_v34 = vpop.f32.mrb[61].mxu1  ;;  %v5730_v59 = vpop.f32.mrb[61].mxu0  ;;  %v2432_v53 = vshll.u32 %v7349_v30, 16 }
 0x17b   : > { %v835_v4 = vpop.f32.mrb[62].mxu1  ;;  %v1342_v40 = vpop.f32.mrb[62].mxu0 }
 0x17c   : > { %v836_v18 = vadd.f32 %v835_v4, %v7239_v33  ;;  %v7343_v24 = vadd.f32 %v1342_v40, %v828_v50  ;;  %v5731_v25 = vpop.f32.mrb[63].mxu0  ;;  %v5651_v15 = vpop.f32.mrb[63].mxu1  ;;  %v2422_v33 = vor.u32 %v2420_v3, %v2418_v43  ;;  %v2966_v50 = vrot.slane %v2964_v46, 1 }
 0x17d   : > { %v2430_v46 = vor.u32 %v2428_v49, %v2426_v31  ;;  %v2434_v25 = vrot.slane %v2432_v53, 1 }
 0x17e   : > { %5937 = vmatmul.mubr.bf16.gmra.mrb[168].mxu0 %v6445_v0  ;;  %5957 = vmatmul.mubr.bf16.vlgmr.msra.gmra.mrb[168].mxu1 %v2419_v2  ;;  %v2968_v0 = vshrl.u32 %v6451_v27, 16  ;;  %v2972_v2 = vshll.u32 %v7352_v60, 16  ;;  %v2427_v40 = vsel %vm1051_vm1, %v2422_v33, %v2426_v31  ;;  %v2967_v5 = vsel %vm1051_vm1, %v2962_v32, %v2966_v50  ;;  %v6458_v33 = vld [vmem:[%s8298_s1 + $0x208] sm:$0xff]  }
 0x17f   : > { %5960 = vmatprep.mubr.msk.bf16.mxu1 %vm6668_vm0, %v8302_v1  ;;  %6040 = vmatprep.mubr.msk.bf16.mxu0 %vm6668_vm0, %v8302_v1  ;;  %v2435_v53 = vsel %vm1051_vm1, %v2430_v46, %v2434_v25 }
 0x180   : > { %6109 = vmatpush3.bf16.msra.mxu1 %v6448_v29  ;;  %v2970_v15 = vor.u32 %v2968_v0, %v2966_v50  ;;  %v2974_v29 = vrot.slane %v2972_v2, 1  ;;  %v6469_v50 = vld [vmem:[%s8298_s1 + $0x1d8] sm:$0xff]   ;;  %v2436_v2 = vshrl.u32 %v7349_v30, 16  ;;  %v6464_v30 = vld [vmem:[%s8298_s1 + $0x210] sm:$0xff]  }
 0x181   : > { %v840_v44 = vpop.f32.mrb[64].mxu1  ;;  %v1347_v11 = vpop.f32.mrb[64].mxu0  ;;  %6110 = vmatprep.subr.bf16.mxu1 %v8302_v1 }
 0x182   : > { %v841_v19 = vadd.f32 %v840_v44, %v7247_v39  ;;  %v7364_v34 = vadd.f32 %v1347_v11, %v833_v54  ;;  %v5654_v43 = vpop.f32.mrb[65].mxu1  ;;  %v5734_v59 = vpop.f32.mrb[65].mxu0 }
 0x183   : > { %v843_v3 = vpop.f32.mrb[66].mxu1  ;;  %v1350_v4 = vpop.f32.mrb[66].mxu0  ;;  %v2975_v43 = vsel %vm1051_vm1, %v2970_v15, %v2974_v29  ;;  %v6470_v15 = vld [vmem:[%s8298_s1 + $0x218] sm:$0xff]  }
 0x184   : > { %v844_v39 = vadd.f32 %v843_v3, %v7252_v52  ;;  %v7373_v54 = vadd.f32 %v1350_v4, %v836_v18  ;;  %v5735_v6 = vpop.f32.mrb[67].mxu0  ;;  %v5655_v27 = vpop.f32.mrb[67].mxu1  ;;  %6111 = vmatpush3.bf16.msra.mxu1 %v6457_v42  ;;  %v7382_v52 = vld [vmem:[%s6722_s23 + $0x88] ss:$16 sps:$4 sm:$0xff]   ;;  %v7385_v18 = vld [vmem:[%s6722_s23 + $0x80] ss:$16 sps:$4 sm:$0xff]  }
 0x185   : > { %6112 = vmatprep.subr.bf16.mxu1 %v8302_v1  ;;  %v2440_v3 = vshll.u32 %v7382_v52, 16  ;;  %v7414_v6 = vld [vmem:[%s6722_s23 + $0xa8] ss:$16 sps:$4 sm:$0xff]  }
 0x186   : > { %5961 = vmatmul.mubr.bf16.gmra.mrb[172].mxu1 %v2427_v40  ;;  %6041 = vmatmul.mubr.bf16.vlgmr.msra.gmra.mrb[172].mxu0 %v2967_v5 }
 0x187   : > { %6193 = vmatpush3.bf16.msra.mxu0 %v6452_v45  ;;  %5964 = vmatprep.mubr.msk.bf16.mxu1 %vm6668_vm0, %v8302_v1  ;;  %v2442_v27 = vrot.slane %v2440_v3, 1 }
 0x188   : > { %6044 = vmatprep.mubr.msk.bf16.mxu0 %vm6668_vm0, %v8302_v1  ;;  %6194 = vmatprep.subr.bf16.mxu0 %v8302_v1 }
 0x189   : > { %v848_v31 = vpop.f32.mrb[68].mxu1  ;;  %v1355_v32 = vpop.f32.mrb[68].mxu0  ;;  %6113 = vmatpush3.bf16.msra.mxu1 %v6463_v17 }
 0x18a   : > { %v849_v42 = vadd.f32 %v848_v31, %v7091_v63  ;;  %v7397_v44 = vadd.f32 %v1355_v32, %v841_v19  ;;  %v5658_v11 = vpop.f32.mrb[69].mxu1  ;;  %v5738_v49 = vpop.f32.mrb[69].mxu0  ;;  %6114 = vmatprep.subr.bf16.mxu1 %v8302_v1  ;;  %v2976_v63 = vshrl.u32 %v7352_v60, 16  ;;  %v2980_v19 = vshll.u32 %v7385_v18, 16  ;;  %v6475_v60 = vld [vmem:[%s8298_s1 + $0x1e0] sm:$0xff]  }
 0x18b   : > { %v851_v59 = vpop.f32.mrb[70].mxu1  ;;  %v1358_v0 = vpop.f32.mrb[70].mxu0  ;;  %6195 = vmatpush3.bf16.msra.mxu0 %v6458_v33  ;;  %v2444_v32 = vshrl.u32 %v7382_v52, 16 }
 0x18c   : > { %v852_v4 = vadd.f32 %v851_v59, %v7101_v7  ;;  %v7407_v40 = vadd.f32 %v1358_v0, %v844_v39  ;;  %v5739_v5 = vpop.f32.mrb[71].mxu0  ;;  %v5659_v45 = vpop.f32.mrb[71].mxu1  ;;  %6196 = vmatprep.subr.bf16.mxu0 %v8302_v1  ;;  %v7420_v7 = vld [vmem:[%s6722_s23 + $0xa0] ss:$16 sps:$4 sm:$0xff]   ;;  %v2438_v39 = vor.u32 %v2436_v2, %v2434_v25  ;;  %v2978_v17 = vor.u32 %v2976_v63, %v2974_v29  ;;  %v6481_v25 = vld [vmem:[%s8298_s1 + $0x1e8] sm:$0xff]  }
 0x18d   : > { %6115 = vmatpush3.bf16.msra.mxu1 %v6469_v50  ;;  %v2982_v46 = vrot.slane %v2980_v19, 1  ;;  %v2448_v50 = vshll.u32 %v7414_v6, 16  ;;  %v2988_v59 = vshll.u32 %v7420_v7, 16  ;;  %v6487_v5 = vld [vmem:[%s8298_s1 + $0x1f0] sm:$0xff]  }
 0x18e   : > { %5965 = vmatmul.mubr.bf16.gmra.mrb[176].mxu1 %v2435_v53  ;;  %6045 = vmatmul.mubr.bf16.gmra.mrb[176].mxu0 %v2975_v43  ;;  %v2984_v43 = vshrl.u32 %v7385_v18, 16  ;;  %v2443_v2 = vsel %vm1051_vm1, %v2438_v39, %v2442_v27  ;;  %v6476_v18 = vld [vmem:[%s8298_s1 + $0x220] sm:$0xff]  }
 0x18f   : > { %5968 = vmatprep.mubr.msk.bf16.mxu1 %vm6668_vm0, %v8302_v1  ;;  %6048 = vmatprep.mubr.msk.bf16.mxu0 %vm6668_vm0, %v8302_v1  ;;  %v2983_v3 = vsel %vm1051_vm1, %v2978_v17, %v2982_v46  ;;  %v7462_v39 = vld [vmem:[%s6722_s23 + $0xc0] ss:$16 sps:$4 sm:$0xff]   ;;  %v6482_v17 = vld [vmem:[%s8298_s1 + $0x228] sm:$0xff]  }
 0x190   : > { %6197 = vmatpush3.bf16.msra.mxu0 %v6464_v30  ;;  %6116 = vmatprep.subr.bf16.mxu1 %v8302_v1  ;;  %v2986_v45 = vor.u32 %v2984_v43, %v2982_v46  ;;  %v2990_v30 = vrot.slane %v2988_v59, 1  ;;  %v2452_v59 = vshrl.u32 %v7414_v6, 16  ;;  %v7493_v6 = vld [vmem:[%s6722_s23 + $0xe0] ss:$16 sps:$4 sm:$0xff]  }
 0x191   : > { %v856_v33 = vpop.f32.mrb[72].mxu1  ;;  %v1363_v31 = vpop.f32.mrb[72].mxu0  ;;  %6198 = vmatprep.subr.bf16.mxu0 %v8302_v1  ;;  %6117 = vmatpush3.bf16.msra.mxu1 %v6475_v60  ;;  %v7459_v60 = vld [vmem:[%s6722_s23 + $0xc8] ss:$16 sps:$4 sm:$0xff]  }
 0x192   : > { %v857_v29 = vadd.f32 %v856_v33, %v7120_v14  ;;  %v7437_v11 = vadd.f32 %v1363_v31, %v849_v42  ;;  %v5662_v49 = vpop.f32.mrb[73].mxu1  ;;  %v5742_v53 = vpop.f32.mrb[73].mxu0  ;;  %6118 = vmatprep.subr.bf16.mxu1 %v8302_v1 }
 0x193   : > { %v859_v52 = vpop.f32.mrb[74].mxu1  ;;  %v1366_v0 = vpop.f32.mrb[74].mxu0  ;;  %v2991_v49 = vsel %vm1051_vm1, %v2986_v45, %v2990_v30 }
 0x194   : > { %v860_v63 = vadd.f32 %v859_v52, %v7131_v21  ;;  %v7445_v19 = vadd.f32 %v1366_v0, %v852_v4  ;;  %v5743_v14 = vpop.f32.mrb[75].mxu0  ;;  %v5663_v42 = vpop.f32.mrb[75].mxu1  ;;  %6199 = vmatpush3.bf16.msra.mxu0 %v6470_v15  ;;  %v2446_v21 = vor.u32 %v2444_v32, %v2442_v27  ;;  %v2450_v4 = vrot.slane %v2448_v50, 1  ;;  %v6493_v15 = vld [vmem:[%s8298_s1 + $0x1f8] sm:$0xff]  }
 0x195   : > { %6200 = vmatprep.subr.bf16.mxu0 %v8302_v1  ;;  %6119 = vmatpush3.bf16.msra.mxu1 %v6481_v25  ;;  %v2456_v52 = vshll.u32 %v7459_v60, 16  ;;  %v6488_v42 = vld [vmem:[%s8298_s1 + $0x230] sm:$0xff]  }
 0x196   : > { %5969 = vmatmul.mubr.bf16.gmra.mrb[180].mxu1 %v2443_v2  ;;  %6049 = vmatmul.mubr.bf16.gmra.mrb[180].mxu0 %v2983_v3  ;;  %v2451_v25 = vsel %vm1051_vm1, %v2446_v21, %v2450_v4  ;;  %v6496_v21 = vld [vmem:[%s8298_s1 + $0x238] sm:$0xff]  }
 0x197   : > { %5972 = vmatprep.mubr.msk.bf16.mxu1 %vm6668_vm0, %v8302_v1  ;;  %6052 = vmatprep.mubr.msk.bf16.mxu0 %vm6668_vm0, %v8302_v1 }
 0x198   : > { %6201 = vmatpush3.bf16.msra.mxu0 %v6476_v18  ;;  %6120 = vmatprep.subr.bf16.mxu1 %v8302_v1  ;;  %v7489_v18 = vld [vmem:[%s6722_s23 + $0xe8] ss:$16 sps:$4 sm:$0xff]  }
 0x199   : > { %v864_v27 = vpop.f32.mrb[76].mxu1  ;;  %v1371_v46 = vpop.f32.mrb[76].mxu0  ;;  %6202 = vmatprep.subr.bf16.mxu0 %v8302_v1  ;;  %6121 = vmatpush3.bf16.msra.mxu1 %v6487_v5 }
 0x19a   : > { %v865_v33 = vadd.f32 %v864_v27, %v7150_v28  ;;  %v7473_v31 = vadd.f32 %v1371_v46, %v857_v29  ;;  %v5666_v32 = vpop.f32.mrb[77].mxu1  ;;  %v5746_v50 = vpop.f32.mrb[77].mxu0  ;;  %6122 = vmatprep.subr.bf16.mxu1 %v8302_v1  ;;  %v2992_v28 = vshrl.u32 %v7420_v7, 16  ;;  %v2996_v29 = vshll.u32 %v7462_v39, 16 }
 0x19b   : > { %v867_v53 = vpop.f32.mrb[78].mxu1  ;;  %v1374_v43 = vpop.f32.mrb[78].mxu0  ;;  %v2458_v7 = vrot.slane %v2456_v52, 1  ;;  %v2460_v27 = vshrl.u32 %v7459_v60, 16  ;;  %v2464_v46 = vshll.u32 %v7489_v18, 16  ;;  %v3000_v50 = vshrl.u32 %v7462_v39, 16 }
 0x19c   : > { %v868_v0 = vadd.f32 %v867_v53, %v7161_v35  ;;  %v7483_v2 = vadd.f32 %v1374_v43, %v860_v63  ;;  %v5747_v3 = vpop.f32.mrb[79].mxu0  ;;  %v5667_v14 = vpop.f32.mrb[79].mxu1  ;;  %6203 = vmatpush3.bf16.msra.mxu0 %v6482_v17  ;;  %v2454_v35 = vor.u32 %v2452_v59, %v2450_v4  ;;  %v2994_v63 = vor.u32 %v2992_v28, %v2990_v30 }
 0x19d   : > { %6204 = vmatprep.subr.bf16.mxu0 %v8302_v1  ;;  %6123 = vmatpush3.bf16.msra.mxu1 %v6493_v15  ;;  %v2998_v5 = vrot.slane %v2996_v29, 1  ;;  %v2462_v39 = vor.u32 %v2460_v27, %v2458_v7  ;;  %v2466_v28 = vrot.slane %v2464_v46, 1  ;;  %v6467_v14 = vld [vmem:[%s6722_s23 + $0x108] ss:$16 sps:$4 sm:$0xff]   ;;  %v2468_v46 = vshrl.u32 %v7489_v18, 16 }
 0x19e   : > { %5973 = vmatmul.mubr.bf16.gmra.mrb[184].mxu1 %v2451_v25  ;;  %6053 = vmatmul.mubr.bf16.gmra.mrb[184].mxu0 %v2991_v49  ;;  %v3004_v25 = vshll.u32 %v7493_v6, 16  ;;  %v2459_v43 = vsel %vm1051_vm1, %v2454_v35, %v2458_v7 }
 0x19f   : > { %5976 = vmatprep.mubr.msk.bf16.mxu1 %vm6668_vm0, %v8302_v1  ;;  %6056 = vmatprep.mubr.msk.bf16.mxu0 %vm6668_vm0, %v8302_v1  ;;  %v2999_v60 = vsel %vm1051_vm1, %v2994_v63, %v2998_v5  ;;  %v3002_v29 = vor.u32 %v3000_v50, %v2998_v5  ;;  %v2467_v5 = vsel %vm1051_vm1, %v2462_v39, %v2466_v28  ;;  %v2476_v39 = vshrl.u32 %v6467_v14, 16 }
 0x1a0   : > { %6205 = vmatpush3.bf16.msra.mxu0 %v6488_v42  ;;  %v3006_v3 = vrot.slane %v3004_v25, 1  ;;  %v7521_v42 = vld [vmem:[%s6722_s23 + $0x100] ss:$16 sps:$4 sm:$0xff]   ;;  %v2470_v18 = vor.u32 %v2468_v46, %v2466_v28 }
 0x1a1   : > { %v872_v45 = vpop.f32.mrb[80].mxu1  ;;  %v1379_v17 = vpop.f32.mrb[80].mxu0  ;;  %6206 = vmatprep.subr.bf16.mxu0 %v8302_v1  ;;  %v3012_v50 = vshll.u32 %v7521_v42, 16 }
 0x1a2   : > { %v873_v15 = vadd.f32 %v872_v45, %v7177_v41  ;;  %v7506_v32 = vadd.f32 %v1379_v17, %v865_v33  ;;  %v5670_v4 = vpop.f32.mrb[81].mxu1  ;;  %v5750_v30 = vpop.f32.mrb[81].mxu0  ;;  %v3007_v45 = vsel %vm1051_vm1, %v3002_v29, %v3006_v3 }
 0x1a3   : > { %v875_v49 = vpop.f32.mrb[82].mxu1  ;;  %v1382_v53 = vpop.f32.mrb[82].mxu0  ;;  %v2472_v4 = vshll.u32 %v6467_v14, 16  ;;  %v3008_v30 = vshrl.u32 %v7493_v6, 16 }
 0x1a4   : > { %v876_v59 = vadd.f32 %v875_v49, %v7184_v47  ;;  %v7513_v52 = vadd.f32 %v1382_v53, %v868_v0  ;;  %v5751_v41 = vpop.f32.mrb[83].mxu0  ;;  %v5671_v33 = vpop.f32.mrb[83].mxu1  ;;  %6207 = vmatpush3.bf16.msra.mxu0 %v6496_v21  ;;  %v7535_v53 = vld [vmem:[%s6722_s23 + $0x128] ss:$16 sps:$4 sm:$0xff]  }
 0x1a5   : > { %v3010_v41 = vor.u32 %v3008_v30, %v3006_v3  ;;  %v2480_v29 = vshll.u32 %v7535_v53, 16 }
 0x1a6   : > { %5977 = vmatmul.mubr.bf16.gmra.mrb[188].mxu1 %v2459_v43  ;;  %6057 = vmatmul.mubr.bf16.gmra.mrb[188].mxu0 %v2999_v60  ;;  %v7538_v43 = vld [vmem:[%s6722_s23 + $0x120] ss:$16 sps:$4 sm:$0xff]   ;;  %v2474_v60 = vrot.slane %v2472_v4, 1 }
 0x1a7   : > { %5980 = vmatprep.mubr.msk.bf16.mxu1 %vm6668_vm0, %v8302_v1  ;;  %6060 = vmatprep.mubr.msk.bf16.mxu0 %vm6668_vm0, %v8302_v1  ;;  %v2482_v30 = vrot.slane %v2480_v29, 1 }
 0x1a8   : > { %v2475_v3 = vsel %vm1051_vm1, %v2470_v18, %v2474_v60  ;;  %v2478_v4 = vor.u32 %v2476_v39, %v2474_v60  ;;  %v7561_v18 = vld [vmem:[%s6722_s23 + $0x140] ss:$16 sps:$4 sm:$0xff]  }
 0x1a9   : > { %v880_v47 = vpop.f32.mrb[84].mxu1  ;;  %v1387_v0 = vpop.f32.mrb[84].mxu0 }
 0x1aa   : > { %v881_v35 = vadd.f32 %v880_v47, %v7193_v51  ;;  %v7524_v63 = vadd.f32 %v1387_v0, %v873_v15  ;;  %v5674_v7 = vpop.f32.mrb[85].mxu1  ;;  %v5754_v21 = vpop.f32.mrb[85].mxu0  ;;  %v2483_v29 = vsel %vm1051_vm1, %v2478_v4, %v2482_v30 }
 0x1ab   : > { %v883_v17 = vpop.f32.mrb[86].mxu1  ;;  %v1390_v27 = vpop.f32.mrb[86].mxu0 }
 0x1ac   : > { %v884_v51 = vadd.f32 %v883_v17, %v7199_v57  ;;  %v7532_v15 = vadd.f32 %v1390_v27, %v876_v59  ;;  %v5755_v25 = vpop.f32.mrb[87].mxu0  ;;  %v5675_v49 = vpop.f32.mrb[87].mxu1  ;;  %v3014_v57 = vrot.slane %v3012_v50, 1 }
 0x1ad   : > { %v6473_v49 = vld [vmem:[%s6722_s23 + $0x148] ss:$16 sps:$4 sm:$0xff]  }
 0x1ae   : > { %5981 = vmatmul.mubr.bf16.gmra.mrb[192].mxu1 %v2467_v5  ;;  %6061 = vmatmul.mubr.bf16.gmra.mrb[192].mxu0 %v3007_v45  ;;  %v3016_v5 = vshrl.u32 %v7521_v42, 16  ;;  %v3020_v45 = vshll.u32 %v7538_v43, 16  ;;  %v3015_v14 = vsel %vm1051_vm1, %v3010_v41, %v3014_v57 }
 0x1af   : > { %5984 = vmatprep.mubr.msk.bf16.mxu1 %vm6668_vm0, %v8302_v1  ;;  %6064 = vmatprep.mubr.msk.bf16.mxu0 %vm6668_vm0, %v8302_v1 }
 0x1b0   : > { %v3018_v50 = vor.u32 %v3016_v5, %v3014_v57  ;;  %v3022_v25 = vrot.slane %v3020_v45, 1  ;;  %v2484_v45 = vshrl.u32 %v7535_v53, 16  ;;  %v7585_v53 = vld [vmem:[%s6722_s23 + $0x160] ss:$16 sps:$4 sm:$0xff]  }
 0x1b1   : > { %v888_v59 = vpop.f32.mrb[88].mxu1  ;;  %v1395_v33 = vpop.f32.mrb[88].mxu0 }
 0x1b2   : > { %v889_v47 = vadd.f32 %v888_v59, %v7207_v61  ;;  %v7546_v0 = vadd.f32 %v1395_v33, %v881_v35  ;;  %v5678_v7 = vpop.f32.mrb[89].mxu1  ;;  %v5758_v21 = vpop.f32.mrb[89].mxu0 }
 0x1b3   : > { %v891_v17 = vpop.f32.mrb[90].mxu1  ;;  %v1398_v28 = vpop.f32.mrb[90].mxu0  ;;  %v3023_v7 = vsel %vm1051_vm1, %v3018_v50, %v3022_v25 }
 0x1b4   : > { %v892_v27 = vadd.f32 %v891_v17, %v7213_v8  ;;  %v7553_v46 = vadd.f32 %v1398_v28, %v884_v51  ;;  %v5759_v61 = vpop.f32.mrb[91].mxu0  ;;  %v5679_v35 = vpop.f32.mrb[91].mxu1  ;;  %v8301_v8 = vrot.slane %v7493_v6, 1  ;;  %v3947_v51 = vrot.slane %v7521_v42, 1 }
 0x1b5   : > { %v2488_v17 = vshll.u32 %v6473_v49, 16  ;;  %v3024_v42 = vshrl.u32 %v7538_v43, 16  ;;  %v3028_v28 = vshll.u32 %v7561_v18, 16  ;;  %v7577_v61 = vld [vmem:[%s6722_s23 + $0x168] ss:$16 sps:$4 sm:$0xff]  }
 0x1b6   : > { %5985 = vmatmul.mubr.bf16.gmra.mrb[196].mxu1 %v2475_v3  ;;  %6065 = vmatmul.mubr.bf16.gmra.mrb[196].mxu0 %v3015_v14  ;;  %v7582_v35 = vsel %vm3933_vm2, %v8301_v8, %v3947_v51 }
 0x1b7   : > { %5988 = vmatprep.mubr.msk.bf16.mxu1 %vm6668_vm0, %v8302_v1  ;;  %6068 = vmatprep.mubr.msk.bf16.mxu0 %vm6668_vm0, %v8302_v1  ;;  %v3026_v4 = vor.u32 %v3024_v42, %v3022_v25  ;;  %v3030_v50 = vrot.slane %v3028_v28, 1 }
 0x1b9   : > { %v896_v41 = vpop.f32.mrb[92].mxu1  ;;  %v1403_v59 = vpop.f32.mrb[92].mxu0 }
 0x1ba   : > { %v897_v60 = vadd.f32 %v896_v41, %v7221_v12  ;;  %v7566_v33 = vadd.f32 %v1403_v59, %v889_v47  ;;  %v5682_v57 = vpop.f32.mrb[93].mxu1  ;;  %v5762_v39 = vpop.f32.mrb[93].mxu0  ;;  %v3949_v41 = vrot.slane %v7538_v43, 1 }
 0x1bb   : > { %v899_v21 = vpop.f32.mrb[94].mxu1  ;;  %v1406_v5 = vpop.f32.mrb[94].mxu0  ;;  %v2492_v39 = vshrl.u32 %v6473_v49, 16  ;;  %v3031_v49 = vsel %vm1051_vm1, %v3026_v4, %v3030_v50 }
 0x1bc   : > { %v900_v12 = vadd.f32 %v899_v21, %v7227_v22  ;;  %v7574_v47 = vadd.f32 %v1406_v5, %v892_v27  ;;  %v5763_v3 = vpop.f32.mrb[95].mxu0  ;;  %v5683_v14 = vpop.f32.mrb[95].mxu1  ;;  %v2486_v22 = vor.u32 %v2484_v45, %v2482_v30  ;;  %v2490_v27 = vrot.slane %v2488_v17, 1 }
 0x1bd   : > { %v3032_v14 = vshrl.u32 %v7561_v18, 16  ;;  %v3036_v30 = vshll.u32 %v7585_v53, 16  ;;  %v7604_v28 = vsel %vm3933_vm2, %v3947_v51, %v3949_v41 }
 0x1be   : > { %5989 = vmatmul.mubr.bf16.gmra.mrb[200].mxu1 %v2483_v29  ;;  %6069 = vmatmul.mubr.bf16.gmra.mrb[200].mxu0 %v3023_v7  ;;  %v2496_v29 = vshll.u32 %v7577_v61, 16  ;;  %v2491_v43 = vsel %vm1051_vm1, %v2486_v22, %v2490_v27  ;;  %v3951_v22 = vrot.slane %v7561_v18, 1  ;;  %v3040_v18 = vshrl.u32 %v7585_v53, 16 }
 0x1bf   : > { %5992 = vmatprep.mubr.msk.bf16.mxu1 %vm6668_vm0, %v8302_v1  ;;  %6072 = vmatprep.mubr.msk.bf16.mxu0 %vm6668_vm0, %v8302_v1 }
 0x1c1   : > { %v904_v59 = vpop.f32.mrb[96].mxu1  ;;  %v1411_v57 = vpop.f32.mrb[96].mxu0 }
 0x1c2   : > { %v905_v7 = vadd.f32 %v904_v59, %v7235_v26  ;;  %v7594_v21 = vadd.f32 %v1411_v57, %v897_v60  ;;  %v5686_v5 = vpop.f32.mrb[97].mxu1  ;;  %v5766_v3 = vpop.f32.mrb[97].mxu0  ;;  %v2494_v59 = vor.u32 %v2492_v39, %v2490_v27  ;;  %v2498_v57 = vrot.slane %v2496_v29, 1 }
 0x1c3   : > { %v907_v45 = vpop.f32.mrb[98].mxu1  ;;  %v1414_v25 = vpop.f32.mrb[98].mxu0  ;;  %v3034_v5 = vor.u32 %v3032_v14, %v3030_v50  ;;  %v3038_v3 = vrot.slane %v3036_v30, 1 }
 0x1c4   : > { %v908_v17 = vadd.f32 %v907_v45, %v7241_v36  ;;  %v7601_v42 = vadd.f32 %v1414_v25, %v900_v12  ;;  %v5767_v26 = vpop.f32.mrb[99].mxu0  ;;  %v5687_v60 = vpop.f32.mrb[99].mxu1  ;;  %v6479_v36 = vld [vmem:[%s6722_s23 + $0x188] ss:$16 sps:$4 sm:$0xff]   ;;  %v7612_v12 = vld [vmem:[%s6722_s23 + $0x180] ss:$16 sps:$4 sm:$0xff]   ;;  %v2499_v29 = vsel %vm1051_vm1, %v2494_v59, %v2498_v57  ;;  %v7630_v59 = vsel %vm3933_vm2, %v3949_v41, %v3951_v22 }
 0x1c5   : > { %v3039_v14 = vsel %vm1051_vm1, %v3034_v5, %v3038_v3  ;;  %8304 = vst [vmem:[#allocation2_spill] sm:$0xff] %v7630_v59  ;;  %v7633_v5 = vld [vmem:[%s6722_s23 + $0x1a0] ss:$16 sps:$4 sm:$0xff]   ;;  %v2508_v41 = vshrl.u32 %v6479_v36, 16  ;;  %v3048_v59 = vshrl.u32 %v7612_v12, 16 }
 0x1c6   : > { %5993 = vmatmul.mubr.bf16.gmra.mrb[204].mxu1 %v2491_v43  ;;  %6073 = vmatmul.mubr.bf16.gmra.mrb[204].mxu0 %v3031_v49  ;;  %v2500_v43 = vshrl.u32 %v7577_v61, 16  ;;  %v2504_v49 = vshll.u32 %v6479_v36, 16 }
 0x1c7   : > { %5996 = vmatprep.mubr.msk.bf16.mxu1 %vm6668_vm0, %v8302_v1  ;;  %6076 = vmatprep.mubr.msk.bf16.mxu0 %vm6668_vm0, %v8302_v1 }
 0x1c8   : > { %v2502_v61 = vor.u32 %v2500_v43, %v2498_v57  ;;  %v3052_v57 = vshll.u32 %v7633_v5, 16 }
 0x1c9   : > { %v1419_v4 = vpop.f32.mrb[100].mxu0  ;;  %v1695_v51 = vpop.f32.mrb[100].mxu1 }
 0x1ca   : > { %v7615_v45 = vadd.f32 %v1419_v4, %v905_v7  ;;  %v1830_v27 = vadd.f32 %v1695_v51, %v7262_v10  ;;  %v5770_v50 = vpop.f32.mrb[101].mxu0  ;;  %v5790_v39 = vpop.f32.mrb[101].mxu1  ;;  %v3044_v7 = vshll.u32 %v7612_v12, 16  ;;  %v7627_v51 = vld [vmem:[%s6722_s23 + $0x1a8] ss:$16 sps:$4 sm:$0xff]  }
 0x1cb   : > { %v1422_v30 = vpop.f32.mrb[102].mxu0  ;;  %v1698_v25 = vpop.f32.mrb[102].mxu1  ;;  %v3953_v39 = vrot.slane %v7585_v53, 1 }
 0x1cc   : > { %v7623_v26 = vadd.f32 %v1422_v30, %v908_v17  ;;  %v1831_v10 = vadd.f32 %v1698_v25, %v7265_v23  ;;  %v5771_v60 = vpop.f32.mrb[103].mxu0  ;;  %v5791_v4 = vpop.f32.mrb[103].mxu1  ;;  %v2506_v17 = vrot.slane %v2504_v49, 1  ;;  %v3042_v23 = vor.u32 %v3040_v18, %v3038_v3 }
 0x1cd   : > { %v3046_v50 = vrot.slane %v3044_v7, 1 }
 0x1ce   : > { %5997 = vmatmul.mubr.bf16.gmra.mrb[208].mxu1 %v2499_v29  ;;  %6077 = vmatmul.mubr.bf16.gmra.mrb[208].mxu0 %v3039_v14  ;;  %v2512_v29 = vshll.u32 %v7627_v51, 16  ;;  %v2507_v53 = vsel %vm1051_vm1, %v2502_v61, %v2506_v17  ;;  %v2510_v7 = vor.u32 %v2508_v41, %v2506_v17  ;;  %v3955_v61 = vrot.slane %v7612_v12, 1 }
 0x1cf   : > { %6000 = vmatprep.mubr.msk.bf16.mxu1 %vm6668_vm0, %v8302_v1  ;;  %6080 = vmatprep.mubr.msk.bf16.mxu0 %vm6668_vm0, %v8302_v1  ;;  %v3047_v36 = vsel %vm1051_vm1, %v3042_v23, %v3046_v50  ;;  %v3056_v12 = vshrl.u32 %v7633_v5, 16 }
 0x1d1   : > { %v1703_v30 = vpop.f32.mrb[104].mxu1  ;;  %v2099_v25 = vpop.f32.mrb[104].mxu0 }
 0x1d2   : > { %v1832_v14 = vadd.f32 %v1703_v30, %v7274_v37  ;;  %v7642_v60 = vadd.f32 %v2099_v25, %v1830_v27  ;;  %v5794_v4 = vpop.f32.mrb[105].mxu1  ;;  %v5874_v8 = vpop.f32.mrb[105].mxu0  ;;  %v2514_v30 = vrot.slane %v2512_v29, 1  ;;  %v3050_v25 = vor.u32 %v3048_v59, %v3046_v50 }
 0x1d3   : > { %v1706_v43 = vpop.f32.mrb[106].mxu1  ;;  %v2102_v3 = vpop.f32.mrb[106].mxu0  ;;  %v7652_v8 = vsel %vm3933_vm2, %v3951_v22, %v3953_v39  ;;  %v3054_v4 = vrot.slane %v3052_v57, 1 }
 0x1d4   : > { %v1833_v49 = vadd.f32 %v1706_v43, %v7277_v48  ;;  %v7649_v18 = vadd.f32 %v2102_v3, %v1831_v10  ;;  %v5875_v37 = vpop.f32.mrb[107].mxu0  ;;  %v5795_v27 = vpop.f32.mrb[107].mxu1  ;;  %v6485_v48 = vld [vmem:[%s6722_s23 + $0x1c8] ss:$16 sps:$4 sm:$0xff]   ;;  %v7660_v10 = vld [vmem:[%s6722_s23 + $0x1c0] ss:$16 sps:$4 sm:$0xff]   ;;  %v2515_v41 = vsel %vm1051_vm1, %v2510_v7, %v2514_v30  ;;  %v7678_v7 = vsel %vm3933_vm2, %v3953_v39, %v3955_v61 }
 0x1d5   : > { %v3055_v29 = vsel %vm1051_vm1, %v3050_v25, %v3054_v4  ;;  %v3060_v37 = vshll.u32 %v7660_v10, 16  ;;  %8306 = vst [vmem:[#allocation4_spill] sm:$0xff] %v7678_v7  ;;  %v7681_v25 = vld [vmem:[%s6722_s23 + $0x1e0] ss:$16 sps:$4 sm:$0xff]   ;;  %v2524_v39 = vshrl.u32 %v6485_v48, 16 }
 0x1d6   : > { %6001 = vmatmul.mubr.bf16.gmra.mrb[212].mxu1 %v2507_v53  ;;  %6081 = vmatmul.mubr.bf16.gmra.mrb[212].mxu0 %v3047_v36  ;;  %v2516_v53 = vshrl.u32 %v7627_v51, 16  ;;  %v2520_v36 = vshll.u32 %v6485_v48, 16 }
 0x1d7   : > { %6004 = vmatprep.mubr.msk.bf16.mxu1 %vm6668_vm0, %v8302_v1  ;;  %6084 = vmatprep.mubr.msk.bf16.mxu0 %vm6668_vm0, %v8302_v1 }
 0x1d8   : > { %v2522_v51 = vrot.slane %v2520_v36, 1 }
 0x1d9   : > { %v1711_v23 = vpop.f32.mrb[108].mxu1  ;;  %v2107_v22 = vpop.f32.mrb[108].mxu0 }
 0x1da   : > { %v1834_v43 = vadd.f32 %v1711_v23, %v7286_v62  ;;  %v7664_v17 = vadd.f32 %v2107_v22, %v1832_v14  ;;  %v5798_v59 = vpop.f32.mrb[109].mxu1  ;;  %v5878_v50 = vpop.f32.mrb[109].mxu0  ;;  %v7675_v22 = vld [vmem:[%s6722_s23 + $0x1e8] ss:$16 sps:$4 sm:$0xff]  }
 0x1db   : > { %v1714_v57 = vpop.f32.mrb[110].mxu1  ;;  %v2110_v3 = vpop.f32.mrb[110].mxu0  ;;  %v3062_v59 = vrot.slane %v3060_v37, 1  ;;  %v3957_v50 = vrot.slane %v7633_v5, 1 }
 0x1dc   : > { %v1835_v62 = vadd.f32 %v1714_v57, %v7289_v9  ;;  %v7672_v14 = vadd.f32 %v2110_v3, %v1833_v49  ;;  %v5879_v27 = vpop.f32.mrb[111].mxu0  ;;  %v5799_v23 = vpop.f32.mrb[111].mxu1  ;;  %v2518_v9 = vor.u32 %v2516_v53, %v2514_v30  ;;  %v3058_v49 = vor.u32 %v3056_v12, %v3054_v4 }
 0x1dd   : > { %v3068_v30 = vshll.u32 %v7681_v25, 16  ;;  %v7700_v37 = vsel %vm3933_vm2, %v3955_v61, %v3957_v50 }
 0x1de   : > { %8305 = vst [vmem:[#allocation3_spill] sm:$0xff] %v7672_v14  ;;  %6005 = vmatmul.mubr.bf16.gmra.mrb[216].mxu1 %v2515_v41  ;;  %6085 = vmatmul.mubr.bf16.gmra.mrb[216].mxu0 %v3055_v29  ;;  %v2528_v41 = vshll.u32 %v7675_v22, 16  ;;  %v3064_v14 = vshrl.u32 %v7660_v10, 16  ;;  %v2523_v5 = vsel %vm1051_vm1, %v2518_v9, %v2522_v51  ;;  %v3063_v48 = vsel %vm1051_vm1, %v3058_v49, %v3062_v59 }
 0x1df   : > { %6008 = vmatprep.mubr.msk.bf16.mxu1 %vm6668_vm0, %v8302_v1  ;;  %6088 = vmatprep.mubr.msk.bf16.mxu0 %vm6668_vm0, %v8302_v1  ;;  %v3959_v9 = vrot.slane %v7660_v10, 1  ;;  %v3072_v10 = vshrl.u32 %v7681_v25, 16 }
 0x1e1   : > { %v1719_v57 = vpop.f32.mrb[112].mxu1  ;;  %v2115_v3 = vpop.f32.mrb[112].mxu0 }
 0x1e2   : > { %v1836_v29 = vadd.f32 %v1719_v57, %v7298_v13  ;;  %v7690_v27 = vadd.f32 %v2115_v3, %v1834_v43  ;;  %v5802_v23 = vpop.f32.mrb[113].mxu1  ;;  %v5882_v7 = vpop.f32.mrb[113].mxu0  ;;  %v2530_v57 = vrot.slane %v2528_v41, 1  ;;  %v3066_v3 = vor.u32 %v3064_v14, %v3062_v59 }
 0x1e3   : > { %v1722_v53 = vpop.f32.mrb[114].mxu1  ;;  %v2118_v4 = vpop.f32.mrb[114].mxu0  ;;  %v2526_v7 = vor.u32 %v2524_v39, %v2522_v51  ;;  %v3070_v23 = vrot.slane %v3068_v30, 1 }
 0x1e4   : > { %v1837_v36 = vadd.f32 %v1722_v53, %v7301_v20  ;;  %v7697_v12 = vadd.f32 %v2118_v4, %v1835_v62  ;;  %v5883_v13 = vpop.f32.mrb[115].mxu0  ;;  %v5803_v43 = vpop.f32.mrb[115].mxu1  ;;  %v6491_v20 = vld [vmem:[%s6722_s23 + $0x208] ss:$16 sps:$4 sm:$0xff]   ;;  %v7708_v62 = vld [vmem:[%s6722_s23 + $0x200] ss:$16 sps:$4 sm:$0xff]  }
 0x1e5   : > { %v2531_v39 = vsel %vm1051_vm1, %v2526_v7, %v2530_v57  ;;  %v3071_v41 = vsel %vm1051_vm1, %v3066_v3, %v3070_v23  ;;  %v3076_v13 = vshll.u32 %v7708_v62, 16  ;;  %v7724_v7 = vsel %vm3933_vm2, %v3957_v50, %v3959_v9 }
 0x1e6   : > { %6009 = vmatmul.mubr.bf16.gmra.mrb[220].mxu1 %v2523_v5  ;;  %6089 = vmatmul.mubr.bf16.gmra.mrb[220].mxu0 %v3063_v48  ;;  %v2532_v5 = vshrl.u32 %v7675_v22, 16  ;;  %v2536_v48 = vshll.u32 %v6491_v20, 16  ;;  %8307 = vst [vmem:[#allocation5_spill] sm:$0xff] %v7724_v7 }
 0x1e7   : > { %6012 = vmatprep.mubr.msk.bf16.mxu1 %vm6668_vm0, %v8302_v1  ;;  %6092 = vmatprep.mubr.msk.bf16.mxu0 %vm6668_vm0, %v8302_v1 }
 0x1e8   : > { %v2534_v22 = vor.u32 %v2532_v5, %v2530_v57  ;;  %v2538_v3 = vrot.slane %v2536_v48, 1  ;;  %v3080_v48 = vshrl.u32 %v7708_v62, 16 }
 0x1e9   : > { %v1727_v49 = vpop.f32.mrb[116].mxu1  ;;  %v2123_v61 = vpop.f32.mrb[116].mxu0 }
 0x1ea   : > { %v1838_v53 = vadd.f32 %v1727_v49, %v7309_v56  ;;  %v7712_v51 = vadd.f32 %v2123_v61, %v1836_v29  ;;  %v5806_v14 = vpop.f32.mrb[117].mxu1  ;;  %v5886_v59 = vpop.f32.mrb[117].mxu0  ;;  %v6494_v61 = vld [vmem:[%s6722_s23 + $0x228] ss:$0 sps:$4 sm:$0x11]  }
 0x1eb   : > { %v1730_v30 = vpop.f32.mrb[118].mxu1  ;;  %v2126_v4 = vpop.f32.mrb[118].mxu0  ;;  %v3074_v14 = vor.u32 %v3072_v10, %v3070_v23  ;;  %v3961_v59 = vrot.slane %v7681_v25, 1  ;;  %v2539_v23 = vsel %vm1051_vm1, %v2534_v22, %v2538_v3  ;;  %v7749_v22 = vld [vmem:[%s6722_s23 + $0x240] ss:$0 sps:$4 sm:$0x11]  }
 0x1ec   : > { %v1839_v56 = vadd.f32 %v1730_v30, %v7314_v58  ;;  %v7720_v29 = vadd.f32 %v2126_v4, %v1837_v36  ;;  %v5887_v43 = vpop.f32.mrb[119].mxu0  ;;  %v5807_v49 = vpop.f32.mrb[119].mxu1  ;;  %v3078_v58 = vrot.slane %v3076_v13, 1  ;;  %v7731_v36 = vld [vmem:[%s6722_s23 + $0x220] ss:$16 sps:$4 sm:$0xff]   ;;  %v2540_v4 = vshrl.u32 %v6491_v20, 16 }
 0x1ed   : > { %v3084_v25 = vshll.u32 %v7731_v36, 16  ;;  %v6498_v20 = vld [vmem:[%s6722_s23 + $0x24] ss:$16 sps:$4 sm:$0xff]  }
 0x1ee   : > { %6013 = vmatmul.mubr.bf16.gmra.mrb[224].mxu1 %v2531_v39  ;;  %6093 = vmatmul.mubr.bf16.gmra.mrb[224].mxu0 %v3071_v41  ;;  %v2544_v39 = vshll.u32 %v6494_v61, 16  ;;  %v3079_v5 = vsel %vm1051_vm1, %v3074_v14, %v3078_v58  ;;  %v2542_v61 = vor.u32 %v2540_v4, %v2538_v3  ;;  %v8310_v14 = vmov 0.0  }
 0x1ef   : > { %6016 = vmatprep.mubr.msk.bf16.mxu1 %vm6668_vm0, %v8302_v1  ;;  %6096 = vmatprep.mubr.msk.bf16.mxu0 %vm6668_vm0, %v8302_v1  ;;  %v3963_v3 = vrot.slane %v7708_v62, 1 }
 0x1f1   : > { %v1735_v30 = vpop.f32.mrb[120].mxu1  ;;  %v2131_v50 = vpop.f32.mrb[120].mxu0 }
 0x1f2   : > { %v1840_v41 = vadd.f32 %v1735_v30, %v7325_v16  ;;  %v7735_v43 = vadd.f32 %v2131_v50, %v1838_v53  ;;  %v5810_v49 = vpop.f32.mrb[121].mxu1  ;;  %v5890_v7 = vpop.f32.mrb[121].mxu0  ;;  %v7746_v30 = vsel %vm3933_vm2, %v3959_v9, %v3961_v59  ;;  %v3507_v50 = vshll.u32 %v6498_v20, 16 }
 0x1f3   : > { %v1738_v1 = vpop.f32.mrb[122].mxu1  ;;  %v2134_v57 = vpop.f32.mrb[122].mxu0  ;;  %v2546_v7 = vrot.slane %v2544_v39, 1  ;;  %8309 = vst [vmem:[#allocation7_spill] sm:$0xff] %v7746_v30  ;;  %v3505_v30 = vshrl.u32 %v6498_v20, 16 }
 0x1f4   : > { %v1841_v10 = vadd.f32 %v1738_v1, %v7329_v38  ;;  %v7743_v16 = vadd.f32 %v2134_v57, %v1839_v56  ;;  %v5891_v53 = vpop.f32.mrb[123].mxu0  ;;  %v5811_v13 = vpop.f32.mrb[123].mxu1  ;;  %v3082_v1 = vor.u32 %v3080_v48, %v3078_v58  ;;  %v3086_v38 = vrot.slane %v3084_v25, 1  ;;  %v6499_v56 = vld [vmem:[%s6722_s23 + $0x44] ss:$16 sps:$4 sm:$0xff]  }
 0x1f5   : > { %v2547_v9 = vsel %vm1051_vm1, %v2542_v61, %v2546_v7  ;;  %v3088_v53 = vshrl.u32 %v7731_v36, 16  ;;  %v3092_v13 = vshll.u32 %v7749_v22, 16  ;;  %v3509_v62 = vrot.slane %v3507_v50, 1 }
 0x1f6   : > { %8308 = vst [vmem:[#allocation6_spill] sm:$0xff] %v7743_v16  ;;  %6017 = vmatmul.mubr.bf16.gmra.mrb[228].mxu1 %v2539_v23  ;;  %6097 = vmatmul.mubr.bf16.gmra.mrb[228].mxu0 %v3079_v5  ;;  %v3087_v25 = vsel %vm1051_vm1, %v3082_v1, %v3086_v38  ;;  %v3512_v16 = vshll.u32 %v6499_v56, 16  ;;  %v3965_v50 = vrot.slane %v7731_v36, 1 }
 0x1f7   : > { %6020 = vmatprep.mubr.msk.bf16.mxu1 %vm6668_vm0, %v8310_v14  ;;  %6100 = vmatprep.mubr.msk.bf16.mxu0 %vm6668_vm0, %v8310_v14  ;;  %v3510_v20 = vor.u32 %v3509_v62, %v3505_v30 }
 0x1f8   : > { %v3514_v1 = vrot.slane %v3512_v16, 1  ;;  %v3516_v16 = vshrl.u32 %v6499_v56, 16 }
 0x1f9   : > { %v1743_v4 = vpop.f32.mrb[124].mxu1  ;;  %v2139_v39 = vpop.f32.mrb[124].mxu0 }
 0x1fa   : > { %v1842_v49 = vadd.f32 %v1743_v4, %v7338_v55  ;;  %v7759_v57 = vadd.f32 %v2139_v39, %v1840_v41  ;;  %v5814_v23 = vpop.f32.mrb[125].mxu1  ;;  %v5894_v5 = vpop.f32.mrb[125].mxu0  ;;  %v7768_v4 = vsel %vm3933_vm2, %v3961_v59, %v3963_v3  ;;  %v3090_v39 = vor.u32 %v3088_v53, %v3086_v38 }
 0x1fb   : > { %v1746_v58 = vpop.f32.mrb[126].mxu1  ;;  %v2142_v48 = vpop.f32.mrb[126].mxu0  ;;  %8311 = vst [vmem:[#allocation8_spill] sm:$0xff] %v7768_v4  ;;  %v3094_v23 = vrot.slane %v3092_v13, 1  ;;  %v3515_v30 = vsel %vm1051_vm1, %v3510_v20, %v3514_v1  ;;  %v3518_v56 = vor.u32 %v3516_v16, %v3514_v1  ;;  %v6654_v20 = vld [vmem:[%s6722_s23 + $0x40] ss:$16 sps:$4 sm:$0xff]  }
 0x1fc   : > { %v1843_v61 = vadd.f32 %v1746_v58, %v7343_v24  ;;  %v7765_v55 = vadd.f32 %v2142_v48, %v1841_v10  ;;  %v5895_v41 = vpop.f32.mrb[127].mxu0  ;;  %v5815_v7 = vpop.f32.mrb[127].mxu1  ;;  %v6500_v24 = vld [vmem:[%s6722_s23 + $0x64] ss:$16 sps:$4 sm:$0xff]   ;;  %v3912_v10 = vld [vmem:[%s6722_s23 + $0x20] sm:$0xe] }
 0x1fd   : > { %v3095_v13 = vsel %vm1051_vm1, %v3090_v39, %v3094_v23  ;;  %v3520_v62 = vshll.u32 %v6500_v24, 16  ;;  %v6653_v41 = vld [vmem:[%s6722_s23 + $0x30] sm:$0xf] }
 0x1fe   : > { %6021 = vmatmul.mubr.bf16.gmra.mrb[232].mxu1 %v2547_v9  ;;  %6101 = vmatmul.mubr.bf16.gmra.mrb[232].mxu0 %v3087_v25  ;;  %v5080_v36 = vcombine.low %v3912_v10, %v6653_v41  ;;  %v3967_v10 = vrot.slane %v7749_v22, 1 }
 0x1ff   : > { %6104 = vmatprep.mubr.msk.bf16.mxu0 %vm6668_vm0, %v8310_v14  ;;  %6124 = vmatprep.mubr.msk.bf16.mxu1 %vm6668_vm0, %v8310_v14  ;;  %v3522_v39 = vrot.slane %v3520_v62, 1  ;;  %v3524_v62 = vshrl.u32 %v6500_v24, 16 }
 0x200   : > { %v3934_v23 = vrot.slane %v5080_v36, 1 }
 0x201   : > { %v1751_v5 = vpop.f32.mrb[128].mxu1  ;;  %v2147_v59 = vpop.f32.mrb[128].mxu0  ;;  %v3523_v1 = vsel %vm1051_vm1, %v3518_v56, %v3522_v39  ;;  %v6655_v56 = vld [vmem:[%s6722_s23 + $0x60] ss:$16 sps:$4 sm:$0xff]  }
 0x202   : > { %v1844_v9 = vadd.f32 %v1751_v5, %v7364_v34  ;;  %v7778_v58 = vadd.f32 %v2147_v59, %v1842_v49  ;;  %v5818_v38 = vpop.f32.mrb[129].mxu1  ;;  %v5898_v53 = vpop.f32.mrb[129].mxu0  ;;  %v7787_v5 = vsel %vm3933_vm2, %v3963_v3, %v3965_v50 }
 0x203   : > { %v1754_v48 = vpop.f32.mrb[130].mxu1  ;;  %v2150_v25 = vpop.f32.mrb[130].mxu0 }
 0x204   : > { %v1845_v7 = vadd.f32 %v1754_v48, %v7373_v54  ;;  %v7784_v4 = vadd.f32 %v2150_v25, %v1843_v61  ;;  %v5899_v34 = vpop.f32.mrb[131].mxu0  ;;  %v5819_v49 = vpop.f32.mrb[131].mxu1  ;;  %v3935_v54 = vrot.slane %v6654_v20, 1  ;;  %v6502_v61 = vld [vmem:[%s6722_s23 + $0x84] ss:$16 sps:$4 sm:$0xff]  }
 0x205   : > { %v3528_v41 = vshll.u32 %v6502_v61, 16  ;;  %v3526_v49 = vor.u32 %v3524_v62, %v3522_v39 }
 0x206   : > { %6105 = vmatmul.mubr.bf16.gmra.mrb[236].mxu0 %v3095_v13  ;;  %6125 = vmatmul.mubr.bf16.vlgmr.msra.gmra.mrb[236].mxu1 %v3515_v30  ;;  %v3936_v16 = vsel %vm3933_vm2, %v3934_v23, %v3935_v54  ;;  %v3937_v23 = vrot.slane %v6655_v56, 1 }
 0x207   : > { %6128 = vmatprep.mubr.msk.bf16.mxu1 %vm6668_vm0, %v8310_v14  ;;  %6208 = vmatprep.mubr.msk.bf16.mxu0 %vm6668_vm0, %v8310_v14  ;;  %v3530_v24 = vrot.slane %v3528_v41, 1 }
 0x208   : > { %v3938_v39 = vsel %vm3933_vm2, %v3935_v54, %v3937_v23 }
 0x209   : > { %v1759_v59 = vpop.f32.mrb[132].mxu1  ;;  %v2155_v38 = vpop.f32.mrb[132].mxu0 }
 0x20a   : > { %v1846_v3 = vadd.f32 %v1759_v59, %v7397_v44  ;;  %v7797_v53 = vadd.f32 %v2155_v38, %v1844_v9  ;;  %v5822_v13 = vpop.f32.mrb[133].mxu1  ;;  %v5902_v48 = vpop.f32.mrb[133].mxu0  ;;  %v7805_v9 = vsel %vm3933_vm2, %v3965_v50, %v3967_v10 }
 0x20b   : > { %v1762_v25 = vpop.f32.mrb[134].mxu1  ;;  %v2158_v30 = vpop.f32.mrb[134].mxu0 }
 0x20c   : > { %v1847_v22 = vadd.f32 %v1762_v25, %v7407_v40  ;;  %v7802_v36 = vadd.f32 %v2158_v30, %v1845_v7  ;;  %v5903_v34 = vpop.f32.mrb[135].mxu0  ;;  %v5823_v44 = vpop.f32.mrb[135].mxu1  ;;  %v6503_v40 = vld [vmem:[%s6722_s23 + $0xa4] ss:$16 sps:$4 sm:$0xff]   ;;  %v3531_v25 = vsel %vm1051_vm1, %v3526_v49, %v3530_v24  ;;  %v3532_v30 = vshrl.u32 %v6502_v61, 16 }
 0x20d   : > { %v6656_v44 = vld [vmem:[%s6722_s23 + $0x80] ss:$16 sps:$4 sm:$0xff]   ;;  %v6504_v61 = vld [vmem:[%s6722_s23 + $0xc4] ss:$16 sps:$4 sm:$0xff]  }
 0x20e   : > { %6129 = vmatmul.mubr.bf16.gmra.mrb[240].mxu1 %v3523_v1  ;;  %6209 = vmatmul.mubr.bf16.vlgmr.msra.gmra.mrb[240].mxu0 %v3936_v16  ;;  %v3536_v1 = vshll.u32 %v6503_v40, 16  ;;  %v3939_v54 = vrot.slane %v6656_v44, 1 }
 0x20f   : > { %6132 = vmatprep.mubr.msk.bf16.mxu1 %vm6668_vm0, %v8310_v14  ;;  %6212 = vmatprep.mubr.msk.bf16.mxu0 %vm6668_vm0, %v8310_v14 }
 0x210   : > { %v3538_v34 = vrot.slane %v3536_v1, 1 }
 0x211   : > { %v1767_v7 = vpop.f32.mrb[136].mxu1  ;;  %v2163_v20 = vpop.f32.mrb[136].mxu0 }
 0x212   : > { %v1848_v59 = vadd.f32 %v1767_v7, %v7437_v11  ;;  %v7814_v38 = vadd.f32 %v2163_v20, %v1846_v3  ;;  %v5826_v50 = vpop.f32.mrb[137].mxu1  ;;  %v5906_v10 = vpop.f32.mrb[137].mxu0  ;;  %v3534_v3 = vor.u32 %v3532_v30, %v3530_v24  ;;  %v3940_v24 = vsel %vm3933_vm2, %v3937_v23, %v3939_v54 }
 0x213   : > { %v1770_v13 = vpop.f32.mrb[138].mxu1  ;;  %v2166_v48 = vpop.f32.mrb[138].mxu0 }
 0x214   : > { %v1849_v16 = vadd.f32 %v1770_v13, %v7445_v19  ;;  %v7819_v62 = vadd.f32 %v2166_v48, %v1847_v22  ;;  %v5907_v41 = vpop.f32.mrb[139].mxu0  ;;  %v5827_v11 = vpop.f32.mrb[139].mxu1  ;;  %v3539_v13 = vsel %vm1051_vm1, %v3534_v3, %v3538_v34  ;;  %v3540_v48 = vshrl.u32 %v6503_v40, 16  ;;  %v6505_v40 = vld [vmem:[%s6722_s23 + $0xe4] ss:$16 sps:$4 sm:$0xff]  }
 0x215   : > { %v6657_v11 = vld [vmem:[%s6722_s23 + $0xa0] ss:$16 sps:$4 sm:$0xff]  }
 0x216   : > { %6133 = vmatmul.mubr.bf16.gmra.mrb[244].mxu1 %v3531_v25  ;;  %6213 = vmatmul.mubr.bf16.gmra.mrb[244].mxu0 %v3938_v39  ;;  %v3544_v25 = vshll.u32 %v6504_v61, 16  ;;  %v3941_v23 = vrot.slane %v6657_v11, 1 }
 0x217   : > { %6136 = vmatprep.mubr.msk.bf16.mxu1 %vm6668_vm0, %v8310_v14  ;;  %6216 = vmatprep.mubr.msk.bf16.mxu0 %vm6668_vm0, %v8310_v14 }
 0x218   : > { %v3546_v41 = vrot.slane %v3544_v25, 1 }
 0x219   : > { %v1775_v49 = vpop.f32.mrb[140].mxu1  ;;  %v2171_v56 = vpop.f32.mrb[140].mxu0 }
 0x21a   : > { %v1850_v19 = vadd.f32 %v1775_v49, %v7473_v31  ;;  %v7828_v22 = vadd.f32 %v2171_v56, %v1848_v59  ;;  %v5830_v7 = vpop.f32.mrb[141].mxu1  ;;  %v5910_v20 = vpop.f32.mrb[141].mxu0  ;;  %v3542_v59 = vor.u32 %v3540_v48, %v3538_v34  ;;  %v3942_v34 = vsel %vm3933_vm2, %v3939_v54, %v3941_v23  ;;  %v6506_v54 = vld [vmem:[%s6722_s23 + $0x104] ss:$16 sps:$4 sm:$0xff]  }
 0x21b   : > { %v1778_v50 = vpop.f32.mrb[142].mxu1  ;;  %v2174_v10 = vpop.f32.mrb[142].mxu0 }
 0x21c   : > { %v1851_v39 = vadd.f32 %v1778_v50, %v7483_v2  ;;  %v7833_v30 = vadd.f32 %v2174_v10, %v1849_v16  ;;  %v5911_v1 = vpop.f32.mrb[143].mxu0  ;;  %v5831_v31 = vpop.f32.mrb[143].mxu1  ;;  %v3547_v50 = vsel %vm1051_vm1, %v3542_v59, %v3546_v41  ;;  %v3548_v10 = vshrl.u32 %v6504_v61, 16 }
 0x21d   : > { %v6658_v1 = vld [vmem:[%s6722_s23 + $0xc0] ss:$16 sps:$4 sm:$0xff]  }
 0x21e   : > { %6137 = vmatmul.mubr.bf16.gmra.mrb[248].mxu1 %v3539_v13  ;;  %6217 = vmatmul.mubr.bf16.gmra.mrb[248].mxu0 %v3940_v24  ;;  %v3552_v13 = vshll.u32 %v6505_v40, 16  ;;  %v3943_v31 = vrot.slane %v6658_v1, 1 }
 0x21f   : > { %6140 = vmatprep.mubr.msk.bf16.mxu1 %vm6668_vm0, %v8310_v14  ;;  %6220 = vmatprep.mubr.msk.bf16.mxu0 %vm6668_vm0, %v8310_v14 }
 0x220   : > { %v3554_v61 = vrot.slane %v3552_v13, 1 }
 0x221   : > { %v1783_v3 = vpop.f32.mrb[144].mxu1  ;;  %v2179_v44 = vpop.f32.mrb[144].mxu0 }
 0x222   : > { %v1852_v2 = vadd.f32 %v1783_v3, %v7506_v32  ;;  %v7842_v16 = vadd.f32 %v2179_v44, %v1850_v19  ;;  %v5834_v49 = vpop.f32.mrb[145].mxu1  ;;  %v5914_v56 = vpop.f32.mrb[145].mxu0  ;;  %v3550_v19 = vor.u32 %v3548_v10, %v3546_v41  ;;  %v3944_v41 = vsel %vm3933_vm2, %v3941_v23, %v3943_v31 }
 0x223   : > { %v1786_v7 = vpop.f32.mrb[146].mxu1  ;;  %v2182_v20 = vpop.f32.mrb[146].mxu0 }
 0x224   : > { %v1853_v24 = vadd.f32 %v1786_v7, %v7513_v52  ;;  %v7847_v48 = vadd.f32 %v2182_v20, %v1851_v39  ;;  %v5915_v25 = vpop.f32.mrb[147].mxu0  ;;  %v5835_v32 = vpop.f32.mrb[147].mxu1  ;;  %v3555_v7 = vsel %vm1051_vm1, %v3550_v19, %v3554_v61  ;;  %v3556_v20 = vshrl.u32 %v6505_v40, 16 }
 0x226   : > { %6141 = vmatmul.mubr.bf16.gmra.mrb[252].mxu1 %v3547_v50  ;;  %6221 = vmatmul.mubr.bf16.gmra.mrb[252].mxu0 %v3942_v34  ;;  %v3560_v50 = vshll.u32 %v6506_v54, 16 }
 0x227   : > { %6144 = vmatprep.mubr.msk.bf16.mxu1 %vm6668_vm0, %v8310_v14  ;;  %6224 = vmatprep.mubr.msk.bf16.mxu0 %vm6668_vm0, %v8310_v14 }
 0x228   : > { %v3562_v23 = vrot.slane %v3560_v50, 1  ;;  %v6508_v50 = vld [vmem:[%s6722_s23 + $0x144] ss:$16 sps:$4 sm:$0xff]  }
 0x229   : > { %v1791_v59 = vpop.f32.mrb[148].mxu1  ;;  %v2187_v11 = vpop.f32.mrb[148].mxu0 }
 0x22a   : > { %v1854_v52 = vadd.f32 %v1791_v59, %v7524_v63  ;;  %v7856_v39 = vadd.f32 %v2187_v11, %v1852_v2  ;;  %v5838_v3 = vpop.f32.mrb[149].mxu1  ;;  %v5918_v44 = vpop.f32.mrb[149].mxu0  ;;  %v3558_v63 = vor.u32 %v3556_v20, %v3554_v61  ;;  %v6507_v2 = vld [vmem:[%s6722_s23 + $0x124] ss:$16 sps:$4 sm:$0xff]   ;;  %v3564_v61 = vshrl.u32 %v6506_v54, 16 }
 0x22b   : > { %v1794_v49 = vpop.f32.mrb[150].mxu1  ;;  %v2190_v56 = vpop.f32.mrb[150].mxu0  ;;  %v8312_v44 = vrot.slane %v7493_v6, 1 }
 0x22c   : > { %v1855_v10 = vadd.f32 %v1794_v49, %v7532_v15  ;;  %v7861_v34 = vadd.f32 %v2190_v56, %v1853_v24  ;;  %v5919_v13 = vpop.f32.mrb[151].mxu0  ;;  %v5839_v25 = vpop.f32.mrb[151].mxu1  ;;  %v3563_v3 = vsel %vm1051_vm1, %v3558_v63, %v3562_v23  ;;  %v3568_v49 = vshll.u32 %v6507_v2, 16 }
 0x22d   : > { %v3566_v20 = vor.u32 %v3564_v61, %v3562_v23 }
 0x22e   : > { %6145 = vmatmul.mubr.bf16.gmra.mrb[0].mxu1 %v3555_v7  ;;  %6225 = vmatmul.mubr.bf16.gmra.mrb[0].mxu0 %v3944_v41  ;;  %v3946_v41 = vsel %vm3933_vm2, %v3943_v31, %v8312_v44  ;;  %v3570_v6 = vrot.slane %v3568_v49, 1  ;;  %v6509_v44 = vld [vmem:[%s6722_s23 + $0x164] ss:$16 sps:$4 sm:$0xff]  }
 0x22f   : > { %6148 = vmatprep.mubr.msk.bf16.mxu1 %vm6668_vm0, %v8310_v14  ;;  %6228 = vmatprep.mubr.msk.bf16.mxu0 %vm6668_vm0, %v8310_v14 }
 0x231   : > { %v1799_v32 = vpop.f32.mrb[152].mxu1  ;;  %v2195_v40 = vpop.f32.mrb[152].mxu0 }
 0x232   : > { %v1856_v19 = vadd.f32 %v1799_v32, %v7546_v0  ;;  %v7869_v15 = vadd.f32 %v2195_v40, %v1854_v52  ;;  %v5842_v24 = vpop.f32.mrb[153].mxu1  ;;  %v5922_v1 = vpop.f32.mrb[153].mxu0  ;;  %v3571_v40 = vsel %vm1051_vm1, %v3566_v20, %v3570_v6  ;;  %v3580_v20 = vshrl.u32 %v6508_v50, 16 }
 0x233   : > { %v1802_v59 = vpop.f32.mrb[154].mxu1  ;;  %v2198_v11 = vpop.f32.mrb[154].mxu0  ;;  %v3572_v24 = vshrl.u32 %v6507_v2, 16  ;;  %v3576_v1 = vshll.u32 %v6508_v50, 16 }
 0x234   : > { %v1857_v56 = vadd.f32 %v1802_v59, %v7553_v46  ;;  %v7876_v7 = vadd.f32 %v2198_v11, %v1855_v10  ;;  %v5923_v0 = vpop.f32.mrb[155].mxu0  ;;  %v5843_v52 = vpop.f32.mrb[155].mxu1 }
 0x236   : > { %6149 = vmatmul.mubr.bf16.gmra.mrb[4].mxu1 %v3563_v3  ;;  %6229 = vmatmul.mubr.bf16.gmra.mrb[4].mxu0 %v3946_v41 }
 0x237   : > { %6152 = vmatprep.mubr.msk.bf16.mxu1 %vm6668_vm0, %v8310_v14  ;;  %6232 = vmatprep.mubr.msk.bf16.mxu0 %vm6668_vm0, %v8310_v14 }
 0x239   : > { %v1807_v31 = vpop.f32.mrb[156].mxu1  ;;  %v2203_v54 = vpop.f32.mrb[156].mxu0 }
 0x23a   : > { %v1858_v13 = vadd.f32 %v1807_v31, %v7566_v33  ;;  %v7884_v46 = vadd.f32 %v2203_v54, %v1856_v19  ;;  %v5846_v10 = vpop.f32.mrb[157].mxu1  ;;  %v5926_v25 = vpop.f32.mrb[157].mxu0  ;;  %v3574_v33 = vor.u32 %v3572_v24, %v3570_v6  ;;  %v3578_v19 = vrot.slane %v3576_v1, 1 }
 0x23b   : > { %v1810_v63 = vpop.f32.mrb[158].mxu1  ;;  %v2206_v32 = vpop.f32.mrb[158].mxu0  ;;  %v3584_v31 = vshll.u32 %v6509_v44, 16 }
 0x23c   : > { %v1859_v59 = vadd.f32 %v1810_v63, %v7574_v47  ;;  %v7888_v23 = vadd.f32 %v2206_v32, %v1857_v56  ;;  %v5927_v11 = vpop.f32.mrb[159].mxu0  ;;  %v5847_v3 = vpop.f32.mrb[159].mxu1  ;;  %v3579_v52 = vsel %vm1051_vm1, %v3574_v33, %v3578_v19  ;;  %v6510_v63 = vld [vmem:[%s6722_s23 + $0x184] ss:$16 sps:$4 sm:$0xff]  }
 0x23d   : > { %v3588_v3 = vshrl.u32 %v6509_v44, 16  ;;  %v3592_v33 = vshll.u32 %v6510_v63, 16 }
 0x23e   : > { %6153 = vmatmul.mubr.bf16.gmra.mrb[8].mxu1 %v3571_v40  ;;  %6233 = vmatmul.mubr.bf16.gmra.mrb[8].mxu0 %v7582_v35 }
 0x23f   : > { %6156 = vmatprep.mubr.msk.bf16.mxu1 %vm6668_vm0, %v8310_v14  ;;  %6236 = vmatprep.mubr.msk.bf16.mxu0 %vm6668_vm0, %v8310_v14 }
 0x241   : > { %v1815_v2 = vpop.f32.mrb[160].mxu1  ;;  %v2211_v41 = vpop.f32.mrb[160].mxu0 }
 0x242   : > { %v1860_v47 = vadd.f32 %v1815_v2, %v7594_v21  ;;  %v7897_v61 = vadd.f32 %v2211_v41, %v1858_v13  ;;  %v5850_v49 = vpop.f32.mrb[161].mxu1  ;;  %v5930_v56 = vpop.f32.mrb[161].mxu0  ;;  %v3582_v21 = vor.u32 %v3580_v20, %v3578_v19  ;;  %v3586_v13 = vrot.slane %v3584_v31, 1 }
 0x243   : > { %v1818_v0 = vpop.f32.mrb[162].mxu1  ;;  %v2214_v35 = vpop.f32.mrb[162].mxu0  ;;  %v8313_v56 = vld [vmem:[#allocation2_spill] sm:$0xff] }
 0x244   : > { %v1861_v54 = vadd.f32 %v1818_v0, %v7601_v42  ;;  %v7901_v6 = vadd.f32 %v2214_v35, %v1859_v59  ;;  %v5931_v10 = vpop.f32.mrb[163].mxu0  ;;  %v5851_v25 = vpop.f32.mrb[163].mxu1  ;;  %v3587_v11 = vsel %vm1051_vm1, %v3582_v21, %v3586_v13  ;;  %v6511_v0 = vld [vmem:[%s6722_s23 + $0x1a4] ss:$16 sps:$4 sm:$0xff]   ;;  %v3596_v21 = vshrl.u32 %v6510_v63, 16 }
 0x246   : > { %6157 = vmatmul.mubr.bf16.gmra.mrb[12].mxu1 %v3579_v52  ;;  %6237 = vmatmul.mubr.bf16.gmra.mrb[12].mxu0 %v7604_v28 }
 0x247   : > { %6160 = vmatprep.mubr.msk.bf16.mxu1 %vm6668_vm0, %v8310_v14  ;;  %6240 = vmatprep.mubr.msk.bf16.mxu0 %vm6668_vm0, %v8310_v14 }
 0x249   : > { %v1823_v50 = vpop.f32.mrb[164].mxu1  ;;  %v2219_v32 = vpop.f32.mrb[164].mxu0 }
 0x24a   : > { %v1862_v42 = vadd.f32 %v1823_v50, %v7615_v45  ;;  %v7910_v40 = vadd.f32 %v2219_v32, %v1860_v47  ;;  %v5854_v24 = vpop.f32.mrb[165].mxu1  ;;  %v5934_v1 = vpop.f32.mrb[165].mxu0  ;;  %v3590_v45 = vor.u32 %v3588_v3, %v3586_v13  ;;  %v3594_v47 = vrot.slane %v3592_v33, 1 }
 0x24b   : > { %v1826_v59 = vpop.f32.mrb[166].mxu1  ;;  %v2222_v28 = vpop.f32.mrb[166].mxu0  ;;  %v3600_v50 = vshll.u32 %v6511_v0, 16 }
 0x24c   : > { %v1863_v2 = vadd.f32 %v1826_v59, %v7623_v26  ;;  %v7914_v19 = vadd.f32 %v2222_v28, %v1861_v54  ;;  %v5935_v41 = vpop.f32.mrb[167].mxu0  ;;  %v5855_v49 = vpop.f32.mrb[167].mxu1  ;;  %v3595_v25 = vsel %vm1051_vm1, %v3590_v45, %v3594_v47  ;;  %v6512_v59 = vld [vmem:[%s6722_s23 + $0x1c4] ss:$16 sps:$4 sm:$0xff]   ;;  %v8314_v45 = vld [vmem:[#allocation3_spill] sm:$0xff] }
 0x24d   : > { %v3604_v49 = vshrl.u32 %v6511_v0, 16 }
 0x24e   : > { %6161 = vmatmul.mubr.bf16.gmra.mrb[16].mxu1 %v3587_v11  ;;  %6241 = vmatmul.mubr.bf16.gmra.mrb[16].mxu0 %v8313_v56  ;;  %v3608_v56 = vshll.u32 %v6512_v59, 16 }
 0x24f   : > { %6164 = vmatprep.mubr.msk.bf16.mxu1 %vm6668_vm0, %v8310_v14  ;;  %6244 = vmatprep.mubr.msk.bf16.mxu0 %vm6668_vm0, %v8310_v14 }
 0x251   : > { %v2227_v44 = vpop.f32.mrb[168].mxu0  ;;  %v2647_v35 = vpop.f32.mrb[168].mxu1 }
 0x252   : > { %v7922_v52 = vadd.f32 %v2227_v44, %v1862_v42  ;;  %v2782_v26 = vadd.f32 %v2647_v35, %v7642_v60  ;;  %v5938_v20 = vpop.f32.mrb[169].mxu0  ;;  %v5958_v31 = vpop.f32.mrb[169].mxu1  ;;  %v3598_v60 = vor.u32 %v3596_v21, %v3594_v47  ;;  %v3602_v42 = vrot.slane %v3600_v50, 1 }
 0x253   : > { %v2230_v54 = vpop.f32.mrb[170].mxu0  ;;  %v2650_v10 = vpop.f32.mrb[170].mxu1  ;;  %v8315_v31 = vld [vmem:[#allocation4_spill] sm:$0xff] }
 0x254   : > { %v7926_v32 = vadd.f32 %v2230_v54, %v1863_v2  ;;  %v2783_v13 = vadd.f32 %v2650_v10, %v7649_v18  ;;  %v5939_v24 = vpop.f32.mrb[171].mxu0  ;;  %v5959_v1 = vpop.f32.mrb[171].mxu1  ;;  %v3603_v41 = vsel %vm1051_vm1, %v3598_v60, %v3602_v42  ;;  %v6513_v54 = vld [vmem:[%s6722_s23 + $0x1e4] ss:$16 sps:$4 sm:$0xff]  }
 0x256   : > { %6165 = vmatmul.mubr.bf16.gmra.mrb[20].mxu1 %v3595_v25  ;;  %6245 = vmatmul.mubr.bf16.gmra.mrb[20].mxu0 %v7652_v8 }
 0x257   : > { %6168 = vmatprep.mubr.msk.bf16.mxu1 %vm6668_vm0, %v8310_v14  ;;  %6248 = vmatprep.mubr.msk.bf16.mxu0 %vm6668_vm0, %v8310_v14 }
 0x259   : > { %v2655_v63 = vpop.f32.mrb[172].mxu1  ;;  %v3195_v28 = vpop.f32.mrb[172].mxu0 }
 0x25a   : > { %v2784_v11 = vadd.f32 %v2655_v63, %v7664_v17  ;;  %v7936_v3 = vadd.f32 %v3195_v28, %v2782_v26  ;;  %v5962_v18 = vpop.f32.mrb[173].mxu1  ;;  %v6042_v33 = vpop.f32.mrb[173].mxu0  ;;  %v3606_v17 = vor.u32 %v3604_v49, %v3602_v42  ;;  %v3610_v26 = vrot.slane %v3608_v56, 1 }
 0x25b   : > { %v2658_v2 = vpop.f32.mrb[174].mxu1  ;;  %v3198_v8 = vpop.f32.mrb[174].mxu0  ;;  %v3612_v63 = vshrl.u32 %v6512_v59, 16  ;;  %v3616_v28 = vshll.u32 %v6513_v54, 16 }
 0x25c   : > { %v2785_v44 = vadd.f32 %v2658_v2, %v8314_v45  ;;  %v7940_v47 = vadd.f32 %v3198_v8, %v2783_v13  ;;  %v6043_v35 = vpop.f32.mrb[175].mxu0  ;;  %v5963_v20 = vpop.f32.mrb[175].mxu1  ;;  %v3611_v60 = vsel %vm1051_vm1, %v3606_v17, %v3610_v26  ;;  %v6514_v8 = vld [vmem:[%s6722_s23 + $0x204] ss:$16 sps:$4 sm:$0xff]  }
 0x25d   : > { %v3620_v20 = vshrl.u32 %v6513_v54, 16 }
 0x25e   : > { %6169 = vmatmul.mubr.bf16.gmra.mrb[24].mxu1 %v3603_v41  ;;  %6249 = vmatmul.mubr.bf16.gmra.mrb[24].mxu0 %v8315_v31  ;;  %v3624_v31 = vshll.u32 %v6514_v8, 16 }
 0x25f   : > { %6172 = vmatprep.mubr.msk.bf16.mxu1 %vm6668_vm0, %v8310_v14  ;;  %6252 = vmatprep.mubr.msk.bf16.mxu0 %vm6668_vm0, %v8310_v14 }
 0x261   : > { %v2663_v0 = vpop.f32.mrb[176].mxu1  ;;  %v3203_v10 = vpop.f32.mrb[176].mxu0 }
 0x262   : > { %v2786_v25 = vadd.f32 %v2663_v0, %v7690_v27  ;;  %v7949_v21 = vadd.f32 %v3203_v10, %v2784_v11  ;;  %v5966_v50 = vpop.f32.mrb[177].mxu1  ;;  %v6046_v13 = vpop.f32.mrb[177].mxu0  ;;  %v3614_v27 = vor.u32 %v3612_v63, %v3610_v26  ;;  %v3618_v11 = vrot.slane %v3616_v28, 1 }
 0x263   : > { %v2666_v24 = vpop.f32.mrb[178].mxu1  ;;  %v3206_v1 = vpop.f32.mrb[178].mxu0  ;;  %v8316_v50 = vld [vmem:[#allocation5_spill] sm:$0xff]  ;;  %v6515_v13 = vld [vmem:[%s6722_s23 + $0x224] ss:$16 sps:$4 sm:$0xff]  }
 0x264   : > { %v2787_v18 = vadd.f32 %v2666_v24, %v7697_v12  ;;  %v7953_v42 = vadd.f32 %v3206_v1, %v2785_v44  ;;  %v6047_v33 = vpop.f32.mrb[179].mxu0  ;;  %v5967_v2 = vpop.f32.mrb[179].mxu1  ;;  %v3619_v35 = vsel %vm1051_vm1, %v3614_v27, %v3618_v11  ;;  %v3632_v27 = vshll.u32 %v6515_v13, 16 }
 0x265   : > { %v3628_v2 = vshrl.u32 %v6514_v8, 16 }
 0x266   : > { %6173 = vmatmul.mubr.bf16.gmra.mrb[28].mxu1 %v3611_v60  ;;  %6253 = vmatmul.mubr.bf16.gmra.mrb[28].mxu0 %v7700_v37 }
 0x267   : > { %6176 = vmatprep.mubr.msk.bf16.mxu1 %vm6668_vm0, %v8310_v14  ;;  %6256 = vmatprep.mubr.msk.bf16.mxu0 %vm6668_vm0, %v8310_v14 }
 0x269   : > { %v2671_v59 = vpop.f32.mrb[180].mxu1  ;;  %v3211_v41 = vpop.f32.mrb[180].mxu0 }
 0x26a   : > { %v2788_v12 = vadd.f32 %v2671_v59, %v7712_v51  ;;  %v7962_v49 = vadd.f32 %v3211_v41, %v2786_v25  ;;  %v5970_v56 = vpop.f32.mrb[181].mxu1  ;;  %v6050_v45 = vpop.f32.mrb[181].mxu0  ;;  %v3622_v51 = vor.u32 %v3620_v20, %v3618_v11  ;;  %v3626_v25 = vrot.slane %v3624_v31, 1  ;;  %v8317_v59 = vld [vmem:[#allocation6_spill] sm:$0xff] }
 0x26b   : > { %v2674_v44 = vpop.f32.mrb[182].mxu1  ;;  %v3214_v37 = vpop.f32.mrb[182].mxu0 }
 0x26c   : > { %v2789_v17 = vadd.f32 %v2674_v44, %v7720_v29  ;;  %v7966_v26 = vadd.f32 %v3214_v37, %v2787_v18  ;;  %v6051_v0 = vpop.f32.mrb[183].mxu0  ;;  %v5971_v10 = vpop.f32.mrb[183].mxu1  ;;  %v3627_v33 = vsel %vm1051_vm1, %v3622_v51, %v3626_v25  ;;  %v8318_v44 = vld [vmem:[#allocation7_spill] sm:$0xff]  ;;  %v6516_v37 = vld [vmem:[%s6722_s23 + $0x244] ss:$0 sps:$4 sm:$0x11]  }
 0x26e   : > { %6177 = vmatmul.mubr.bf16.gmra.mrb[32].mxu1 %v3619_v35  ;;  %6257 = vmatmul.mubr.bf16.gmra.mrb[32].mxu0 %v8316_v50 }
 0x26f   : > { %6180 = vmatprep.mubr.msk.bf16.mxu1 %vm6668_vm0, %v8310_v14  ;;  %6260 = vmatprep.mubr.msk.bf16.mxu0 %vm6668_vm0, %v8310_v14 }
 0x271   : > { %v2679_v54 = vpop.f32.mrb[184].mxu1  ;;  %v3219_v24 = vpop.f32.mrb[184].mxu0 }
 0x272   : > { %v2790_v29 = vadd.f32 %v2679_v54, %v7735_v43  ;;  %v7975_v1 = vadd.f32 %v3219_v24, %v2788_v12  ;;  %v5974_v60 = vpop.f32.mrb[185].mxu1  ;;  %v6054_v63 = vpop.f32.mrb[185].mxu0  ;;  %v3630_v43 = vor.u32 %v3628_v2, %v3626_v25  ;;  %v3634_v12 = vrot.slane %v3632_v27, 1 }
 0x273   : > { %v2682_v28 = vpop.f32.mrb[186].mxu1  ;;  %v3222_v18 = vpop.f32.mrb[186].mxu0  ;;  %v3636_v54 = vshrl.u32 %v6515_v13, 16  ;;  %v3640_v24 = vshll.u32 %v6516_v37, 16 }
 0x274   : > { %v2791_v41 = vadd.f32 %v2682_v28, %v8317_v59  ;;  %v7979_v11 = vadd.f32 %v3222_v18, %v2789_v17  ;;  %v6055_v56 = vpop.f32.mrb[187].mxu0  ;;  %v5975_v45 = vpop.f32.mrb[187].mxu1  ;;  %v3635_v51 = vsel %vm1051_vm1, %v3630_v43, %v3634_v12  ;;  %v8319_v18 = vld [vmem:[#allocation8_spill] sm:$0xff] }
 0x276   : > { %6181 = vmatmul.mubr.bf16.gmra.mrb[36].mxu1 %v3627_v33  ;;  %6261 = vmatmul.mubr.bf16.gmra.mrb[36].mxu0 %v8318_v44 }
 0x277   : > { %6184 = vmatprep.mubr.msk.bf16.mxu1 %vm6668_vm0, %v8310_v14  ;;  %6264 = vmatprep.mubr.msk.bf16.mxu0 %vm6668_vm0, %v8310_v14 }
 0x279   : > { %v2687_v8 = vpop.f32.mrb[188].mxu1  ;;  %v3227_v35 = vpop.f32.mrb[188].mxu0 }
 0x27a   : > { %v2792_v20 = vadd.f32 %v2687_v8, %v7759_v57  ;;  %v7988_v31 = vadd.f32 %v3227_v35, %v2790_v29  ;;  %v5978_v17 = vpop.f32.mrb[189].mxu1  ;;  %v6058_v0 = vpop.f32.mrb[189].mxu0  ;;  %v3638_v57 = vor.u32 %v3636_v54, %v3634_v12  ;;  %v3642_v29 = vrot.slane %v3640_v24, 1 }
 0x27b   : > { %v2690_v10 = vpop.f32.mrb[190].mxu1  ;;  %v3230_v50 = vpop.f32.mrb[190].mxu0 }
 0x27c   : > { %v2793_v60 = vadd.f32 %v2690_v10, %v7765_v55  ;;  %v7992_v63 = vadd.f32 %v3230_v50, %v2791_v41  ;;  %v6059_v25 = vpop.f32.mrb[191].mxu0  ;;  %v5979_v28 = vpop.f32.mrb[191].mxu1  ;;  %v3643_v45 = vsel %vm1051_vm1, %v3638_v57, %v3642_v29 }
 0x27e   : > { %6185 = vmatmul.mubr.bf16.gmra.mrb[40].mxu1 %v3635_v51  ;;  %6265 = vmatmul.mubr.bf16.gmra.mrb[40].mxu0 %v8319_v18 }
 0x27f   : > { %6188 = vmatprep.mubr.msk.bf16.mxu1 %vm6668_vm0, %v8310_v14  ;;  %6268 = vmatprep.mubr.msk.bf16.mxu0 %vm6668_vm0, %v8310_v14 }
 0x281   : > { %v2695_v33 = vpop.f32.mrb[192].mxu1  ;;  %v3235_v13 = vpop.f32.mrb[192].mxu0 }
 0x282   : > { %v2794_v2 = vadd.f32 %v2695_v33, %v7778_v58  ;;  %v8000_v55 = vadd.f32 %v3235_v13, %v2792_v20  ;;  %v5982_v27 = vpop.f32.mrb[193].mxu1  ;;  %v6062_v59 = vpop.f32.mrb[193].mxu0 }
 0x283   : > { %v2698_v41 = vpop.f32.mrb[194].mxu1  ;;  %v3238_v56 = vpop.f32.mrb[194].mxu0 }
 0x284   : > { %v2795_v44 = vadd.f32 %v2698_v41, %v7784_v4  ;;  %v8004_v43 = vadd.f32 %v3238_v56, %v2793_v60  ;;  %v6063_v37 = vpop.f32.mrb[195].mxu0  ;;  %v5983_v8 = vpop.f32.mrb[195].mxu1 }
 0x286   : > { %6189 = vmatmul.mubr.bf16.gmra.mrb[44].mxu1 %v3643_v45  ;;  %6269 = vmatmul.mubr.bf16.gmra.mrb[44].mxu0 %v7787_v5 }
 0x287   : > { %6272 = vmatprep.mubr.msk.bf16.mxu0 %vm6668_vm0, %v8310_v14 }
 0x289   : > { %v2703_v58 = vpop.f32.mrb[196].mxu1  ;;  %v3243_v12 = vpop.f32.mrb[196].mxu0 }
 0x28a   : > { %v2796_v35 = vadd.f32 %v2703_v58, %v7797_v53  ;;  %v8010_v20 = vadd.f32 %v3243_v12, %v2794_v2  ;;  %v5986_v17 = vpop.f32.mrb[197].mxu1  ;;  %v6066_v0 = vpop.f32.mrb[197].mxu0 }
 0x28b   : > { %v2706_v10 = vpop.f32.mrb[198].mxu1  ;;  %v3246_v4 = vpop.f32.mrb[198].mxu0 }
 0x28c   : > { %v2797_v50 = vadd.f32 %v2706_v10, %v7802_v36  ;;  %v8013_v51 = vadd.f32 %v3246_v4, %v2795_v44  ;;  %v6067_v54 = vpop.f32.mrb[199].mxu0  ;;  %v5987_v24 = vpop.f32.mrb[199].mxu1 }
 0x28e   : > { %6273 = vmatmul.mubr.bf16.gmra.mrb[48].mxu0 %v7805_v9 }
 0x291   : > { %v2711_v5 = vpop.f32.mrb[200].mxu1  ;;  %v3251_v14 = vpop.f32.mrb[200].mxu0 }
 0x292   : > { %v2798_v60 = vadd.f32 %v2711_v5, %v7814_v38  ;;  %v8017_v25 = vadd.f32 %v3251_v14, %v2796_v35  ;;  %v5990_v53 = vpop.f32.mrb[201].mxu1  ;;  %v6070_v28 = vpop.f32.mrb[201].mxu0 }
 0x293   : > { %v2714_v18 = vpop.f32.mrb[202].mxu1  ;;  %v3254_v57 = vpop.f32.mrb[202].mxu0 }
 0x294   : > { %v2799_v29 = vadd.f32 %v2714_v18, %v7819_v62  ;;  %v8020_v33 = vadd.f32 %v3254_v57, %v2797_v50  ;;  %v6071_v36 = vpop.f32.mrb[203].mxu0  ;;  %v5991_v13 = vpop.f32.mrb[203].mxu1 }
 0x299   : > { %v2719_v2 = vpop.f32.mrb[204].mxu1  ;;  %v3259_v27 = vpop.f32.mrb[204].mxu0 }
 0x29a   : > { %v2800_v9 = vadd.f32 %v2719_v2, %v7828_v22  ;;  %v8023_v59 = vadd.f32 %v3259_v27, %v2798_v60  ;;  %v5994_v41 = vpop.f32.mrb[205].mxu1  ;;  %v6074_v38 = vpop.f32.mrb[205].mxu0 }
 0x29b   : > { %v2722_v56 = vpop.f32.mrb[206].mxu1  ;;  %v3262_v45 = vpop.f32.mrb[206].mxu0 }
 0x29c   : > { %v2801_v44 = vadd.f32 %v2722_v56, %v7833_v30  ;;  %v8026_v37 = vadd.f32 %v3262_v45, %v2799_v29  ;;  %v6075_v8 = vpop.f32.mrb[207].mxu0  ;;  %v5995_v62 = vpop.f32.mrb[207].mxu1 }
 0x2a1   : > { %v2727_v58 = vpop.f32.mrb[208].mxu1  ;;  %v3267_v12 = vpop.f32.mrb[208].mxu0 }
 0x2a2   : > { %v2802_v35 = vadd.f32 %v2727_v58, %v7842_v16  ;;  %v8029_v17 = vadd.f32 %v3267_v12, %v2800_v9  ;;  %v5998_v0 = vpop.f32.mrb[209].mxu1  ;;  %v6078_v22 = vpop.f32.mrb[209].mxu0 }
 0x2a3   : > { %v2730_v10 = vpop.f32.mrb[210].mxu1  ;;  %v3270_v4 = vpop.f32.mrb[210].mxu0 }
 0x2a4   : > { %v2803_v50 = vadd.f32 %v2730_v10, %v7847_v48  ;;  %v8032_v54 = vadd.f32 %v3270_v4, %v2801_v44  ;;  %v6079_v24 = vpop.f32.mrb[211].mxu0  ;;  %v5999_v30 = vpop.f32.mrb[211].mxu1 }
 0x2a9   : > { %v2735_v5 = vpop.f32.mrb[212].mxu1  ;;  %v3275_v14 = vpop.f32.mrb[212].mxu0 }
 0x2aa   : > { %v2804_v60 = vadd.f32 %v2735_v5, %v7856_v39  ;;  %v8035_v53 = vadd.f32 %v3275_v14, %v2802_v35  ;;  %v6002_v28 = vpop.f32.mrb[213].mxu1  ;;  %v6082_v16 = vpop.f32.mrb[213].mxu0 }
 0x2ab   : > { %v2738_v18 = vpop.f32.mrb[214].mxu1  ;;  %v3278_v57 = vpop.f32.mrb[214].mxu0 }
 0x2ac   : > { %v2805_v29 = vadd.f32 %v2738_v18, %v7861_v34  ;;  %v8038_v36 = vadd.f32 %v3278_v57, %v2803_v50  ;;  %v6083_v13 = vpop.f32.mrb[215].mxu0  ;;  %v6003_v48 = vpop.f32.mrb[215].mxu1 }
 0x2b1   : > { %v2743_v2 = vpop.f32.mrb[216].mxu1  ;;  %v3283_v27 = vpop.f32.mrb[216].mxu0 }
 0x2b2   : > { %v2806_v9 = vadd.f32 %v2743_v2, %v7869_v15  ;;  %v8041_v41 = vadd.f32 %v3283_v27, %v2804_v60  ;;  %v6006_v38 = vpop.f32.mrb[217].mxu1  ;;  %v6086_v39 = vpop.f32.mrb[217].mxu0 }
 0x2b3   : > { %v2746_v56 = vpop.f32.mrb[218].mxu1  ;;  %v3286_v45 = vpop.f32.mrb[218].mxu0 }
 0x2b4   : > { %v2807_v44 = vadd.f32 %v2746_v56, %v7876_v7  ;;  %v8044_v8 = vadd.f32 %v3286_v45, %v2805_v29  ;;  %v6087_v62 = vpop.f32.mrb[219].mxu0  ;;  %v6007_v34 = vpop.f32.mrb[219].mxu1 }
 0x2b9   : > { %v2751_v58 = vpop.f32.mrb[220].mxu1  ;;  %v3291_v12 = vpop.f32.mrb[220].mxu0 }
 0x2ba   : > { %v2808_v35 = vadd.f32 %v2751_v58, %v7884_v46  ;;  %v8047_v0 = vadd.f32 %v3291_v12, %v2806_v9  ;;  %v6010_v22 = vpop.f32.mrb[221].mxu1  ;;  %v6090_v15 = vpop.f32.mrb[221].mxu0 }
 0x2bb   : > { %v2754_v10 = vpop.f32.mrb[222].mxu1  ;;  %v3294_v4 = vpop.f32.mrb[222].mxu0 }
 0x2bc   : > { %v2809_v50 = vadd.f32 %v2754_v10, %v7888_v23  ;;  %v8050_v24 = vadd.f32 %v3294_v4, %v2807_v44  ;;  %v6091_v30 = vpop.f32.mrb[223].mxu0  ;;  %v6011_v7 = vpop.f32.mrb[223].mxu1 }
 0x2c1   : > { %v2759_v5 = vpop.f32.mrb[224].mxu1  ;;  %v3299_v14 = vpop.f32.mrb[224].mxu0 }
 0x2c2   : > { %v2810_v60 = vadd.f32 %v2759_v5, %v7897_v61  ;;  %v8053_v28 = vadd.f32 %v3299_v14, %v2808_v35  ;;  %v6014_v16 = vpop.f32.mrb[225].mxu1  ;;  %v6094_v46 = vpop.f32.mrb[225].mxu0 }
 0x2c3   : > { %v2762_v18 = vpop.f32.mrb[226].mxu1  ;;  %v3302_v57 = vpop.f32.mrb[226].mxu0 }
 0x2c4   : > { %v2811_v29 = vadd.f32 %v2762_v18, %v7901_v6  ;;  %v8056_v13 = vadd.f32 %v3302_v57, %v2809_v50  ;;  %v6095_v48 = vpop.f32.mrb[227].mxu0  ;;  %v6015_v23 = vpop.f32.mrb[227].mxu1 }
 0x2c9   : > { %v2767_v2 = vpop.f32.mrb[228].mxu1  ;;  %v3307_v27 = vpop.f32.mrb[228].mxu0 }
 0x2ca   : > { %v2812_v9 = vadd.f32 %v2767_v2, %v7910_v40  ;;  %v8059_v38 = vadd.f32 %v3307_v27, %v2810_v60  ;;  %v6018_v39 = vpop.f32.mrb[229].mxu1  ;;  %v6098_v61 = vpop.f32.mrb[229].mxu0 }
 0x2cb   : > { %v2770_v56 = vpop.f32.mrb[230].mxu1  ;;  %v3310_v45 = vpop.f32.mrb[230].mxu0 }
 0x2cc   : > { %v2813_v44 = vadd.f32 %v2770_v56, %v7914_v19  ;;  %v8062_v62 = vadd.f32 %v3310_v45, %v2811_v29  ;;  %v6099_v34 = vpop.f32.mrb[231].mxu0  ;;  %v6019_v6 = vpop.f32.mrb[231].mxu1 }
 0x2d1   : > { %v2775_v58 = vpop.f32.mrb[232].mxu1  ;;  %v3315_v12 = vpop.f32.mrb[232].mxu0 }
 0x2d2   : > { %v2814_v35 = vadd.f32 %v2775_v58, %v7922_v52  ;;  %v8065_v22 = vadd.f32 %v3315_v12, %v2812_v9  ;;  %v6022_v15 = vpop.f32.mrb[233].mxu1  ;;  %v6102_v40 = vpop.f32.mrb[233].mxu0  ;;  %v8079_v9 = vld [vmem:[%s8299_s2] ss:$0 sm:$0xff] }
 0x2d3   : > { %v2778_v10 = vpop.f32.mrb[234].mxu1  ;;  %v3318_v4 = vpop.f32.mrb[234].mxu0 }
 0x2d4   : > { %v2815_v50 = vadd.f32 %v2778_v10, %v7926_v32  ;;  %v8068_v30 = vadd.f32 %v3318_v4, %v2813_v44  ;;  %v6103_v7 = vpop.f32.mrb[235].mxu0  ;;  %v6023_v19 = vpop.f32.mrb[235].mxu1 }
 0x2d9   : > { %v3323_v5 = vpop.f32.mrb[236].mxu0  ;;  %v3743_v14 = vpop.f32.mrb[236].mxu1 }
 0x2da   : > { %v8070_v60 = vadd.f32 %v3323_v5, %v2814_v35  ;;  %v3878_v16 = vadd.f32 %v3743_v14, %v7936_v3  ;;  %v6106_v46 = vpop.f32.mrb[237].mxu0  ;;  %v6126_v52 = vpop.f32.mrb[237].mxu1 }
 0x2db   : > { %v3326_v18 = vpop.f32.mrb[238].mxu0  ;;  %v3746_v57 = vpop.f32.mrb[238].mxu1 }
 0x2dc   : > { %v8073_v29 = vadd.f32 %v3326_v18, %v2815_v50  ;;  %v3879_v48 = vadd.f32 %v3746_v57, %v7940_v47  ;;  %v6107_v23 = vpop.f32.mrb[239].mxu0  ;;  %v6127_v32 = vpop.f32.mrb[239].mxu1 }
 0x2e1   : > { %v3751_v2 = vpop.f32.mrb[240].mxu1  ;;  %v4068_v27 = vpop.f32.mrb[240].mxu0 }
 0x2e2   : > { %v3880_v39 = vadd.f32 %v3751_v2, %v7949_v21  ;;  %v4203_v3 = vadd.f32 %v4068_v27, %v3878_v16  ;;  %v6130_v61 = vpop.f32.mrb[241].mxu1  ;;  %v6210_v56 = vpop.f32.mrb[241].mxu0 }
 0x2e3   : > { %v3754_v45 = vpop.f32.mrb[242].mxu1  ;;  %v4071_v44 = vpop.f32.mrb[242].mxu0 }
 0x2e4   : > { %v8083_v34 = vadd.f32 %v8079_v9, %v4203_v3  ;;  %v3881_v47 = vadd.f32 %v3754_v45, %v7953_v42  ;;  %v4204_v6 = vadd.f32 %v4071_v44, %v3879_v48  ;;  %v6211_v58 = vpop.f32.mrb[243].mxu0  ;;  %v6131_v12 = vpop.f32.mrb[243].mxu1 }
 0x2e6   : > { %v5090_v35 = vmul.f32 -1.442695, %v8083_v34  ;;  %v8088_v15 = vadd.f32 %v8079_v9, %v4204_v6 }
 0x2e8   : > { %6517 = vpow2.f32 %v5090_v35  ;;  %v5091_v21 = vmul.f32 -1.442695, %v8088_v15 }
 0x2e9   : > { %v3759_v40 = vpop.f32.mrb[244].mxu1  ;;  %v4076_v10 = vpop.f32.mrb[244].mxu0 }
 0x2ea   : > { %6519 = vpow2.f32 %v5091_v21  ;;  %v3882_v4 = vadd.f32 %v3759_v40, %v7962_v49  ;;  %v4205_v50 = vadd.f32 %v4076_v10, %v3880_v39  ;;  %v6134_v7 = vpop.f32.mrb[245].mxu1  ;;  %v6214_v19 = vpop.f32.mrb[245].mxu0 }
 0x2eb   : > { %v3762_v42 = vpop.f32.mrb[246].mxu1  ;;  %v4079_v5 = vpop.f32.mrb[246].mxu0 }
 0x2ec   : > { %v8093_v14 = vadd.f32 %v8079_v9, %v4205_v50  ;;  %v3883_v16 = vadd.f32 %v3762_v42, %v7966_v26  ;;  %v4206_v46 = vadd.f32 %v4079_v5, %v3881_v47  ;;  %v6215_v52 = vpop.f32.mrb[247].mxu0  ;;  %v6135_v18 = vpop.f32.mrb[247].mxu1 }
 0x2ee   : > { %v5092_v57 = vmul.f32 -1.442695, %v8093_v14  ;;  %v8098_v48 = vadd.f32 %v8079_v9, %v4206_v46 }
 0x2f0   : > { %6521 = vpow2.f32 %v5092_v57  ;;  %v5093_v49 = vmul.f32 -1.442695, %v8098_v48 }
 0x2f1   : > { %v3767_v23 = vpop.f32.mrb[248].mxu1  ;;  %v4084_v32 = vpop.f32.mrb[248].mxu0 }
 0x2f2   : > { %v6518_v2 = vpop.eup %6517  ;;  %6523 = vpow2.f32 %v5093_v49  ;;  %v3884_v27 = vadd.f32 %v3767_v23, %v7975_v1  ;;  %v4207_v39 = vadd.f32 %v4084_v32, %v3882_v4  ;;  %v6138_v3 = vpop.f32.mrb[249].mxu1 }
 0x2f3   : > { %v6218_v26 = vpop.f32.mrb[249].mxu0  ;;  %v4380_v61 = vadd.f32 1.0, %v6518_v2  ;;  %v3770_v56 = vpop.f32.mrb[250].mxu1 }
 0x2f4   : > { %v4087_v45 = vpop.f32.mrb[250].mxu0  ;;  %v6520_v44 = vpop.eup %6519  ;;  %v8103_v47 = vadd.f32 %v8079_v9, %v4207_v39  ;;  %v3885_v6 = vadd.f32 %v3770_v56, %v7979_v11 }
 0x2f5   : > { %v4208_v58 = vadd.f32 %v4087_v45, %v3883_v16  ;;  %v6219_v12 = vpop.f32.mrb[251].mxu0  ;;  %v6139_v35 = vpop.f32.mrb[251].mxu1  ;;  %6525 = vrcp.f32 %v4380_v61  ;;  %v4381_v21 = vadd.f32 1.0, %v6520_v44 }
 0x2f6   : > { %v5094_v40 = vmul.f32 -1.442695, %v8103_v47 }
 0x2f7   : > { %v8108_v1 = vadd.f32 %v8079_v9, %v4208_v58  ;;  %6527 = vrcp.f32 %v4381_v21 }
 0x2f8   : > { %6529 = vpow2.f32 %v5094_v40 }
 0x2f9   : > { %v5095_v10 = vmul.f32 -1.442695, %v8108_v1  ;;  %v3775_v4 = vpop.f32.mrb[252].mxu1  ;;  %v4092_v50 = vpop.f32.mrb[252].mxu0 }
 0x2fa   : > { %v6522_v7 = vpop.eup %6521  ;;  %v3886_v11 = vadd.f32 %v3775_v4, %v7988_v31  ;;  %v4209_v19 = vadd.f32 %v4092_v50, %v3884_v27  ;;  %v6142_v42 = vpop.f32.mrb[253].mxu1 }
 0x2fb   : > { %6531 = vpow2.f32 %v5095_v10  ;;  %v6222_v5 = vpop.f32.mrb[253].mxu0  ;;  %v4382_v16 = vadd.f32 1.0, %v6522_v7  ;;  %v3778_v46 = vpop.f32.mrb[254].mxu1 }
 0x2fc   : > { %v4095_v52 = vpop.f32.mrb[254].mxu0  ;;  %v6524_v18 = vpop.eup %6523  ;;  %v8113_v57 = vadd.f32 %v8079_v9, %v4209_v19  ;;  %v3887_v49 = vadd.f32 %v3778_v46, %v7992_v63 }
 0x2fd   : > { %v4210_v23 = vadd.f32 %v4095_v52, %v3885_v6  ;;  %v6223_v32 = vpop.f32.mrb[255].mxu0  ;;  %v6143_v2 = vpop.f32.mrb[255].mxu1  ;;  %6533 = vrcp.f32 %v4382_v16  ;;  %v4383_v39 = vadd.f32 1.0, %v6524_v18 }
 0x2fe   : > { %v5096_v31 = vmul.f32 -1.442695, %v8113_v57 }
 0x2ff   : > { %v8118_v27 = vadd.f32 %v8079_v9, %v4210_v23  ;;  %v6526_v3 = vpop.eup %6525  ;;  %6535 = vrcp.f32 %v4383_v39 }
 0x300   : > { %6537 = vpow2.f32 %v5096_v31  ;;  %v4482_v56 = vmul.f32 %v6526_v3, %v8083_v34 }
 0x301   : > { %v5097_v26 = vmul.f32 -1.442695, %v8118_v27  ;;  %v6528_v61 = vpop.eup %6527  ;;  %v3783_v63 = vpop.f32.mrb[0].mxu1 }
 0x302   : > { %v4100_v45 = vpop.f32.mrb[0].mxu0  ;;  %v6530_v44 = vpop.eup %6529  ;;  %v4483_v6 = vmul.f32 %v6528_v61, %v8088_v15  ;;  %v3888_v58 = vadd.f32 %v3783_v63, %v8000_v55 }
 0x303   : > { %6539 = vpow2.f32 %v5097_v26  ;;  %v4211_v12 = vadd.f32 %v4100_v45, %v3886_v11  ;;  %v6146_v35 = vpop.f32.mrb[1].mxu1  ;;  %v6226_v21 = vpop.f32.mrb[1].mxu0  ;;  %v4384_v40 = vadd.f32 1.0, %v6530_v44 }
 0x304   : > { %v3786_v10 = vpop.f32.mrb[2].mxu1  ;;  %v4103_v34 = vpop.f32.mrb[2].mxu0  ;;  %v5197_v50 = vpack.c.bf16 %v4483_v6, %v4482_v56 }
 0x305   : > { %v6532_v4 = vpop.eup %6531  ;;  %v8131_v7 = vadd.f32 %v8079_v9, %v4211_v12  ;;  %v3889_v15 = vadd.f32 %v3786_v10, %v8004_v43  ;;  %v4212_v55 = vadd.f32 %v4103_v34, %v3887_v49  ;;  %v6227_v11 = vpop.f32.mrb[3].mxu0  ;;  %6541 = vrcp.f32 %v4384_v40 }
 0x306   : > { %v6147_v19 = vpop.f32.mrb[3].mxu1  ;;  %v4385_v42 = vadd.f32 1.0, %v6532_v4  ;;  %5198 = vst [vmem:[%s8128_s20] sm:$0xff] %v5197_v50  }
 0x307   : > { %v5098_v5 = vmul.f32 -1.442695, %v8131_v7  ;;  %v8137_v16 = vadd.f32 %v8079_v9, %v4212_v55  ;;  %v6534_v46 = vpop.eup %6533 }
 0x308   : > { %6543 = vrcp.f32 %v4385_v42  ;;  %v4484_v23 = vmul.f32 %v6534_v46, %v8093_v14 }
 0x309   : > { %6545 = vpow2.f32 %v5098_v5  ;;  %v5099_v52 = vmul.f32 -1.442695, %v8137_v16  ;;  %v6536_v18 = vpop.eup %6535  ;;  %v3791_v43 = vpop.f32.mrb[4].mxu1 }
 0x30a   : > { %v4108_v49 = vpop.f32.mrb[4].mxu0  ;;  %v6538_v32 = vpop.eup %6537  ;;  %v4485_v2 = vmul.f32 %v6536_v18, %v8098_v48  ;;  %v3890_v39 = vadd.f32 %v3791_v43, %v8010_v20 }
 0x30b   : > { %6547 = vpow2.f32 %v5099_v52  ;;  %v4213_v31 = vadd.f32 %v4108_v49, %v3888_v58  ;;  %v6150_v3 = vpop.f32.mrb[5].mxu1  ;;  %v6230_v26 = vpop.f32.mrb[5].mxu0  ;;  %v4386_v61 = vadd.f32 1.0, %v6538_v32 }
 0x30c   : > { %v3794_v56 = vpop.f32.mrb[6].mxu1  ;;  %v4111_v63 = vpop.f32.mrb[6].mxu0  ;;  %v5202_v44 = vpack.c.bf16 %v4485_v2, %v4484_v23 }
 0x30d   : > { %v6540_v45 = vpop.eup %6539  ;;  %v8144_v6 = vadd.f32 %v8079_v9, %v4213_v31  ;;  %v3891_v14 = vadd.f32 %v3794_v56, %v8013_v51  ;;  %v4214_v12 = vadd.f32 %v4111_v63, %v3889_v15  ;;  %v6231_v35 = vpop.f32.mrb[7].mxu0  ;;  %6549 = vrcp.f32 %v4386_v61 }
 0x30e   : > { %v6151_v48 = vpop.f32.mrb[7].mxu1  ;;  %v4387_v21 = vadd.f32 1.0, %v6540_v45  ;;  %5279 = vst [vmem:[%s8128_s20 + $0x8] sm:$0xff] %v5202_v44  }
 0x30f   : > { %v5100_v20 = vmul.f32 -1.442695, %v8144_v6  ;;  %v8150_v58 = vadd.f32 %v8079_v9, %v4214_v12  ;;  %v6542_v40 = vpop.eup %6541 }
 0x310   : > { %6551 = vrcp.f32 %v4387_v21  ;;  %v4486_v4 = vmul.f32 %v6542_v40, %v8103_v47 }
 0x311   : > { %6553 = vpow2.f32 %v5100_v20  ;;  %v5101_v10 = vmul.f32 -1.442695, %v8150_v58  ;;  %v3799_v51 = vpop.f32.mrb[8].mxu1  ;;  %v4116_v50 = vpop.f32.mrb[8].mxu0 }
 0x312   : > { %v6544_v34 = vpop.eup %6543  ;;  %v3892_v11 = vadd.f32 %v3799_v51, %v8017_v25  ;;  %v4215_v19 = vadd.f32 %v4116_v50, %v3890_v39  ;;  %v6154_v42 = vpop.f32.mrb[9].mxu1 }
 0x313   : > { %v6546_v15 = vpop.eup %6545  ;;  %v4487_v55 = vmul.f32 %v6544_v34, %v8108_v1  ;;  %6555 = vpow2.f32 %v5101_v10  ;;  %v6234_v5 = vpop.f32.mrb[9].mxu0 }
 0x314   : > { %v4388_v46 = vadd.f32 1.0, %v6546_v15  ;;  %v3802_v52 = vpop.f32.mrb[10].mxu1  ;;  %v4119_v18 = vpop.f32.mrb[10].mxu0  ;;  %v8157_v49 = vadd.f32 %v8079_v9, %v4215_v19 }
 0x315   : > { %v6548_v23 = vpop.eup %6547  ;;  %v5207_v43 = vpack.c.bf16 %v4487_v55, %v4486_v4  ;;  %v3893_v47 = vadd.f32 %v3802_v52, %v8020_v33  ;;  %v4216_v32 = vadd.f32 %v4119_v18, %v3891_v14  ;;  %v6235_v2 = vpop.f32.mrb[11].mxu0 }
 0x316   : > { %v6155_v1 = vpop.f32.mrb[11].mxu1  ;;  %6557 = vrcp.f32 %v4388_v46  ;;  %v4389_v31 = vadd.f32 1.0, %v6548_v23  ;;  %v5102_v25 = vmul.f32 -1.442695, %v8157_v49 }
 0x317   : > { %5280 = vst [vmem:[%s8128_s20 + $0x10] sm:$0xff] %v5207_v43   ;;  %v8163_v39 = vadd.f32 %v8079_v9, %v4216_v32  ;;  %v6550_v3 = vpop.eup %6549 }
 0x318   : > { %6559 = vrcp.f32 %v4389_v31  ;;  %v4488_v56 = vmul.f32 %v6550_v3, %v8113_v57 }
 0x319   : > { %6561 = vpow2.f32 %v5102_v25  ;;  %v5103_v26 = vmul.f32 -1.442695, %v8163_v39  ;;  %v3807_v33 = vpop.f32.mrb[12].mxu1  ;;  %v4124_v63 = vpop.f32.mrb[12].mxu0 }
 0x31a   : > { %v6552_v61 = vpop.eup %6551  ;;  %v3894_v14 = vadd.f32 %v3807_v33, %v8023_v59  ;;  %v4217_v12 = vadd.f32 %v4124_v63, %v3892_v11  ;;  %v6158_v35 = vpop.f32.mrb[13].mxu1 }
 0x31b   : > { %v6554_v45 = vpop.eup %6553  ;;  %v4489_v44 = vmul.f32 %v6552_v61, %v8118_v27  ;;  %6563 = vpow2.f32 %v5103_v26  ;;  %v6238_v48 = vpop.f32.mrb[13].mxu0 }
 0x31c   : > { %v4390_v21 = vadd.f32 1.0, %v6554_v45  ;;  %v3810_v20 = vpop.f32.mrb[14].mxu1  ;;  %v4127_v40 = vpop.f32.mrb[14].mxu0  ;;  %v8170_v4 = vadd.f32 %v8079_v9, %v4217_v12 }
 0x31d   : > { %v6556_v10 = vpop.eup %6555  ;;  %v5212_v34 = vpack.c.bf16 %v4489_v44, %v4488_v56  ;;  %v3895_v57 = vadd.f32 %v3810_v20, %v8026_v37  ;;  %v4218_v51 = vadd.f32 %v4127_v40, %v3893_v47  ;;  %v6239_v50 = vpop.f32.mrb[15].mxu0 }
 0x31e   : > { %v6159_v27 = vpop.f32.mrb[15].mxu1  ;;  %6565 = vrcp.f32 %v4390_v21  ;;  %v4391_v15 = vadd.f32 1.0, %v6556_v10  ;;  %v5104_v59 = vmul.f32 -1.442695, %v8170_v4 }
 0x31f   : > { %5281 = vst [vmem:[%s8128_s20 + $0x18] sm:$0xff] %v5212_v34   ;;  %v8176_v55 = vadd.f32 %v8079_v9, %v4218_v51 }
 0x320   : > { %v6558_v11 = vpop.eup %6557  ;;  %6567 = vrcp.f32 %v4391_v15 }
 0x321   : > { %6569 = vpow2.f32 %v5104_v59  ;;  %v5105_v19 = vmul.f32 -1.442695, %v8176_v55  ;;  %v4490_v5 = vmul.f32 %v6558_v11, %v8131_v7  ;;  %v3815_v37 = vpop.f32.mrb[16].mxu1  ;;  %v4132_v46 = vpop.f32.mrb[16].mxu0 }
 0x322   : > { %v6560_v42 = vpop.eup %6559  ;;  %v3896_v23 = vadd.f32 %v3815_v37, %v8029_v17  ;;  %v4219_v43 = vadd.f32 %v4132_v46, %v3894_v14  ;;  %v6162_v47 = vpop.f32.mrb[17].mxu1 }
 0x323   : > { %v6562_v52 = vpop.eup %6561  ;;  %v4491_v18 = vmul.f32 %v6560_v42, %v8137_v16  ;;  %6571 = vpow2.f32 %v5105_v19  ;;  %v6242_v32 = vpop.f32.mrb[17].mxu0 }
 0x324   : > { %v4392_v2 = vadd.f32 1.0, %v6562_v52  ;;  %v3818_v1 = vpop.f32.mrb[18].mxu1  ;;  %v4135_v31 = vpop.f32.mrb[18].mxu0  ;;  %v8183_v26 = vadd.f32 %v8079_v9, %v4219_v43 }
 0x325   : > { %v6564_v25 = vpop.eup %6563  ;;  %v5217_v3 = vpack.c.bf16 %v4491_v18, %v4490_v5  ;;  %v3897_v7 = vadd.f32 %v3818_v1, %v8032_v54  ;;  %v4220_v61 = vadd.f32 %v4135_v31, %v3895_v57  ;;  %v6243_v56 = vpop.f32.mrb[19].mxu0 }
 0x326   : > { %v6163_v16 = vpop.f32.mrb[19].mxu1  ;;  %6573 = vrcp.f32 %v4392_v2  ;;  %v4393_v33 = vadd.f32 1.0, %v6564_v25  ;;  %v5106_v17 = vmul.f32 -1.442695, %v8183_v26 }
 0x327   : > { %5282 = vst [vmem:[%s8128_s20 + $0x20] sm:$0xff] %v5217_v3   ;;  %v8189_v63 = vadd.f32 %v8079_v9, %v4220_v61 }
 0x328   : > { %v6566_v45 = vpop.eup %6565  ;;  %6575 = vrcp.f32 %v4393_v33 }
 0x329   : > { %6577 = vpow2.f32 %v5106_v17  ;;  %v5107_v44 = vmul.f32 -1.442695, %v8189_v63  ;;  %v4492_v12 = vmul.f32 %v6566_v45, %v8144_v6  ;;  %v3823_v54 = vpop.f32.mrb[20].mxu1  ;;  %v4140_v35 = vpop.f32.mrb[20].mxu0 }
 0x32a   : > { %v6568_v14 = vpop.eup %6567  ;;  %v3898_v20 = vadd.f32 %v3823_v54, %v8035_v53  ;;  %v4221_v40 = vadd.f32 %v4140_v35, %v3896_v23  ;;  %v6166_v10 = vpop.f32.mrb[21].mxu1 }
 0x32b   : > { %v6570_v48 = vpop.eup %6569  ;;  %v4493_v21 = vmul.f32 %v6568_v14, %v8150_v58  ;;  %6579 = vpow2.f32 %v5107_v44  ;;  %v6246_v34 = vpop.f32.mrb[21].mxu0 }
 0x32c   : > { %v4394_v57 = vadd.f32 1.0, %v6570_v48  ;;  %v3826_v51 = vpop.f32.mrb[22].mxu1  ;;  %v4143_v50 = vpop.f32.mrb[22].mxu0  ;;  %v8196_v59 = vadd.f32 %v8079_v9, %v4221_v40 }
 0x32d   : > { %v6572_v27 = vpop.eup %6571  ;;  %v5222_v15 = vpack.c.bf16 %v4493_v21, %v4492_v12  ;;  %v3899_v6 = vadd.f32 %v3826_v51, %v8038_v36  ;;  %v4222_v11 = vadd.f32 %v4143_v50, %v3897_v7  ;;  %v6247_v19 = vpop.f32.mrb[23].mxu0 }
 0x32e   : > { %v6167_v58 = vpop.f32.mrb[23].mxu1  ;;  %6581 = vrcp.f32 %v4394_v57  ;;  %v4395_v42 = vadd.f32 1.0, %v6572_v27  ;;  %v5108_v53 = vmul.f32 -1.442695, %v8196_v59 }
 0x32f   : > { %5283 = vst [vmem:[%s8128_s20 + $0x28] sm:$0xff] %v5222_v15   ;;  %v8202_v5 = vadd.f32 %v8079_v9, %v4222_v11 }
 0x330   : > { %v6574_v37 = vpop.eup %6573  ;;  %6583 = vrcp.f32 %v4395_v42 }
 0x331   : > { %6585 = vpow2.f32 %v5108_v53  ;;  %v5109_v46 = vmul.f32 -1.442695, %v8202_v5  ;;  %v4494_v18 = vmul.f32 %v6574_v37, %v8157_v49  ;;  %v3831_v36 = vpop.f32.mrb[24].mxu1  ;;  %v4148_v23 = vpop.f32.mrb[24].mxu0 }
 0x332   : > { %v6576_v52 = vpop.eup %6575  ;;  %v3900_v32 = vadd.f32 %v3831_v36, %v8041_v41  ;;  %v4223_v2 = vadd.f32 %v4148_v23, %v3898_v20  ;;  %v6170_v1 = vpop.f32.mrb[25].mxu1 }
 0x333   : > { %v6578_v43 = vpop.eup %6577  ;;  %v4495_v47 = vmul.f32 %v6576_v52, %v8163_v39  ;;  %6587 = vpow2.f32 %v5109_v46  ;;  %v6250_v31 = vpop.f32.mrb[25].mxu0 }
 0x334   : > { %v4396_v25 = vadd.f32 1.0, %v6578_v43  ;;  %v3834_v3 = vpop.f32.mrb[26].mxu1  ;;  %v4151_v7 = vpop.f32.mrb[26].mxu0  ;;  %v8209_v16 = vadd.f32 %v8079_v9, %v4223_v2 }
 0x335   : > { %v6580_v61 = vpop.eup %6579  ;;  %v5227_v56 = vpack.c.bf16 %v4495_v47, %v4494_v18  ;;  %v3901_v49 = vadd.f32 %v3834_v3, %v8044_v8  ;;  %v4224_v33 = vadd.f32 %v4151_v7, %v3899_v6  ;;  %v6251_v17 = vpop.f32.mrb[27].mxu0 }
 0x336   : > { %v6171_v39 = vpop.f32.mrb[27].mxu1  ;;  %6589 = vrcp.f32 %v4396_v25  ;;  %v4397_v45 = vadd.f32 1.0, %v6580_v61  ;;  %v5110_v41 = vmul.f32 -1.442695, %v8209_v16 }
 0x337   : > { %5284 = vst [vmem:[%s8128_s20 + $0x30] sm:$0xff] %v5227_v56   ;;  %v8215_v44 = vadd.f32 %v8079_v9, %v4224_v33 }
 0x338   : > { %v6582_v14 = vpop.eup %6581  ;;  %6591 = vrcp.f32 %v4397_v45 }
 0x339   : > { %6593 = vpow2.f32 %v5110_v41  ;;  %v5111_v12 = vmul.f32 -1.442695, %v8215_v44  ;;  %v4496_v35 = vmul.f32 %v6582_v14, %v8170_v4  ;;  %v3839_v8 = vpop.f32.mrb[28].mxu1  ;;  %v4156_v48 = vpop.f32.mrb[28].mxu0 }
 0x33a   : > { %v6584_v54 = vpop.eup %6583  ;;  %v3902_v40 = vadd.f32 %v3839_v8, %v8047_v0  ;;  %v4225_v10 = vadd.f32 %v4156_v48, %v3900_v32  ;;  %v6174_v34 = vpop.f32.mrb[29].mxu1 }
 0x33b   : > { %v6586_v21 = vpop.eup %6585  ;;  %v4497_v20 = vmul.f32 %v6584_v54, %v8176_v55  ;;  %6595 = vpow2.f32 %v5111_v12  ;;  %v6254_v57 = vpop.f32.mrb[29].mxu0 }
 0x33c   : > { %v4398_v51 = vadd.f32 1.0, %v6586_v21  ;;  %v3842_v50 = vpop.f32.mrb[30].mxu1  ;;  %v4159_v27 = vpop.f32.mrb[30].mxu0  ;;  %v8222_v11 = vadd.f32 %v8079_v9, %v4225_v10 }
 0x33d   : > { %v6588_v15 = vpop.eup %6587  ;;  %v5232_v6 = vpack.c.bf16 %v4497_v20, %v4496_v35  ;;  %v3903_v4 = vadd.f32 %v3842_v50, %v8050_v24  ;;  %v4226_v19 = vadd.f32 %v4159_v27, %v3901_v49  ;;  %v6255_v58 = vpop.f32.mrb[31].mxu0 }
 0x33e   : > { %v6175_v55 = vpop.f32.mrb[31].mxu1  ;;  %6597 = vrcp.f32 %v4398_v51  ;;  %v4399_v42 = vadd.f32 1.0, %v6588_v15  ;;  %v5112_v0 = vmul.f32 -1.442695, %v8222_v11 }
 0x33f   : > { %5285 = vst [vmem:[%s8128_s20 + $0x38] sm:$0xff] %v5232_v6   ;;  %v8228_v53 = vadd.f32 %v8079_v9, %v4226_v19 }
 0x340   : > { %v6590_v37 = vpop.eup %6589  ;;  %6599 = vrcp.f32 %v4399_v42 }
 0x341   : > { %6601 = vpow2.f32 %v5112_v0  ;;  %v5113_v46 = vmul.f32 -1.442695, %v8228_v53  ;;  %v4498_v18 = vmul.f32 %v6590_v37, %v8183_v26  ;;  %v3847_v24 = vpop.f32.mrb[32].mxu1  ;;  %v4164_v36 = vpop.f32.mrb[32].mxu0 }
 0x342   : > { %v6592_v52 = vpop.eup %6591  ;;  %v3904_v47 = vadd.f32 %v3847_v24, %v8053_v28  ;;  %v4227_v32 = vadd.f32 %v4164_v36, %v3902_v40  ;;  %v6178_v2 = vpop.f32.mrb[33].mxu1 }
 0x343   : > { %v6594_v23 = vpop.eup %6593  ;;  %v4499_v43 = vmul.f32 %v6592_v52, %v8189_v63  ;;  %6603 = vpow2.f32 %v5113_v46  ;;  %v6258_v1 = vpop.f32.mrb[33].mxu0 }
 0x344   : > { %v4400_v31 = vadd.f32 1.0, %v6594_v23  ;;  %v3850_v25 = vpop.f32.mrb[34].mxu1  ;;  %v4167_v3 = vpop.f32.mrb[34].mxu0  ;;  %v8235_v56 = vadd.f32 %v8079_v9, %v4227_v32 }
 0x345   : > { %v6596_v7 = vpop.eup %6595  ;;  %v5237_v61 = vpack.c.bf16 %v4499_v43, %v4498_v18  ;;  %v3905_v26 = vadd.f32 %v3850_v25, %v8056_v13  ;;  %v4228_v49 = vadd.f32 %v4167_v3, %v3903_v4  ;;  %v6259_v33 = vpop.f32.mrb[35].mxu0 }
 0x346   : > { %v6179_v63 = vpop.f32.mrb[35].mxu1  ;;  %6605 = vrcp.f32 %v4400_v31  ;;  %v4401_v17 = vadd.f32 1.0, %v6596_v7  ;;  %v5114_v28 = vmul.f32 -1.442695, %v8235_v56 }
 0x347   : > { %5286 = vst [vmem:[%s8128_s20 + $0x40] sm:$0xff] %v5237_v61   ;;  %v8241_v39 = vadd.f32 %v8079_v9, %v4228_v49 }
 0x348   : > { %v6598_v45 = vpop.eup %6597  ;;  %6607 = vrcp.f32 %v4401_v17 }
 0x349   : > { %6609 = vpow2.f32 %v5114_v28  ;;  %v5115_v41 = vmul.f32 -1.442695, %v8241_v39  ;;  %v4500_v12 = vmul.f32 %v6598_v45, %v8196_v59  ;;  %v3855_v13 = vpop.f32.mrb[36].mxu1  ;;  %v4172_v54 = vpop.f32.mrb[36].mxu0 }
 0x34a   : > { %v6600_v14 = vpop.eup %6599  ;;  %v3906_v48 = vadd.f32 %v3855_v13, %v8059_v38  ;;  %v4229_v21 = vadd.f32 %v4172_v54, %v3904_v47  ;;  %v6182_v20 = vpop.f32.mrb[37].mxu1 }
 0x34b   : > { %v6602_v35 = vpop.eup %6601  ;;  %v4501_v8 = vmul.f32 %v6600_v14, %v8202_v5  ;;  %6611 = vpow2.f32 %v5115_v41  ;;  %v6262_v40 = vpop.f32.mrb[37].mxu0 }
 0x34c   : > { %v4402_v10 = vadd.f32 1.0, %v6602_v35  ;;  %v3858_v34 = vpop.f32.mrb[38].mxu1  ;;  %v4175_v57 = vpop.f32.mrb[38].mxu0  ;;  %v8248_v27 = vadd.f32 %v8079_v9, %v4229_v21 }
 0x34d   : > { %v6604_v51 = vpop.eup %6603  ;;  %v5242_v50 = vpack.c.bf16 %v4501_v8, %v4500_v12  ;;  %v3907_v59 = vadd.f32 %v3858_v34, %v8062_v62  ;;  %v4230_v15 = vadd.f32 %v4175_v57, %v3905_v26  ;;  %v6263_v6 = vpop.f32.mrb[39].mxu0 }
 0x34e   : > { %v6183_v5 = vpop.f32.mrb[39].mxu1  ;;  %6613 = vrcp.f32 %v4402_v10  ;;  %v4403_v4 = vadd.f32 1.0, %v6604_v51  ;;  %v5116_v38 = vmul.f32 -1.442695, %v8248_v27 }
 0x34f   : > { %5287 = vst [vmem:[%s8128_s20 + $0x48] sm:$0xff] %v5242_v50   ;;  %v8254_v19 = vadd.f32 %v8079_v9, %v4230_v15 }
 0x350   : > { %v6606_v58 = vpop.eup %6605  ;;  %6615 = vrcp.f32 %v4403_v4 }
 0x351   : > { %6617 = vpow2.f32 %v5116_v38  ;;  %v5117_v55 = vmul.f32 -1.442695, %v8254_v19  ;;  %v4502_v0 = vmul.f32 %v6606_v58, %v8209_v16  ;;  %v3863_v62 = vpop.f32.mrb[40].mxu1  ;;  %v4180_v37 = vpop.f32.mrb[40].mxu0 }
 0x352   : > { %v6608_v42 = vpop.eup %6607  ;;  %v3908_v18 = vadd.f32 %v3863_v62, %v8065_v22  ;;  %v4231_v24 = vadd.f32 %v4180_v37, %v3906_v48  ;;  %v6186_v36 = vpop.f32.mrb[41].mxu1 }
 0x353   : > { %v6610_v46 = vpop.eup %6609  ;;  %v4503_v52 = vmul.f32 %v6608_v42, %v8215_v44  ;;  %6619 = vpow2.f32 %v5117_v55  ;;  %v6266_v23 = vpop.f32.mrb[41].mxu0 }
 0x354   : > { %v4404_v43 = vadd.f32 1.0, %v6610_v46  ;;  %v3866_v47 = vpop.f32.mrb[42].mxu1  ;;  %v4183_v32 = vpop.f32.mrb[42].mxu0  ;;  %v8261_v31 = vadd.f32 %v8079_v9, %v4231_v24 }
 0x355   : > { %v6612_v2 = vpop.eup %6611  ;;  %v5247_v1 = vpack.c.bf16 %v4503_v52, %v4502_v0  ;;  %v3909_v16 = vadd.f32 %v3866_v47, %v8068_v30  ;;  %v4232_v25 = vadd.f32 %v4183_v32, %v3907_v59  ;;  %v6267_v3 = vpop.f32.mrb[43].mxu0 }
 0x356   : > { %v6187_v44 = vpop.f32.mrb[43].mxu1  ;;  %6621 = vrcp.f32 %v4404_v43  ;;  %v4405_v7 = vadd.f32 1.0, %v6612_v2  ;;  %v5118_v22 = vmul.f32 -1.442695, %v8261_v31 }
 0x357   : > { %5288 = vst [vmem:[%s8128_s20 + $0x50] sm:$0xff] %v5247_v1   ;;  %v8267_v61 = vadd.f32 %v8079_v9, %v4232_v25 }
 0x358   : > { %v6614_v26 = vpop.eup %6613  ;;  %6623 = vrcp.f32 %v4405_v7 }
 0x359   : > { %6625 = vpow2.f32 %v5118_v22  ;;  %v5119_v49 = vmul.f32 -1.442695, %v8267_v61  ;;  %v4504_v63 = vmul.f32 %v6614_v26, %v8222_v11  ;;  %v3871_v30 = vpop.f32.mrb[44].mxu1  ;;  %v4188_v17 = vpop.f32.mrb[44].mxu0 }
 0x35a   : > { %v6616_v33 = vpop.eup %6615  ;;  %v3910_v41 = vadd.f32 %v3871_v30, %v8070_v60  ;;  %v4233_v14 = vadd.f32 %v4188_v17, %v3908_v18  ;;  %v6190_v12 = vpop.f32.mrb[45].mxu1 }
 0x35b   : > { %v6618_v28 = vpop.eup %6617  ;;  %v4505_v45 = vmul.f32 %v6616_v33, %v8228_v53  ;;  %6627 = vpow2.f32 %v5119_v49  ;;  %v6270_v13 = vpop.f32.mrb[45].mxu0 }
 0x35c   : > { %v4406_v54 = vadd.f32 1.0, %v6618_v28  ;;  %v3874_v35 = vpop.f32.mrb[46].mxu1  ;;  %v4191_v8 = vpop.f32.mrb[46].mxu0  ;;  %v8274_v20 = vadd.f32 %v8079_v9, %v4233_v14 }
 0x35d   : > { %v6620_v48 = vpop.eup %6619  ;;  %v5252_v21 = vpack.c.bf16 %v4505_v45, %v4504_v63  ;;  %v3911_v11 = vadd.f32 %v3874_v35, %v8073_v29  ;;  %v4234_v40 = vadd.f32 %v4191_v8, %v3909_v16  ;;  %v6271_v10 = vpop.f32.mrb[47].mxu0 }
 0x35e   : > { %v6191_v53 = vpop.f32.mrb[47].mxu1  ;;  %6629 = vrcp.f32 %v4406_v54  ;;  %v4407_v34 = vadd.f32 1.0, %v6620_v48  ;;  %v5120_v60 = vmul.f32 -1.442695, %v8274_v20 }
 0x35f   : > { %5289 = vst [vmem:[%s8128_s20 + $0x58] sm:$0xff] %v5252_v21   ;;  %v4275_v57 = vadd.f32 %v8079_v9, %v4234_v40 }
 0x360   : > { %v6622_v51 = vpop.eup %6621  ;;  %6631 = vrcp.f32 %v4407_v34 }
 0x361   : > { %6633 = vpow2.f32 %v5120_v60  ;;  %v5121_v50 = vmul.f32 -1.442695, %v4275_v57  ;;  %v4196_v15 = vpop.f32.mrb[48].mxu0  ;;  %v4506_v29 = vmul.f32 %v6622_v51, %v8235_v56 }
 0x362   : > { %v6624_v59 = vpop.eup %6623  ;;  %v4235_v4 = vadd.f32 %v4196_v15, %v3910_v41  ;;  %v6274_v38 = vpop.f32.mrb[49].mxu0 }
 0x363   : > { %v6626_v6 = vpop.eup %6625  ;;  %v4507_v5 = vmul.f32 %v6624_v59, %v8241_v39  ;;  %6635 = vpow2.f32 %v5121_v50  ;;  %v4199_v55 = vpop.f32.mrb[50].mxu0 }
 0x364   : > { %v4408_v58 = vadd.f32 1.0, %v6626_v6  ;;  %v4276_v62 = vadd.f32 %v8079_v9, %v4235_v4  ;;  %v4236_v37 = vadd.f32 %v4199_v55, %v3911_v11  ;;  %v6275_v46 = vpop.f32.mrb[51].mxu0 }
 0x365   : > { %v6628_v42 = vpop.eup %6627  ;;  %v5257_v0 = vpack.c.bf16 %v4507_v5, %v4506_v29 }
 0x366   : > { %6637 = vrcp.f32 %v4408_v58  ;;  %v4409_v52 = vadd.f32 1.0, %v6628_v42  ;;  %v5122_v18 = vmul.f32 -1.442695, %v4276_v62  ;;  %v4277_v56 = vadd.f32 %v8079_v9, %v4236_v37 }
 0x367   : > { %5290 = vst [vmem:[%s8128_s20 + $0x60] sm:$0xff] %v5257_v0  }
 0x368   : > { %v6630_v24 = vpop.eup %6629  ;;  %6639 = vrcp.f32 %v4409_v52  ;;  %v5123_v39 = vmul.f32 -1.442695, %v4277_v56 }
 0x369   : > { %6641 = vpow2.f32 %v5122_v18  ;;  %v4508_v43 = vmul.f32 %v6630_v24, %v8248_v27 }
 0x36a   : > { %v6632_v36 = vpop.eup %6631  ;;  %6643 = vpow2.f32 %v5123_v39 }
 0x36b   : > { %v6634_v23 = vpop.eup %6633  ;;  %v4509_v47 = vmul.f32 %v6632_v36, %v8254_v19 }
 0x36c   : > { %v4410_v32 = vadd.f32 1.0, %v6634_v23 }
 0x36d   : > { %v6636_v2 = vpop.eup %6635  ;;  %v5262_v1 = vpack.c.bf16 %v4509_v47, %v4508_v43 }
 0x36e   : > { %6645 = vrcp.f32 %v4410_v32  ;;  %v4411_v16 = vadd.f32 1.0, %v6636_v2 }
 0x36f   : > { %5291 = vst [vmem:[%s8128_s20 + $0x68] sm:$0xff] %v5262_v1  }
 0x370   : > { %v6638_v25 = vpop.eup %6637  ;;  %6647 = vrcp.f32 %v4411_v16 }
 0x371   : > { %v4510_v44 = vmul.f32 %v6638_v25, %v8261_v31 }
 0x372   : > { %v6640_v9 = vpop.eup %6639 }
 0x373   : > { %v6642_v3 = vpop.eup %6641  ;;  %v4511_v7 = vmul.f32 %v6640_v9, %v8267_v61 }
 0x374   : > { %v4412_v27 = vadd.f32 1.0, %v6642_v3  ;;  %v6644_v22 = vpop.eup %6643 }
 0x375   : > { %v5267_v19 = vpack.c.bf16 %v4511_v7, %v4510_v44  ;;  %v4413_v26 = vadd.f32 1.0, %v6644_v22 }
 0x376   : > { %6649 = vrcp.f32 %v4412_v27 }
 0x377   : > { %5292 = vst [vmem:[%s8128_s20 + $0x70] sm:$0xff] %v5267_v19   ;;  %6651 = vrcp.f32 %v4413_v26 }
 0x378   : > { %v6646_v49 = vpop.eup %6645 }
 0x379   : > { %v4512_v63 = vmul.f32 %v6646_v49, %v8274_v20 }
 0x37a   : > { %v6648_v33 = vpop.eup %6647 }
 0x37b   : > { %v4513_v30 = vmul.f32 %v6648_v33, %v4275_v57 }
 0x37d   : > { %v5272_v17 = vpack.c.bf16 %v4513_v30, %v4512_v63 }
 0x37f   : > { %5293 = vst [vmem:[%s8128_s20 + $0x78] sm:$0xff] %v5272_v17  }
 0x380   : > { %v6650_v28 = vpop.eup %6649 }
 0x381   : > { %v6652_v45 = vpop.eup %6651  ;;  %v4514_v31 = vmul.f32 %v6650_v28, %v4276_v62 }
 0x382   : > { %v4515_v41 = vmul.f32 %v6652_v45, %v4277_v56 }
 0x384   : > { %v5277_v61 = vpack.c.bf16 %v4515_v41, %v4514_v31 }
 0x386   : > { %5294 = vst [vmem:[%s8128_s20 + $0x80] sm:$0xff] %v5277_v61  }
 0x387 PF: > { %s13_s12 = sadd.s32 1, %s6665_s12  }
 0x388   : > { %p10_p4 = scmp.ge.s32.totalorder %s13_s12, 4  }
 0x38a   :  { %12 = sbr.rel (!%p10_p4) target bundleno = 1 (0x1), region = 70 }

// kernel: viewpoint_forward.9
= control target key start
LH: loop header
LB: loop body
LE: loop exit
PB: predicated region body
PF: predicated region fallthrough
CT: control target
= control target key end

     0   :  { %s6496_s15 = smov 0   ;;  %s7619_s0 = inlined_call_operand.vmem [shape: bf16[2,342,128], index: 0, kind: input, shape index: {}]   ;;  %s7620_s1 = inlined_call_operand.vmem [shape: bf16[9,128,128], index: 1, kind: input, shape index: {}]   ;;  %s7621_s2 = inlined_call_operand.vmem [shape: f32[1,128], index: 2, kind: input, shape index: {}]   ;;  %s7622_s3 = inlined_call_operand.vmem [shape: bf16[2,288,128], index: 3, kind: input, shape index: {}]   ;;  %s7623_s4 = inlined_call_operand.vmem [shape: bf16[2,288,128], index: 4, kind: output, shape index: {}]  }
   0x1 LB: > { %s4549_s16 = sadd.s32 4294967295, %s6469_s15   ;;  %p4553_p0 = scmp.ge.s32.totalorder %s6469_s15, 1  ;;  %s6469_s15 = sphi %s6496_s15, %s14_s15  }
   0x2   : > { %p172_p1 = scmp.lt.s32.totalorder %s6469_s15, 3 }
   0x4   : > { %p173_p2 = pnand %p4553_p0, %p172_p1 }
   0x5   : > { %v6142_v0 = vld [vmem:[%s7620_s1 + $0x40] sm:$0xff] (!%p173_p2)   ;;  %p203_p3 = scmp.lt.s32.totalorder (!%p173_p2), %s4549_s16, 1  ;;  %v6144_v2 = vld [vmem:[%s7620_s1 + $0x48] sm:$0xff] (!%p173_p2)   ;;  %v6146_v4 = vld [vmem:[%s7620_s1 + $0x50] sm:$0xff] (!%p173_p2)   ;;  %vm382_vm0 = vsmask.f32 (!%p173_p2), 7424 }
   0x6   : > { %176 = sbr.rel (%p173_p2) target bundleno = 616 (0x268), region = 36  ;;  %v6143_v1 = vld [vmem:[%s7620_s1 + $0x100] sm:$0xff] (!%p173_p2)   ;;  %5360 = vmatprep.subr.bf16.mxu1 (!%p173_p2), %v6142_v0  ;;  %v6145_v3 = vld [vmem:[%s7620_s1 + $0x108] sm:$0xff] (!%p173_p2)   ;;  %v6147_v5 = vld [vmem:[%s7620_s1 + $0x110] sm:$0xff] (!%p173_p2)   ;;  %vm1839_vm1 = vsmask.f32 (!%p173_p2), 6400 }
   0x7   : > { %5568 = vmatprep.subr.bf16.mxu0 (!%p173_p2), %v6143_v1  ;;  %5361 = vmatpush3.bf16.msra.mxu1 (!%p173_p2), %v6142_v0  ;;  %v6148_v6 = vld [vmem:[%s7620_s1 + $0x58] sm:$0xff] (!%p173_p2)   ;;  %v6150_v8 = vld [vmem:[%s7620_s1 + $0x60] sm:$0xff] (!%p173_p2)   ;;  %v6152_v10 = vld [vmem:[%s7620_s1 + $0x68] sm:$0xff] (!%p173_p2)   ;;  %vm2310_vm2 = vcmask (!%p173_p2), 1045504   ;;  %vm1038_vm3 = vcmask (!%p173_p2), 1046528   ;;  %vm3582_vm5 = vcmask (!%p173_p2), 1044480  }
   0x8   : > { %5569 = vmatpush3.bf16.msra.mxu0 (!%p173_p2), %v6143_v1  ;;  %5362 = vmatprep.subr.bf16.mxu1 (!%p173_p2), %v6144_v2  ;;  %v6149_v7 = vld [vmem:[%s7620_s1 + $0x118] sm:$0xff] (!%p173_p2)   ;;  %v6151_v9 = vld [vmem:[%s7620_s1 + $0x120] sm:$0xff] (!%p173_p2)   ;;  %v6153_v11 = vld [vmem:[%s7620_s1 + $0x128] sm:$0xff] (!%p173_p2)   ;;  %vm3111_vm4 = vsmask.f32 (!%p173_p2), 5376 }
   0x9   : > { %5570 = vmatprep.subr.bf16.mxu0 (!%p173_p2), %v6145_v3  ;;  %v6154_v17 = vld [vmem:[%s7620_s1 + $0x70] sm:$0xff] (!%p173_p2)   ;;  %v6156_v32 = vld [vmem:[%s7620_s1 + $0x78] sm:$0xff] (!%p173_p2)   ;;  %v6163_v48 = vld [vmem:[%s7620_s1] sm:$0xff] (!%p173_p2)  }
   0xa   : > { %v6155_v20 = vld [vmem:[%s7620_s1 + $0x130] sm:$0xff] (!%p173_p2)   ;;  %v6157_v36 = vld [vmem:[%s7620_s1 + $0x138] sm:$0xff] (!%p173_p2)   ;;  %v6165_v54 = vld [vmem:[%s7620_s1 + $0x140] sm:$0xff] (!%p173_p2)  }
   0xb   : > { %5363 = vmatpush3.bf16.msra.mxu1 (!%p173_p2), %v6144_v2 }
   0xc   : > { %5571 = vmatpush3.bf16.msra.mxu0 (!%p173_p2), %v6145_v3  ;;  %5364 = vmatprep.subr.bf16.mxu1 (!%p173_p2), %v6146_v4 }
   0xd   : > { %s7625_s16 = smov (!%p203_p3, %s4549_s16), 1  ;;  %5572 = vmatprep.subr.bf16.mxu0 %v6147_v5 }
   0xe   : > { %s6132_s7 = smul.u32 172, %s7625_s16 }
   0xf   : > { %5365 = vmatpush3.bf16.msra.mxu1 %v6146_v4  ;;  %s6133_s20 = smul.u32 144, %s7625_s16 }
  0x10   : > { %5573 = vmatpush3.bf16.msra.mxu0 %v6147_v5  ;;  %5366 = vmatprep.subr.bf16.mxu1 %v6148_v6  ;;  %s6540_s14 = scalar_lea.vmem %s7619_s0, %s6132_s7 }
  0x11   : > { %5574 = vmatprep.subr.bf16.mxu0 %v6149_v7  ;;  %v219_v12 = vld [vmem:[%s6540_s14] sm:$0xf]  ;;  %v220_v13 = vld [vmem:[%s6540_s14 + $0x4] sm:$0xf]  ;;  %v6553_v15 = vld [vmem:[%s6540_s14 + $0x8] sm:$0xff]   ;;  %s7388_s23 = scalar_lea.vmem %s7622_s3, %s6133_s20  ;;  %s7436_s26 = scalar_lea.vmem %s7623_s4, %s6133_s20 }
  0x12   : > { %v6550_v14 = vcombine.low %v219_v12, %v220_v13  ;;  %v6556_v16 = vld [vmem:[%s6540_s14 + $0x10] sm:$0xff]   ;;  %v1355_v18 = vld [vmem:[%s6540_s14 + $0x8] sm:$0xe]  ;;  %v6563_v19 = vld [vmem:[%s6540_s14 + $0xc] sm:$0xf]  ;;  %v391_v23 = vshll.u32 %v6553_v15, 16 }
  0x13   : > { %5367 = vmatpush3.bf16.msra.mxu1 %v6148_v6  ;;  %v6572_v24 = vcombine.low %v1355_v18, %v6563_v19  ;;  %v6575_v25 = vld [vmem:[%s6540_s14 + $0x10] sm:$0xff]   ;;  %v1849_v26 = vshrl.u32 %v6556_v16, 16  ;;  %v1852_v27 = vshll.u32 %v6556_v16, 16  ;;  %v395_v40 = vshrl.u32 %v6553_v15, 16  ;;  %v6590_v41 = vld [vmem:[%s6540_s14 + $0x18] sm:$0xff]   ;;  %v6607_v57 = vld [vmem:[%s6540_s14 + $0x20] sm:$0xff]  }
  0x14   : > { %5575 = vmatpush3.bf16.msra.mxu0 %v6149_v7  ;;  %5368 = vmatprep.subr.bf16.mxu1 %v6150_v8  ;;  %v384_v21 = vshrl.u32 %v6550_v14, 16  ;;  %v386_v22 = vshll.u32 %v6550_v14, 16  ;;  %v393_v29 = vrot.slane %v391_v23, 1  ;;  %v399_v35 = vshll.u32 %v6575_v25, 16  ;;  %v6604_v55 = vld [vmem:[%s6540_s14 + $0x18] sm:$0xff]   ;;  %v6611_v60 = vld [vmem:[%s6540_s14 + $0x20] sm:$0xff]  }
  0x15   : > { %5576 = vmatprep.subr.bf16.mxu0 %v6151_v9  ;;  %v1841_v30 = vshrl.u32 %v6572_v24, 16  ;;  %v1844_v31 = vshll.u32 %v6572_v24, 16  ;;  %v1851_v33 = vrot.slane %v1849_v26, 1  ;;  %v1854_v34 = vrot.slane %v1852_v27, 2  ;;  %v6615_v62 = vld [vmem:[%s6540_s14 + $0x28] sm:$0xff]  }
  0x16   : > { %v388_v28 = vrot.slane %v386_v22, 1  ;;  %v1858_v45 = vshrl.u32 %v6590_v41, 16  ;;  %v1861_v46 = vshll.u32 %v6590_v41, 16  ;;  %v401_v47 = vrot.slane %v399_v35, 1  ;;  %v6166_v7 = vld [vmem:[%s7620_s1 + $0x148] sm:$0xff]  }
  0x17   : > { %5369 = vmatpush3.bf16.msra.mxu1 %v6150_v8  ;;  %v1843_v38 = vrot.slane %v1841_v30, 1  ;;  %v1846_v39 = vrot.slane %v1844_v31, 2  ;;  %v1855_v42 = vor.u32 %v1854_v34, %v1851_v33  ;;  %v403_v49 = vshrl.u32 %v6575_v25, 16  ;;  %v6635_v22 = vld [vmem:[%s6540_s14 + $0x28] sm:$0xff]   ;;  %v6644_v31 = vld [vmem:[%s6540_s14 + $0x30] sm:$0xff]   ;;  %v6648_v33 = vld [vmem:[%s6540_s14 + $0x38] sm:$0xff]  }
  0x18   : > { %5577 = vmatpush3.bf16.msra.mxu0 %v6151_v9  ;;  %5370 = vmatprep.subr.bf16.mxu1 %v6152_v10  ;;  %v389_v37 = vor.u32 %v388_v28, %v384_v21  ;;  %v397_v51 = vor.u32 %v395_v40, %v393_v29  ;;  %v1860_v52 = vrot.slane %v1858_v45, 1  ;;  %v1863_v53 = vrot.slane %v1861_v46, 2  ;;  %v6171_v21 = vld [vmem:[%s7620_s1 + $0x150] sm:$0xff]  }
  0x19   : > { %5578 = vmatprep.subr.bf16.mxu0 %v6153_v11  ;;  %v1847_v44 = vor.u32 %v1846_v39, %v1843_v38  ;;  %v405_v58 = vor.u32 %v403_v49, %v401_v47  ;;  %v407_v59 = vshll.u32 %v6604_v55, 16  ;;  %v411_v61 = vshrl.u32 %v6604_v55, 16  ;;  %v6640_v28 = vld [vmem:[%s6540_s14 + $0x30] sm:$0xff]  }
  0x1a   : > { %v394_v43 = vsel %vm382_vm0, %v389_v37, %v393_v29  ;;  %v1864_v56 = vor.u32 %v1863_v53, %v1860_v52  ;;  %v402_v63 = vsel %vm382_vm0, %v397_v51, %v401_v47  ;;  %v1867_v1 = vshrl.u32 %v6607_v57, 16  ;;  %v6179_v46 = vld [vmem:[%s7620_s1 + $0x10] sm:$0xff]   ;;  %v6178_v53 = vld [vmem:[%s7620_s1 + $0x160] sm:$0xff]  }
  0x1b   : > { %5371 = vmatpush3.bf16.msra.mxu1 %v6152_v10  ;;  %5376 = vmatprep.mubr.bf16.mxu1 %v394_v43  ;;  %v1856_v50 = vsel %vm1839_vm1, %v1847_v44, %v1855_v42  ;;  %v1870_v2 = vshll.u32 %v6607_v57, 16  ;;  %v409_v3 = vrot.slane %v407_v59, 1  ;;  %v415_v4 = vshll.u32 %v6611_v60, 16  ;;  %v6172_v10 = vld [vmem:[%s7620_s1 + $0x8] sm:$0xff]   ;;  %v6173_v43 = vld [vmem:[%s7620_s1 + $0x158] sm:$0xff]  }
  0x1c   : > { %5579 = vmatpush3.bf16.msra.mxu0 %v6153_v11  ;;  %5372 = vmatprep.subr.bf16.mxu1 %v6154_v17  ;;  %v1865_v0 = vsel %vm1839_vm1, %v1855_v42, %v1864_v56  ;;  %v1876_v5 = vshrl.u32 %v6615_v62, 16  ;;  %v1879_v6 = vshll.u32 %v6615_v62, 16  ;;  %v1869_v8 = vrot.slane %v1867_v1, 1  ;;  %v6677_v1 = vld [vmem:[%s6540_s14 + $0x40] sm:$0xff]  }
  0x1d   : > { %5580 = vmatprep.subr.bf16.mxu0 %v6155_v20  ;;  %5584 = vmatprep.mubr.bf16.mxu0 %v1856_v50  ;;  %v1872_v9 = vrot.slane %v1870_v2, 2  ;;  %v410_v11 = vsel %vm382_vm0, %v405_v58, %v409_v3  ;;  %v417_v18 = vrot.slane %v415_v4, 1  ;;  %v419_v23 = vshrl.u32 %v6611_v60, 16 }
  0x1e   : > { %v1878_v12 = vrot.slane %v1876_v5, 1  ;;  %v423_v30 = vshll.u32 %v6635_v22, 16  ;;  %v1888_v37 = vshll.u32 %v6640_v28, 16  ;;  %v431_v39 = vshll.u32 %v6644_v31, 16 }
  0x1f   : > { %5373 = vmatpush3.bf16.msra.mxu1 %v6154_v17  ;;  %v1873_v13 = vor.u32 %v1872_v9, %v1869_v8  ;;  %v413_v17 = vor.u32 %v411_v61, %v409_v3  ;;  %v421_v29 = vor.u32 %v419_v23, %v417_v18  ;;  %v1894_v40 = vshrl.u32 %v6648_v33, 16  ;;  %v6673_v61 = vld [vmem:[%s6540_s14 + $0x40] sm:$0xff]   ;;  %v6180_v3 = vld [vmem:[%s7620_s1 + $0x168] sm:$0xff]  }
  0x20   : > { %5581 = vmatpush3.bf16.msra.mxu0 %v6155_v20  ;;  %5374 = vmatprep.subr.bf16.mxu1 %v6156_v32  ;;  %v1881_v20 = vrot.slane %v1879_v6, 2  ;;  %v425_v38 = vrot.slane %v423_v30, 1  ;;  %v1897_v42 = vshll.u32 %v6648_v33, 16  ;;  %v1890_v45 = vrot.slane %v1888_v37, 2  ;;  %v6186_v30 = vld [vmem:[%s7620_s1 + $0x18] sm:$0xff]  }
  0x21   : > { %5582 = vmatprep.subr.bf16.mxu0 %v6157_v36  ;;  %v1874_v26 = vsel %vm1839_vm1, %v1864_v56, %v1873_v13  ;;  %v418_v34 = vsel %vm382_vm0, %v413_v17, %v417_v18  ;;  %v433_v51 = vrot.slane %v431_v39, 1  ;;  %v435_v56 = vshrl.u32 %v6644_v31, 16  ;;  %v2289_v37 = vld [vmem:[%s6540_s14 + $0x8] sm:$0xc] }
  0x22   : > { %v1882_v27 = vor.u32 %v1881_v20, %v1878_v12  ;;  %v426_v47 = vsel %vm382_vm0, %v421_v29, %v425_v38  ;;  %v1899_v52 = vrot.slane %v1897_v42, 2  ;;  %v1903_v4 = vshrl.u32 %v6673_v61, 16  ;;  %v6185_v29 = vld [vmem:[%s7620_s1 + $0x170] sm:$0xff]  }
  0x23   : > { %5375 = vmatpush3.bf16.msra.mxu1 %v6156_v32  ;;  %v427_v32 = vshrl.u32 %v6635_v22, 16  ;;  %v1906_v5 = vshll.u32 %v6673_v61, 16  ;;  %v2312_v39 = vrot.slane %v6556_v16, 2 }
  0x24   : > { %5583 = vmatpush3.bf16.msra.mxu0 %v6157_v36  ;;  %5412 = vmatprep.subr.bf16.mxu1 %v6163_v48  ;;  %v1883_v35 = vsel %vm1839_vm1, %v1873_v13, %v1882_v27  ;;  %v1885_v36 = vshrl.u32 %v6640_v28, 16 }
  0x25   : > { %5620 = vmatprep.subr.bf16.mxu0 %v6165_v54  ;;  %v429_v50 = vor.u32 %v427_v32, %v425_v38  ;;  %v1908_v12 = vrot.slane %v1906_v5, 2  ;;  %v4717_v38 = vcombine.low %v2289_v37, %v6563_v19  ;;  %v2316_v5 = vrot.slane %v6607_v57, 2  ;;  %v6202_v37 = vld [vmem:[%s7620_s1 + $0x190] sm:$0xff]  }
  0x26   : > { %5377 = vmatmul.mubr.bf16.vlgmr.msra.gmra.mrb[0].mxu1 %v402_v63  ;;  %v1887_v44 = vrot.slane %v1885_v36, 1  ;;  %v437_v63 = vor.u32 %v435_v56, %v433_v51  ;;  %v451_v36 = vshrl.u32 %v6677_v1, 16 }
  0x27   : > { %5585 = vmatmul.mubr.bf16.vlgmr.msra.gmra.mrb[0].mxu0 %v1865_v0  ;;  %5413 = vmatpush3.bf16.msra.mxu1 %v6163_v48  ;;  %v1896_v48 = vrot.slane %v1894_v40, 1  ;;  %v434_v2 = vsel %vm382_vm0, %v429_v50, %v433_v51  ;;  %v6711_v40 = vld [vmem:[%s6540_s14 + $0x50] sm:$0xff]   ;;  %v2311_v19 = vrot.slane %v4717_v38, 2 }
  0x28   : > { %5621 = vmatpush3.bf16.msra.mxu0 %v6165_v54  ;;  %5380 = vmatprep.mubr.bf16.mxu1 %v410_v11  ;;  %v1891_v49 = vor.u32 %v1890_v45, %v1887_v44  ;;  %v6668_v54 = vld [vmem:[%s6540_s14 + $0x38] sm:$0xff]   ;;  %v1905_v11 = vrot.slane %v1903_v4, 1  ;;  %v467_v51 = vshrl.u32 %v6711_v40, 16 }
  0x29   : > { %5622 = vmatprep.subr.bf16.mxu0 %v6166_v7  ;;  %5414 = vmatprep.subr.bf16.mxu1 %v6172_v10  ;;  %v1900_v59 = vor.u32 %v1899_v52, %v1896_v48  ;;  %v439_v0 = vshll.u32 %v6668_v54, 16  ;;  %v443_v6 = vshrl.u32 %v6668_v54, 16  ;;  %v463_v48 = vshll.u32 %v6711_v40, 16 }
  0x2a   : > { %5588 = vmatprep.mubr.bf16.mxu0 %v1874_v26  ;;  %v1892_v58 = vsel %vm1839_vm1, %v1882_v27, %v1891_v49 }
  0x2b   : > { %5415 = vmatpush3.bf16.msra.mxu1 %v6172_v10  ;;  %v1901_v8 = vsel %vm1839_vm1, %v1891_v49, %v1900_v59  ;;  %v441_v9 = vrot.slane %v439_v0, 1  ;;  %v447_v10 = vshll.u32 %v6677_v1, 16  ;;  %v6187_v49 = vld [vmem:[%s7620_s1 + $0x178] sm:$0xff]   ;;  %v465_v56 = vrot.slane %v463_v48, 1 }
  0x2c   : > { %5623 = vmatpush3.bf16.msra.mxu0 %v6166_v7  ;;  %5416 = vmatprep.subr.bf16.mxu1 %v6179_v46  ;;  %v6687_v7 = vld [vmem:[%s6540_s14 + $0x48] sm:$0xff]   ;;  %v2314_v0 = vrot.slane %v6590_v41, 2  ;;  %v6208_v48 = vld [vmem:[%s7620_s1 + $0x198] sm:$0xff]  }
  0x2d   : > { %5624 = vmatprep.subr.bf16.mxu0 %v6171_v21  ;;  %v1912_v13 = vshrl.u32 %v6687_v7, 16  ;;  %v1915_v17 = vshll.u32 %v6687_v7, 16  ;;  %v442_v18 = vsel %vm382_vm0, %v437_v63, %v441_v9  ;;  %v449_v20 = vrot.slane %v447_v10, 1 }
  0x2e   : > { %5381 = vmatmul.mubr.bf16.gmra.mrb[4].mxu1 %v418_v34  ;;  %v445_v23 = vor.u32 %v443_v6, %v441_v9  ;;  %v469_v4 = vor.u32 %v467_v51, %v465_v56  ;;  %v6194_v6 = vld [vmem:[%s7620_s1 + $0x180] sm:$0xff]   ;;  %v2315_v57 = vsel %vm2310_vm2, %v2312_v39, %v2314_v0 }
  0x2f   : > { %5589 = vmatmul.mubr.bf16.gmra.mrb[4].mxu0 %v1883_v35  ;;  %5384 = vmatprep.mubr.bf16.mxu1 %v426_v47  ;;  %v1914_v26 = vrot.slane %v1912_v13, 1  ;;  %v1917_v27 = vrot.slane %v1915_v17, 2  ;;  %v6704_v35 = vld [vmem:[%s6540_s14 + $0x48] sm:$0xff]   ;;  %v6720_v47 = vld [vmem:[%s6540_s14 + $0x58] sm:$0xff]   ;;  %v6199_v17 = vld [vmem:[%s7620_s1 + $0x30] sm:$0xff]  }
  0x30   : > { %5625 = vmatpush3.bf16.msra.mxu0 %v6171_v21  ;;  %5417 = vmatpush3.bf16.msra.mxu1 %v6179_v46  ;;  %v1909_v21 = vor.u32 %v1908_v12, %v1905_v11  ;;  %v450_v42 = vsel %vm382_vm0, %v445_v23, %v449_v20  ;;  %v455_v44 = vshll.u32 %v6704_v35, 16  ;;  %v459_v45 = vshrl.u32 %v6704_v35, 16  ;;  %v6191_v46 = vld [vmem:[%s7620_s1 + $0x20] sm:$0xff]   ;;  %v6761_v23 = vld [vmem:[%s6540_s14 + $0x70] sm:$0xff]  }
  0x31   : > { %5626 = vmatprep.subr.bf16.mxu0 %v6173_v43  ;;  %5592 = vmatprep.mubr.bf16.mxu0 %v1892_v58  ;;  %v6701_v34 = vor.u32 %v1917_v27, %v1914_v26  ;;  %v471_v52 = vshll.u32 %v6720_v47, 16  ;;  %v6732_v58 = vld [vmem:[%s6540_s14 + $0x60] sm:$0xff]   ;;  %v475_v10 = vshrl.u32 %v6720_v47, 16  ;;  %v2318_v27 = vrot.slane %v6615_v62, 2 }
  0x32   : > { %v1910_v32 = vsel %vm1839_vm1, %v1900_v59, %v1909_v21  ;;  %5418 = vmatprep.subr.bf16.mxu1 %v6186_v30  ;;  %v457_v50 = vrot.slane %v455_v44, 1  ;;  %v479_v41 = vshll.u32 %v6732_v58, 16  ;;  %v483_v11 = vshrl.u32 %v6732_v58, 16 }
  0x33   : > { %v1919_v16 = vsel %vm1839_vm1, %v1909_v21, %v6701_v34  ;;  %v495_v38 = vshll.u32 %v6761_v23, 16  ;;  %v499_v44 = vshrl.u32 %v6761_v23, 16 }
  0x34   : > { %5627 = vmatpush3.bf16.msra.mxu0 %v6173_v43  ;;  %5419 = vmatpush3.bf16.msra.mxu1 %v6186_v30  ;;  %v453_v43 = vor.u32 %v451_v36, %v449_v20  ;;  %v461_v63 = vor.u32 %v459_v45, %v457_v50  ;;  %v6198_v20 = vld [vmem:[%s7620_s1 + $0x188] sm:$0xff]   ;;  %v481_v21 = vrot.slane %v479_v41, 1  ;;  %v2320_v36 = vrot.slane %v6640_v28, 2  ;;  %v6205_v41 = vld [vmem:[%s6540_s14 + $0x50] sm:$0xff]  }
  0x35   : > { %5628 = vmatprep.subr.bf16.mxu0 %v6178_v53  ;;  %5420 = vmatprep.subr.bf16.mxu1 %v6191_v46 }
  0x36   : > { %5385 = vmatmul.mubr.bf16.gmra.mrb[8].mxu1 %v434_v2  ;;  %v458_v59 = vsel %vm382_vm0, %v453_v43, %v457_v50  ;;  %v473_v2 = vrot.slane %v471_v52, 1  ;;  %v466_v9 = vsel %vm382_vm0, %v461_v63, %v465_v56  ;;  %v2319_v43 = vsel %vm2310_vm2, %v2316_v5, %v2318_v27 }
  0x37   : > { %5593 = vmatmul.mubr.bf16.gmra.mrb[8].mxu0 %v1901_v8  ;;  %5388 = vmatprep.mubr.bf16.mxu1 %v442_v18  ;;  %v6744_v8 = vld [vmem:[%s6540_s14 + $0x68] sm:$0xff]   ;;  %v2317_v18 = vsel %vm2310_vm2, %v2314_v0, %v2316_v5  ;;  %v2322_v50 = vrot.slane %v6648_v33, 2  ;;  %v2324_v56 = vrot.slane %v6673_v61, 2  ;;  %v6212_v61 = vld [vmem:[%s7620_s1 + $0x1a0] sm:$0xff]  }
  0x38   : > { %5629 = vmatpush3.bf16.msra.mxu0 %v6178_v53  ;;  %5596 = vmatprep.mubr.bf16.mxu0 %v1910_v32  ;;  %v2313_v53 = vsel %vm2310_vm2, %v2311_v19, %v2312_v39  ;;  %v474_v12 = vsel %vm382_vm0, %v469_v4, %v473_v2  ;;  %v487_v13 = vshll.u32 %v6744_v8, 16  ;;  %v477_v26 = vor.u32 %v475_v10, %v473_v2  ;;  %v6765_v32 = vld [vmem:[%s6540_s14 + $0x78] sm:$0xff]  }
  0x39   : > { %5630 = vmatprep.subr.bf16.mxu0 %v6180_v3  ;;  %5421 = vmatpush3.bf16.msra.mxu1 %v6191_v46  ;;  %v491_v62 = vshrl.u32 %v6744_v8, 16  ;;  %v503_v45 = vshll.u32 %v6765_v32, 16  ;;  %v2321_v46 = vsel %vm2310_vm2, %v2318_v27, %v2320_v36  ;;  %v497_v19 = vrot.slane %v495_v38, 1  ;;  %v6220_v27 = vld [vmem:[%s7620_s1 + $0x1b0] sm:$0xff]  }
  0x3a   : > { %v489_v30 = vrot.slane %v487_v13, 1  ;;  %v482_v39 = vsel %vm382_vm0, %v477_v26, %v481_v21  ;;  %v507_v0 = vshrl.u32 %v6765_v32, 16  ;;  %v2323_v2 = vsel %vm2310_vm2, %v2320_v36, %v2322_v50 }
  0x3b   : > { %v501_v51 = vor.u32 %v499_v44, %v497_v19  ;;  %v505_v52 = vrot.slane %v503_v45, 1  ;;  %v6211_v45 = vld [vmem:[%s6540_s14 + $0x68] sm:$0xff]  }
  0x3c   : > { %5631 = vmatpush3.bf16.msra.mxu0 %v6180_v3  ;;  %v6195_v3 = vld [vmem:[%s7620_s1 + $0x28] sm:$0xff]  }
  0x3d   : > { %5632 = vmatprep.subr.bf16.mxu0 %v6185_v29  ;;  %5422 = vmatprep.subr.bf16.mxu1 %v6195_v3 }
  0x3e   : > { %5389 = vmatmul.mubr.bf16.gmra.mrb[12].mxu1 %v450_v42  ;;  %v6204_v42 = vld [vmem:[%s7620_s1 + $0x38] sm:$0xff]  }
  0x3f   : > { %5597 = vmatmul.mubr.bf16.gmra.mrb[12].mxu0 %v1919_v16  ;;  %5392 = vmatprep.mubr.bf16.mxu1 %v458_v59  ;;  %v6783_v16 = vld [vmem:[%s6540_s14 + $0x80] sm:$0xff]  }
  0x40   : > { %5633 = vmatpush3.bf16.msra.mxu0 %v6185_v29  ;;  %5636 = vmatprep.mubr.bf16.mxu0 %v2313_v53  ;;  %v485_v29 = vor.u32 %v483_v11, %v481_v21  ;;  %v6790_v53 = vld [vmem:[%s6540_s14 + $0x88] sm:$0xff]   ;;  %v6796_v59 = vld [vmem:[%s7620_s1 + $0x80] sm:$0xff]   ;;  %v511_v63 = vshll.u32 %v6783_v16, 16  ;;  %v515_v4 = vshrl.u32 %v6783_v16, 16  ;;  %v509_v11 = vor.u32 %v507_v0, %v505_v52  ;;  %v6219_v0 = vld [vmem:[%s7620_s1 + $0x90] sm:$0xff]  }
  0x41   : > { %5634 = vmatprep.subr.bf16.mxu0 %v6187_v49  ;;  %5423 = vmatpush3.bf16.msra.mxu1 %v6195_v3  ;;  %v506_v3 = vsel %vm382_vm0, %v501_v51, %v505_v52  ;;  %v519_v5 = vshll.u32 %v6790_v53, 16  ;;  %v6214_v51 = vld [vmem:[%s6540_s14 + $0x78] sm:$0xff]  }
  0x42   : > { %5424 = vmatprep.subr.bf16.mxu1 %v6199_v17  ;;  %v490_v28 = vsel %vm382_vm0, %v485_v29, %v489_v30  ;;  %v513_v10 = vrot.slane %v511_v63, 1 }
  0x44   : > { %5635 = vmatpush3.bf16.msra.mxu0 %v6187_v49  ;;  %v493_v49 = vor.u32 %v491_v62, %v489_v30  ;;  %v517_v13 = vor.u32 %v515_v4, %v513_v10  ;;  %v514_v21 = vsel %vm382_vm0, %v509_v11, %v513_v10  ;;  %v6224_v62 = vld [vmem:[%s7620_s1 + $0x1b8] sm:$0xff]   ;;  %v6228_v10 = vld [vmem:[%s7620_s1 + $0xa0] sm:$0xff]  }
  0x45   : > { %5672 = vmatprep.subr.bf16.mxu0 %v6194_v6  ;;  %5425 = vmatpush3.bf16.msra.mxu1 %v6199_v17  ;;  %v521_v17 = vrot.slane %v519_v5, 1  ;;  %v6223_v4 = vld [vmem:[%s7620_s1 + $0x98] sm:$0xff]   ;;  %v2627_v5 = vld [vmem:[%s6540_s14 + $0x10] sm:$0xc] }
  0x46   : > { %5393 = vmatmul.mubr.bf16.gmra.mrb[16].mxu1 %v466_v9  ;;  %5426 = vmatprep.subr.bf16.mxu1 %v6204_v42  ;;  %v498_v33 = vsel %vm382_vm0, %v493_v49, %v497_v19  ;;  %v6812_v9 = vld [vmem:[%s6540_s14 + $0x90] ss:$0 sps:$4 sm:$0x11]   ;;  %v2334_v49 = vrot.slane %v6211_v45, 2  ;;  %v6243_v45 = vld [vmem:[%s7620_s1 + $0x1d8] sm:$0xff]  }
  0x47   : > { %5637 = vmatmul.mubr.bf16.vlgmr.msra.gmra.mrb[0].mxu0 %v2315_v57  ;;  %5396 = vmatprep.mubr.bf16.mxu1 %v474_v12  ;;  %v6216_v57 = vld [vmem:[%s7620_s1 + $0x1a8] sm:$0xff]   ;;  %v2326_v12 = vrot.slane %v6687_v7, 2  ;;  %v527_v26 = vshll.u32 %v6812_v9, 16  ;;  %v522_v30 = vsel %vm382_vm0, %v517_v13, %v521_v17  ;;  %v6207_v7 = vld [vmem:[%s6540_s14 + $0x58] sm:$0xff]   ;;  %v6213_v19 = vld [vmem:[%s6540_s14 + $0x70] sm:$0xff]  }
  0x48   : > { %5640 = vmatprep.mubr.bf16.mxu0 %v2317_v18  ;;  %5673 = vmatpush3.bf16.msra.mxu0 %v6194_v6  ;;  %v2325_v6 = vsel %vm2310_vm2, %v2322_v50, %v2324_v56  ;;  %v2328_v18 = vrot.slane %v6205_v41, 2  ;;  %v2336_v50 = vrot.slane %v6213_v19, 2  ;;  %v6222_v11 = vld [vmem:[%s6540_s14 + $0x98] ss:$0 sps:$4 sm:$0x33]   ;;  %v6232_v13 = vld [vmem:[%s7620_s1 + $0xa8] sm:$0xff]  }
  0x49   : > { %5674 = vmatprep.subr.bf16.mxu0 %v6198_v20  ;;  %5427 = vmatpush3.bf16.msra.mxu1 %v6204_v42  ;;  %v2327_v29 = vsel %vm2310_vm2, %v2324_v56, %v2326_v12  ;;  %v2330_v42 = vrot.slane %v6207_v7, 2  ;;  %v6215_v56 = vld [vmem:[%s7620_s1 + $0x88] sm:$0xff]  }
  0x4a   : > { %5464 = vmatprep.subr.bf16.mxu1 %v6796_v59  ;;  %v2329_v36 = vsel %vm2310_vm2, %v2326_v12, %v2328_v18  ;;  %v2337_v63 = vsel %vm2310_vm2, %v2334_v49, %v2336_v50 }
  0x4b   : > { %v2331_v44 = vsel %vm2310_vm2, %v2328_v18, %v2330_v42 }
  0x4c   : > { %5675 = vmatpush3.bf16.msra.mxu0 %v6198_v20  ;;  %v523_v20 = vshrl.u32 %v6790_v53, 16 }
  0x4d   : > { %5676 = vmatprep.subr.bf16.mxu0 %v6202_v37 }
  0x4e   : > { %5397 = vmatmul.mubr.bf16.gmra.mrb[20].mxu1 %v482_v39  ;;  %v525_v38 = vor.u32 %v523_v20, %v521_v17  ;;  %v529_v39 = vrot.slane %v527_v26, 1  ;;  %v2346_v17 = vrot.slane %v6222_v11, 2 }
  0x4f   : > { %5641 = vmatmul.mubr.bf16.gmra.mrb[4].mxu0 %v2319_v43  ;;  %5400 = vmatprep.mubr.bf16.mxu1 %v490_v28 }
  0x50   : > { %5644 = vmatprep.mubr.bf16.mxu0 %v2321_v46  ;;  %5677 = vmatpush3.bf16.msra.mxu0 %v6202_v37  ;;  %v6209_v37 = vld [vmem:[%s6540_s14 + $0x60] sm:$0xff]   ;;  %v530_v28 = vsel %vm382_vm0, %v525_v38, %v529_v39  ;;  %v6914_v38 = vld [vmem:[%s6540_s14 + $0x30] sm:$0xff]   ;;  %v6235_v39 = vld [vmem:[%s7620_s1 + $0x1c8] sm:$0xff]  }
  0x51   : > { %5678 = vmatprep.subr.bf16.mxu0 %v6208_v48  ;;  %v2332_v43 = vrot.slane %v6209_v37, 2 }
  0x53   : > { %v2333_v46 = vsel %vm2310_vm2, %v2330_v42, %v2332_v43  ;;  %v2335_v52 = vsel %vm2310_vm2, %v2332_v43, %v2334_v49  ;;  %v6239_v43 = vld [vmem:[%s7620_s1 + $0x1d0] sm:$0xff]  }
  0x54   : > { %5679 = vmatpush3.bf16.msra.mxu0 %v6208_v48  ;;  %v6840_v48 = vld [vmem:[%s7620_s1 + $0x1c0] sm:$0xff]  }
  0x55   : > { %5680 = vmatprep.subr.bf16.mxu0 %v6212_v61 }
  0x56   : > { %5401 = vmatmul.mubr.bf16.gmra.mrb[24].mxu1 %v498_v33  ;;  %v6217_v33 = vld [vmem:[%s6540_s14 + $0x80] sm:$0xff]  }
  0x57   : > { %5645 = vmatmul.mubr.bf16.gmra.mrb[8].mxu0 %v2323_v2  ;;  %5404 = vmatprep.mubr.bf16.mxu1 %v506_v3  ;;  %v6218_v2 = vld [vmem:[%s6540_s14 + $0x88] sm:$0xff]  }
  0x58   : > { %5648 = vmatprep.mubr.bf16.mxu0 %v2325_v6  ;;  %5681 = vmatpush3.bf16.msra.mxu0 %v6212_v61  ;;  %v2340_v61 = vrot.slane %v6217_v33, 2  ;;  %v6868_v6 = vld [vmem:[%s6540_s14 + $0x14] sm:$0xf] }
  0x59   : > { %5682 = vmatprep.subr.bf16.mxu0 %v6216_v57  ;;  %v6256_v33 = vld [vmem:[%s7620_s1 + $0x1f0] sm:$0xff]  }
  0x5c   : > { %5683 = vmatpush3.bf16.msra.mxu0 %v6216_v57 }
  0x5d   : > { %5684 = vmatprep.subr.bf16.mxu0 %v6220_v27 }
  0x5e   : > { %5405 = vmatmul.mubr.bf16.gmra.mrb[28].mxu1 %v514_v21  ;;  %v6236_v21 = vld [vmem:[%s7620_s1 + $0xb0] sm:$0xff]  }
  0x5f   : > { %5649 = vmatmul.mubr.bf16.gmra.mrb[12].mxu0 %v2327_v29  ;;  %5408 = vmatprep.mubr.bf16.mxu1 %v522_v30  ;;  %v6240_v29 = vld [vmem:[%s7620_s1 + $0xb8] sm:$0xff]  }
  0x60   : > { %5652 = vmatprep.mubr.bf16.mxu0 %v2329_v36  ;;  %5685 = vmatpush3.bf16.msra.mxu0 %v6220_v27  ;;  %v6894_v27 = vld [vmem:[%s6540_s14 + $0x20] sm:$0xff]  }
  0x61   : > { %5686 = vmatprep.subr.bf16.mxu0 %v6224_v62  ;;  %v2777_v30 = vrot.slane %v6894_v27, 2  ;;  %v6910_v36 = vld [vmem:[%s7620_s1 + $0xc0] sm:$0xff]  }
  0x64   : > { %5687 = vmatpush3.bf16.msra.mxu0 %v6224_v62  ;;  %v2781_v62 = vrot.slane %v6914_v38, 2 }
  0x65   : > { %5724 = vmatprep.subr.bf16.mxu0 %v6840_v48 }
  0x66   : > { %5409 = vmatmul.mubr.bf16.gmra.mrb[32].mxu1 %v530_v28 }
  0x67   : > { %5653 = vmatmul.mubr.bf16.gmra.mrb[16].mxu0 %v2331_v44  ;;  %5428 = vmatprep.mubr.bf16.mxu1 %v6550_v14  ;;  %v2338_v14 = vrot.slane %v6214_v51, 2  ;;  %v6934_v44 = vld [vmem:[%s6540_s14 + $0x40] sm:$0xff]   ;;  %v6252_v51 = vld [vmem:[%s7620_s1 + $0x1e8] sm:$0xff]  }
  0x68   : > { %5656 = vmatprep.mubr.bf16.mxu0 %v2333_v46  ;;  %v2785_v46 = vrot.slane %v6934_v44, 2 }
  0x69   : > { %v2339_v3 = vsel %vm2310_vm2, %v2336_v50, %v2338_v14  ;;  %v6952_v50 = vld [vmem:[%s6540_s14 + $0x50] sm:$0xff]  }
  0x6e   : > { %5429 = vmatmul.mubr.bf16.vlgmr.msra.gmra.mrb[0].mxu1 %v6553_v15  ;;  %v2341_v15 = vsel %vm2310_vm2, %v2338_v14, %v2340_v61 }
  0x6f   : > { %5657 = vmatmul.mubr.bf16.gmra.mrb[20].mxu0 %v2335_v52  ;;  %5465 = vmatpush3.bf16.msra.mxu1 %v6796_v59  ;;  %v2342_v59 = vrot.slane %v6218_v2, 2  ;;  %v2789_v52 = vrot.slane %v6952_v50, 2  ;;  %v6976_v2 = vld [vmem:[%s6540_s14 + $0x68] sm:$0xff]  }
  0x70   : > { %5432 = vmatprep.mubr.bf16.mxu1 %v6575_v25  ;;  %5660 = vmatprep.mubr.bf16.mxu0 %v2337_v63  ;;  %v6221_v25 = vld [vmem:[%s6540_s14 + $0x90] sm:$0xff]   ;;  %v1017_v63 = vld [vmem:[%s6540_s14] sm:$0xe] }
  0x71   : > { %5466 = vmatprep.subr.bf16.mxu1 %v6215_v56  ;;  %v2344_v41 = vrot.slane %v6221_v25, 2  ;;  %v2343_v57 = vsel %vm2310_vm2, %v2340_v61, %v2342_v59  ;;  %v6421_v25 = vld [vmem:[%s6540_s14 + $0x8] sm:$0xff]  }
  0x73   : > { %5467 = vmatpush3.bf16.msra.mxu1 %v6215_v56  ;;  %v2345_v12 = vsel %vm2310_vm2, %v2342_v59, %v2344_v41  ;;  %v2347_v26 = vsel %vm2310_vm2, %v2344_v41, %v2346_v17 }
  0x74   : > { %5468 = vmatprep.subr.bf16.mxu1 %v6219_v0 }
  0x76   : > { %5433 = vmatmul.mubr.bf16.gmra.mrb[4].mxu1 %v6604_v55  ;;  %v6876_v55 = vcombine.low %v2627_v5, %v6868_v6  ;;  %v2795_v5 = vrot.slane %v6976_v2, 2 }
  0x77   : > { %5661 = vmatmul.mubr.bf16.gmra.mrb[24].mxu0 %v2339_v3  ;;  %5436 = vmatprep.mubr.bf16.mxu1 %v6611_v60  ;;  %v6879_v60 = vld [vmem:[%s6540_s14 + $0x18] sm:$0xff]  }
  0x78   : > { %5664 = vmatprep.mubr.bf16.mxu0 %v2341_v15  ;;  %5469 = vmatpush3.bf16.msra.mxu1 %v6219_v0  ;;  %v2774_v18 = vrot.slane %v6876_v55, 2  ;;  %v2775_v20 = vrot.slane %v6879_v60, 2  ;;  %v6420_v0 = vld [vmem:[%s6540_s14 + $0x4] sm:$0xf]  ;;  %v6260_v3 = vld [vmem:[%s7620_s1 + $0x1f8] sm:$0xff]  }
  0x79   : > { %5470 = vmatprep.subr.bf16.mxu1 %v6223_v4  ;;  %v4624_v61 = vcombine.low %v1017_v63, %v6420_v0  ;;  %v3113_v0 = vshrl.u32 %v6876_v55, 16 }
  0x7a   : > { %v2778_v37 = vsel %vm2310_vm2, %v2775_v20, %v2777_v30 }
  0x7b   : > { %v1039_v59 = vrot.slane %v4624_v61, 1 }
  0x7c   : > { %5471 = vmatpush3.bf16.msra.mxu1 %v6223_v4  ;;  %v1040_v4 = vrot.slane %v6421_v25, 1 }
  0x7d   : > { %5472 = vmatprep.subr.bf16.mxu1 %v6228_v10 }
  0x7e   : > { %5437 = vmatmul.mubr.bf16.gmra.mrb[8].mxu1 %v6635_v22  ;;  %v2776_v22 = vsel %vm2310_vm2, %v2774_v18, %v2775_v20  ;;  %v1041_v41 = vsel %vm1038_vm3, %v1039_v59, %v1040_v4  ;;  %v6423_v18 = vld [vmem:[%s6540_s14 + $0x18] sm:$0xff]   ;;  %v6261_v59 = vld [vmem:[%s7620_s1 + $0xe0] sm:$0xff]  }
  0x7f   : > { %5665 = vmatmul.mubr.bf16.gmra.mrb[28].mxu0 %v2343_v57  ;;  %5440 = vmatprep.mubr.bf16.mxu1 %v6644_v31  ;;  %v6898_v31 = vld [vmem:[%s6540_s14 + $0x28] sm:$0xff]   ;;  %v6998_v57 = vld [vmem:[%s6540_s14 + $0x78] sm:$0xff]   ;;  %v1044_v20 = vrot.slane %v6423_v18, 1  ;;  %v6428_v18 = vld [vmem:[%s6540_s14 + $0x40] sm:$0xff]  }
  0x80   : > { %5668 = vmatprep.mubr.bf16.mxu0 %v2345_v12  ;;  %5473 = vmatpush3.bf16.msra.mxu1 %v6228_v10  ;;  %v2779_v7 = vrot.slane %v6898_v31, 2  ;;  %v6994_v10 = vld [vmem:[%s6540_s14 + $0x70] sm:$0xff]  }
  0x81   : > { %5474 = vmatprep.subr.bf16.mxu1 %v6232_v13  ;;  %v6422_v12 = vld [vmem:[%s6540_s14 + $0x10] sm:$0xff]   ;;  %v2797_v17 = vrot.slane %v6994_v10, 2 }
  0x82   : > { %v2782_v28 = vsel %vm2310_vm2, %v2779_v7, %v2781_v62 }
  0x84   : > { %5475 = vmatpush3.bf16.msra.mxu1 %v6232_v13  ;;  %v1042_v13 = vrot.slane %v6422_v12, 1 }
  0x85   : > { %5476 = vmatprep.subr.bf16.mxu1 %v6236_v21 }
  0x86   : > { %5441 = vmatmul.mubr.bf16.gmra.mrb[12].mxu1 %v6668_v54  ;;  %v2780_v54 = vsel %vm2310_vm2, %v2777_v30, %v2779_v7  ;;  %v1045_v30 = vsel %vm1038_vm3, %v1042_v13, %v1044_v20 }
  0x87   : > { %5669 = vmatmul.mubr.bf16.gmra.mrb[32].mxu0 %v2347_v26  ;;  %5444 = vmatprep.mubr.bf16.mxu1 %v6677_v1  ;;  %v6918_v1 = vld [vmem:[%s6540_s14 + $0x38] sm:$0xff]   ;;  %v1043_v26 = vsel %vm1038_vm3, %v1040_v4, %v1042_v13 }
  0x88   : > { %5688 = vmatprep.mubr.bf16.mxu0 %v2776_v22  ;;  %5477 = vmatpush3.bf16.msra.mxu1 %v6236_v21  ;;  %v2783_v42 = vrot.slane %v6918_v1, 2  ;;  %v2799_v21 = vrot.slane %v6998_v57, 2  ;;  %v2798_v22 = vsel %vm2310_vm2, %v2795_v5, %v2797_v17 }
  0x89   : > { %5478 = vmatprep.subr.bf16.mxu1 %v6240_v29 }
  0x8a   : > { %v2786_v49 = vsel %vm2310_vm2, %v2783_v42, %v2785_v46  ;;  %v2800_v7 = vsel %vm2310_vm2, %v2797_v17, %v2799_v21  ;;  %v6263_v17 = vld [vmem:[%s7620_s1 + $0xe8] sm:$0xff]  }
  0x8c   : > { %5479 = vmatpush3.bf16.msra.mxu1 %v6240_v29  ;;  %v7009_v29 = vld [vmem:[%s6540_s14 + $0x80] sm:$0xff]  }
  0x8d   : > { %5516 = vmatprep.subr.bf16.mxu1 %v6910_v36 }
  0x8e   : > { %5445 = vmatmul.mubr.bf16.gmra.mrb[16].mxu1 %v6704_v35  ;;  %v6937_v35 = vld [vmem:[%s6540_s14 + $0x48] sm:$0xff]  }
  0x8f   : > { %5689 = vmatmul.mubr.bf16.vlgmr.msra.gmra.mrb[0].mxu0 %v2778_v37  ;;  %5448 = vmatprep.mubr.bf16.mxu1 %v6711_v40  ;;  %v2784_v40 = vsel %vm2310_vm2, %v2781_v62, %v2783_v42  ;;  %v2787_v19 = vrot.slane %v6937_v35, 2  ;;  %v6251_v37 = vld [vmem:[%s7620_s1 + $0xc8] sm:$0xff]   ;;  %v2801_v42 = vrot.slane %v7009_v29, 2 }
  0x90   : > { %5692 = vmatprep.mubr.bf16.mxu0 %v2780_v54  ;;  %5725 = vmatpush3.bf16.msra.mxu0 %v6840_v48  ;;  %v6248_v48 = vld [vmem:[%s7620_s1 + $0x1e0] sm:$0xff]   ;;  %v7017_v54 = vld [vmem:[%s6540_s14 + $0x88] sm:$0xff]  }
  0x91   : > { %5726 = vmatprep.subr.bf16.mxu0 %v6235_v39  ;;  %v2790_v14 = vsel %vm2310_vm2, %v2787_v19, %v2789_v52 }
  0x94   : > { %5727 = vmatpush3.bf16.msra.mxu0 %v6235_v39  ;;  %v6424_v39 = vld [vmem:[%s6540_s14 + $0x20] sm:$0xff]  }
  0x95   : > { %5728 = vmatprep.subr.bf16.mxu0 %v6239_v43  ;;  %v1046_v62 = vrot.slane %v6424_v39, 1 }
  0x96   : > { %5449 = vmatmul.mubr.bf16.gmra.mrb[20].mxu1 %v6720_v47  ;;  %v2788_v47 = vsel %vm2310_vm2, %v2785_v46, %v2787_v19 }
  0x97   : > { %5693 = vmatmul.mubr.bf16.gmra.mrb[4].mxu0 %v2782_v28  ;;  %5452 = vmatprep.mubr.bf16.mxu1 %v6732_v58  ;;  %v6956_v58 = vld [vmem:[%s6540_s14 + $0x58] sm:$0xff]   ;;  %v1047_v46 = vsel %vm1038_vm3, %v1044_v20, %v1046_v62  ;;  %v1054_v20 = vrot.slane %v6428_v18, 1  ;;  %v6433_v18 = vld [vmem:[%s6540_s14 + $0x60] sm:$0xff]  }
  0x98   : > { %5696 = vmatprep.mubr.bf16.mxu0 %v2784_v40  ;;  %5729 = vmatpush3.bf16.msra.mxu0 %v6239_v43  ;;  %v2791_v56 = vrot.slane %v6956_v58, 2  ;;  %v6425_v43 = vld [vmem:[%s6540_s14 + $0x28] sm:$0xff]   ;;  %v6255_v40 = vld [vmem:[%s7620_s1 + $0xd0] sm:$0xff]  }
  0x99   : > { %5730 = vmatprep.subr.bf16.mxu0 %v6243_v45  ;;  %v1048_v28 = vrot.slane %v6425_v43, 1  ;;  %v6265_v43 = vld [vmem:[%s7620_s1 + $0xf0] sm:$0xff]  }
  0x9b   : > { %v1049_v19 = vsel %vm1038_vm3, %v1046_v62, %v1048_v28  ;;  %v3139_v62 = vshrl.u32 %v6898_v31, 16 }
  0x9c   : > { %5731 = vmatpush3.bf16.msra.mxu0 %v6243_v45  ;;  %v2803_v45 = vrot.slane %v7017_v54, 2 }
  0x9d   : > { %5732 = vmatprep.subr.bf16.mxu0 %v6248_v48 }
  0x9e   : > { %5453 = vmatmul.mubr.bf16.gmra.mrb[24].mxu1 %v6744_v8  ;;  %v6971_v8 = vld [vmem:[%s6540_s14 + $0x60] sm:$0xff]  }
  0x9f   : > { %5697 = vmatmul.mubr.bf16.gmra.mrb[8].mxu0 %v2786_v49  ;;  %5456 = vmatprep.mubr.bf16.mxu1 %v6761_v23  ;;  %v2792_v23 = vsel %vm2310_vm2, %v2789_v52, %v2791_v56  ;;  %v2793_v15 = vrot.slane %v6971_v8, 2  ;;  %v2804_v49 = vsel %vm2310_vm2, %v2801_v42, %v2803_v45  ;;  %v6426_v52 = vld [vmem:[%s6540_s14 + $0x30] sm:$0xff]  }
  0xa0   : > { %5700 = vmatprep.mubr.bf16.mxu0 %v2788_v47  ;;  %5733 = vmatpush3.bf16.msra.mxu0 %v6248_v48  ;;  %v7031_v48 = vld [vmem:[%s6540_s14 + $0x90] sm:$0xff]   ;;  %v7035_v47 = vld [vmem:[%s6540_s14 + $0x98] sm:$0xff]  }
  0xa1   : > { %5734 = vmatprep.subr.bf16.mxu0 %v6252_v51  ;;  %v2796_v11 = vsel %vm2310_vm2, %v2793_v15, %v2795_v5  ;;  %v2805_v63 = vrot.slane %v7031_v48, 2  ;;  %v2807_v61 = vrot.slane %v7035_v47, 2 }
  0xa3   : > { %v2806_v4 = vsel %vm2310_vm2, %v2803_v45, %v2805_v63 }
  0xa4   : > { %5735 = vmatpush3.bf16.msra.mxu0 %v6252_v51  ;;  %v6259_v51 = vld [vmem:[%s7620_s1 + $0xd8] sm:$0xff]  }
  0xa5   : > { %5736 = vmatprep.subr.bf16.mxu0 %v6256_v33 }
  0xa6   : > { %5457 = vmatmul.mubr.bf16.gmra.mrb[28].mxu1 %v6765_v32  ;;  %v6989_v32 = vld [vmem:[%s7620_s1 + $0x200] sm:$0xff]  }
  0xa7   : > { %5701 = vmatmul.mubr.bf16.gmra.mrb[12].mxu0 %v2790_v14  ;;  %5460 = vmatprep.mubr.bf16.mxu1 %v6783_v16  ;;  %v2794_v16 = vsel %vm2310_vm2, %v2791_v56, %v2793_v15  ;;  %v1050_v56 = vrot.slane %v6426_v52, 1  ;;  %v3124_v15 = vshll.u32 %v6879_v60, 16  ;;  %v6267_v52 = vld [vmem:[%s7620_s1 + $0xf8] sm:$0xff]  }
  0xa8   : > { %5704 = vmatprep.mubr.bf16.mxu0 %v2792_v23  ;;  %5737 = vmatpush3.bf16.msra.mxu0 %v6256_v33  ;;  %v6427_v33 = vld [vmem:[%s6540_s14 + $0x38] sm:$0xff]   ;;  %v3116_v23 = vshll.u32 %v6876_v55, 16  ;;  %v2808_v55 = vsel %vm2310_vm2, %v2805_v63, %v2807_v61 }
  0xa9   : > { %5738 = vmatprep.subr.bf16.mxu0 %v6260_v3  ;;  %v1052_v14 = vrot.slane %v6427_v33, 1  ;;  %v1051_v25 = vsel %vm1038_vm3, %v1048_v28, %v1050_v56  ;;  %v3126_v13 = vrot.slane %v3124_v15, 3  ;;  %v3157_v15 = vshrl.u32 %v6918_v1, 16 }
  0xab   : > { %v1053_v5 = vsel %vm1038_vm3, %v1050_v56, %v1052_v14  ;;  %v1055_v28 = vsel %vm1038_vm3, %v1052_v14, %v1054_v20  ;;  %v6430_v56 = vld [vmem:[%s6540_s14 + $0x50] sm:$0xff]   ;;  %v6431_v14 = vld [vmem:[%s6540_s14 + $0x58] sm:$0xff]  }
  0xac   : > { %5739 = vmatpush3.bf16.msra.mxu0 %v6260_v3  ;;  %v3121_v3 = vshrl.u32 %v6879_v60, 16  ;;  %v1058_v63 = vrot.slane %v6430_v56, 1  ;;  %v6268_v56 = vld [vmem:[%s7620_s1 + $0x218] sm:$0xff]  }
  0xad   : > { %5776 = vmatprep.subr.bf16.mxu0 %v6989_v32 }
  0xae   : > { %5461 = vmatmul.mubr.bf16.gmra.mrb[32].mxu1 %v6790_v53  ;;  %v3123_v12 = vrot.slane %v3121_v3, 2 }
  0xaf   : > { %5705 = vmatmul.mubr.bf16.gmra.mrb[16].mxu0 %v2794_v16  ;;  %5480 = vmatprep.mubr.bf16.mxu1 %v1041_v41  ;;  %v6258_v16 = vld [vmem:[%s6540_s14 + $0xa0] ss:$0 sps:$4 sm:$0x33]   ;;  %v3115_v41 = vrot.slane %v3113_v0, 2  ;;  %v1060_v0 = vrot.slane %v6431_v14, 1 }
  0xb0   : > { %5708 = vmatprep.mubr.bf16.mxu0 %v2796_v11  ;;  %v3118_v11 = vrot.slane %v3116_v23, 3  ;;  %v3127_v39 = vor.u32 %v3126_v13, %v3123_v12  ;;  %v3151_v23 = vshll.u32 %v6914_v38, 16  ;;  %v6264_v13 = vld [vmem:[%s7620_s1 + $0x208] sm:$0xff]  }
  0xb6   : > { %5481 = vmatmul.mubr.bf16.vlgmr.msra.gmra.mrb[0].mxu1 %v1043_v26  ;;  %v6429_v26 = vld [vmem:[%s6540_s14 + $0x48] sm:$0xff]  }
  0xb7   : > { %5709 = vmatmul.mubr.bf16.gmra.mrb[20].mxu0 %v2798_v22  ;;  %5517 = vmatpush3.bf16.msra.mxu1 %v6910_v36  ;;  %v2802_v36 = vsel %vm2310_vm2, %v2799_v21, %v2801_v42  ;;  %v2809_v21 = vrot.slane %v6258_v16, 2  ;;  %v1056_v22 = vrot.slane %v6429_v26, 1  ;;  %v3142_v42 = vshll.u32 %v6898_v31, 16 }
  0xb8   : > { %5484 = vmatprep.mubr.bf16.mxu1 %v1045_v30  ;;  %5712 = vmatprep.mubr.bf16.mxu0 %v2800_v7  ;;  %v3130_v30 = vshrl.u32 %v6894_v27, 16  ;;  %v3133_v7 = vshll.u32 %v6894_v27, 16 }
  0xb9   : > { %5518 = vmatprep.subr.bf16.mxu1 %v6251_v37  ;;  %v1057_v45 = vsel %vm1038_vm3, %v1054_v20, %v1056_v22  ;;  %v1062_v20 = vrot.slane %v6433_v18, 1 }
  0xbb   : > { %5519 = vmatpush3.bf16.msra.mxu1 %v6251_v37  ;;  %v3119_v37 = vor.u32 %v3118_v11, %v3115_v41  ;;  %v3153_v41 = vrot.slane %v3151_v23, 3  ;;  %v3159_v11 = vrot.slane %v3157_v15, 2  ;;  %v3187_v15 = vshll.u32 %v6952_v50, 16 }
  0xbc   : > { %5520 = vmatprep.subr.bf16.mxu1 %v6255_v40 }
  0xbe   : > { %5485 = vmatmul.mubr.bf16.gmra.mrb[4].mxu1 %v1047_v46  ;;  %v3132_v46 = vrot.slane %v3130_v30, 2  ;;  %v3166_v30 = vshrl.u32 %v6934_v44, 16 }
  0xbf   : > { %5713 = vmatmul.mubr.bf16.gmra.mrb[24].mxu0 %v2802_v36  ;;  %5488 = vmatprep.mubr.bf16.mxu1 %v1049_v19  ;;  %v3135_v36 = vrot.slane %v3133_v7, 3  ;;  %v3128_v19 = vsel %vm3111_vm4, %v3119_v37, %v3127_v39  ;;  %v3169_v7 = vshll.u32 %v6934_v44, 16 }
  0xc0   : > { %5716 = vmatprep.mubr.bf16.mxu0 %v2804_v49  ;;  %5521 = vmatpush3.bf16.msra.mxu1 %v6255_v40  ;;  %v2810_v40 = vsel %vm2310_vm2, %v2807_v61, %v2809_v21  ;;  %v3141_v49 = vrot.slane %v3139_v62, 2  ;;  %v3148_v61 = vshrl.u32 %v6914_v38, 16  ;;  %v6434_v21 = vld [vmem:[%s6540_s14 + $0x68] sm:$0xff]   ;;  %v3178_v62 = vshll.u32 %v6937_v35, 16 }
  0xc1   : > { %5522 = vmatprep.subr.bf16.mxu1 %v6259_v51  ;;  %v3136_v33 = vor.u32 %v3135_v36, %v3132_v46  ;;  %v1064_v26 = vrot.slane %v6434_v21, 1  ;;  %v3168_v46 = vrot.slane %v3166_v30, 2  ;;  %v3171_v36 = vrot.slane %v3169_v7, 3  ;;  %v6270_v21 = vld [vmem:[%s7620_s1 + $0x228] sm:$0xff]  }
  0xc2   : > { %v3150_v16 = vrot.slane %v3148_v61, 2  ;;  %v6436_v61 = vld [vmem:[%s6540_s14 + $0x78] sm:$0xff]   ;;  %v1072_v7 = vrot.slane %v6790_v53, 1 }
  0xc3   : > { %v1068_v23 = vrot.slane %v6436_v61, 1  ;;  %v6438_v61 = vld [vmem:[%s6540_s14 + $0x10] sm:$0xff]  }
  0xc4   : > { %5523 = vmatpush3.bf16.msra.mxu1 %v6259_v51  ;;  %v3144_v51 = vrot.slane %v3142_v42, 3  ;;  %v6266_v42 = vld [vmem:[%s7620_s1 + $0x210] sm:$0xff]  }
  0xc5   : > { %5524 = vmatprep.subr.bf16.mxu1 %v6261_v59 }
  0xc6   : > { %5489 = vmatmul.mubr.bf16.gmra.mrb[8].mxu1 %v1051_v25  ;;  %v3145_v3 = vor.u32 %v3144_v51, %v3141_v49  ;;  %v1059_v25 = vsel %vm1038_vm3, %v1056_v22, %v1058_v63  ;;  %v3154_v22 = vor.u32 %v3153_v41, %v3150_v16 }
  0xc7   : > { %5717 = vmatmul.mubr.bf16.gmra.mrb[28].mxu0 %v2806_v4  ;;  %5492 = vmatprep.mubr.bf16.mxu1 %v1053_v5  ;;  %v3137_v4 = vsel %vm3111_vm4, %v3127_v39, %v3136_v33  ;;  %v1061_v5 = vsel %vm1038_vm3, %v1058_v63, %v1060_v0  ;;  %v3175_v39 = vshrl.u32 %v6937_v35, 16 }
  0xc8   : > { %5720 = vmatprep.mubr.bf16.mxu0 %v2808_v55  ;;  %5525 = vmatpush3.bf16.msra.mxu1 %v6261_v59  ;;  %v3160_v59 = vshll.u32 %v6918_v1, 16  ;;  %v3146_v55 = vsel %vm3111_vm4, %v3136_v33, %v3145_v3  ;;  %v6435_v33 = vld [vmem:[%s6540_s14 + $0x70] sm:$0xff]  }
  0xc9   : > { %5526 = vmatprep.subr.bf16.mxu1 %v6263_v17  ;;  %v3177_v51 = vrot.slane %v3175_v39, 2  ;;  %v1066_v14 = vrot.slane %v6435_v33, 1  ;;  %v3205_v39 = vshll.u32 %v6971_v8, 16  ;;  %v1074_v33 = vrot.slane %v6812_v9, 1 }
  0xca   : > { %v3162_v12 = vrot.slane %v3160_v59, 3 }
  0xcb   : > { %v1067_v16 = vsel %vm1038_vm3, %v1064_v26, %v1066_v14  ;;  %v1075_v9 = vsel %vm1038_vm3, %v1072_v7, %v1074_v33  ;;  %v3256_v33 = vshrl.u32 %v7031_v48, 16 }
  0xcc   : > { %5527 = vmatpush3.bf16.msra.mxu1 %v6263_v17  ;;  %v7091_v17 = vld [vmem:[%s7620_s1 + $0x100] sm:$0xff]   ;;  %v3163_v37 = vor.u32 %v3162_v12, %v3159_v11  ;;  %v3189_v12 = vrot.slane %v3187_v15, 3  ;;  %v3223_v15 = vshll.u32 %v6994_v10, 16 }
  0xcd   : > { %5528 = vmatprep.subr.bf16.mxu1 %v6265_v43 }
  0xce   : > { %5493 = vmatmul.mubr.bf16.gmra.mrb[12].mxu1 %v1055_v28  ;;  %v3616_v28 = vrot.slane %v7035_v47, 3  ;;  %v3164_v49 = vsel %vm3111_vm4, %v3154_v22, %v3163_v37 }
  0xcf   : > { %5721 = vmatmul.mubr.bf16.gmra.mrb[32].mxu0 %v2810_v40  ;;  %5496 = vmatprep.mubr.bf16.mxu1 %v1057_v45  ;;  %v1065_v40 = vsel %vm1038_vm3, %v1062_v20, %v1064_v26  ;;  %v3155_v45 = vsel %vm3111_vm4, %v3145_v3, %v3154_v22  ;;  %v3184_v3 = vshrl.u32 %v6952_v50, 16  ;;  %v6437_v26 = vld [vmem:[%s6540_s14 + $0x80] sm:$0xff]  }
  0xd0   : > { %5740 = vmatprep.mubr.bf16.mxu0 %v3128_v19  ;;  %5529 = vmatpush3.bf16.msra.mxu1 %v6265_v43  ;;  %v7105_v43 = vld [vmem:[%s6540_s14 + $0xa0] ss:$0 sps:$4 sm:$0x77]   ;;  %v1070_v22 = vrot.slane %v6437_v26, 1  ;;  %v3241_v26 = vshll.u32 %v7009_v29, 16 }
  0xd1   : > { %5530 = vmatprep.subr.bf16.mxu1 %v6267_v52  ;;  %v3618_v19 = vrot.slane %v7105_v43, 3  ;;  %v3186_v11 = vrot.slane %v3184_v3, 2  ;;  %v3220_v3 = vshrl.u32 %v6994_v10, 16 }
  0xd2   : > { %v1073_v53 = vsel %vm1038_vm3, %v1070_v22, %v1072_v7 }
  0xd3   : > { %v7119_v63 = vsel %vm3582_vm5, %v3616_v28, %v3618_v19  ;;  %v3190_v30 = vor.u32 %v3189_v12, %v3186_v11  ;;  %v3207_v19 = vrot.slane %v3205_v39, 3  ;;  %v3250_v39 = vshll.u32 %v7017_v54, 16 }
  0xd4   : > { %5531 = vmatpush3.bf16.msra.mxu1 %v6267_v52  ;;  %v3180_v52 = vrot.slane %v3178_v62, 3 }
  0xd5   : > { %5828 = vmatprep.subr.bf16.mxu1 %v7091_v17 }
  0xd6   : > { %5497 = vmatmul.mubr.bf16.gmra.mrb[16].mxu1 %v1059_v25  ;;  %v3181_v59 = vor.u32 %v3180_v52, %v3177_v51  ;;  %v3193_v25 = vshrl.u32 %v6956_v58, 16 }
  0xd7   : > { %5741 = vmatmul.mubr.bf16.vlgmr.msra.gmra.mrb[0].mxu0 %v3137_v4  ;;  %5500 = vmatprep.mubr.bf16.mxu1 %v1061_v5  ;;  %v3196_v4 = vshll.u32 %v6956_v58, 16  ;;  %v6269_v5 = vld [vmem:[%s7620_s1 + $0x220] sm:$0xff]  }
  0xd8   : > { %5744 = vmatprep.mubr.bf16.mxu0 %v3146_v55  ;;  %5777 = vmatpush3.bf16.msra.mxu0 %v6989_v32  ;;  %v1063_v32 = vsel %vm1038_vm3, %v1060_v0, %v1062_v20  ;;  %v3172_v0 = vor.u32 %v3171_v36, %v3168_v46  ;;  %v1069_v55 = vsel %vm1038_vm3, %v1066_v14, %v1068_v23  ;;  %v3195_v18 = vrot.slane %v3193_v25, 2 }
  0xd9   : > { %5778 = vmatprep.subr.bf16.mxu0 %v6264_v13  ;;  %v3198_v20 = vrot.slane %v3196_v4, 3  ;;  %v3191_v46 = vsel %vm3111_vm4, %v3181_v59, %v3190_v30  ;;  %v1502_v14 = vrot.slane %v6572_v24, 1  ;;  %v3229_v25 = vshrl.u32 %v6998_v57, 16 }
  0xda   : > { %v3173_v41 = vsel %vm3111_vm4, %v3163_v37, %v3172_v0  ;;  %v3202_v37 = vshrl.u32 %v6971_v8, 16  ;;  %v3232_v4 = vshll.u32 %v6998_v57, 16 }
  0xdb   : > { %v3199_v62 = vor.u32 %v3198_v20, %v3195_v18  ;;  %v3231_v11 = vrot.slane %v3229_v25, 2  ;;  %v3258_v25 = vrot.slane %v3256_v33, 2 }
  0xdc   : > { %5779 = vmatpush3.bf16.msra.mxu0 %v6264_v13  ;;  %v3182_v13 = vsel %vm3111_vm4, %v3172_v0, %v3181_v59  ;;  %v3204_v36 = vrot.slane %v3202_v37, 2  ;;  %v3234_v12 = vrot.slane %v3232_v4, 3  ;;  %v3247_v37 = vshrl.u32 %v7017_v54, 16 }
  0xdd   : > { %5780 = vmatprep.subr.bf16.mxu0 %v6266_v42 }
  0xde   : > { %5501 = vmatmul.mubr.bf16.gmra.mrb[20].mxu1 %v1063_v32  ;;  %v3214_v32 = vshll.u32 %v6976_v2, 16  ;;  %v3208_v0 = vor.u32 %v3207_v19, %v3204_v36  ;;  %v3235_v7 = vor.u32 %v3234_v12, %v3231_v11  ;;  %v3252_v36 = vrot.slane %v3250_v39, 3  ;;  %v6441_v19 = vld [vmem:[%s6540_s14 + $0x28] sm:$0xff]   ;;  %v6446_v12 = vld [vmem:[%s6540_s14 + $0x40] sm:$0xff]  }
  0xdf   : > { %5745 = vmatmul.mubr.bf16.gmra.mrb[4].mxu0 %v3155_v45  ;;  %5504 = vmatprep.mubr.bf16.mxu1 %v1065_v40  ;;  %v6271_v40 = vld [vmem:[%s7620_s1 + $0x230] sm:$0xff]   ;;  %v1071_v45 = vsel %vm1038_vm3, %v1068_v23, %v1070_v22  ;;  %v1503_v23 = vrot.slane %v6438_v61, 1  ;;  %v6440_v22 = vld [vmem:[%s6540_s14 + $0x20] sm:$0xff]  }
  0xe0   : > { %5748 = vmatprep.mubr.bf16.mxu0 %v3164_v49  ;;  %5781 = vmatpush3.bf16.msra.mxu0 %v6266_v42  ;;  %v3211_v42 = vshrl.u32 %v6976_v2, 16  ;;  %v3200_v49 = vsel %vm3111_vm4, %v3190_v30, %v3199_v62  ;;  %v3216_v52 = vrot.slane %v3214_v32, 3  ;;  %v3209_v24 = vsel %vm3111_vm4, %v3199_v62, %v3208_v0 }
  0xe1   : > { %5782 = vmatprep.subr.bf16.mxu0 %v6268_v56  ;;  %v1507_v30 = vrot.slane %v6440_v22, 1  ;;  %v3561_v22 = vld [vmem:[%s6540_s14 + $0x10] sm:$0x8] }
  0xe2   : > { %v3213_v51 = vrot.slane %v3211_v42, 2 }
  0xe4   : > { %5783 = vmatpush3.bf16.msra.mxu0 %v6268_v56  ;;  %v6273_v56 = vld [vmem:[%s7620_s1 + $0x238] sm:$0xff]   ;;  %v3217_v59 = vor.u32 %v3216_v52, %v3213_v51  ;;  %v6442_v52 = vld [vmem:[%s6540_s14 + $0x30] sm:$0xff]  }
  0xe5   : > { %5784 = vmatprep.subr.bf16.mxu0 %v6269_v5 }
  0xe6   : > { %5505 = vmatmul.mubr.bf16.gmra.mrb[24].mxu1 %v1067_v16  ;;  %v3222_v16 = vrot.slane %v3220_v3, 2 }
  0xe7   : > { %5749 = vmatmul.mubr.bf16.gmra.mrb[8].mxu0 %v3173_v41  ;;  %5508 = vmatprep.mubr.bf16.mxu1 %v1069_v55  ;;  %v3225_v41 = vrot.slane %v3223_v15, 3  ;;  %v3218_v55 = vsel %vm3111_vm4, %v3208_v0, %v3217_v59  ;;  %v6443_v0 = vld [vmem:[%s7620_s1 + $0x108] sm:$0xff]  }
  0xe8   : > { %5752 = vmatprep.mubr.bf16.mxu0 %v3182_v13  ;;  %5785 = vmatpush3.bf16.msra.mxu0 %v6269_v5  ;;  %v1504_v5 = vsel %vm1038_vm3, %v1502_v14, %v1503_v23  ;;  %v6439_v13 = vld [vmem:[%s6540_s14 + $0x18] sm:$0xff]   ;;  %v3259_v14 = vshll.u32 %v7031_v48, 16 }
  0xe9   : > { %5786 = vmatprep.subr.bf16.mxu0 %v6270_v21  ;;  %v1505_v18 = vrot.slane %v6439_v13, 1  ;;  %v3226_v20 = vor.u32 %v3225_v41, %v3222_v16  ;;  %v6445_v41 = vld [vmem:[%s6540_s14 + $0x38] sm:$0xff]   ;;  %v1515_v13 = vrot.slane %v6446_v12, 1 }
  0xea   : > { %v3261_v4 = vrot.slane %v3259_v14, 3  ;;  %v6452_v14 = vld [vmem:[%s7620_s1 + $0x130] sm:$0xff]  }
  0xeb   : > { %v1506_v62 = vsel %vm1038_vm3, %v1503_v23, %v1505_v18  ;;  %v3227_v42 = vsel %vm3111_vm4, %v3217_v59, %v3226_v20  ;;  %v3265_v23 = vshrl.u32 %v7035_v47, 16 }
  0xec   : > { %5787 = vmatpush3.bf16.msra.mxu0 %v6270_v21  ;;  %v3238_v21 = vshrl.u32 %v7009_v29, 16  ;;  %v3262_v11 = vor.u32 %v3261_v4, %v3258_v25 }
  0xed   : > { %5788 = vmatprep.subr.bf16.mxu0 %v6271_v40 }
  0xee   : > { %5509 = vmatmul.mubr.bf16.gmra.mrb[28].mxu1 %v1071_v45  ;;  %v3240_v32 = vrot.slane %v3238_v21, 2  ;;  %v1508_v45 = vsel %vm1038_vm3, %v1505_v18, %v1507_v30  ;;  %v3274_v18 = vshrl.u32 %v7105_v43, 16 }
  0xef   : > { %5753 = vmatmul.mubr.bf16.gmra.mrb[12].mxu0 %v3191_v46  ;;  %5512 = vmatprep.mubr.bf16.mxu1 %v1073_v53  ;;  %v3236_v46 = vsel %vm3111_vm4, %v3226_v20, %v3235_v7  ;;  %v3249_v53 = vrot.slane %v3247_v37, 2  ;;  %v3277_v20 = vshll.u32 %v7105_v43, 16 }
  0xf0   : > { %5756 = vmatprep.mubr.bf16.mxu0 %v3200_v49  ;;  %5789 = vmatpush3.bf16.msra.mxu0 %v6271_v40  ;;  %v3243_v40 = vrot.slane %v3241_v26, 3  ;;  %v1509_v49 = vrot.slane %v6441_v19, 1  ;;  %v6447_v26 = vld [vmem:[%s7620_s1 + $0x118] sm:$0xff]   ;;  %v3276_v39 = vrot.slane %v3274_v18, 2 }
  0xf1   : > { %5790 = vmatprep.subr.bf16.mxu0 %v6273_v56  ;;  %v3253_v61 = vor.u32 %v3252_v36, %v3249_v53  ;;  %v7209_v53 = vld [vmem:[%s6540_s14 + $0x50] sm:$0xff]   ;;  %v7255_v18 = vld [vmem:[%s6540_s14 + $0x78] sm:$0xff]  }
  0xf2   : > { %v3244_v51 = vor.u32 %v3243_v40, %v3240_v32  ;;  %v1510_v3 = vsel %vm1038_vm3, %v1507_v30, %v1509_v49  ;;  %v6448_v32 = vld [vmem:[%s7620_s1 + $0x120] sm:$0xff]   ;;  %v6449_v40 = vld [vmem:[%s6540_s14 + $0x48] sm:$0xff]   ;;  %v1519_v36 = vrot.slane %v7209_v53, 1 }
  0xf4   : > { %5791 = vmatpush3.bf16.msra.mxu0 %v6273_v56  ;;  %v1511_v56 = vrot.slane %v6442_v52, 1  ;;  %v3245_v15 = vsel %vm3111_vm4, %v3235_v7, %v3244_v51  ;;  %v3263_v7 = vsel %vm3111_vm4, %v3253_v61, %v3262_v11 }
  0xf6   : > { %5513 = vmatmul.mubr.bf16.gmra.mrb[32].mxu1 %v1075_v9  ;;  %v1512_v59 = vsel %vm1038_vm3, %v1509_v49, %v1511_v56  ;;  %v6444_v9 = vld [vmem:[%s7620_s1 + $0x110] sm:$0xff]   ;;  %v6451_v49 = vld [vmem:[%s7620_s1 + $0x128] sm:$0xff]  }
  0xf7   : > { %5757 = vmatmul.mubr.bf16.gmra.mrb[16].mxu0 %v3209_v24  ;;  %5532 = vmatprep.mubr.bf16.mxu1 %v1504_v5  ;;  %v3254_v24 = vsel %vm3111_vm4, %v3244_v51, %v3253_v61  ;;  %v3267_v5 = vrot.slane %v3265_v23, 2  ;;  %v3586_v61 = vrot.slane %v6894_v27, 3  ;;  %v7229_v23 = vld [vmem:[%s6540_s14 + $0x60] sm:$0xff]  }
  0xf8   : > { %5760 = vmatprep.mubr.bf16.mxu0 %v3218_v55  ;;  %v1513_v55 = vrot.slane %v6445_v41, 1  ;;  %v3592_v41 = vrot.slane %v6918_v1, 3  ;;  %v3594_v1 = vrot.slane %v6934_v44, 3 }
  0xfa   : > { %v1514_v30 = vsel %vm1038_vm3, %v1511_v56, %v1513_v55  ;;  %v1516_v37 = vsel %vm1038_vm3, %v1513_v55, %v1515_v13 }
  0xfe   : > { %5533 = vmatmul.mubr.bf16.vlgmr.msra.gmra.mrb[0].mxu1 %v1506_v62  ;;  %v3279_v62 = vrot.slane %v3277_v20, 3  ;;  %v7260_v20 = vld [vmem:[%s6540_s14 + $0x80] sm:$0xff]  }
  0xff   : > { %5761 = vmatmul.mubr.bf16.gmra.mrb[20].mxu0 %v3227_v42  ;;  %5836 = vmatpush3.bf16.msra.mxu1 %v7091_v17  ;;  %v3268_v17 = vshll.u32 %v7035_v47, 16  ;;  %v4810_v42 = vcombine.low %v3561_v22, %v6868_v6  ;;  %v3584_v6 = vrot.slane %v6879_v60, 3  ;;  %v7224_v60 = vld [vmem:[%s6540_s14 + $0x58] sm:$0xff]  }
 0x100   : > { %5536 = vmatprep.mubr.bf16.mxu1 %v1508_v45  ;;  %5764 = vmatprep.mubr.bf16.mxu0 %v3236_v46  ;;  %v1517_v45 = vrot.slane %v6449_v40, 1  ;;  %v3280_v46 = vor.u32 %v3279_v62, %v3276_v39  ;;  %v7269_v39 = vld [vmem:[%s6540_s14 + $0x88] sm:$0xff]   ;;  %v3598_v62 = vrot.slane %v6952_v50, 3  ;;  %v3600_v40 = vrot.slane %v6956_v58, 3 }
 0x101   : > { %5829 = vmatprep.subr.bf16.mxu1 %v6443_v0  ;;  %v3270_v16 = vrot.slane %v3268_v17, 3  ;;  %v3583_v19 = vrot.slane %v4810_v42, 3  ;;  %v1523_v17 = vrot.slane %v7229_v23, 1  ;;  %v3587_v25 = vsel %vm3582_vm5, %v3584_v6, %v3586_v61 }
 0x102   : > { %v1518_v51 = vsel %vm1038_vm3, %v1515_v13, %v1517_v45  ;;  %v1520_v56 = vsel %vm1038_vm3, %v1517_v45, %v1519_v36  ;;  %v1533_v44 = vrot.slane %v7269_v39, 1  ;;  %v1921_v42 = vshrl.u32 %v7209_v53, 16 }
 0x103   : > { %5837 = vmatpush3.bf16.msra.mxu1 %v6443_v0  ;;  %v3271_v21 = vor.u32 %v3270_v16, %v3267_v5  ;;  %v3585_v33 = vsel %vm3582_vm5, %v3583_v19, %v3584_v6  ;;  %v1521_v0 = vrot.slane %v7224_v60, 1  ;;  %v7246_v5 = vld [vmem:[%s6540_s14 + $0x70] sm:$0xff]   ;;  %v3601_v50 = vsel %vm3582_vm5, %v3598_v62, %v3600_v40 }
 0x104   : > { %5830 = vmatprep.subr.bf16.mxu1 %v6444_v9  ;;  %v1527_v16 = vrot.slane %v7246_v5, 1  ;;  %v1923_v6 = vrot.slane %v1921_v42, 1  ;;  %v3602_v58 = vrot.slane %v6971_v8, 3 }
 0x105   : > { %v3272_v43 = vsel %vm3111_vm4, %v3262_v11, %v3271_v21  ;;  %v3281_v52 = vsel %vm3111_vm4, %v3271_v21, %v3280_v46  ;;  %v1524_v4 = vsel %vm1038_vm3, %v1521_v0, %v1523_v17  ;;  %v1531_v21 = vrot.slane %v7260_v20, 1  ;;  %v6275_v46 = vld [vmem:[%s6540_s14 + $0x98] ss:$0 sps:$4 sm:$0x11]  }
 0x106   : > { %5537 = vmatmul.mubr.bf16.gmra.mrb[4].mxu1 %v1510_v3  ;;  %v3588_v3 = vrot.slane %v6898_v31, 3 }
 0x107   : > { %5765 = vmatmul.mubr.bf16.gmra.mrb[24].mxu0 %v3245_v15  ;;  %5540 = vmatprep.mubr.bf16.mxu1 %v1512_v59  ;;  %v6455_v15 = vld [vmem:[%s7620_s1 + $0x138] sm:$0xff]   ;;  %v1522_v59 = vsel %vm1038_vm3, %v1519_v36, %v1521_v0  ;;  %v1534_v45 = vsel %vm1038_vm3, %v1531_v21, %v1533_v44  ;;  %v3604_v0 = vrot.slane %v6976_v2, 3 }
 0x108   : > { %5768 = vmatprep.mubr.bf16.mxu0 %v3254_v24  ;;  %5838 = vmatpush3.bf16.msra.mxu1 %v6444_v9  ;;  %v3589_v27 = vsel %vm3582_vm5, %v3586_v61, %v3588_v3  ;;  %v7241_v9 = vld [vmem:[%s6540_s14 + $0x68] sm:$0xff]   ;;  %v3590_v24 = vrot.slane %v6914_v38, 3  ;;  %v1529_v38 = vrot.slane %v7255_v18, 1 }
 0x109   : > { %5831 = vmatprep.subr.bf16.mxu1 %v6447_v26  ;;  %v1525_v31 = vrot.slane %v7241_v9, 1  ;;  %v3605_v8 = vsel %vm3582_vm5, %v3602_v58, %v3604_v0  ;;  %v1951_v2 = vshll.u32 %v7241_v9, 16 }
 0x10a   : > { %v3591_v11 = vsel %vm3582_vm5, %v3588_v3, %v3590_v24  ;;  %v3593_v13 = vsel %vm3582_vm5, %v3590_v24, %v3592_v41  ;;  %v1530_v22 = vsel %vm1038_vm3, %v1527_v16, %v1529_v38  ;;  %v1957_v24 = vshrl.u32 %v7246_v5, 16 }
 0x10b   : > { %v1526_v55 = vsel %vm1038_vm3, %v1523_v17, %v1525_v31  ;;  %v1528_v12 = vsel %vm1038_vm3, %v1525_v31, %v1527_v16  ;;  %v3608_v16 = vrot.slane %v6998_v57, 3  ;;  %v1969_v57 = vshll.u32 %v7255_v18, 16 }
 0x10c   : > { %5839 = vmatpush3.bf16.msra.mxu1 %v6447_v26  ;;  %v3596_v26 = vrot.slane %v6937_v35, 3  ;;  %v7274_v35 = vld [vmem:[%s6540_s14 + $0x90] sm:$0xff]  }
 0x10d   : > { %5832 = vmatprep.subr.bf16.mxu1 %v6448_v32 }
 0x10e   : > { %5541 = vmatmul.mubr.bf16.gmra.mrb[8].mxu1 %v1514_v30  ;;  %v3595_v30 = vsel %vm3582_vm5, %v3592_v41, %v3594_v1  ;;  %v3599_v36 = vsel %vm3582_vm5, %v3596_v26, %v3598_v62  ;;  %v1971_v62 = vrot.slane %v1969_v57, 2 }
 0x10f   : > { %5769 = vmatmul.mubr.bf16.gmra.mrb[28].mxu0 %v3263_v7  ;;  %5544 = vmatprep.mubr.bf16.mxu1 %v1516_v37  ;;  %v1532_v7 = vsel %vm1038_vm3, %v1529_v38, %v1531_v21  ;;  %v3597_v37 = vsel %vm3582_vm5, %v3594_v1, %v3596_v26  ;;  %v1959_v38 = vrot.slane %v1957_v24, 1  ;;  %v3610_v21 = vrot.slane %v7009_v29, 3 }
 0x110   : > { %5772 = vmatprep.mubr.bf16.mxu0 %v3272_v43  ;;  %5840 = vmatpush3.bf16.msra.mxu1 %v6448_v32  ;;  %v1535_v43 = vrot.slane %v7274_v35, 1  ;;  %v1924_v32 = vshll.u32 %v7209_v53, 16  ;;  %v1933_v53 = vshll.u32 %v7224_v60, 16 }
 0x111   : > { %5833 = vmatprep.subr.bf16.mxu1 %v6451_v49 }
 0x112   : > { %v1536_v19 = vsel %vm1038_vm3, %v1533_v44, %v1535_v43  ;;  %v1935_v3 = vrot.slane %v1933_v53, 2 }
 0x114   : > { %5841 = vmatpush3.bf16.msra.mxu1 %v6451_v49  ;;  %v1926_v49 = vrot.slane %v1924_v32, 2 }
 0x115   : > { %5834 = vmatprep.subr.bf16.mxu1 %v6452_v14 }
 0x116   : > { %5545 = vmatmul.mubr.bf16.gmra.mrb[12].mxu1 %v1518_v51  ;;  %v1537_v51 = vrot.slane %v6275_v46, 1 }
 0x117   : > { %5773 = vmatmul.mubr.bf16.gmra.mrb[32].mxu0 %v3281_v52  ;;  %5548 = vmatprep.mubr.bf16.mxu1 %v1520_v56  ;;  %v1930_v52 = vshrl.u32 %v7224_v60, 16  ;;  %v1927_v56 = vor.u32 %v1926_v49, %v1923_v6 }
 0x118   : > { %5792 = vmatprep.mubr.bf16.mxu0 %v3585_v33  ;;  %5842 = vmatpush3.bf16.msra.mxu1 %v6452_v14  ;;  %v1939_v33 = vshrl.u32 %v7229_v23, 16  ;;  %v1942_v14 = vshll.u32 %v7229_v23, 16  ;;  %v1538_v61 = vsel %vm1038_vm3, %v1535_v43, %v1537_v51  ;;  %v1948_v23 = vshrl.u32 %v7241_v9, 16 }
 0x119   : > { %5835 = vmatprep.subr.bf16.mxu1 %v6455_v15  ;;  %v1932_v17 = vrot.slane %v1930_v52, 1  ;;  %v3611_v43 = vsel %vm3582_vm5, %v3608_v16, %v3610_v21 }
 0x11a   : > { %v1941_v60 = vrot.slane %v1939_v33, 1 }
 0x11c   : > { %5843 = vmatpush3.bf16.msra.mxu1 %v6455_v15  ;;  %v3603_v15 = vsel %vm3582_vm5, %v3600_v40, %v3602_v58 }
 0x11e   : > { %5549 = vmatmul.mubr.bf16.gmra.mrb[16].mxu1 %v1522_v59  ;;  %v1928_v59 = vsel %vm1839_vm1, %v6701_v34, %v1927_v56  ;;  %v1960_v34 = vshll.u32 %v7246_v5, 16  ;;  %v1966_v5 = vshrl.u32 %v7255_v18, 16 }
 0x11f   : > { %5793 = vmatmul.mubr.bf16.vlgmr.msra.gmra.mrb[0].mxu0 %v3587_v25  ;;  %5552 = vmatprep.mubr.bf16.mxu1 %v1524_v4  ;;  %v1944_v25 = vrot.slane %v1942_v14, 2  ;;  %v1936_v4 = vor.u32 %v1935_v3, %v1932_v17 }
 0x120   : > { %5796 = vmatprep.mubr.bf16.mxu0 %v3589_v27  ;;  %v3606_v27 = vrot.slane %v6994_v10, 3  ;;  %v1962_v9 = vrot.slane %v1960_v34, 2  ;;  %v1968_v44 = vrot.slane %v1966_v5, 1 }
 0x121   : > { %v1945_v31 = vor.u32 %v1944_v25, %v1941_v60  ;;  %v1937_v41 = vsel %vm1839_vm1, %v1927_v56, %v1936_v4  ;;  %v6462_v56 = vld [vmem:[%s6540_s14 + $0x98] ss:$0 sps:$4 sm:$0x33]  }
 0x122   : > { %v3609_v1 = vsel %vm3582_vm5, %v3606_v27, %v3608_v16  ;;  %v1963_v26 = vor.u32 %v1962_v9, %v1959_v38  ;;  %v1972_v29 = vor.u32 %v1971_v62, %v1968_v44  ;;  %v2005_v33 = vshll.u32 %v6462_v56, 16 }
 0x124   : > { %v1973_v6 = vsel %vm1839_vm1, %v1963_v26, %v1972_v29  ;;  %v2007_v17 = vrot.slane %v2005_v33, 2 }
 0x126   : > { %5553 = vmatmul.mubr.bf16.gmra.mrb[20].mxu1 %v1526_v55  ;;  %v1950_v55 = vrot.slane %v1948_v23, 1 }
 0x127   : > { %5797 = vmatmul.mubr.bf16.gmra.mrb[4].mxu0 %v3591_v11  ;;  %5556 = vmatprep.mubr.bf16.mxu1 %v1528_v12  ;;  %v1953_v11 = vrot.slane %v1951_v2, 2  ;;  %v3607_v12 = vsel %vm3582_vm5, %v3604_v0, %v3606_v27 }
 0x128   : > { %5800 = vmatprep.mubr.bf16.mxu0 %v3593_v13  ;;  %v1946_v13 = vsel %vm1839_vm1, %v1936_v4, %v1945_v31 }
 0x129   : > { %v1954_v10 = vor.u32 %v1953_v11, %v1950_v55 }
 0x12b   : > { %v1964_v42 = vsel %vm1839_vm1, %v1954_v10, %v1963_v26 }
 0x12e   : > { %5557 = vmatmul.mubr.bf16.gmra.mrb[24].mxu1 %v1530_v22  ;;  %v1975_v22 = vshrl.u32 %v7260_v20, 16 }
 0x12f   : > { %5801 = vmatmul.mubr.bf16.gmra.mrb[8].mxu0 %v3595_v30  ;;  %5560 = vmatprep.mubr.bf16.mxu1 %v1532_v7  ;;  %v1978_v30 = vshll.u32 %v7260_v20, 16  ;;  %v3612_v7 = vrot.slane %v7017_v54, 3  ;;  %v1984_v20 = vshrl.u32 %v7269_v39, 16  ;;  %v1987_v54 = vshll.u32 %v7269_v39, 16 }
 0x130   : > { %5804 = vmatprep.mubr.bf16.mxu0 %v3597_v37  ;;  %v1955_v37 = vsel %vm1839_vm1, %v1945_v31, %v1954_v10  ;;  %v1977_v32 = vrot.slane %v1975_v22, 1 }
 0x131   : > { %v1980_v18 = vrot.slane %v1978_v30, 2  ;;  %v3613_v40 = vsel %vm3582_vm5, %v3610_v21, %v3612_v7  ;;  %v1986_v49 = vrot.slane %v1984_v20, 1 }
 0x133   : > { %v1981_v46 = vor.u32 %v1980_v18, %v1977_v32 }
 0x135   : > { %v1982_v52 = vsel %vm1839_vm1, %v1972_v29, %v1981_v46 }
 0x136   : > { %5561 = vmatmul.mubr.bf16.gmra.mrb[28].mxu1 %v1534_v45  ;;  %v3614_v45 = vrot.slane %v7031_v48, 3 }
 0x137   : > { %5805 = vmatmul.mubr.bf16.gmra.mrb[12].mxu0 %v3599_v36  ;;  %5564 = vmatprep.mubr.bf16.mxu1 %v1536_v19  ;;  %v1993_v36 = vshrl.u32 %v7274_v35, 16  ;;  %v1996_v19 = vshll.u32 %v7274_v35, 16  ;;  %v2002_v35 = vshrl.u32 %v6462_v56, 16 }
 0x138   : > { %5808 = vmatprep.mubr.bf16.mxu0 %v3601_v50  ;;  %v1989_v50 = vrot.slane %v1987_v54, 2  ;;  %v3615_v51 = vsel %vm3582_vm5, %v3612_v7, %v3614_v45  ;;  %v3617_v48 = vsel %vm3582_vm5, %v3614_v45, %v3616_v28 }
 0x139   : > { %v1995_v53 = vrot.slane %v1993_v36, 1  ;;  %v1998_v58 = vrot.slane %v1996_v19, 2 }
 0x13a   : > { %v1990_v39 = vor.u32 %v1989_v50, %v1986_v49 }
 0x13b   : > { %v1999_v14 = vor.u32 %v1998_v58, %v1995_v53 }
 0x13c   : > { %v1991_v0 = vsel %vm1839_vm1, %v1981_v46, %v1990_v39 }
 0x13d   : > { %v2000_v3 = vsel %vm1839_vm1, %v1990_v39, %v1999_v14 }
 0x13e   : > { %5565 = vmatmul.mubr.bf16.gmra.mrb[32].mxu1 %v1538_v61  ;;  %v2004_v61 = vrot.slane %v2002_v35, 1 }
 0x13f   : > { %5809 = vmatmul.mubr.bf16.gmra.mrb[16].mxu0 %v3603_v15  ;;  %5600 = vmatprep.mubr.bf16.mxu1 %v1928_v59 }
 0x140   : > { %5812 = vmatprep.mubr.bf16.mxu0 %v3605_v8  ;;  %v2008_v47 = vor.u32 %v2007_v17, %v2004_v61 }
 0x142   : > { %v2009_v28 = vsel %vm1839_vm1, %v1999_v14, %v2008_v47 }
 0x146   : > { %5601 = vmatmul.mubr.bf16.vlgmr.msra.gmra.mrb[16].mxu1 %v1937_v41 }
 0x147   : > { %5813 = vmatmul.mubr.bf16.gmra.mrb[20].mxu0 %v3607_v12  ;;  %5604 = vmatprep.mubr.bf16.mxu1 %v1946_v13  ;;  %v7345_v12 = vld [vmem:[%s7621_s2] ss:$0 sm:$0xff] }
 0x148   : > { %5816 = vmatprep.mubr.bf16.mxu0 %v3609_v1 }
 0x14e   : > { %5605 = vmatmul.mubr.bf16.gmra.mrb[20].mxu1 %v1955_v37 }
 0x14f   : > { %5817 = vmatmul.mubr.bf16.gmra.mrb[24].mxu0 %v3611_v43  ;;  %5608 = vmatprep.mubr.bf16.mxu1 %v1964_v42 }
 0x150   : > { %5820 = vmatprep.mubr.bf16.mxu0 %v3613_v40 }
 0x156   : > { %5609 = vmatmul.mubr.bf16.gmra.mrb[24].mxu1 %v1973_v6 }
 0x157   : > { %5821 = vmatmul.mubr.bf16.gmra.mrb[28].mxu0 %v3615_v51  ;;  %5612 = vmatprep.mubr.bf16.mxu1 %v1982_v52 }
 0x158   : > { %5824 = vmatprep.mubr.bf16.mxu0 %v3617_v48 }
 0x15e   : > { %5613 = vmatmul.mubr.bf16.gmra.mrb[28].mxu1 %v1991_v0 }
 0x15f   : > { %5825 = vmatmul.mubr.bf16.gmra.mrb[32].mxu0 %v7119_v63  ;;  %5616 = vmatprep.mubr.bf16.mxu1 %v2000_v3 }
 0x166   : > { %5617 = vmatmul.mubr.bf16.gmra.mrb[32].mxu1 %v2009_v28 }
 0x1d1   : > { %v5534_v15 = vpop.f32.mrb[0].mxu1 }
 0x1d2   : > { %v1639_v59 = vpop.f32.mrb[1].mxu1 }
 0x1d3   : > { %v5535_v60 = vpop.f32.mrb[2].mxu1 }
 0x1d4   : > { %v1642_v25 = vpop.f32.mrb[3].mxu1 }
 0x1d9   : > { %v5538_v8 = vpop.f32.mrb[4].mxu1 }
 0x1da   : > { %v1655_v4 = vpop.f32.mrb[5].mxu1 }
 0x1db   : > { %v5539_v23 = vpop.f32.mrb[6].mxu1 }
 0x1dc   : > { %v1658_v2 = vpop.f32.mrb[7].mxu1 }
 0x1e1   : > { %v5542_v27 = vpop.f32.mrb[8].mxu1 }
 0x1e2   : > { %v1671_v31 = vpop.f32.mrb[9].mxu1 }
 0x1e3   : > { %v5543_v24 = vpop.f32.mrb[10].mxu1 }
 0x1e4   : > { %v7332_v34 = vpop.f32.mrb[11].mxu1 }
 0x1e9   : > { %v7334_v16 = vpop.f32.mrb[12].mxu1 }
 0x1ea   : > { %v7336_v63 = vpop.f32.mrb[13].mxu1 }
 0x1eb   : > { %v7338_v41 = vpop.f32.mrb[14].mxu1 }
 0x1ec   : > { %v7340_v55 = vpop.f32.mrb[15].mxu1 }
 0x1f2   : > { %v5794_v11 = vpop.f32.mrb[0].mxu0 }
 0x1f3   : > { %v5844_v13 = vadd.f32 %v5794_v11, %v5534_v15  ;;  %v3720_v38 = vpop.f32.mrb[1].mxu0 }
 0x1f4   : > { %v5845_v9 = vadd.f32 %v3720_v38, %v1639_v59  ;;  %v5795_v1 = vpop.f32.mrb[2].mxu0 }
 0x1f5   : > { %v7348_v10 = vadd.f32 %v5844_v13, %v7345_v12  ;;  %v5846_v5 = vadd.f32 %v5795_v1, %v5535_v60  ;;  %v3723_v57 = vpop.f32.mrb[3].mxu0 }
 0x1f6   : > { %v7351_v21 = vadd.f32 %v5845_v9, %v7345_v12  ;;  %v5847_v26 = vadd.f32 %v3723_v57, %v1642_v25 }
 0x1f7   : > { %v4822_v22 = vmul.f32 -1.442695, %v7348_v10  ;;  %v7355_v30 = vadd.f32 %v5846_v5, %v7345_v12 }
 0x1f8   : > { %v4820_v7 = vmul.f32 -1.442695, %v7351_v21  ;;  %v7359_v37 = vadd.f32 %v5847_v26, %v7345_v12 }
 0x1f9   : > { %6276 = vpow2.f32 %v4822_v22  ;;  %v4823_v44 = vmul.f32 -1.442695, %v7355_v30  ;;  %v4931_v22 = vld [vmem:[%s7388_s23] sm:$0xff]  }
 0x1fa   : > { %6278 = vpow2.f32 %v4820_v7  ;;  %v4821_v62 = vmul.f32 -1.442695, %v7359_v37  ;;  %v5798_v43 = vpop.f32.mrb[4].mxu0 }
 0x1fb   : > { %6280 = vpow2.f32 %v4823_v44  ;;  %v5848_v42 = vadd.f32 %v5798_v43, %v5538_v8  ;;  %v3736_v32 = vpop.f32.mrb[5].mxu0 }
 0x1fc   : > { %6282 = vpow2.f32 %v4821_v62  ;;  %v5849_v18 = vadd.f32 %v3736_v32, %v1655_v4  ;;  %v5799_v40 = vpop.f32.mrb[6].mxu0 }
 0x1fd   : > { %v7364_v29 = vadd.f32 %v5848_v42, %v7345_v12  ;;  %v5850_v20 = vadd.f32 %v5799_v40, %v5539_v23  ;;  %v3739_v54 = vpop.f32.mrb[7].mxu0 }
 0x1fe   : > { %v7367_v45 = vadd.f32 %v5849_v18, %v7345_v12  ;;  %v5851_v46 = vadd.f32 %v3739_v54, %v1658_v2  ;;  %v5092_v2 = vld [vmem:[%s7388_s23 + $0x8] sm:$0xff]  }
 0x1ff   : > { %v4826_v36 = vmul.f32 -1.442695, %v7364_v29  ;;  %v7371_v19 = vadd.f32 %v5850_v20, %v7345_v12  ;;  %v4936_v9 = vunpack.c.l.bf16 %v5092_v2 }
 0x200   : > { %v4824_v6 = vmul.f32 -1.442695, %v7367_v45  ;;  %v7375_v49 = vadd.f32 %v5851_v46, %v7345_v12  ;;  %v4932_v46 = vunpack.c.l.bf16 %v4931_v22 }
 0x201   : > { %6284 = vpow2.f32 %v4826_v36  ;;  %v4827_v50 = vmul.f32 -1.442695, %v7371_v19 }
 0x202   : > { %6286 = vpow2.f32 %v4824_v6  ;;  %v4825_v51 = vmul.f32 -1.442695, %v7375_v49  ;;  %v5802_v52 = vpop.f32.mrb[8].mxu0 }
 0x203   : > { %v6277_v53 = vpop.eup %6276  ;;  %6288 = vpow2.f32 %v4827_v50  ;;  %v5852_v58 = vadd.f32 %v5802_v52, %v5542_v27  ;;  %v3752_v48 = vpop.f32.mrb[9].mxu0 }
 0x204   : > { %v6279_v39 = vpop.eup %6278  ;;  %v4052_v56 = vadd.f32 1.0, %v6277_v53  ;;  %6290 = vpow2.f32 %v4825_v51  ;;  %v5853_v35 = vadd.f32 %v3752_v48, %v1671_v31  ;;  %v5803_v33 = vpop.f32.mrb[10].mxu0  ;;  %v4937_v51 = vunpack.c.h.bf16 %v5092_v2 }
 0x205   : > { %v6281_v14 = vpop.eup %6280  ;;  %v4050_v0 = vadd.f32 1.0, %v6279_v39  ;;  %v7381_v61 = vadd.f32 %v5852_v58, %v7345_v12  ;;  %v5854_v17 = vadd.f32 %v5803_v33, %v5543_v24  ;;  %v3755_v3 = vpop.f32.mrb[11].mxu0  ;;  %v4933_v58 = vunpack.c.h.bf16 %v4931_v22 }
 0x206   : > { %v6283_v47 = vpop.eup %6282  ;;  %6292 = vrcp.f32 %v4052_v56  ;;  %v4053_v28 = vadd.f32 1.0, %v6281_v14  ;;  %v7391_v15 = vadd.f32 %v5853_v35, %v7345_v12  ;;  %v5855_v59 = vadd.f32 %v3755_v3, %v7332_v34 }
 0x207   : > { %6294 = vrcp.f32 %v4050_v0  ;;  %v4051_v60 = vadd.f32 1.0, %v6283_v47  ;;  %v4830_v25 = vmul.f32 -1.442695, %v7381_v61  ;;  %v7396_v8 = vadd.f32 %v5854_v17, %v7345_v12  ;;  %v5094_v47 = vld [vmem:[%s7388_s23 + $0x18] sm:$0xff]  }
 0x208   : > { %6296 = vrcp.f32 %v4053_v28  ;;  %v4828_v4 = vmul.f32 -1.442695, %v7391_v15  ;;  %v7400_v23 = vadd.f32 %v5855_v59, %v7345_v12 }
 0x209   : > { %6298 = vrcp.f32 %v4051_v60  ;;  %v4831_v27 = vmul.f32 -1.442695, %v7396_v8 }
 0x20a   : > { %6300 = vpow2.f32 %v4830_v25  ;;  %v4829_v31 = vmul.f32 -1.442695, %v7400_v23  ;;  %v5806_v24 = vpop.f32.mrb[12].mxu0  ;;  %v5093_v25 = vld [vmem:[%s7388_s23 + $0x10] sm:$0xff]  }
 0x20b   : > { %v6285_v34 = vpop.eup %6284  ;;  %6302 = vpow2.f32 %v4828_v4  ;;  %v5856_v11 = vadd.f32 %v5806_v24, %v7334_v16  ;;  %v3768_v13 = vpop.f32.mrb[13].mxu0 }
 0x20c   : > { %v6287_v38 = vpop.eup %6286  ;;  %v4056_v1 = vadd.f32 1.0, %v6285_v34  ;;  %6304 = vpow2.f32 %v4831_v27  ;;  %v5857_v5 = vadd.f32 %v3768_v13, %v7336_v63  ;;  %v5807_v57 = vpop.f32.mrb[14].mxu0  ;;  %v7440_v13 = vld [vmem:[%s7388_s23 + $0x28] sm:$0xff]  }
 0x20d   : > { %v6289_v26 = vpop.eup %6288  ;;  %v4054_v7 = vadd.f32 1.0, %v6287_v38  ;;  %6306 = vpow2.f32 %v4829_v31  ;;  %v7409_v44 = vadd.f32 %v5856_v11, %v7345_v12  ;;  %v5858_v62 = vadd.f32 %v5807_v57, %v7338_v41  ;;  %v3771_v43 = vpop.f32.mrb[15].mxu0  ;;  %v7443_v38 = vld [vmem:[%s7388_s23 + $0x20] sm:$0xff]  }
 0x20e   : > { %v6291_v42 = vpop.eup %6290  ;;  %6308 = vrcp.f32 %v4056_v1  ;;  %v4057_v16 = vadd.f32 1.0, %v6289_v26  ;;  %v7413_v32 = vadd.f32 %v5857_v5, %v7345_v12  ;;  %v5859_v18 = vadd.f32 %v3771_v43, %v7340_v55 }
 0x20f   : > { %6310 = vrcp.f32 %v4054_v7  ;;  %v4055_v63 = vadd.f32 1.0, %v6291_v42  ;;  %v4834_v40 = vmul.f32 -1.442695, %v7409_v44  ;;  %v7418_v20 = vadd.f32 %v5858_v62, %v7345_v12 }
 0x210   : > { %v6293_v54 = vpop.eup %6292  ;;  %6312 = vrcp.f32 %v4057_v16  ;;  %v4832_v41 = vmul.f32 -1.442695, %v7413_v32  ;;  %v7422_v36 = vadd.f32 %v5859_v18, %v7345_v12  ;;  %v4944_v11 = vunpack.c.l.bf16 %v5094_v47 }
 0x211   : > { %v6295_v6 = vpop.eup %6294  ;;  %v4160_v50 = vmul.f32 %v6293_v54, %v7348_v10  ;;  %6314 = vrcp.f32 %v4055_v63  ;;  %v4835_v55 = vmul.f32 -1.442695, %v7418_v20  ;;  %v4940_v57 = vunpack.c.l.bf16 %v5093_v25 }
 0x212   : > { %v6297_v52 = vpop.eup %6296  ;;  %v4158_v53 = vmul.f32 %v6295_v6, %v7351_v21  ;;  %6316 = vpow2.f32 %v4834_v40  ;;  %v4833_v48 = vmul.f32 -1.442695, %v7422_v36  ;;  %v5810_v39 = vpop.f32.mrb[16].mxu0  ;;  %v4945_v26 = vunpack.c.h.bf16 %v5094_v47 }
 0x213   : > { %v6299_v56 = vpop.eup %6298  ;;  %v4161_v35 = vmul.f32 %v6297_v52, %v7355_v30  ;;  %6318 = vpow2.f32 %v4832_v41  ;;  %v3784_v33 = vpop.f32.mrb[17].mxu0  ;;  %v4268_v21 = vadd.f32 %v4936_v9, %v4160_v50  ;;  %v4941_v43 = vunpack.c.h.bf16 %v5093_v25 }
 0x214   : > { %v6301_v10 = vpop.eup %6300  ;;  %v4159_v14 = vmul.f32 %v6299_v56, %v7359_v37  ;;  %6320 = vpow2.f32 %v4835_v55  ;;  %v5811_v0 = vpop.f32.mrb[18].mxu0  ;;  %v4266_v30 = vadd.f32 %v4932_v46, %v4158_v53  ;;  %v4952_v54 = vunpack.c.l.bf16 %v7440_v13 }
 0x215   : > { %v6303_v17 = vpop.eup %6302  ;;  %v4269_v3 = vadd.f32 %v4937_v51, %v4161_v35  ;;  %v4060_v28 = vadd.f32 1.0, %v6301_v10  ;;  %6322 = vpow2.f32 %v4833_v48  ;;  %v3787_v59 = vpop.f32.mrb[19].mxu0  ;;  %v4953_v25 = vunpack.c.h.bf16 %v7440_v13 }
 0x216   : > { %v6305_v60 = vpop.eup %6304  ;;  %v4267_v37 = vadd.f32 %v4933_v58, %v4159_v14  ;;  %v4058_v4 = vadd.f32 1.0, %v6303_v17 }
 0x217   : > { %v6307_v2 = vpop.eup %6306  ;;  %v5010_v27 = vpack.c.bf16 %v4269_v3, %v4268_v21  ;;  %6324 = vrcp.f32 %v4060_v28  ;;  %v4061_v31 = vadd.f32 1.0, %v6305_v60 }
 0x218   : > { %v6309_v24 = vpop.eup %6308  ;;  %v5005_v34 = vpack.c.bf16 %v4267_v37, %v4266_v30  ;;  %6326 = vrcp.f32 %v4058_v4  ;;  %v4059_v9 = vadd.f32 1.0, %v6307_v2 }
 0x219   : > { %v6311_v1 = vpop.eup %6310  ;;  %5109 = vst [vmem:[%s7436_s26 + $0x8] sm:$0xff] %v5010_v27   ;;  %v4164_v5 = vmul.f32 %v6309_v24, %v7364_v29  ;;  %6328 = vrcp.f32 %v4061_v31  ;;  %v5602_v22 = vpop.f32.mrb[16].mxu1  ;;  %v4948_v29 = vunpack.c.l.bf16 %v7443_v38 }
 0x21a   : > { %v6313_v7 = vpop.eup %6312  ;;  %5006 = vst [vmem:[%s7436_s26] sm:$0xff] %v5005_v34   ;;  %v4162_v62 = vmul.f32 %v6311_v1, %v7367_v45  ;;  %6330 = vrcp.f32 %v4059_v9  ;;  %v5860_v42 = vadd.f32 %v5810_v39, %v5602_v22  ;;  %v5814_v16 = vpop.f32.mrb[20].mxu0  ;;  %v4949_v34 = vunpack.c.h.bf16 %v7443_v38 }
 0x21b   : > { %v2174_v18 = vpop.f32.mrb[17].mxu1  ;;  %v6315_v63 = vpop.eup %6314  ;;  %v4165_v40 = vmul.f32 %v6313_v7, %v7371_v19  ;;  %v4272_v51 = vadd.f32 %v4944_v11, %v4164_v5 }
 0x21c   : > { %v5861_v46 = vadd.f32 %v3784_v33, %v2174_v18  ;;  %v3800_v41 = vpop.f32.mrb[21].mxu0  ;;  %v5603_v6 = vpop.f32.mrb[18].mxu1  ;;  %v4163_v55 = vmul.f32 %v6315_v63, %v7375_v49  ;;  %v7454_v45 = vadd.f32 %v5860_v42, %v7345_v12  ;;  %v4270_v14 = vadd.f32 %v4940_v57, %v4162_v62 }
 0x21d   : > { %v6317_v50 = vpop.eup %6316  ;;  %v5862_v52 = vadd.f32 %v5811_v0, %v5603_v6  ;;  %v5815_v53 = vpop.f32.mrb[22].mxu0  ;;  %v4273_v39 = vadd.f32 %v4945_v26, %v4165_v40  ;;  %v5097_v6 = vld [vmem:[%s7388_s23 + $0x30] sm:$0xff]  }
 0x21e   : > { %v2177_v58 = vpop.f32.mrb[19].mxu1  ;;  %v6319_v48 = vpop.eup %6318  ;;  %v4064_v19 = vadd.f32 1.0, %v6317_v50  ;;  %v7457_v56 = vadd.f32 %v5861_v46, %v7345_v12  ;;  %v4271_v17 = vadd.f32 %v4941_v43, %v4163_v55  ;;  %v4838_v28 = vmul.f32 -1.442695, %v7454_v45 }
 0x21f   : > { %v5863_v35 = vadd.f32 %v3787_v59, %v2177_v58  ;;  %v3803_v33 = vpop.f32.mrb[23].mxu0  ;;  %v6321_v10 = vpop.eup %6320  ;;  %v4062_v21 = vadd.f32 1.0, %v6319_v48  ;;  %v7460_v49 = vadd.f32 %v5862_v52, %v7345_v12  ;;  %v5020_v0 = vpack.c.bf16 %v4273_v39, %v4272_v51 }
 0x220   : > { %v6323_v3 = vpop.eup %6322  ;;  %6332 = vrcp.f32 %v4064_v19  ;;  %v4065_v47 = vadd.f32 1.0, %v6321_v10  ;;  %v5015_v60 = vpack.c.bf16 %v4271_v17, %v4270_v14  ;;  %v4836_v59 = vmul.f32 -1.442695, %v7457_v56 }
 0x221   : > { %6334 = vrcp.f32 %v4062_v21  ;;  %v4063_v30 = vadd.f32 1.0, %v6323_v3  ;;  %v6325_v37 = vpop.eup %6324  ;;  %5111 = vst [vmem:[%s7436_s26 + $0x18] sm:$0xff] %v5020_v0   ;;  %v4839_v4 = vmul.f32 -1.442695, %v7460_v49  ;;  %v7468_v2 = vadd.f32 %v5863_v35, %v7345_v12  ;;  %v5606_v27 = vpop.f32.mrb[20].mxu1 }
 0x222   : > { %6336 = vrcp.f32 %v4065_v47  ;;  %v6327_v31 = vpop.eup %6326  ;;  %5110 = vst [vmem:[%s7436_s26 + $0x10] sm:$0xff] %v5015_v60   ;;  %v4168_v24 = vmul.f32 %v6325_v37, %v7381_v61  ;;  %v5864_v11 = vadd.f32 %v5814_v16, %v5606_v27  ;;  %v5818_v9 = vpop.f32.mrb[24].mxu0  ;;  %v4956_v35 = vunpack.c.l.bf16 %v5097_v6 }
 0x223   : > { %6338 = vrcp.f32 %v4063_v30  ;;  %v2190_v1 = vpop.f32.mrb[21].mxu1  ;;  %v6329_v5 = vpop.eup %6328  ;;  %v4166_v13 = vmul.f32 %v6327_v31, %v7391_v15  ;;  %v4837_v57 = vmul.f32 -1.442695, %v7468_v2  ;;  %v5098_v15 = vld [vmem:[%s7388_s23 + $0x38] sm:$0xff]  }
 0x224   : > { %6340 = vpow2.f32 %v4838_v28  ;;  %v5865_v26 = vadd.f32 %v3800_v41, %v2190_v1  ;;  %v3816_v22 = vpop.f32.mrb[25].mxu0  ;;  %v5607_v7 = vpop.f32.mrb[22].mxu1  ;;  %v4169_v61 = vmul.f32 %v6329_v5, %v7396_v8  ;;  %v7477_v43 = vadd.f32 %v5864_v11, %v7345_v12 }
 0x225   : > { %v6331_v62 = vpop.eup %6330  ;;  %6342 = vpow2.f32 %v4836_v59  ;;  %v5819_v42 = vpop.f32.mrb[26].mxu0  ;;  %v4276_v18 = vadd.f32 %v4952_v54, %v4168_v24  ;;  %v5866_v50 = vadd.f32 %v5815_v53, %v5607_v7  ;;  %v4274_v51 = vadd.f32 %v4948_v29, %v4166_v13 }
 0x226   : > { %v2193_v16 = vpop.f32.mrb[23].mxu1  ;;  %v4167_v63 = vmul.f32 %v6331_v62, %v7400_v23  ;;  %6344 = vpow2.f32 %v4839_v4  ;;  %v7482_v40 = vadd.f32 %v5865_v26, %v7345_v12  ;;  %v3819_v46 = vpop.f32.mrb[27].mxu0  ;;  %v4277_v41 = vadd.f32 %v4953_v25, %v4169_v61 }
 0x227   : > { %6346 = vpow2.f32 %v4837_v57  ;;  %v4842_v8 = vmul.f32 -1.442695, %v7477_v43  ;;  %v5867_v23 = vadd.f32 %v3803_v33, %v2193_v16  ;;  %v4960_v58 = vunpack.c.l.bf16 %v5098_v15 }
 0x228   : > { %v4275_v55 = vadd.f32 %v4949_v34, %v4167_v63  ;;  %v4840_v54 = vmul.f32 -1.442695, %v7482_v40  ;;  %v5030_v52 = vpack.c.bf16 %v4277_v41, %v4276_v18  ;;  %v7490_v48 = vadd.f32 %v5866_v50, %v7345_v12 }
 0x229   : > { %6348 = vpow2.f32 %v4842_v8  ;;  %v7493_v53 = vadd.f32 %v5867_v23, %v7345_v12  ;;  %v5610_v38 = vpop.f32.mrb[24].mxu1  ;;  %v4961_v33 = vunpack.c.h.bf16 %v5098_v15  ;;  %v4957_v28 = vunpack.c.h.bf16 %v5097_v6  ;;  %v7515_v8 = vld [vmem:[%s7388_s23 + $0x48] sm:$0xff]  }
 0x22a   : > { %v6333_v39 = vpop.eup %6332  ;;  %v5025_v19 = vpack.c.bf16 %v4275_v55, %v4274_v51  ;;  %6350 = vpow2.f32 %v4840_v54  ;;  %5113 = vst [vmem:[%s7436_s26 + $0x28] sm:$0xff] %v5030_v52   ;;  %v4843_v14 = vmul.f32 -1.442695, %v7490_v48  ;;  %v5868_v17 = vadd.f32 %v5818_v9, %v5610_v38  ;;  %v5822_v21 = vpop.f32.mrb[28].mxu0  ;;  %v7523_v52 = vld [vmem:[%s7388_s23 + $0x40] sm:$0xff]  }
 0x22b   : > { %v6335_v29 = vpop.eup %6334  ;;  %v4172_v10 = vmul.f32 %v6333_v39, %v7409_v44  ;;  %v2206_v3 = vpop.f32.mrb[25].mxu1  ;;  %v4841_v60 = vmul.f32 -1.442695, %v7493_v53 }
 0x22c   : > { %v6337_v0 = vpop.eup %6336  ;;  %5112 = vst [vmem:[%s7436_s26 + $0x20] sm:$0xff] %v5025_v19   ;;  %v4170_v47 = vmul.f32 %v6335_v29, %v7413_v32  ;;  %v5869_v30 = vadd.f32 %v3816_v22, %v2206_v3  ;;  %v3832_v59 = vpop.f32.mrb[29].mxu0  ;;  %6352 = vpow2.f32 %v4843_v14  ;;  %v7503_v44 = vadd.f32 %v5868_v17, %v7345_v12 }
 0x22d   : > { %v5611_v37 = vpop.f32.mrb[26].mxu1  ;;  %v6339_v25 = vpop.eup %6338  ;;  %v4173_v4 = vmul.f32 %v6337_v0, %v7418_v20  ;;  %v4280_v34 = vadd.f32 %v4960_v58, %v4172_v10  ;;  %6354 = vpow2.f32 %v4841_v60  ;;  %v4964_v60 = vunpack.c.l.bf16 %v7523_v52 }
 0x22e   : > { %v5823_v27 = vpop.f32.mrb[30].mxu0  ;;  %v2209_v31 = vpop.f32.mrb[27].mxu1  ;;  %v4278_v11 = vadd.f32 %v4956_v35, %v4170_v47  ;;  %v4171_v32 = vmul.f32 %v6339_v25, %v7422_v36  ;;  %v7507_v57 = vadd.f32 %v5869_v30, %v7345_v12  ;;  %v5870_v20 = vadd.f32 %v5819_v42, %v5611_v37  ;;  %v7537_v30 = vld [vmem:[%s7388_s23 + $0x58] sm:$0xff]   ;;  %v7543_v25 = vld [vmem:[%s7388_s23 + $0x50] sm:$0xff]  }
 0x22f   : > { %v6341_v24 = vpop.eup %6340  ;;  %v3835_v9 = vpop.f32.mrb[31].mxu0  ;;  %v4281_v5 = vadd.f32 %v4961_v33, %v4173_v4  ;;  %v4846_v62 = vmul.f32 -1.442695, %v7503_v44  ;;  %v5871_v61 = vadd.f32 %v3819_v46, %v2209_v31 }
 0x230   : > { %v6343_v1 = vpop.eup %6342  ;;  %v4068_v13 = vadd.f32 1.0, %v6341_v24  ;;  %v4279_v22 = vadd.f32 %v4957_v28, %v4171_v32  ;;  %v7511_v63 = vadd.f32 %v5870_v20, %v7345_v12  ;;  %v4844_v46 = vmul.f32 -1.442695, %v7507_v57 }
 0x231   : > { %v6345_v26 = vpop.eup %6344  ;;  %v4066_v7 = vadd.f32 1.0, %v6343_v1  ;;  %v5040_v18 = vpack.c.bf16 %v4281_v5, %v4280_v34  ;;  %v5614_v41 = vpop.f32.mrb[28].mxu1  ;;  %v7519_v50 = vadd.f32 %v5871_v61, %v7345_v12  ;;  %v4968_v28 = vunpack.c.l.bf16 %v7515_v8 }
 0x232   : > { %v6347_v16 = vpop.eup %6346  ;;  %6356 = vrcp.f32 %v4068_v13  ;;  %v4069_v36 = vadd.f32 1.0, %v6345_v26  ;;  %v5035_v15 = vpack.c.bf16 %v4279_v22, %v4278_v11  ;;  %v5872_v51 = vadd.f32 %v5822_v21, %v5614_v41  ;;  %v5826_v55 = vpop.f32.mrb[32].mxu0 }
 0x233   : > { %6358 = vrcp.f32 %v4066_v7  ;;  %v4067_v42 = vadd.f32 1.0, %v6347_v16  ;;  %v6349_v6 = vpop.eup %6348  ;;  %5115 = vst [vmem:[%s7436_s26 + $0x38] sm:$0xff] %v5040_v18   ;;  %v2222_v54 = vpop.f32.mrb[29].mxu1  ;;  %v4847_v39 = vmul.f32 -1.442695, %v7511_v63  ;;  %v4969_v24 = vunpack.c.h.bf16 %v7515_v8 }
 0x234   : > { %6360 = vrcp.f32 %v4069_v36  ;;  %v6351_v23 = vpop.eup %6350  ;;  %5114 = vst [vmem:[%s7436_s26 + $0x30] sm:$0xff] %v5035_v15   ;;  %v4072_v58 = vadd.f32 1.0, %v6349_v6  ;;  %v5873_v19 = vadd.f32 %v3832_v59, %v2222_v54  ;;  %v3848_v35 = vpop.f32.mrb[33].mxu0  ;;  %v7527_v10 = vadd.f32 %v5872_v51, %v7345_v12 }
 0x235   : > { %6362 = vrcp.f32 %v4067_v42  ;;  %v5615_v38 = vpop.f32.mrb[30].mxu1  ;;  %v4070_v29 = vadd.f32 1.0, %v6351_v23  ;;  %v5827_v14 = vpop.f32.mrb[34].mxu0  ;;  %v4965_v32 = vunpack.c.h.bf16 %v7523_v52  ;;  %v4972_v20 = vunpack.c.l.bf16 %v7543_v25 }
 0x236   : > { %6364 = vpow2.f32 %v4846_v62  ;;  %v5874_v33 = vadd.f32 %v5823_v27, %v5615_v38  ;;  %v2225_v17 = vpop.f32.mrb[31].mxu1  ;;  %v7530_v21 = vadd.f32 %v5873_v19, %v7345_v12  ;;  %v7532_v0 = vpop.f32.mrb[35].mxu0  ;;  %v4845_v27 = vmul.f32 -1.442695, %v7519_v50 }
 0x237   : > { %6366 = vrcp.f32 %v4072_v58  ;;  %v5875_v3 = vadd.f32 %v3835_v9, %v2225_v17  ;;  %v6353_v47 = vpop.eup %6352  ;;  %v4850_v11 = vmul.f32 -1.442695, %v7527_v10  ;;  %v4976_v9 = vunpack.c.l.bf16 %v7537_v30 }
 0x238   : > { %6368 = vrcp.f32 %v4070_v29  ;;  %v7540_v59 = vadd.f32 %v5874_v33, %v7345_v12  ;;  %v6355_v37 = vpop.eup %6354  ;;  %v4073_v4 = vadd.f32 1.0, %v6353_v47  ;;  %v4848_v1 = vmul.f32 -1.442695, %v7530_v21 }
 0x239   : > { %6370 = vpow2.f32 %v4844_v46  ;;  %v7547_v31 = vadd.f32 %v5875_v3, %v7345_v12  ;;  %v4071_v34 = vadd.f32 1.0, %v6355_v37  ;;  %v5618_v5 = vpop.f32.mrb[32].mxu1 }
 0x23a   : > { %6372 = vpow2.f32 %v4847_v39  ;;  %v4851_v26 = vmul.f32 -1.442695, %v7540_v59  ;;  %v5876_v22 = vadd.f32 %v5826_v55, %v5618_v5  ;;  %v2238_v7 = vpop.f32.mrb[33].mxu1  ;;  %v4977_v55 = vunpack.c.h.bf16 %v7537_v30 }
 0x23b   : > { %6374 = vrcp.f32 %v4073_v4  ;;  %v4849_v16 = vmul.f32 -1.442695, %v7547_v31  ;;  %v5877_v18 = vadd.f32 %v3848_v35, %v2238_v7  ;;  %v5619_v36 = vpop.f32.mrb[34].mxu1 }
 0x23c   : > { %v6357_v13 = vpop.eup %6356  ;;  %6376 = vrcp.f32 %v4071_v34  ;;  %v7560_v41 = vadd.f32 %v5876_v22, %v7345_v12  ;;  %v5878_v6 = vadd.f32 %v5827_v14, %v5619_v36  ;;  %v2241_v8 = vpop.f32.mrb[35].mxu1 }
 0x23d   : > { %v6359_v62 = vpop.eup %6358  ;;  %v4176_v61 = vmul.f32 %v6357_v13, %v7454_v45  ;;  %6378 = vpow2.f32 %v4845_v27  ;;  %v7565_v45 = vadd.f32 %v5877_v18, %v7345_v12  ;;  %v5879_v3 = vadd.f32 %v7532_v0, %v2241_v8 }
 0x23e   : > { %v6361_v15 = vpop.eup %6360  ;;  %v4174_v42 = vmul.f32 %v6359_v62, %v7457_v56  ;;  %6380 = vpow2.f32 %v4850_v11  ;;  %v4854_v56 = vmul.f32 -1.442695, %v7560_v41  ;;  %v7571_v33 = vadd.f32 %v5878_v6, %v7345_v12 }
 0x23f   : > { %v6363_v46 = vpop.eup %6362  ;;  %v4177_v51 = vmul.f32 %v6361_v15, %v7460_v49  ;;  %6382 = vpow2.f32 %v4848_v1  ;;  %v4284_v23 = vadd.f32 %v4968_v28, %v4176_v61  ;;  %v4852_v35 = vmul.f32 -1.442695, %v7565_v45 }
 0x240   : > { %v6365_v54 = vpop.eup %6364  ;;  %v4175_v52 = vmul.f32 %v6363_v46, %v7468_v2  ;;  %6384 = vpow2.f32 %v4851_v26  ;;  %v4282_v38 = vadd.f32 %v4964_v60, %v4174_v42  ;;  %v4973_v2 = vunpack.c.h.bf16 %v7543_v25 }
 0x241   : > { %v6367_v58 = vpop.eup %6366  ;;  %v4285_v39 = vadd.f32 %v4969_v24, %v4177_v51  ;;  %v4076_v19 = vadd.f32 1.0, %v6365_v54  ;;  %6386 = vpow2.f32 %v4849_v16  ;;  %v4855_v34 = vmul.f32 -1.442695, %v7571_v33  ;;  %v5103_v54 = vld [vmem:[%s7388_s23 + $0x60] sm:$0xff]  }
 0x242   : > { %v6369_v49 = vpop.eup %6368  ;;  %v4283_v29 = vadd.f32 %v4965_v32, %v4175_v52  ;;  %6388 = vpow2.f32 %v4854_v56  ;;  %v4180_v37 = vmul.f32 %v6367_v58, %v7477_v43  ;;  %v7580_v11 = vadd.f32 %v5879_v3, %v7345_v12 }
 0x243   : > { %v6371_v14 = vpop.eup %6370  ;;  %v5050_v17 = vpack.c.bf16 %v4285_v39, %v4284_v23  ;;  %6390 = vrcp.f32 %v4076_v19  ;;  %v4178_v27 = vmul.f32 %v6369_v49, %v7482_v40  ;;  %v5106_v39 = vld [vmem:[%s7388_s23 + $0x78] sm:$0xff]   ;;  %v5105_v19 = vld [vmem:[%s7388_s23 + $0x70] sm:$0xff]  }
 0x244   : > { %v6373_v47 = vpop.eup %6372  ;;  %v5045_v28 = vpack.c.bf16 %v4283_v29, %v4282_v38  ;;  %v4074_v4 = vadd.f32 1.0, %v6371_v14  ;;  %6392 = vpow2.f32 %v4852_v35  ;;  %v4853_v5 = vmul.f32 -1.442695, %v7580_v11 }
 0x245   : > { %v6375_v60 = vpop.eup %6374  ;;  %5117 = vst [vmem:[%s7436_s26 + $0x48] sm:$0xff] %v5050_v17   ;;  %v4077_v24 = vadd.f32 1.0, %v6373_v47  ;;  %v4288_v40 = vadd.f32 %v4976_v9, %v4180_v37  ;;  %v4286_v7 = vadd.f32 %v4972_v20, %v4178_v27  ;;  %v5104_v20 = vld [vmem:[%s7388_s23 + $0x68] sm:$0xff]   ;;  %v4980_v38 = vunpack.c.l.bf16 %v5103_v54 }
 0x246   : > { %v6377_v32 = vpop.eup %6376  ;;  %5116 = vst [vmem:[%s7436_s26 + $0x40] sm:$0xff] %v5045_v28   ;;  %v4181_v0 = vmul.f32 %v6375_v60, %v7490_v48  ;;  %6394 = vrcp.f32 %v4074_v4  ;;  %v4985_v23 = vunpack.c.h.bf16 %v5104_v20  ;;  %v4981_v29 = vunpack.c.h.bf16 %v5103_v54 }
 0x247   : > { %v6379_v1 = vpop.eup %6378  ;;  %v4179_v43 = vmul.f32 %v6377_v32, %v7493_v53  ;;  %6396 = vrcp.f32 %v4077_v24  ;;  %v4992_v37 = vunpack.c.l.bf16 %v5106_v39  ;;  %v4988_v4 = vunpack.c.l.bf16 %v5105_v19 }
 0x248   : > { %v6381_v13 = vpop.eup %6380  ;;  %v4289_v26 = vadd.f32 %v4977_v55, %v4181_v0  ;;  %v4075_v22 = vadd.f32 1.0, %v6379_v1  ;;  %6398 = vpow2.f32 %v4855_v34  ;;  %v4984_v55 = vunpack.c.l.bf16 %v5104_v20 }
 0x249   : > { %v6383_v12 = vpop.eup %6382  ;;  %v4287_v48 = vadd.f32 %v4973_v2, %v4179_v43  ;;  %v4080_v62 = vadd.f32 1.0, %v6381_v13  ;;  %6400 = vpow2.f32 %v4853_v5  ;;  %v4989_v1 = vunpack.c.h.bf16 %v5105_v19 }
 0x24a   : > { %v6385_v53 = vpop.eup %6384  ;;  %v5060_v61 = vpack.c.bf16 %v4289_v26, %v4288_v40  ;;  %6402 = vrcp.f32 %v4075_v22  ;;  %v4078_v16 = vadd.f32 1.0, %v6383_v12 }
 0x24b   : > { %v6387_v18 = vpop.eup %6386  ;;  %v5055_v30 = vpack.c.bf16 %v4287_v48, %v4286_v7  ;;  %6404 = vrcp.f32 %v4080_v62  ;;  %v4081_v9 = vadd.f32 1.0, %v6385_v53  ;;  %v5108_v7 = vld [vmem:[%s7388_s23 + $0x88] sm:$0xff]   ;;  %v5107_v62 = vld [vmem:[%s7388_s23 + $0x80] sm:$0xff]  }
 0x24c   : > { %v6389_v36 = vpop.eup %6388  ;;  %5119 = vst [vmem:[%s7436_s26 + $0x58] sm:$0xff] %v5060_v61   ;;  %6406 = vrcp.f32 %v4078_v16  ;;  %v4079_v15 = vadd.f32 1.0, %v6387_v18  ;;  %v5000_v16 = vunpack.c.l.bf16 %v5108_v7 }
 0x24d   : > { %v6391_v25 = vpop.eup %6390  ;;  %5118 = vst [vmem:[%s7436_s26 + $0x50] sm:$0xff] %v5055_v30   ;;  %6408 = vrcp.f32 %v4081_v9  ;;  %v4084_v42 = vadd.f32 1.0, %v6389_v36  ;;  %v4996_v30 = vunpack.c.l.bf16 %v5107_v62  ;;  %v4997_v9 = vunpack.c.h.bf16 %v5107_v62 }
 0x24e   : > { %v6393_v6 = vpop.eup %6392  ;;  %6410 = vrcp.f32 %v4079_v15  ;;  %v4184_v51 = vmul.f32 %v6391_v25, %v7503_v44 }
 0x24f   : > { %v4082_v8 = vadd.f32 1.0, %v6393_v6  ;;  %6412 = vrcp.f32 %v4084_v42 }
 0x250   : > { %v6395_v46 = vpop.eup %6394  ;;  %v4292_v2 = vadd.f32 %v4984_v55, %v4184_v51 }
 0x251   : > { %v6397_v52 = vpop.eup %6396  ;;  %6414 = vrcp.f32 %v4082_v8  ;;  %v4182_v49 = vmul.f32 %v6395_v46, %v7507_v57  ;;  %v4993_v57 = vunpack.c.h.bf16 %v5106_v39 }
 0x252   : > { %v6399_v56 = vpop.eup %6398  ;;  %v4185_v58 = vmul.f32 %v6397_v52, %v7511_v63 }
 0x253   : > { %v6401_v35 = vpop.eup %6400  ;;  %v4085_v14 = vadd.f32 1.0, %v6399_v56  ;;  %v4290_v34 = vadd.f32 %v4980_v38, %v4182_v49 }
 0x254   : > { %v6403_v17 = vpop.eup %6402  ;;  %v4293_v44 = vadd.f32 %v4985_v23, %v4185_v58  ;;  %v4083_v3 = vadd.f32 1.0, %v6401_v35 }
 0x255   : > { %v6405_v47 = vpop.eup %6404  ;;  %v4183_v28 = vmul.f32 %v6403_v17, %v7519_v50  ;;  %6416 = vrcp.f32 %v4085_v14 }
 0x256   : > { %v6407_v63 = vpop.eup %6406  ;;  %v5070_v60 = vpack.c.bf16 %v4293_v44, %v4292_v2  ;;  %v4188_v27 = vmul.f32 %v6405_v47, %v7527_v10  ;;  %6418 = vrcp.f32 %v4083_v3 }
 0x257   : > { %v6409_v24 = vpop.eup %6408  ;;  %v4291_v32 = vadd.f32 %v4981_v29, %v4183_v28  ;;  %v4186_v0 = vmul.f32 %v6407_v63, %v7530_v21 }
 0x258   : > { %v6411_v43 = vpop.eup %6410  ;;  %5121 = vst [vmem:[%s7436_s26 + $0x68] sm:$0xff] %v5070_v60   ;;  %v4189_v50 = vmul.f32 %v6409_v24, %v7540_v59  ;;  %v4296_v10 = vadd.f32 %v4992_v37, %v4188_v27  ;;  %v5001_v59 = vunpack.c.h.bf16 %v5108_v7 }
 0x259   : > { %v5065_v5 = vpack.c.bf16 %v4291_v32, %v4290_v34  ;;  %v4187_v13 = vmul.f32 %v6411_v43, %v7547_v31  ;;  %v6413_v26 = vpop.eup %6412  ;;  %v4294_v22 = vadd.f32 %v4988_v4, %v4186_v0 }
 0x25a   : > { %v4297_v40 = vadd.f32 %v4993_v57, %v4189_v50  ;;  %v4192_v61 = vmul.f32 %v6413_v26, %v7560_v41 }
 0x25b   : > { %5120 = vst [vmem:[%s7436_s26 + $0x60] sm:$0xff] %v5065_v5   ;;  %v4295_v12 = vadd.f32 %v4989_v1, %v4187_v13  ;;  %v6415_v48 = vpop.eup %6414 }
 0x25c   : > { %v5080_v21 = vpack.c.bf16 %v4297_v40, %v4296_v10  ;;  %v4190_v18 = vmul.f32 %v6415_v48, %v7565_v45  ;;  %v4300_v20 = vadd.f32 %v5000_v16, %v4192_v61 }
 0x25d   : > { %v5075_v53 = vpack.c.bf16 %v4295_v12, %v4294_v22 }
 0x25e   : > { %5123 = vst [vmem:[%s7436_s26 + $0x78] sm:$0xff] %v5080_v21   ;;  %v4298_v6 = vadd.f32 %v4996_v30, %v4190_v18 }
 0x25f   : > { %v6417_v31 = vpop.eup %6416  ;;  %5122 = vst [vmem:[%s7436_s26 + $0x70] sm:$0xff] %v5075_v53  }
 0x260   : > { %v6419_v36 = vpop.eup %6418  ;;  %v4193_v15 = vmul.f32 %v6417_v31, %v7571_v33 }
 0x261   : > { %v4191_v25 = vmul.f32 %v6419_v36, %v7580_v11 }
 0x262   : > { %v4301_v42 = vadd.f32 %v5001_v59, %v4193_v15 }
 0x263   : > { %v4299_v8 = vadd.f32 %v4997_v9, %v4191_v25 }
 0x264   : > { %v5090_v41 = vpack.c.bf16 %v4301_v42, %v4300_v20 }
 0x265   : > { %v5085_v46 = vpack.c.bf16 %v4299_v8, %v4298_v6 }
 0x266   : > { %5125 = vst [vmem:[%s7436_s26 + $0x88] sm:$0xff] %v5090_v41  }
 0x267   : > { %5124 = vst [vmem:[%s7436_s26 + $0x80] sm:$0xff] %v5085_v46  }
 0x268 PF: > { %s14_s15 = sadd.s32 1, %s6469_s15  }
 0x269   : > { %p11_p4 = scmp.ge.s32.totalorder %s14_s15, 4  }
 0x26b   :  { %13 = sbr.rel (!%p11_p4) target bundleno = 1 (0x1), region = 77 }

// kernel: viewpoint_forward.11
= control target key start
LH: loop header
LB: loop body
LE: loop exit
PB: predicated region body
PF: predicated region fallthrough
CT: control target
= control target key end

     0   :  { %s602_s1 = inlined_call_operand.vmem [shape: bf16[128,128], index: 1, kind: input, shape index: {}]   ;;  %s603_s0 = inlined_call_operand.vmem [shape: bf16[128,128], index: 0, kind: input, shape index: {}]   ;;  %s604_s2 = inlined_call_operand.vmem [shape: f32[1,128], index: 2, kind: input, shape index: {}]   ;;  %s605_s3 = inlined_call_operand.vmem [shape: bf16[128,128], index: 3, kind: output, shape index: {}]  }
   0x1   :  { %v491_v0 = vld [vmem:[%s602_s1] sm:$0xff]   ;;  %v492_v1 = vld [vmem:[%s602_s1 + $0x8] sm:$0xff]   ;;  %v493_v2 = vld [vmem:[%s602_s1 + $0x10] sm:$0xff]  }
   0x2   :  { %443 = vmatprep.subr.bf16.mxu0 %v491_v0  ;;  %475 = vmatprep.subr.bf16.mxu1 %v491_v0  ;;  %v494_v3 = vld [vmem:[%s602_s1 + $0x18] sm:$0xff]   ;;  %v499_v4 = vld [vmem:[%s603_s0] sm:$0xff]   ;;  %v496_v7 = vld [vmem:[%s602_s1 + $0x28] sm:$0xff]  }
   0x3   :  { %444 = vmatpush3.bf16.msra.mxu0 %v491_v0  ;;  %483 = vmatpush3.bf16.msra.mxu1 %v491_v0  ;;  %v500_v5 = vld [vmem:[%s603_s0 + $0x20] sm:$0xff]   ;;  %v497_v8 = vld [vmem:[%s602_s1 + $0x30] sm:$0xff]   ;;  %v498_v9 = vld [vmem:[%s602_s1 + $0x38] sm:$0xff]  }
   0x4   :  { %445 = vmatprep.subr.bf16.mxu0 %v492_v1  ;;  %476 = vmatprep.subr.bf16.mxu1 %v492_v1  ;;  %v495_v6 = vld [vmem:[%s602_s1 + $0x20] sm:$0xff]   ;;  %v501_v10 = vld [vmem:[%s603_s0 + $0x8] sm:$0xff]   ;;  %v503_v12 = vld [vmem:[%s603_s0 + $0x10] sm:$0xff]  }
   0x5   :  { %459 = vmatprep.mubr.bf16.mxu0 %v499_v4  ;;  %467 = vmatprep.mubr.bf16.mxu1 %v500_v5  ;;  %v502_v11 = vld [vmem:[%s603_s0 + $0x28] sm:$0xff]   ;;  %v504_v13 = vld [vmem:[%s603_s0 + $0x30] sm:$0xff]   ;;  %v505_v14 = vld [vmem:[%s603_s0 + $0x18] sm:$0xff]  }
   0x6   :  { %v506_v15 = vld [vmem:[%s603_s0 + $0x38] sm:$0xff]   ;;  %v331_v17 = vld [vmem:[%s604_s2] ss:$0 sm:$0xff] }
   0x7   :  { %446 = vmatpush3.bf16.msra.mxu0 %v492_v1  ;;  %484 = vmatpush3.bf16.msra.mxu1 %v492_v1 }
   0x8   :  { %447 = vmatprep.subr.bf16.mxu0 %v493_v2  ;;  %477 = vmatprep.subr.bf16.mxu1 %v493_v2 }
   0xb   :  { %448 = vmatpush3.bf16.msra.mxu0 %v493_v2  ;;  %485 = vmatpush3.bf16.msra.mxu1 %v493_v2 }
   0xc   :  { %449 = vmatprep.subr.bf16.mxu0 %v494_v3  ;;  %478 = vmatprep.subr.bf16.mxu1 %v494_v3 }
   0xf   :  { %450 = vmatpush3.bf16.msra.mxu0 %v494_v3  ;;  %486 = vmatpush3.bf16.msra.mxu1 %v494_v3 }
  0x10   :  { %451 = vmatprep.subr.bf16.mxu0 %v495_v6  ;;  %479 = vmatprep.subr.bf16.mxu1 %v495_v6 }
  0x13   :  { %452 = vmatpush3.bf16.msra.mxu0 %v495_v6  ;;  %487 = vmatpush3.bf16.msra.mxu1 %v495_v6 }
  0x14   :  { %453 = vmatprep.subr.bf16.mxu0 %v496_v7  ;;  %480 = vmatprep.subr.bf16.mxu1 %v496_v7 }
  0x17   :  { %454 = vmatpush3.bf16.msra.mxu0 %v496_v7  ;;  %488 = vmatpush3.bf16.msra.mxu1 %v496_v7 }
  0x18   :  { %455 = vmatprep.subr.bf16.mxu0 %v497_v8  ;;  %481 = vmatprep.subr.bf16.mxu1 %v497_v8 }
  0x1b   :  { %456 = vmatpush3.bf16.msra.mxu0 %v497_v8  ;;  %489 = vmatpush3.bf16.msra.mxu1 %v497_v8 }
  0x1c   :  { %457 = vmatprep.subr.bf16.mxu0 %v498_v9  ;;  %482 = vmatprep.subr.bf16.mxu1 %v498_v9 }
  0x1f   :  { %458 = vmatpush3.bf16.msra.mxu0 %v498_v9  ;;  %490 = vmatpush3.bf16.msra.mxu1 %v498_v9 }
  0x22   :  { %460 = vmatmul.mubr.bf16.vlgmr.msra.gmra.mrb[0].mxu0 %v501_v10  ;;  %468 = vmatmul.mubr.bf16.vlgmr.msra.gmra.mrb[0].mxu1 %v502_v11 }
  0x23   :  { %463 = vmatprep.mubr.bf16.mxu0 %v503_v12  ;;  %471 = vmatprep.mubr.bf16.mxu1 %v504_v13 }
  0x2a   :  { %464 = vmatmul.mubr.bf16.gmra.mrb[4].mxu0 %v505_v14  ;;  %472 = vmatmul.mubr.bf16.gmra.mrb[4].mxu1 %v506_v15 }
  0xf5   :  { %v461_v16 = vpop.f32.mrb[0].mxu0  ;;  %v469_v18 = vpop.f32.mrb[0].mxu1 }
  0xf6   :  { %v184_v19 = vpop.f32.mrb[1].mxu0  ;;  %v216_v20 = vpop.f32.mrb[1].mxu1  ;;  %v193_v23 = vadd.f32 %v461_v16, %v331_v17  ;;  %v225_v24 = vadd.f32 %v469_v18, %v331_v17 }
  0xf7   :  { %v462_v21 = vpop.f32.mrb[2].mxu0  ;;  %v470_v22 = vpop.f32.mrb[2].mxu1  ;;  %v185_v29 = vadd.f32 %v331_v17, %v184_v19  ;;  %v217_v30 = vadd.f32 %v331_v17, %v216_v20 }
  0xf8   :  { %v196_v25 = vadd.f32 %v462_v21, %v331_v17  ;;  %v228_v26 = vadd.f32 %v470_v22, %v331_v17  ;;  %v187_v27 = vpop.f32.mrb[3].mxu0  ;;  %v219_v28 = vpop.f32.mrb[3].mxu1 }
  0xf9   :  { %v188_v31 = vadd.f32 %v331_v17, %v187_v27  ;;  %v220_v32 = vadd.f32 %v331_v17, %v219_v28 }
  0xfa   :  { %v388_v33 = vpack.c.bf16 %v196_v25, %v193_v23  ;;  %v408_v34 = vpack.c.bf16 %v228_v26, %v225_v24 }
  0xfb   :  { %v383_v35 = vpack.c.bf16 %v188_v31, %v185_v29  ;;  %v403_v36 = vpack.c.bf16 %v220_v32, %v217_v30 }
  0xfc   :  { %420 = vst [vmem:[%s605_s3 + $0x8] sm:$0xff] %v388_v33   ;;  %424 = vst [vmem:[%s605_s3 + $0x28] sm:$0xff] %v408_v34  }
  0xfd   :  { %384 = vst [vmem:[%s605_s3] sm:$0xff] %v383_v35   ;;  %423 = vst [vmem:[%s605_s3 + $0x20] sm:$0xff] %v403_v36   ;;  %v465_v37 = vpop.f32.mrb[4].mxu0  ;;  %v473_v38 = vpop.f32.mrb[4].mxu1 }
  0xfe   :  { %v200_v39 = vpop.f32.mrb[5].mxu0  ;;  %v232_v40 = vpop.f32.mrb[5].mxu1  ;;  %v209_v43 = vadd.f32 %v465_v37, %v331_v17  ;;  %v241_v44 = vadd.f32 %v473_v38, %v331_v17 }
  0xff   :  { %v466_v41 = vpop.f32.mrb[6].mxu0  ;;  %v474_v42 = vpop.f32.mrb[6].mxu1  ;;  %v201_v49 = vadd.f32 %v331_v17, %v200_v39  ;;  %v233_v50 = vadd.f32 %v331_v17, %v232_v40 }
 0x100   :  { %v212_v45 = vadd.f32 %v466_v41, %v331_v17  ;;  %v244_v46 = vadd.f32 %v474_v42, %v331_v17  ;;  %v203_v47 = vpop.f32.mrb[7].mxu0  ;;  %v235_v48 = vpop.f32.mrb[7].mxu1 }
 0x101   :  { %v204_v51 = vadd.f32 %v331_v17, %v203_v47  ;;  %v236_v52 = vadd.f32 %v331_v17, %v235_v48 }
 0x102   :  { %v398_v53 = vpack.c.bf16 %v212_v45, %v209_v43  ;;  %v418_v54 = vpack.c.bf16 %v244_v46, %v241_v44 }
 0x103   :  { %v393_v55 = vpack.c.bf16 %v204_v51, %v201_v49  ;;  %v413_v56 = vpack.c.bf16 %v236_v52, %v233_v50 }
 0x104   :  { %422 = vst [vmem:[%s605_s3 + $0x18] sm:$0xff] %v398_v53   ;;  %426 = vst [vmem:[%s605_s3 + $0x38] sm:$0xff] %v418_v54  }
 0x105   :  { %421 = vst [vmem:[%s605_s3 + $0x10] sm:$0xff] %v393_v55   ;;  %425 = vst [vmem:[%s605_s3 + $0x30] sm:$0xff] %v413_v56  }

// kernel: viewpoint_forward.12
= control target key start
LH: loop header
LB: loop body
LE: loop exit
PB: predicated region body
PF: predicated region fallthrough
CT: control target
= control target key end

     0   :  { %v905_v1 = vmov 0   ;;  %v49_v25 = vlaneseq  ;;  %s1248_s1 = inlined_call_operand.vmem [shape: bf16[128,256], index: 1, kind: input, shape index: {}]   ;;  %s1249_s0 = inlined_call_operand.vmem [shape: bf16[128,128], index: 0, kind: input, shape index: {}]   ;;  %s1250_s2 = inlined_call_operand.vmem [shape: f32[1,256], index: 2, kind: input, shape index: {}]   ;;  %s1251_s3 = inlined_call_operand.vmem [shape: bf16[128,256], index: 3, kind: output, shape index: {}]  }
   0x1   :  { %v745_v0 = vld [vmem:[%s1248_s1 + $0x4] ss:$8 sps:$4 sm:$0xff]   ;;  %219 = vmatprep.mubr.bf16.mxu0 %v905_v1  ;;  %259 = vmatprep.mubr.bf16.mxu1 %v905_v1  ;;  %v747_v2 = vld [vmem:[%s1248_s1] ss:$8 sps:$4 sm:$0xff]   ;;  %v748_v3 = vld [vmem:[%s1248_s1 + $0x14] ss:$8 sps:$4 sm:$0xff]  }
   0x2   :  { %187 = vmatprep.subr.bf16.mxu0 %v745_v0  ;;  %728 = vmatprep.subr.bf16.mxu1 %v745_v0  ;;  %v750_v4 = vld [vmem:[%s1248_s1 + $0x10] ss:$8 sps:$4 sm:$0xff]   ;;  %v751_v5 = vld [vmem:[%s1248_s1 + $0x24] ss:$8 sps:$4 sm:$0xff]   ;;  %v753_v6 = vld [vmem:[%s1248_s1 + $0x20] ss:$8 sps:$4 sm:$0xff]  }
   0x3   :  { %188 = vmatpush1.bf16.msra.mxu0 %v747_v2  ;;  %736 = vmatpush1.bf16.msra.mxu1 %v747_v2  ;;  %v754_v7 = vld [vmem:[%s1248_s1 + $0x34] ss:$8 sps:$4 sm:$0xff]   ;;  %v756_v8 = vld [vmem:[%s1248_s1 + $0x30] ss:$8 sps:$4 sm:$0xff]   ;;  %v757_v9 = vld [vmem:[%s1248_s1 + $0x44] ss:$8 sps:$4 sm:$0xff]  }
   0x4   :  { %189 = vmatprep.subr.bf16.mxu0 %v748_v3  ;;  %729 = vmatprep.subr.bf16.mxu1 %v748_v3  ;;  %v759_v10 = vld [vmem:[%s1248_s1 + $0x40] ss:$8 sps:$4 sm:$0xff]   ;;  %v760_v11 = vld [vmem:[%s1248_s1 + $0x54] ss:$8 sps:$4 sm:$0xff]   ;;  %v762_v12 = vld [vmem:[%s1248_s1 + $0x50] ss:$8 sps:$4 sm:$0xff]  }
   0x5   :  { %v763_v13 = vld [vmem:[%s1248_s1 + $0x64] ss:$8 sps:$4 sm:$0xff]   ;;  %v765_v14 = vld [vmem:[%s1248_s1 + $0x60] ss:$8 sps:$4 sm:$0xff]   ;;  %v766_v15 = vld [vmem:[%s1248_s1 + $0x74] ss:$8 sps:$4 sm:$0xff]  }
   0x6   :  { %v768_v16 = vld [vmem:[%s1248_s1 + $0x70] ss:$8 sps:$4 sm:$0xff]   ;;  %v769_v17 = vld [vmem:[%s1249_s0] sm:$0xff]   ;;  %v771_v19 = vld [vmem:[%s1249_s0 + $0x8] sm:$0xff]   ;;  %v50_v26 = vshrl.u32 %v49_v25, 7 }
   0x7   :  { %190 = vmatpush1.bf16.msra.mxu0 %v750_v4  ;;  %737 = vmatpush1.bf16.msra.mxu1 %v750_v4  ;;  %v770_v18 = vld [vmem:[%s1249_s0 + $0x20] sm:$0xff]   ;;  %v772_v20 = vld [vmem:[%s1249_s0 + $0x28] sm:$0xff]   ;;  %v773_v21 = vld [vmem:[%s1249_s0 + $0x10] sm:$0xff]  }
   0x8   :  { %191 = vmatprep.subr.bf16.mxu0 %v751_v5  ;;  %730 = vmatprep.subr.bf16.mxu1 %v751_v5  ;;  %v774_v22 = vld [vmem:[%s1249_s0 + $0x30] sm:$0xff]   ;;  %v775_v23 = vld [vmem:[%s1249_s0 + $0x18] sm:$0xff]   ;;  %v51_v27 = vsub.s32 0, %v50_v26  ;;  %v47_v28 = vld [vmem:[%s1250_s2] sm:$0x3]  ;;  %v55_v29 = vsub.s32 1, %v50_v26 }
   0x9   :  { %v776_v24 = vld [vmem:[%s1249_s0 + $0x38] sm:$0xff]  }
   0xa   :  { %v1009_v30 = vrot.slane %v47_v28, %v51_v27  ;;  %v1011_v31 = vrot.slane %v47_v28, %v55_v29 }
   0xb   :  { %192 = vmatpush1.bf16.msra.mxu0 %v753_v6  ;;  %738 = vmatpush1.bf16.msra.mxu1 %v753_v6 }
   0xc   :  { %193 = vmatprep.subr.bf16.mxu0 %v754_v7  ;;  %731 = vmatprep.subr.bf16.mxu1 %v754_v7 }
   0xf   :  { %194 = vmatpush1.bf16.msra.mxu0 %v756_v8  ;;  %739 = vmatpush1.bf16.msra.mxu1 %v756_v8 }
  0x10   :  { %195 = vmatprep.subr.bf16.mxu0 %v757_v9  ;;  %732 = vmatprep.subr.bf16.mxu1 %v757_v9 }
  0x13   :  { %196 = vmatpush1.bf16.msra.mxu0 %v759_v10  ;;  %740 = vmatpush1.bf16.msra.mxu1 %v759_v10 }
  0x14   :  { %197 = vmatprep.subr.bf16.mxu0 %v760_v11  ;;  %733 = vmatprep.subr.bf16.mxu1 %v760_v11 }
  0x17   :  { %198 = vmatpush1.bf16.msra.mxu0 %v762_v12  ;;  %741 = vmatpush1.bf16.msra.mxu1 %v762_v12 }
  0x18   :  { %199 = vmatprep.subr.bf16.mxu0 %v763_v13  ;;  %734 = vmatprep.subr.bf16.mxu1 %v763_v13 }
  0x1b   :  { %200 = vmatpush1.bf16.msra.mxu0 %v765_v14  ;;  %742 = vmatpush1.bf16.msra.mxu1 %v765_v14 }
  0x1c   :  { %201 = vmatprep.subr.bf16.mxu0 %v766_v15  ;;  %735 = vmatprep.subr.bf16.mxu1 %v766_v15 }
  0x1f   :  { %202 = vmatpush1.bf16.msra.mxu0 %v768_v16  ;;  %743 = vmatpush1.bf16.msra.mxu1 %v768_v16 }
  0x22   :  { %220 = vmatmul.mubr.bf16.vlgmr.msra.gmra.mrb[0].mxu0 %v769_v17  ;;  %260 = vmatmul.mubr.bf16.vlgmr.msra.gmra.mrb[0].mxu1 %v770_v18 }
  0x23   :  { %229 = vmatprep.mubr.bf16.mxu0 %v905_v1  ;;  %269 = vmatprep.mubr.bf16.mxu1 %v905_v1 }
  0x2a   :  { %230 = vmatmul.mubr.bf16.gmra.mrb[4].mxu0 %v771_v19  ;;  %270 = vmatmul.mubr.bf16.gmra.mrb[4].mxu1 %v772_v20 }
  0x2b   :  { %239 = vmatprep.mubr.bf16.mxu0 %v905_v1  ;;  %279 = vmatprep.mubr.bf16.mxu1 %v905_v1 }
  0x32   :  { %240 = vmatmul.mubr.bf16.gmra.mrb[8].mxu0 %v773_v21  ;;  %280 = vmatmul.mubr.bf16.gmra.mrb[8].mxu1 %v774_v22 }
  0x33   :  { %249 = vmatprep.mubr.bf16.mxu0 %v905_v1  ;;  %289 = vmatprep.mubr.bf16.mxu1 %v905_v1 }
  0x3a   :  { %250 = vmatmul.mubr.bf16.gmra.mrb[12].mxu0 %v775_v23  ;;  %290 = vmatmul.mubr.bf16.gmra.mrb[12].mxu1 %v776_v24 }
  0xf5   :  { %v221_v32 = vpop.f32.mrb[0].mxu0  ;;  %v261_v33 = vpop.f32.mrb[0].mxu1 }
  0xf6   :  { %v1014_v34 = vadd.f32 %v221_v32, %v1009_v30  ;;  %v1017_v35 = vadd.f32 %v261_v33, %v1009_v30  ;;  %v223_v36 = vpop.f32.mrb[1].mxu0  ;;  %v263_v37 = vpop.f32.mrb[1].mxu1 }
  0xf7   :  { %v1020_v38 = vadd.f32 %v223_v36, %v1011_v31  ;;  %v1023_v39 = vadd.f32 %v263_v37, %v1011_v31  ;;  %v225_v40 = vpop.f32.mrb[2].mxu0  ;;  %v265_v41 = vpop.f32.mrb[2].mxu1 }
  0xf8   :  { %v664_v42 = vmul.f32 -1.442695, %v1014_v34  ;;  %v680_v43 = vmul.f32 -1.442695, %v1017_v35  ;;  %v1028_v44 = vadd.f32 %v225_v40, %v1009_v30  ;;  %v1031_v45 = vadd.f32 %v265_v41, %v1009_v30  ;;  %v227_v46 = vpop.f32.mrb[3].mxu0  ;;  %v267_v47 = vpop.f32.mrb[3].mxu1 }
  0xf9   :  { %v665_v48 = vmul.f32 -1.442695, %v1020_v38  ;;  %v681_v49 = vmul.f32 -1.442695, %v1023_v39  ;;  %v1036_v50 = vadd.f32 %v227_v46, %v1011_v31  ;;  %v1039_v51 = vadd.f32 %v267_v47, %v1011_v31 }
  0xfa   :  { %777 = vpow2.f32 %v664_v42  ;;  %v666_v52 = vmul.f32 -1.442695, %v1028_v44  ;;  %v682_v53 = vmul.f32 -1.442695, %v1031_v45 }
  0xfb   :  { %779 = vpow2.f32 %v680_v43  ;;  %v667_v54 = vmul.f32 -1.442695, %v1036_v50  ;;  %v683_v55 = vmul.f32 -1.442695, %v1039_v51 }
  0xfc   :  { %781 = vpow2.f32 %v665_v48 }
  0xfd   :  { %783 = vpow2.f32 %v681_v49  ;;  %v231_v56 = vpop.f32.mrb[4].mxu0  ;;  %v271_v57 = vpop.f32.mrb[4].mxu1 }
  0xfe   :  { %785 = vpow2.f32 %v666_v52  ;;  %v1046_v58 = vadd.f32 %v231_v56, %v1009_v30  ;;  %v1049_v59 = vadd.f32 %v271_v57, %v1009_v30  ;;  %v233_v60 = vpop.f32.mrb[5].mxu0  ;;  %v273_v61 = vpop.f32.mrb[5].mxu1 }
  0xff   :  { %787 = vpow2.f32 %v682_v53  ;;  %v1052_v62 = vadd.f32 %v233_v60, %v1011_v31  ;;  %v1055_v63 = vadd.f32 %v273_v61, %v1011_v31  ;;  %v235_v0 = vpop.f32.mrb[6].mxu0  ;;  %v275_v1 = vpop.f32.mrb[6].mxu1 }
 0x100   :  { %789 = vpow2.f32 %v667_v54  ;;  %v668_v2 = vmul.f32 -1.442695, %v1046_v58  ;;  %v684_v3 = vmul.f32 -1.442695, %v1049_v59  ;;  %v1060_v4 = vadd.f32 %v235_v0, %v1009_v30  ;;  %v237_v5 = vpop.f32.mrb[7].mxu0  ;;  %v277_v6 = vpop.f32.mrb[7].mxu1 }
 0x101   :  { %791 = vpow2.f32 %v683_v55  ;;  %v669_v7 = vmul.f32 -1.442695, %v1052_v62  ;;  %v685_v8 = vmul.f32 -1.442695, %v1055_v63  ;;  %v1072_v41 = vadd.f32 %v275_v1, %v1009_v30 }
 0x102   :  { %793 = vpow2.f32 %v668_v2  ;;  %v670_v9 = vmul.f32 -1.442695, %v1060_v4  ;;  %v1075_v46 = vadd.f32 %v237_v5, %v1011_v31  ;;  %v1078_v47 = vadd.f32 %v277_v6, %v1011_v31 }
 0x103   :  { %795 = vpow2.f32 %v684_v3  ;;  %v686_v5 = vmul.f32 -1.442695, %v1072_v41 }
 0x104   :  { %v778_v10 = vpop.eup %777  ;;  %797 = vpow2.f32 %v669_v7 }
 0x105   :  { %v780_v11 = vpop.eup %779  ;;  %v396_v12 = vadd.f32 1.0, %v778_v10  ;;  %799 = vpow2.f32 %v685_v8  ;;  %v241_v13 = vpop.f32.mrb[8].mxu0 }
 0x106   :  { %v281_v14 = vpop.f32.mrb[8].mxu1  ;;  %v782_v15 = vpop.eup %781  ;;  %v412_v16 = vadd.f32 1.0, %v780_v11  ;;  %801 = vpow2.f32 %v670_v9  ;;  %v1081_v53 = vadd.f32 %v241_v13, %v1009_v30  ;;  %v671_v11 = vmul.f32 -1.442695, %v1075_v46 }
 0x107   :  { %v243_v17 = vpop.f32.mrb[9].mxu0  ;;  %v283_v18 = vpop.f32.mrb[9].mxu1  ;;  %803 = vrcp.f32 %v396_v12  ;;  %v397_v20 = vadd.f32 1.0, %v782_v15  ;;  %v1086_v60 = vadd.f32 %v281_v14, %v1009_v30  ;;  %v687_v12 = vmul.f32 -1.442695, %v1078_v47 }
 0x108   :  { %v784_v19 = vpop.eup %783  ;;  %v245_v21 = vpop.f32.mrb[10].mxu0  ;;  %805 = vrcp.f32 %v412_v16  ;;  %v1089_v61 = vadd.f32 %v243_v17, %v1011_v31  ;;  %v1097_v6 = vadd.f32 %v283_v18, %v1011_v31  ;;  %v672_v16 = vmul.f32 -1.442695, %v1081_v53 }
 0x109   :  { %v1065_v22 = vpop.f32.mrb[10].mxu1  ;;  %v786_v23 = vpop.eup %785  ;;  %v413_v24 = vadd.f32 1.0, %v784_v19  ;;  %807 = vrcp.f32 %v397_v20  ;;  %v1110_v17 = vadd.f32 %v245_v21, %v1009_v30  ;;  %v688_v20 = vmul.f32 -1.442695, %v1086_v60 }
 0x10a   :  { %v1067_v25 = vpop.f32.mrb[11].mxu0  ;;  %v788_v26 = vpop.eup %787  ;;  %v398_v27 = vadd.f32 1.0, %v786_v23  ;;  %v673_v23 = vmul.f32 -1.442695, %v1089_v61 }
 0x10b   :  { %v1069_v28 = vpop.f32.mrb[11].mxu1  ;;  %v790_v29 = vpop.eup %789  ;;  %809 = vrcp.f32 %v413_v24  ;;  %v414_v32 = vadd.f32 1.0, %v788_v26 }
 0x10c   :  { %v792_v33 = vpop.eup %791  ;;  %811 = vrcp.f32 %v398_v27  ;;  %v399_v36 = vadd.f32 1.0, %v790_v29  ;;  %v1119_v27 = vadd.f32 %v1065_v22, %v1009_v30  ;;  %v674_v22 = vmul.f32 -1.442695, %v1110_v17 }
 0x10d   :  { %v794_v37 = vpop.eup %793  ;;  %813 = vrcp.f32 %v414_v32  ;;  %v415_v40 = vadd.f32 1.0, %v792_v33  ;;  %v251_v48 = vpop.f32.mrb[12].mxu0  ;;  %v1128_v32 = vadd.f32 %v1069_v28, %v1011_v31 }
 0x10e   :  { %v796_v42 = vpop.eup %795  ;;  %815 = vrcp.f32 %v399_v36  ;;  %v400_v43 = vadd.f32 1.0, %v794_v37  ;;  %v291_v54 = vpop.f32.mrb[12].mxu1 }
 0x10f   :  { %v798_v49 = vpop.eup %797  ;;  %817 = vrcp.f32 %v415_v40  ;;  %v416_v52 = vadd.f32 1.0, %v796_v42  ;;  %v1083_v55 = vpop.f32.mrb[13].mxu0  ;;  %v1134_v42 = vadd.f32 %v251_v48, %v1009_v30 }
 0x110   :  { %v800_v56 = vpop.eup %799  ;;  %819 = vrcp.f32 %v400_v43  ;;  %v401_v57 = vadd.f32 1.0, %v798_v49  ;;  %v1091_v0 = vpop.f32.mrb[13].mxu1  ;;  %v1142_v43 = vadd.f32 %v291_v54, %v1009_v30 }
 0x111   :  { %v1093_v1 = vpop.f32.mrb[14].mxu0  ;;  %v802_v2 = vpop.eup %801  ;;  %821 = vrcp.f32 %v416_v52  ;;  %v417_v3 = vadd.f32 1.0, %v800_v56 }
 0x112   :  { %v1099_v7 = vpop.f32.mrb[14].mxu1  ;;  %v1101_v8 = vpop.f32.mrb[15].mxu0  ;;  %823 = vrcp.f32 %v401_v57  ;;  %v402_v10 = vadd.f32 1.0, %v802_v2  ;;  %v691_v57 = vmul.f32 -1.442695, %v1128_v32 }
 0x113   :  { %v804_v9 = vpop.eup %803  ;;  %v1105_v13 = vpop.f32.mrb[15].mxu1  ;;  %825 = vrcp.f32 %v417_v3 }
 0x114   :  { %v806_v14 = vpop.eup %805  ;;  %v492_v15 = vmul.f32 %v804_v9, %v1014_v34  ;;  %827 = vrcp.f32 %v402_v10  ;;  %v689_v34 = vmul.f32 -1.442695, %v1097_v6 }
 0x115   :  { %v808_v18 = vpop.eup %807  ;;  %v508_v19 = vmul.f32 %v806_v14, %v1017_v35  ;;  %829 = vpow2.f32 %v686_v5  ;;  %v1124_v35 = vadd.f32 %v1067_v25, %v1011_v31  ;;  %v676_v5 = vmul.f32 -1.442695, %v1134_v42 }
 0x116   :  { %v810_v24 = vpop.eup %809  ;;  %v493_v26 = vmul.f32 %v808_v18, %v1020_v38  ;;  %831 = vpow2.f32 %v671_v11 }
 0x117   :  { %v812_v21 = vpop.eup %811  ;;  %v509_v29 = vmul.f32 %v810_v24, %v1023_v39  ;;  %833 = vpow2.f32 %v687_v12  ;;  %v675_v48 = vmul.f32 -1.442695, %v1124_v35 }
 0x118   :  { %v814_v38 = vpop.eup %813  ;;  %v712_v33 = vpack.c.bf16 %v493_v26, %v492_v15  ;;  %v494_v36 = vmul.f32 %v812_v21, %v1028_v44  ;;  %835 = vpow2.f32 %v672_v16  ;;  %v690_v44 = vmul.f32 -1.442695, %v1119_v27 }
 0x119   :  { %v816_v37 = vpop.eup %815  ;;  %v720_v40 = vpack.c.bf16 %v509_v29, %v508_v19  ;;  %v510_v39 = vmul.f32 %v814_v38, %v1031_v45  ;;  %837 = vpow2.f32 %v688_v20 }
 0x11a   :  { %v818_v25 = vpop.eup %817  ;;  %620 = vst [vmem:[%s1251_s3] sm:$0xff] %v712_v33  ;;  %v495_v28 = vmul.f32 %v816_v37, %v1036_v50  ;;  %839 = vpow2.f32 %v673_v23 }
 0x11b   :  { %v820_v49 = vpop.eup %819  ;;  %628 = vst [vmem:[%s1251_s3 + $0x40] sm:$0xff] %v720_v40  ;;  %v511_v45 = vmul.f32 %v818_v25, %v1039_v51  ;;  %841 = vpow2.f32 %v689_v34 }
 0x11c   :  { %v822_v52 = vpop.eup %821  ;;  %v713_v56 = vpack.c.bf16 %v495_v28, %v494_v36  ;;  %v496_v50 = vmul.f32 %v820_v49, %v1046_v58  ;;  %843 = vpow2.f32 %v674_v22  ;;  %v692_v58 = vmul.f32 -1.442695, %v1142_v43 }
 0x11d   :  { %v824_v2 = vpop.eup %823  ;;  %v721_v54 = vpack.c.bf16 %v511_v45, %v510_v39  ;;  %v512_v3 = vmul.f32 %v822_v52, %v1049_v59  ;;  %845 = vpow2.f32 %v690_v44  ;;  %v1170_v22 = vadd.f32 %v1083_v55, %v1011_v31 }
 0x11e   :  { %v826_v9 = vpop.eup %825  ;;  %621 = vst [vmem:[%s1251_s3 + $0x8] sm:$0xff] %v713_v56  ;;  %v497_v51 = vmul.f32 %v824_v2, %v1052_v62  ;;  %847 = vpow2.f32 %v675_v48  ;;  %v1174_v39 = vadd.f32 %v1091_v0, %v1011_v31  ;;  %v1178_v44 = vadd.f32 %v1093_v1, %v1009_v30 }
 0x11f   :  { %v828_v10 = vpop.eup %827  ;;  %629 = vst [vmem:[%s1251_s3 + $0x48] sm:$0xff] %v721_v54  ;;  %v513_v59 = vmul.f32 %v826_v9, %v1055_v63  ;;  %849 = vpow2.f32 %v691_v57  ;;  %v1182_v55 = vadd.f32 %v1099_v7, %v1009_v30  ;;  %v677_v52 = vmul.f32 -1.442695, %v1170_v22 }
 0x120   :  { %v830_v11 = vpop.eup %829  ;;  %v714_v12 = vpack.c.bf16 %v497_v51, %v496_v50  ;;  %851 = vpow2.f32 %v676_v5  ;;  %v1187_v0 = vadd.f32 %v1101_v8, %v1011_v31  ;;  %v498_v50 = vmul.f32 %v828_v10, %v1060_v4 }
 0x121   :  { %v832_v14 = vpop.eup %831  ;;  %v722_v15 = vpack.c.bf16 %v513_v59, %v512_v3  ;;  %v418_v16 = vadd.f32 1.0, %v830_v11  ;;  %853 = vpow2.f32 %v692_v58  ;;  %v693_v1 = vmul.f32 -1.442695, %v1174_v39 }
 0x122   :  { %v834_v18 = vpop.eup %833  ;;  %622 = vst [vmem:[%s1251_s3 + $0x10] sm:$0xff] %v714_v12  ;;  %v403_v62 = vadd.f32 1.0, %v832_v14  ;;  %v1193_v57 = vadd.f32 %v1105_v13, %v1011_v31  ;;  %v678_v2 = vmul.f32 -1.442695, %v1178_v44  ;;  %v694_v8 = vmul.f32 -1.442695, %v1182_v55 }
 0x123   :  { %v836_v19 = vpop.eup %835  ;;  %630 = vst [vmem:[%s1251_s3 + $0x50] sm:$0xff] %v722_v15  ;;  %855 = vrcp.f32 %v418_v16  ;;  %v419_v63 = vadd.f32 1.0, %v834_v18  ;;  %v679_v9 = vmul.f32 -1.442695, %v1187_v0 }
 0x124   :  { %v838_v20 = vpop.eup %837  ;;  %857 = vrcp.f32 %v403_v62  ;;  %v404_v23 = vadd.f32 1.0, %v836_v19 }
 0x125   :  { %v840_v24 = vpop.eup %839  ;;  %859 = vrcp.f32 %v419_v63  ;;  %v420_v26 = vadd.f32 1.0, %v838_v20 }
 0x126   :  { %v842_v34 = vpop.eup %841  ;;  %861 = vrcp.f32 %v404_v23  ;;  %v405_v21 = vadd.f32 1.0, %v840_v24 }
 0x127   :  { %v844_v29 = vpop.eup %843  ;;  %863 = vrcp.f32 %v420_v26  ;;  %v421_v38 = vadd.f32 1.0, %v842_v34 }
 0x128   :  { %v846_v33 = vpop.eup %845  ;;  %865 = vrcp.f32 %v405_v21  ;;  %v406_v36 = vadd.f32 1.0, %v844_v29 }
 0x129   :  { %v848_v37 = vpop.eup %847  ;;  %867 = vrcp.f32 %v421_v38  ;;  %v422_v40 = vadd.f32 1.0, %v846_v33 }
 0x12a   :  { %v850_v25 = vpop.eup %849  ;;  %869 = vrcp.f32 %v406_v36  ;;  %v407_v28 = vadd.f32 1.0, %v848_v37 }
 0x12b   :  { %v852_v49 = vpop.eup %851  ;;  %871 = vrcp.f32 %v422_v40  ;;  %v423_v45 = vadd.f32 1.0, %v850_v25 }
 0x12c   :  { %v854_v48 = vpop.eup %853  ;;  %873 = vrcp.f32 %v407_v28  ;;  %v408_v15 = vadd.f32 1.0, %v852_v49 }
 0x12d   :  { %v856_v56 = vpop.eup %855  ;;  %875 = vrcp.f32 %v423_v45 }
 0x12e   :  { %v858_v30 = vpop.eup %857  ;;  %v514_v7 = vmul.f32 %v856_v56, %v1072_v41  ;;  %877 = vpow2.f32 %v677_v52  ;;  %v695_v41 = vmul.f32 -1.442695, %v1193_v57 }
 0x12f   :  { %v860_v54 = vpop.eup %859  ;;  %v499_v3 = vmul.f32 %v858_v30, %v1075_v46  ;;  %879 = vpow2.f32 %v693_v1 }
 0x130   :  { %v862_v5 = vpop.eup %861  ;;  %v515_v4 = vmul.f32 %v860_v54, %v1078_v47  ;;  %881 = vpow2.f32 %v678_v2 }
 0x131   :  { %v864_v51 = vpop.eup %863  ;;  %v715_v58 = vpack.c.bf16 %v499_v3, %v498_v50  ;;  %v500_v31 = vmul.f32 %v862_v5, %v1081_v53  ;;  %883 = vpow2.f32 %v694_v8 }
 0x132   :  { %v866_v13 = vpop.eup %865  ;;  %v723_v10 = vpack.c.bf16 %v515_v4, %v514_v7  ;;  %v516_v59 = vmul.f32 %v864_v51, %v1086_v60  ;;  %885 = vpow2.f32 %v679_v9 }
 0x133   :  { %v868_v46 = vpop.eup %867  ;;  %623 = vst [vmem:[%s1251_s3 + $0x18] sm:$0xff] %v715_v58  ;;  %v501_v47 = vmul.f32 %v866_v13, %v1089_v61  ;;  %887 = vpow2.f32 %v695_v41  ;;  %v424_v61 = vadd.f32 1.0, %v854_v48 }
 0x134   :  { %v870_v11 = vpop.eup %869  ;;  %631 = vst [vmem:[%s1251_s3 + $0x58] sm:$0xff] %v723_v10  ;;  %v517_v53 = vmul.f32 %v868_v46, %v1097_v6  ;;  %889 = vrcp.f32 %v408_v15 }
 0x135   :  { %v872_v12 = vpop.eup %871  ;;  %v716_v14 = vpack.c.bf16 %v501_v47, %v500_v31  ;;  %v502_v60 = vmul.f32 %v870_v11, %v1110_v17  ;;  %891 = vrcp.f32 %v424_v61 }
 0x136   :  { %v874_v16 = vpop.eup %873  ;;  %v724_v18 = vpack.c.bf16 %v517_v53, %v516_v59  ;;  %v518_v62 = vmul.f32 %v872_v12, %v1119_v27 }
 0x137   :  { %v876_v19 = vpop.eup %875  ;;  %624 = vst [vmem:[%s1251_s3 + $0x20] sm:$0xff] %v716_v14  ;;  %v503_v63 = vmul.f32 %v874_v16, %v1124_v35 }
 0x138   :  { %632 = vst [vmem:[%s1251_s3 + $0x60] sm:$0xff] %v724_v18  ;;  %v519_v6 = vmul.f32 %v876_v19, %v1128_v32  ;;  %v878_v20 = vpop.eup %877 }
 0x139   :  { %v717_v17 = vpack.c.bf16 %v503_v63, %v502_v60  ;;  %v880_v27 = vpop.eup %879  ;;  %v409_v24 = vadd.f32 1.0, %v878_v20 }
 0x13a   :  { %v725_v23 = vpack.c.bf16 %v519_v6, %v518_v62  ;;  %v882_v26 = vpop.eup %881  ;;  %v425_v35 = vadd.f32 1.0, %v880_v27 }
 0x13b   :  { %625 = vst [vmem:[%s1251_s3 + $0x28] sm:$0xff] %v717_v17  ;;  %v884_v34 = vpop.eup %883  ;;  %893 = vrcp.f32 %v409_v24  ;;  %v410_v32 = vadd.f32 1.0, %v882_v26 }
 0x13c   :  { %633 = vst [vmem:[%s1251_s3 + $0x68] sm:$0xff] %v725_v23  ;;  %v886_v21 = vpop.eup %885  ;;  %895 = vrcp.f32 %v425_v35  ;;  %v426_v29 = vadd.f32 1.0, %v884_v34 }
 0x13d   :  { %v888_v38 = vpop.eup %887  ;;  %897 = vrcp.f32 %v410_v32  ;;  %v411_v33 = vadd.f32 1.0, %v886_v21 }
 0x13e   :  { %899 = vrcp.f32 %v426_v29  ;;  %v427_v36 = vadd.f32 1.0, %v888_v38  ;;  %v890_v37 = vpop.eup %889 }
 0x13f   :  { %901 = vrcp.f32 %v411_v33  ;;  %v892_v40 = vpop.eup %891  ;;  %v504_v25 = vmul.f32 %v890_v37, %v1134_v42 }
 0x140   :  { %903 = vrcp.f32 %v427_v36  ;;  %v520_v49 = vmul.f32 %v892_v40, %v1142_v43 }
 0x145   :  { %v894_v28 = vpop.eup %893 }
 0x146   :  { %v896_v45 = vpop.eup %895  ;;  %v505_v48 = vmul.f32 %v894_v28, %v1170_v22 }
 0x147   :  { %v898_v52 = vpop.eup %897  ;;  %v521_v56 = vmul.f32 %v896_v45, %v1174_v39 }
 0x148   :  { %v900_v50 = vpop.eup %899  ;;  %v718_v1 = vpack.c.bf16 %v505_v48, %v504_v25  ;;  %v506_v30 = vmul.f32 %v898_v52, %v1178_v44 }
 0x149   :  { %v902_v7 = vpop.eup %901  ;;  %v726_v2 = vpack.c.bf16 %v521_v56, %v520_v49  ;;  %v522_v54 = vmul.f32 %v900_v50, %v1182_v55 }
 0x14a   :  { %v904_v3 = vpop.eup %903  ;;  %626 = vst [vmem:[%s1251_s3 + $0x30] sm:$0xff] %v718_v1  ;;  %v507_v42 = vmul.f32 %v902_v7, %v1187_v0 }
 0x14b   :  { %634 = vst [vmem:[%s1251_s3 + $0x70] sm:$0xff] %v726_v2  ;;  %v523_v43 = vmul.f32 %v904_v3, %v1193_v57 }
 0x14c   :  { %v719_v22 = vpack.c.bf16 %v507_v42, %v506_v30 }
 0x14d   :  { %v727_v39 = vpack.c.bf16 %v523_v43, %v522_v54 }
 0x14e   :  { %627 = vst [vmem:[%s1251_s3 + $0x38] sm:$0xff] %v719_v22 }
 0x14f   :  { %635 = vst [vmem:[%s1251_s3 + $0x78] sm:$0xff] %v727_v39 }

// kernel: viewpoint_forward.10
= control target key start
LH: loop header
LB: loop body
LE: loop exit
PB: predicated region body
PF: predicated region fallthrough
CT: control target
= control target key end

     0   :  { %s3080_s12 = smov 0   ;;  %s3614_s0 = inlined_call_operand.vmem [shape: bf16[2,90,512], index: 0, kind: input, shape index: {}]   ;;  %s3615_s1 = inlined_call_operand.vmem [shape: bf16[9,128,128], index: 1, kind: input, shape index: {}]   ;;  %s3616_s2 = inlined_call_operand.vmem [shape: f32[1,128], index: 2, kind: input, shape index: {}]   ;;  %s3617_s3 = inlined_call_operand.vmem [shape: bf16[2,72,128], index: 3, kind: output, shape index: {}]  }
   0x1 LB: > { %s2131_s13 = sadd.s32 4294967295, %s3056_s12   ;;  %p2135_p0 = scmp.ge.s32.totalorder %s3056_s12, 1  ;;  %s3056_s12 = sphi %s3080_s12, %s13_s12  }
   0x2   : > { %p137_p1 = scmp.lt.s32.totalorder %s3056_s12, 3 }
   0x4   : > { %p138_p2 = pnand %p2135_p0, %p137_p1 }
   0x5   : > { %v2901_v0 = vld [vmem:[%s3615_s1 + $0x40] sm:$0xff] (!%p138_p2)   ;;  %v3058_v1 = vmov (!%p138_p2), 0.0   ;;  %v2903_v3 = vld [vmem:[%s3615_s1 + $0x48] sm:$0xff] (!%p138_p2)   ;;  %vm3059_vm0 = vmmov (!%p138_p2), 0   ;;  %p161_p3 = scmp.lt.s32.totalorder (!%p138_p2), %s2131_s13, 1  ;;  %v2905_v5 = vld [vmem:[%s3615_s1 + $0x50] sm:$0xff] (!%p138_p2)  }
   0x6   : > { %141 = sbr.rel (%p138_p2) target bundleno = 463 (0x1cf), region = 32  ;;  %2549 = vmatprep.subr.bf16.mxu0 (!%p138_p2), %v3058_v1  ;;  %2585 = vmatprep.subr.bf16.mxu1 (!%p138_p2), %v3058_v1  ;;  %v2902_v2 = vld [vmem:[%s3615_s1] sm:$0xff] (!%p138_p2)   ;;  %v2904_v4 = vld [vmem:[%s3615_s1 + $0x8] sm:$0xff] (!%p138_p2)   ;;  %v2906_v6 = vld [vmem:[%s3615_s1 + $0x10] sm:$0xff] (!%p138_p2)   ;;  %vm571_vm1 = vsmask.f32 (!%p138_p2), 7424 }
   0x7   : > { %2550 = vmatpush3.bf16.msra.mxu0 (!%p138_p2), %v2901_v0  ;;  %2565 = vmatprep.mubr.msk.bf16.mxu0 (!%p138_p2), %vm3059_vm0, %v3058_v1  ;;  %v2907_v7 = vld [vmem:[%s3615_s1 + $0x58] sm:$0xff] (!%p138_p2)   ;;  %v2909_v9 = vld [vmem:[%s3615_s1 + $0x60] sm:$0xff] (!%p138_p2)   ;;  %v2911_v11 = vld [vmem:[%s3615_s1 + $0x68] sm:$0xff] (!%p138_p2)   ;;  %vm1807_vm2 = vcmask (!%p138_p2), 1046528  }
   0x8   : > { %2586 = vmatpush3.bf16.msra.mxu1 (!%p138_p2), %v2902_v2  ;;  %2551 = vmatprep.subr.bf16.mxu0 (!%p138_p2), %v3058_v1  ;;  %v2908_v8 = vld [vmem:[%s3615_s1 + $0x18] sm:$0xff] (!%p138_p2)   ;;  %v2910_v10 = vld [vmem:[%s3615_s1 + $0x20] sm:$0xff] (!%p138_p2)   ;;  %v2912_v12 = vld [vmem:[%s3615_s1 + $0x28] sm:$0xff] (!%p138_p2)  }
   0x9   : > { %2587 = vmatprep.subr.bf16.mxu1 (!%p138_p2), %v3058_v1  ;;  %2601 = vmatprep.mubr.msk.bf16.mxu1 (!%p138_p2), %vm3059_vm0, %v3058_v1  ;;  %v2913_v13 = vld [vmem:[%s3615_s1 + $0x70] sm:$0xff] (!%p138_p2)   ;;  %v2915_v15 = vld [vmem:[%s3615_s1 + $0x78] sm:$0xff] (!%p138_p2)   ;;  %v2919_v19 = vld [vmem:[%s3615_s1 + $0x80] sm:$0xff] (!%p138_p2)  }
   0xa   : > { %v2914_v14 = vld [vmem:[%s3615_s1 + $0x30] sm:$0xff] (!%p138_p2)   ;;  %v2916_v16 = vld [vmem:[%s3615_s1 + $0x38] sm:$0xff] (!%p138_p2)   ;;  %v2923_v20 = vld [vmem:[%s3615_s1 + $0xc0] sm:$0xff] (!%p138_p2)  }
   0xb   : > { %2552 = vmatpush3.bf16.msra.mxu0 (!%p138_p2), %v2903_v3  ;;  %v2920_v21 = vld [vmem:[%s3615_s1 + $0x88] sm:$0xff] (!%p138_p2)   ;;  %v2924_v25 = vld [vmem:[%s3615_s1 + $0x90] sm:$0xff] (!%p138_p2)   ;;  %v2928_v27 = vld [vmem:[%s3615_s1 + $0x98] sm:$0xff] (!%p138_p2)  }
   0xc   : > { %2588 = vmatpush3.bf16.msra.mxu1 (!%p138_p2), %v2904_v4  ;;  %2553 = vmatprep.subr.bf16.mxu0 (!%p138_p2), %v3058_v1  ;;  %v2925_v23 = vld [vmem:[%s3615_s1 + $0xc8] sm:$0xff] (!%p138_p2)   ;;  %v2929_v26 = vld [vmem:[%s3615_s1 + $0xd0] sm:$0xff] (!%p138_p2)   ;;  %v2931_v29 = vld [vmem:[%s3615_s1 + $0xd8] sm:$0xff] (!%p138_p2)  }
   0xd   : > { %s3619_s13 = smov (!%p161_p3, %s2131_s13), 1  ;;  %2589 = vmatprep.subr.bf16.mxu1 %v3058_v1  ;;  %v2930_v31 = vld [vmem:[%s3615_s1 + $0xa0] sm:$0xff]   ;;  %v2935_v33 = vld [vmem:[%s3615_s1 + $0xa8] sm:$0xff]   ;;  %v2937_v38 = vld [vmem:[%s3615_s1 + $0xb0] sm:$0xff]  }
   0xe   : > { %s2889_s30 = smul.u32 192, %s3619_s13  ;;  %v2934_v32 = vld [vmem:[%s3615_s1 + $0xe0] sm:$0xff]   ;;  %v2936_v36 = vld [vmem:[%s3615_s1 + $0xe8] sm:$0xff]   ;;  %v2940_v39 = vld [vmem:[%s3615_s1 + $0xf0] sm:$0xff]  }
   0xf   : > { %2554 = vmatpush3.bf16.msra.mxu0 %v2905_v5  ;;  %v2941_v43 = vld [vmem:[%s3615_s1 + $0xb8] sm:$0xff]   ;;  %v2946_v54 = vld [vmem:[%s3615_s1 + $0x100] sm:$0xff]   ;;  %v2947_v58 = vld [vmem:[%s3615_s1 + $0x108] sm:$0xff]   ;;  %s2890_s18 = smul.u32 36, %s3619_s13 }
  0x10   : > { %2590 = vmatpush3.bf16.msra.mxu1 %v2906_v6  ;;  %2555 = vmatprep.subr.bf16.mxu0 %v3058_v1  ;;  %s3137_s10 = scalar_lea.vmem %s3614_s0, %s2889_s30  ;;  %v2942_v45 = vld [vmem:[%s3615_s1 + $0xf8] sm:$0xff]   ;;  %v2950_v57 = vld [vmem:[%s3615_s1 + $0x140] sm:$0xff]   ;;  %v2952_v62 = vld [vmem:[%s3615_s1 + $0x148] sm:$0xff]  }
  0x11   : > { %2591 = vmatprep.subr.bf16.mxu1 %v3058_v1  ;;  %v2917_v17 = vld [vmem:[%s3137_s10 + $0x4] ss:$16 sps:$4 sm:$0xff]   ;;  %v2918_v18 = vld [vmem:[%s3137_s10] ss:$16 sps:$4 sm:$0xff]   ;;  %v2945_v52 = vld [vmem:[%s3137_s10 + $0x8] ss:$16 sps:$4 sm:$0xff]   ;;  %s170_s21 = scalar_lea.vmem %s3617_s3, %s2890_s18 }
  0x12   : > { %v2921_v22 = vld [vmem:[%s3137_s10 + $0x24] ss:$16 sps:$4 sm:$0xff]   ;;  %v2922_v24 = vld [vmem:[%s3137_s10 + $0x20] ss:$16 sps:$4 sm:$0xff]   ;;  %v2949_v63 = vld [vmem:[%s3137_s10 + $0x28] ss:$16 sps:$4 sm:$0xff]  }
  0x13   : > { %2556 = vmatpush3.bf16.msra.mxu0 %v2907_v7  ;;  %v2926_v28 = vld [vmem:[%s3137_s10 + $0x44] ss:$16 sps:$4 sm:$0xff]   ;;  %v2927_v30 = vld [vmem:[%s3137_s10 + $0x40] ss:$16 sps:$4 sm:$0xff]  }
  0x14   : > { %2592 = vmatpush3.bf16.msra.mxu1 %v2908_v8  ;;  %2557 = vmatprep.subr.bf16.mxu0 %v3058_v1  ;;  %v2932_v34 = vld [vmem:[%s3137_s10 + $0x64] ss:$16 sps:$4 sm:$0xff]   ;;  %v2933_v35 = vld [vmem:[%s3137_s10 + $0x60] ss:$16 sps:$4 sm:$0xff]  }
  0x15   : > { %2593 = vmatprep.subr.bf16.mxu1 %v3058_v1  ;;  %v2943_v37 = vld [vmem:[%s3137_s10] ss:$16 sps:$4 sm:$0xff]   ;;  %v2938_v42 = vld [vmem:[%s3137_s10 + $0x84] ss:$0 sps:$4 sm:$0xff]  }
  0x16   : > { %v2944_v40 = vld [vmem:[%s3137_s10 + $0x20] ss:$16 sps:$4 sm:$0xff]   ;;  %v575_v41 = vshll.u32 %v2943_v37, 16  ;;  %v573_v46 = vshrl.u32 %v2943_v37, 16 }
  0x17   : > { %2558 = vmatpush3.bf16.msra.mxu0 %v2909_v9  ;;  %v2939_v44 = vld [vmem:[%s3137_s10 + $0x80] ss:$0 sps:$4 sm:$0xff]   ;;  %v580_v48 = vshll.u32 %v2944_v40, 16  ;;  %v584_v55 = vshrl.u32 %v2944_v40, 16  ;;  %v2951_v0 = vld [vmem:[%s3615_s1 + $0x110] sm:$0xff]   ;;  %v2955_v9 = vld [vmem:[%s3615_s1 + $0x118] sm:$0xff]  }
  0x18   : > { %2594 = vmatpush3.bf16.msra.mxu1 %v2910_v10  ;;  %2559 = vmatprep.subr.bf16.mxu0 %v3058_v1  ;;  %v577_v47 = vrot.slane %v575_v41, 1  ;;  %v2948_v51 = vld [vmem:[%s3137_s10 + $0x40] ss:$16 sps:$4 sm:$0xff]   ;;  %v2958_v10 = vld [vmem:[%s3615_s1 + $0x158] sm:$0xff]  }
  0x19   : > { %2595 = vmatprep.subr.bf16.mxu1 %v3058_v1  ;;  %v582_v49 = vrot.slane %v580_v48, 1  ;;  %v588_v56 = vshll.u32 %v2948_v51, 16  ;;  %v2953_v61 = vld [vmem:[%s3137_s10 + $0x60] ss:$16 sps:$4 sm:$0xff]   ;;  %v592_v3 = vshrl.u32 %v2948_v51, 16 }
  0x1a   : > { %v578_v50 = vor.u32 %v577_v47, %v573_v46  ;;  %v596_v4 = vshll.u32 %v2953_v61, 16  ;;  %v2956_v5 = vld [vmem:[%s3615_s1 + $0x150] sm:$0xff]   ;;  %v2972_v40 = vld [vmem:[%s3615_s1 + $0x180] sm:$0xff]   ;;  %v2980_v48 = vld [vmem:[%s3137_s10 + $0x68] ss:$16 sps:$4 sm:$0xff]  }
  0x1b   : > { %2560 = vmatpush3.bf16.msra.mxu0 %v2911_v11  ;;  %v586_v59 = vor.u32 %v584_v55, %v582_v49  ;;  %v590_v60 = vrot.slane %v588_v56, 1  ;;  %v2959_v6 = vld [vmem:[%s3137_s10 + $0x80] ss:$16 sps:$4 sm:$0x1f]   ;;  %v2954_v11 = vld [vmem:[%s3137_s10 + $0x48] ss:$16 sps:$4 sm:$0xff]  }
  0x1c   : > { %2596 = vmatpush3.bf16.msra.mxu1 %v2912_v12  ;;  %2561 = vmatprep.subr.bf16.mxu0 %v3058_v1  ;;  %v583_v53 = vsel %vm571_vm1, %v578_v50, %v582_v49  ;;  %v598_v8 = vrot.slane %v596_v4, 1  ;;  %v2978_v49 = vld [vmem:[%s3615_s1 + $0x1c8] sm:$0xff]   ;;  %v2977_v51 = vld [vmem:[%s3615_s1 + $0x190] sm:$0xff]   ;;  %v2981_v56 = vld [vmem:[%s3615_s1 + $0x198] sm:$0xff]  }
  0x1d   : > { %2597 = vmatprep.subr.bf16.mxu1 %v3058_v1  ;;  %v591_v2 = vsel %vm571_vm1, %v586_v59, %v590_v60  ;;  %v594_v7 = vor.u32 %v592_v3, %v590_v60  ;;  %v2974_v50 = vld [vmem:[%s3137_s10 + $0x2c] ss:$16 sps:$4 sm:$0xff]   ;;  %v2982_v55 = vld [vmem:[%s3615_s1 + $0x1d0] sm:$0xff]   ;;  %v2986_v59 = vld [vmem:[%s3137_s10 + $0x88] ss:$16 sps:$4 sm:$0x1f]  }
  0x1e   : > { %v2984_v60 = vld [vmem:[%s3615_s1 + $0x1d8] sm:$0xff]   ;;  %v2987_v3 = vld [vmem:[%s3615_s1 + $0x1e0] sm:$0xff]   ;;  %v2988_v4 = vld [vmem:[%s3615_s1 + $0x1a8] sm:$0xff]  }
  0x1f   : > { %2562 = vmatpush3.bf16.msra.mxu0 %v2913_v13  ;;  %v599_v12 = vsel %vm571_vm1, %v594_v7, %v598_v8  ;;  %v2957_v13 = vld [vmem:[%s3615_s1 + $0x120] sm:$0xff]   ;;  %v1336_v7 = vld [vmem:[%s3137_s10 + $0x10] sm:$0xf] }
  0x20   : > { %2598 = vmatpush3.bf16.msra.mxu1 %v2914_v14  ;;  %2563 = vmatprep.subr.bf16.mxu0 %v3058_v1  ;;  %v600_v14 = vshrl.u32 %v2953_v61, 16  ;;  %v2979_v61 = vld [vmem:[%s3137_s10 + $0x4c] ss:$16 sps:$4 sm:$0xff]  }
  0x21   : > { %2599 = vmatprep.subr.bf16.mxu1 %v3058_v1 }
  0x23   : > { %2564 = vmatpush3.bf16.msra.mxu0 %v2915_v15  ;;  %v604_v15 = vshll.u32 %v2959_v6, 16 }
  0x24   : > { %2600 = vmatpush3.bf16.msra.mxu1 %v2916_v16  ;;  %2621 = vmatprep.subr.bf16.mxu0 %v3058_v1  ;;  %v2961_v16 = vld [vmem:[%s3615_s1 + $0x160] sm:$0xff]  }
  0x25   : > { %2657 = vmatprep.subr.bf16.mxu1 %v3058_v1 }
  0x26   : > { %2566 = vmatmul.mubr.bf16.vlgmr.msra.gmra.mrb[0].mxu0 %v2917_v17  ;;  %v602_v17 = vor.u32 %v600_v14, %v598_v8  ;;  %v3424_v8 = vld [vmem:[%s3137_s10 + $0x20] sm:$0xf]  ;;  %v2997_v14 = vld [vmem:[%s3137_s10 + $0x14] ss:$16 sps:$4 sm:$0xff]  }
  0x27   : > { %2602 = vmatmul.mubr.bf16.vlgmr.msra.gmra.mrb[0].mxu1 %v2918_v18  ;;  %2622 = vmatpush3.bf16.msra.mxu0 %v2919_v19  ;;  %v606_v18 = vrot.slane %v604_v15, 1  ;;  %v2962_v19 = vld [vmem:[%s3615_s1 + $0x128] sm:$0xff]   ;;  %v2992_v15 = vld [vmem:[%s3615_s1 + $0x1f0] sm:$0xff]  }
  0x28   : > { %2623 = vmatprep.subr.bf16.mxu0 %v3058_v1  ;;  %2569 = vmatprep.mubr.msk.bf16.mxu0 %vm3059_vm0, %v3058_v1 }
  0x29   : > { %2605 = vmatprep.mubr.msk.bf16.mxu1 %vm3059_vm0, %v3058_v1  ;;  %2658 = vmatpush3.bf16.msra.mxu1 %v2923_v20  ;;  %v2963_v20 = vld [vmem:[%s3615_s1 + $0x168] sm:$0xff]  }
  0x2a   : > { %2659 = vmatprep.subr.bf16.mxu1 %v3058_v1 }
  0x2b   : > { %2624 = vmatpush3.bf16.msra.mxu0 %v2920_v21  ;;  %v607_v21 = vsel %vm571_vm1, %v602_v17, %v606_v18  ;;  %v3446_v17 = vld [vmem:[%s3137_s10 + $0x30] ss:$16 sps:$4 sm:$0xff]  }
  0x2c   : > { %2625 = vmatprep.subr.bf16.mxu0 %v3058_v1 }
  0x2d   : > { %2660 = vmatpush3.bf16.msra.mxu1 %v2925_v23  ;;  %v2964_v23 = vld [vmem:[%s3615_s1 + $0x130] sm:$0xff]  }
  0x2e   : > { %2570 = vmatmul.mubr.bf16.gmra.mrb[4].mxu0 %v2921_v22  ;;  %2661 = vmatprep.subr.bf16.mxu1 %v3058_v1  ;;  %v2960_v22 = vld [vmem:[%s3137_s10 + $0x68] ss:$16 sps:$4 sm:$0xff]  }
  0x2f   : > { %2606 = vmatmul.mubr.bf16.gmra.mrb[4].mxu1 %v2922_v24  ;;  %2626 = vmatpush3.bf16.msra.mxu0 %v2924_v25  ;;  %v2966_v24 = vld [vmem:[%s3615_s1 + $0x170] sm:$0xff]   ;;  %v2970_v25 = vld [vmem:[%s3137_s10 + $0x8] ss:$16 sps:$4 sm:$0xff]  }
  0x30   : > { %2573 = vmatprep.mubr.msk.bf16.mxu0 %vm3059_vm0, %v3058_v1  ;;  %2609 = vmatprep.mubr.msk.bf16.mxu1 %vm3059_vm0, %v3058_v1 }
  0x31   : > { %2627 = vmatprep.subr.bf16.mxu0 %v3058_v1  ;;  %2662 = vmatpush3.bf16.msra.mxu1 %v2929_v26  ;;  %v608_v26 = vshrl.u32 %v2959_v6, 16 }
  0x32   : > { %2663 = vmatprep.subr.bf16.mxu1 %v3058_v1 }
  0x33   : > { %2628 = vmatpush3.bf16.msra.mxu0 %v2928_v27  ;;  %v2971_v27 = vld [vmem:[%s3137_s10 + $0x28] ss:$16 sps:$4 sm:$0xff]  }
  0x34   : > { %2629 = vmatprep.subr.bf16.mxu0 %v3058_v1 }
  0x35   : > { %2664 = vmatpush3.bf16.msra.mxu1 %v2931_v29  ;;  %v1166_v29 = vshll.u32 %v2970_v25, 16 }
  0x36   : > { %2574 = vmatmul.mubr.bf16.gmra.mrb[8].mxu0 %v2926_v28  ;;  %2665 = vmatprep.subr.bf16.mxu1 %v3058_v1  ;;  %v2967_v28 = vld [vmem:[%s3615_s1 + $0x138] sm:$0xff]  }
  0x37   : > { %2610 = vmatmul.mubr.bf16.gmra.mrb[8].mxu1 %v2927_v30  ;;  %2630 = vmatpush3.bf16.msra.mxu0 %v2930_v31  ;;  %v2968_v30 = vld [vmem:[%s3615_s1 + $0x178] sm:$0xff]   ;;  %v610_v31 = vor.u32 %v608_v26, %v606_v18 }
  0x38   : > { %2577 = vmatprep.mubr.msk.bf16.mxu0 %vm3059_vm0, %v3058_v1  ;;  %2613 = vmatprep.mubr.msk.bf16.mxu1 %vm3059_vm0, %v3058_v1 }
  0x39   : > { %2631 = vmatprep.subr.bf16.mxu0 %v3058_v1  ;;  %2666 = vmatpush3.bf16.msra.mxu1 %v2934_v32  ;;  %v2965_v32 = vld [vmem:[%s3137_s10 + $0x88] ss:$0 sps:$4 sm:$0xff]  }
  0x3a   : > { %2667 = vmatprep.subr.bf16.mxu1 %v3058_v1 }
  0x3b   : > { %2632 = vmatpush3.bf16.msra.mxu0 %v2935_v33  ;;  %v1164_v33 = vshrl.u32 %v2970_v25, 16 }
  0x3c   : > { %2633 = vmatprep.subr.bf16.mxu0 %v3058_v1 }
  0x3d   : > { %2668 = vmatpush3.bf16.msra.mxu1 %v2936_v36  ;;  %v2975_v36 = vld [vmem:[%s3137_s10 + $0x48] ss:$16 sps:$4 sm:$0xff]  }
  0x3e   : > { %2578 = vmatmul.mubr.bf16.gmra.mrb[12].mxu0 %v2932_v34  ;;  %2669 = vmatprep.subr.bf16.mxu1 %v3058_v1  ;;  %v1168_v34 = vrot.slane %v1166_v29, 1  ;;  %v1179_v41 = vshll.u32 %v2975_v36, 16 }
  0x3f   : > { %2614 = vmatmul.mubr.bf16.gmra.mrb[12].mxu1 %v2933_v35  ;;  %2581 = vmatprep.mubr.msk.bf16.mxu0 %vm3059_vm0, %v3058_v1  ;;  %v1171_v35 = vshll.u32 %v2971_v27, 16 }
  0x40   : > { %2617 = vmatprep.mubr.msk.bf16.mxu1 %vm3059_vm0, %v3058_v1  ;;  %2634 = vmatpush3.bf16.msra.mxu0 %v2937_v38  ;;  %v1169_v37 = vor.u32 %v1168_v34, %v1164_v33  ;;  %v1181_v46 = vrot.slane %v1179_v41, 1  ;;  %v3466_v33 = vld [vmem:[%s3137_s10 + $0x50] ss:$16 sps:$4 sm:$0xff]  }
  0x41   : > { %2670 = vmatpush3.bf16.msra.mxu1 %v2940_v39  ;;  %2635 = vmatprep.subr.bf16.mxu0 %v3058_v1  ;;  %v1173_v38 = vrot.slane %v1171_v35, 1  ;;  %v2969_v39 = vld [vmem:[%s3137_s10 + $0xc] ss:$16 sps:$4 sm:$0xff]  }
  0x42   : > { %2671 = vmatprep.subr.bf16.mxu1 %v3058_v1 }
  0x44   : > { %2636 = vmatpush3.bf16.msra.mxu0 %v2941_v43  ;;  %v1175_v43 = vshrl.u32 %v2971_v27, 16  ;;  %v1396_v27 = vshll.u32 %v3446_v17, 16 }
  0x45   : > { %2672 = vmatpush3.bf16.msra.mxu1 %v2942_v45  ;;  %2693 = vmatprep.subr.bf16.mxu0 %v3058_v1  ;;  %v2973_v45 = vld [vmem:[%s3615_s1 + $0x188] sm:$0xff]  }
  0x46   : > { %2582 = vmatmul.mubr.bf16.gmra.mrb[16].mxu0 %v2938_v42  ;;  %2729 = vmatprep.subr.bf16.mxu1 %v3058_v1  ;;  %v1174_v42 = vsel %vm571_vm1, %v1169_v37, %v1173_v38  ;;  %v1177_v47 = vor.u32 %v1175_v43, %v1173_v38  ;;  %v2999_v38 = vld [vmem:[%s3615_s1 + $0x200] sm:$0xff]  }
  0x47   : > { %2618 = vmatmul.mubr.bf16.gmra.mrb[16].mxu1 %v2939_v44  ;;  %2637 = vmatprep.mubr.msk.bf16.mxu0 %vm3059_vm0, %v3058_v1  ;;  %v2976_v44 = vld [vmem:[%s3615_s1 + $0x1c0] sm:$0xff]  }
  0x48   : > { %2673 = vmatprep.mubr.msk.bf16.mxu1 %vm3059_vm0, %v3058_v1 }
  0x4e   : > { %2638 = vmatmul.mubr.bf16.vlgmr.msra.gmra.mrb[20].mxu0 %v583_v53  ;;  %v1183_v53 = vshrl.u32 %v2975_v36, 16  ;;  %v3002_v36 = vld [vmem:[%s3137_s10 + $0x54] ss:$16 sps:$4 sm:$0xff]  }
  0x4f   : > { %2674 = vmatmul.mubr.bf16.vlgmr.msra.gmra.mrb[20].mxu1 %v2945_v52  ;;  %2694 = vmatpush3.bf16.msra.mxu0 %v2946_v54  ;;  %v1182_v52 = vsel %vm571_vm1, %v1177_v47, %v1181_v46  ;;  %v1187_v54 = vshll.u32 %v2980_v48, 16  ;;  %v1629_v43 = vshll.u32 %v3002_v36, 16  ;;  %v3482_v47 = vld [vmem:[%s3137_s10 + $0x70] ss:$16 sps:$4 sm:$0xff]  }
  0x50   : > { %2695 = vmatprep.subr.bf16.mxu0 %v3058_v1  ;;  %2641 = vmatprep.mubr.msk.bf16.mxu0 %vm3059_vm0, %v3058_v1 }
  0x51   : > { %2677 = vmatprep.mubr.msk.bf16.mxu1 %vm3059_vm0, %v3058_v1  ;;  %2730 = vmatpush3.bf16.msra.mxu1 %v2950_v57  ;;  %v1185_v57 = vor.u32 %v1183_v53, %v1181_v46  ;;  %v1408_v53 = vshrl.u32 %v3466_v33, 16 }
  0x52   : > { %2731 = vmatprep.subr.bf16.mxu1 %v3058_v1 }
  0x53   : > { %2696 = vmatpush3.bf16.msra.mxu0 %v2947_v58  ;;  %v1189_v58 = vrot.slane %v1187_v54, 1  ;;  %v1412_v54 = vshll.u32 %v3482_v47, 16 }
  0x54   : > { %2697 = vmatprep.subr.bf16.mxu0 %v3058_v1 }
  0x55   : > { %2732 = vmatpush3.bf16.msra.mxu1 %v2952_v62  ;;  %v2983_v62 = vld [vmem:[%s3615_s1 + $0x1a0] sm:$0xff]  }
  0x56   : > { %2642 = vmatmul.mubr.bf16.gmra.mrb[24].mxu0 %v591_v2  ;;  %2733 = vmatprep.subr.bf16.mxu1 %v3058_v1  ;;  %v1195_v2 = vshll.u32 %v2986_v59, 16 }
  0x57   : > { %2678 = vmatmul.mubr.bf16.gmra.mrb[24].mxu1 %v2949_v63  ;;  %2698 = vmatpush3.bf16.msra.mxu0 %v2951_v0  ;;  %v1190_v63 = vsel %vm571_vm1, %v1185_v57, %v1189_v58  ;;  %v1191_v0 = vshrl.u32 %v2980_v48, 16 }
  0x58   : > { %2645 = vmatprep.mubr.msk.bf16.mxu0 %vm3059_vm0, %v3058_v1  ;;  %2681 = vmatprep.mubr.msk.bf16.mxu1 %vm3059_vm0, %v3058_v1  ;;  %v1197_v6 = vrot.slane %v1195_v2, 1 }
  0x59   : > { %2699 = vmatprep.subr.bf16.mxu0 %v3058_v1  ;;  %2734 = vmatpush3.bf16.msra.mxu1 %v2956_v5  ;;  %v1193_v5 = vor.u32 %v1191_v0, %v1189_v58  ;;  %v3009_v0 = vld [vmem:[%s3137_s10 + $0x94] ss:$16 sps:$4 sm:$0x1f]  }
  0x5a   : > { %2735 = vmatprep.subr.bf16.mxu1 %v3058_v1 }
  0x5b   : > { %2700 = vmatpush3.bf16.msra.mxu0 %v2955_v9  ;;  %v2989_v9 = vld [vmem:[%s3615_s1 + $0x1e8] sm:$0xff]  }
  0x5c   : > { %2701 = vmatprep.subr.bf16.mxu0 %v3058_v1 }
  0x5d   : > { %2736 = vmatpush3.bf16.msra.mxu1 %v2958_v10  ;;  %v2985_v10 = vld [vmem:[%s3137_s10 + $0x6c] ss:$16 sps:$4 sm:$0xff]  }
  0x5e   : > { %2646 = vmatmul.mubr.bf16.gmra.mrb[28].mxu0 %v599_v12  ;;  %2737 = vmatprep.subr.bf16.mxu1 %v3058_v1  ;;  %v1198_v12 = vsel %vm571_vm1, %v1193_v5, %v1197_v6 }
  0x5f   : > { %2682 = vmatmul.mubr.bf16.gmra.mrb[28].mxu1 %v2954_v11  ;;  %2702 = vmatpush3.bf16.msra.mxu0 %v2957_v13  ;;  %v2312_v11 = vcombine.low %v1336_v7, %v3424_v8  ;;  %v2990_v13 = vld [vmem:[%s3615_s1 + $0x1b0] sm:$0xff]  }
  0x60   : > { %2649 = vmatprep.mubr.msk.bf16.mxu0 %vm3059_vm0, %v3058_v1  ;;  %2685 = vmatprep.mubr.msk.bf16.mxu1 %vm3059_vm0, %v3058_v1 }
  0x61   : > { %2703 = vmatprep.subr.bf16.mxu0 %v3058_v1  ;;  %2738 = vmatpush3.bf16.msra.mxu1 %v2961_v16  ;;  %v1199_v16 = vshrl.u32 %v2986_v59, 16  ;;  %v1391_v18 = vshll.u32 %v2312_v11, 16  ;;  %v1389_v25 = vshrl.u32 %v2312_v11, 16  ;;  %v1414_v59 = vrot.slane %v1412_v54, 1 }
  0x62   : > { %2739 = vmatprep.subr.bf16.mxu1 %v3058_v1 }
  0x63   : > { %2704 = vmatpush3.bf16.msra.mxu0 %v2962_v19  ;;  %v2993_v19 = vld [vmem:[%s3615_s1 + $0x1b8] sm:$0xff]   ;;  %v1393_v26 = vrot.slane %v1391_v18, 1  ;;  %v3011_v18 = vld [vmem:[%s3615_s1 + $0x230] sm:$0xff]  }
  0x64   : > { %2705 = vmatprep.subr.bf16.mxu0 %v3058_v1 }
  0x65   : > { %2740 = vmatpush3.bf16.msra.mxu1 %v2963_v20  ;;  %v2998_v20 = vld [vmem:[%s3137_s10 + $0x34] ss:$16 sps:$4 sm:$0xff]  }
  0x66   : > { %2650 = vmatmul.mubr.bf16.gmra.mrb[32].mxu0 %v607_v21  ;;  %2741 = vmatprep.subr.bf16.mxu1 %v3058_v1  ;;  %v1616_v21 = vshll.u32 %v2997_v14, 16 }
  0x67   : > { %2686 = vmatmul.mubr.bf16.gmra.mrb[32].mxu1 %v2960_v22  ;;  %2653 = vmatprep.mubr.msk.bf16.mxu0 %vm3059_vm0, %v3058_v1  ;;  %v2994_v22 = vld [vmem:[%s3615_s1 + $0x1f8] sm:$0xff]  }
  0x68   : > { %2689 = vmatprep.mubr.msk.bf16.mxu1 %vm3059_vm0, %v3058_v1  ;;  %2706 = vmatpush3.bf16.msra.mxu0 %v2964_v23  ;;  %v2991_v23 = vld [vmem:[%s3137_s10 + $0x8c] ss:$0 sps:$4 sm:$0xff]   ;;  %v1618_v29 = vrot.slane %v1616_v21, 1  ;;  %v3012_v21 = vld [vmem:[%s3615_s1 + $0x238] sm:$0xff]  }
  0x69   : > { %2742 = vmatpush3.bf16.msra.mxu1 %v2966_v24  ;;  %2707 = vmatprep.subr.bf16.mxu0 %v3058_v1  ;;  %v1201_v24 = vor.u32 %v1199_v16, %v1197_v6 }
  0x6a   : > { %2743 = vmatprep.subr.bf16.mxu1 %v3058_v1 }
  0x6c   : > { %2708 = vmatpush3.bf16.msra.mxu0 %v2967_v28  ;;  %v1614_v28 = vshrl.u32 %v2997_v14, 16 }
  0x6d   : > { %2744 = vmatpush3.bf16.msra.mxu1 %v2968_v30  ;;  %2765 = vmatprep.subr.bf16.mxu0 %v3058_v1  ;;  %v1621_v30 = vshll.u32 %v2998_v20, 16 }
  0x6e   : > { %2654 = vmatmul.mubr.bf16.gmra.mrb[36].mxu0 %v610_v31  ;;  %2801 = vmatprep.subr.bf16.mxu1 %v3058_v1  ;;  %v1394_v31 = vor.u32 %v1393_v26, %v1389_v25  ;;  %v1619_v34 = vor.u32 %v1618_v29, %v1614_v28  ;;  %v1813_v28 = vrot.slane %v3482_v47, 1 }
  0x6f   : > { %2690 = vmatmul.mubr.bf16.gmra.mrb[36].mxu1 %v2965_v32  ;;  %2709 = vmatprep.mubr.msk.bf16.mxu0 %vm3059_vm0, %v3058_v1  ;;  %v1398_v32 = vrot.slane %v1396_v27, 1  ;;  %v1623_v35 = vrot.slane %v1621_v30, 1  ;;  %v1809_v27 = vrot.slane %v3446_v17, 1 }
  0x70   : > { %2745 = vmatprep.mubr.msk.bf16.mxu1 %vm3059_vm0, %v3058_v1 }
  0x71   : > { %v1399_v37 = vsel %vm571_vm1, %v1394_v31, %v1398_v32  ;;  %v1624_v41 = vsel %vm571_vm1, %v1619_v34, %v1623_v35  ;;  %v1811_v31 = vrot.slane %v3466_v33, 1 }
  0x76   : > { %2710 = vmatmul.mubr.bf16.vlgmr.msra.gmra.mrb[40].mxu0 %v2969_v39  ;;  %v1400_v39 = vshrl.u32 %v3446_v17, 16  ;;  %v1812_v17 = vsel %vm1807_vm2, %v1809_v27, %v1811_v31 }
  0x77   : > { %2746 = vmatmul.mubr.bf16.vlgmr.msra.gmra.mrb[40].mxu1 %v1174_v42  ;;  %2766 = vmatpush3.bf16.msra.mxu0 %v2972_v40  ;;  %v1404_v40 = vshll.u32 %v3466_v33, 16  ;;  %v1625_v42 = vshrl.u32 %v2998_v20, 16  ;;  %v1649_v20 = vshrl.u32 %v3009_v0, 16 }
  0x78   : > { %2767 = vmatprep.subr.bf16.mxu0 %v3058_v1  ;;  %2713 = vmatprep.mubr.msk.bf16.mxu0 %vm3059_vm0, %v3058_v1 }
  0x79   : > { %2749 = vmatprep.mubr.msk.bf16.mxu1 %vm3059_vm0, %v3058_v1  ;;  %2802 = vmatpush3.bf16.msra.mxu1 %v2976_v44  ;;  %v3000_v44 = vld [vmem:[%s3615_s1 + $0x208] sm:$0xff]   ;;  %v1406_v46 = vrot.slane %v1404_v40, 1  ;;  %v1627_v48 = vor.u32 %v1625_v42, %v1623_v35 }
  0x7a   : > { %2803 = vmatprep.subr.bf16.mxu1 %v3058_v1 }
  0x7b   : > { %2768 = vmatpush3.bf16.msra.mxu0 %v2973_v45  ;;  %v1402_v45 = vor.u32 %v1400_v39, %v1398_v32  ;;  %v1410_v58 = vor.u32 %v1408_v53, %v1406_v46  ;;  %v1814_v32 = vsel %vm1807_vm2, %v1811_v31, %v1813_v28 }
  0x7c   : > { %2769 = vmatprep.subr.bf16.mxu0 %v3058_v1 }
  0x7d   : > { %2804 = vmatpush3.bf16.msra.mxu1 %v2978_v49  ;;  %v1631_v49 = vrot.slane %v1629_v43, 1  ;;  %v1415_v2 = vsel %vm571_vm1, %v1410_v58, %v1414_v59 }
  0x7e   : > { %2714 = vmatmul.mubr.bf16.gmra.mrb[44].mxu0 %v2974_v50  ;;  %2805 = vmatprep.subr.bf16.mxu1 %v3058_v1  ;;  %v3005_v50 = vld [vmem:[%s3137_s10 + $0x74] ss:$16 sps:$4 sm:$0xff]  }
  0x7f   : > { %2750 = vmatmul.mubr.bf16.gmra.mrb[44].mxu1 %v1182_v52  ;;  %2770 = vmatpush3.bf16.msra.mxu0 %v2977_v51  ;;  %v1407_v51 = vsel %vm571_vm1, %v1402_v45, %v1406_v46  ;;  %v3003_v52 = vld [vmem:[%s3615_s1 + $0x210] sm:$0xff]   ;;  %v1637_v57 = vshll.u32 %v3005_v50, 16  ;;  %v1641_v7 = vshrl.u32 %v3005_v50, 16 }
  0x80   : > { %2717 = vmatprep.mubr.msk.bf16.mxu0 %vm3059_vm0, %v3058_v1  ;;  %2753 = vmatprep.mubr.msk.bf16.mxu1 %vm3059_vm0, %v3058_v1 }
  0x81   : > { %2771 = vmatprep.subr.bf16.mxu0 %v3058_v1  ;;  %2806 = vmatpush3.bf16.msra.mxu1 %v2982_v55  ;;  %v1632_v55 = vsel %vm571_vm1, %v1627_v48, %v1631_v49 }
  0x82   : > { %2807 = vmatprep.subr.bf16.mxu1 %v3058_v1 }
  0x83   : > { %2772 = vmatpush3.bf16.msra.mxu0 %v2981_v56  ;;  %v1633_v56 = vshrl.u32 %v3002_v36, 16 }
  0x84   : > { %2773 = vmatprep.subr.bf16.mxu0 %v3058_v1 }
  0x85   : > { %2808 = vmatpush3.bf16.msra.mxu1 %v2984_v60  ;;  %v3006_v60 = vld [vmem:[%s3615_s1 + $0x218] sm:$0xff]  }
  0x86   : > { %2718 = vmatmul.mubr.bf16.gmra.mrb[48].mxu0 %v2979_v61  ;;  %2809 = vmatprep.subr.bf16.mxu1 %v3058_v1  ;;  %v3504_v61 = vld [vmem:[%s3137_s10 + $0x90] ss:$16 sps:$4 sm:$0x1f]  }
  0x87   : > { %2754 = vmatmul.mubr.bf16.gmra.mrb[48].mxu1 %v1190_v63  ;;  %2774 = vmatpush3.bf16.msra.mxu0 %v2983_v62  ;;  %v1635_v62 = vor.u32 %v1633_v56, %v1631_v49  ;;  %v1639_v63 = vrot.slane %v1637_v57, 1  ;;  %v1420_v5 = vshll.u32 %v3504_v61, 16  ;;  %v1815_v29 = vrot.slane %v3504_v61, 1 }
  0x88   : > { %2721 = vmatprep.mubr.msk.bf16.mxu0 %vm3059_vm0, %v3058_v1  ;;  %2757 = vmatprep.mubr.msk.bf16.mxu1 %vm3059_vm0, %v3058_v1 }
  0x89   : > { %2775 = vmatprep.subr.bf16.mxu0 %v3058_v1  ;;  %2810 = vmatpush3.bf16.msra.mxu1 %v2987_v3  ;;  %v3007_v3 = vld [vmem:[%s3615_s1 + $0x220] sm:$0xff]   ;;  %v1640_v6 = vsel %vm571_vm1, %v1635_v62, %v1639_v63  ;;  %v1422_v11 = vrot.slane %v1420_v5, 1 }
  0x8a   : > { %2811 = vmatprep.subr.bf16.mxu1 %v3058_v1 }
  0x8b   : > { %2776 = vmatpush3.bf16.msra.mxu0 %v2988_v4  ;;  %v1416_v4 = vshrl.u32 %v3482_v47, 16 }
  0x8c   : > { %2777 = vmatprep.subr.bf16.mxu0 %v3058_v1 }
  0x8d   : > { %2812 = vmatpush3.bf16.msra.mxu1 %v2989_v9  ;;  %v1645_v9 = vshll.u32 %v3009_v0, 16 }
  0x8e   : > { %2722 = vmatmul.mubr.bf16.gmra.mrb[52].mxu0 %v2985_v10  ;;  %2813 = vmatprep.subr.bf16.mxu1 %v3058_v1  ;;  %v1418_v10 = vor.u32 %v1416_v4, %v1414_v59 }
  0x8f   : > { %2758 = vmatmul.mubr.bf16.gmra.mrb[52].mxu1 %v1198_v12  ;;  %2725 = vmatprep.mubr.msk.bf16.mxu0 %vm3059_vm0, %v3058_v1  ;;  %v3010_v12 = vld [vmem:[%s3615_s1 + $0x228] sm:$0xff]   ;;  %v1647_v14 = vrot.slane %v1645_v9, 1 }
  0x90   : > { %2761 = vmatprep.mubr.msk.bf16.mxu1 %vm3059_vm0, %v3058_v1  ;;  %2778 = vmatpush3.bf16.msra.mxu0 %v2990_v13  ;;  %v1643_v13 = vor.u32 %v1641_v7, %v1639_v63 }
  0x91   : > { %2814 = vmatpush3.bf16.msra.mxu1 %v2992_v15  ;;  %2779 = vmatprep.subr.bf16.mxu0 %v3058_v1  ;;  %v1423_v15 = vsel %vm571_vm1, %v1418_v10, %v1422_v11 }
  0x92   : > { %2815 = vmatprep.subr.bf16.mxu1 %v3058_v1  ;;  %v1648_v16 = vsel %vm571_vm1, %v1643_v13, %v1647_v14 }
  0x94   : > { %2780 = vmatpush3.bf16.msra.mxu0 %v2993_v19  ;;  %v1424_v19 = vshrl.u32 %v3504_v61, 16 }
  0x95   : > { %2816 = vmatpush3.bf16.msra.mxu1 %v2994_v22  ;;  %2837 = vmatprep.subr.bf16.mxu0 %v3058_v1  ;;  %v1786_v22 = vld [vmem:[%s3137_s10 + $0x10] sm:$0xe] }
  0x96   : > { %2726 = vmatmul.mubr.bf16.gmra.mrb[56].mxu0 %v2991_v23  ;;  %2873 = vmatprep.subr.bf16.mxu1 %v3058_v1  ;;  %v1426_v23 = vor.u32 %v1424_v19, %v1422_v11  ;;  %v2370_v25 = vcombine.low %v1786_v22, %v3424_v8  ;;  %v1816_v8 = vsel %vm1807_vm2, %v1813_v28, %v1815_v29 }
  0x97   : > { %2762 = vmatmul.mubr.bf16.gmra.mrb[56].mxu1 %v1201_v24  ;;  %2781 = vmatprep.mubr.msk.bf16.mxu0 %vm3059_vm0, %v3058_v1  ;;  %v1651_v24 = vor.u32 %v1649_v20, %v1647_v14 }
  0x98   : > { %2817 = vmatprep.mubr.msk.bf16.mxu1 %vm3059_vm0, %v3058_v1  ;;  %v1808_v26 = vrot.slane %v2370_v25, 1 }
  0x9a   : > { %v1810_v30 = vsel %vm1807_vm2, %v1808_v26, %v1809_v27 }
  0x9e   : > { %2782 = vmatmul.mubr.bf16.vlgmr.msra.gmra.mrb[60].mxu0 %v1399_v37 }
  0x9f   : > { %2818 = vmatmul.mubr.bf16.vlgmr.msra.gmra.mrb[60].mxu1 %v1624_v41  ;;  %2838 = vmatpush3.bf16.msra.mxu0 %v2999_v38 }
  0xa0   : > { %2839 = vmatprep.subr.bf16.mxu0 %v3058_v1  ;;  %2785 = vmatprep.mubr.msk.bf16.mxu0 %vm3059_vm0, %v3058_v1 }
  0xa1   : > { %2821 = vmatprep.mubr.msk.bf16.mxu1 %vm3059_vm0, %v3058_v1  ;;  %2881 = vmatpush3.bf16.msra.mxu1 %v2999_v38 }
  0xa2   : > { %2874 = vmatprep.subr.bf16.mxu1 %v3058_v1 }
  0xa3   : > { %2840 = vmatpush3.bf16.msra.mxu0 %v3000_v44 }
  0xa4   : > { %2841 = vmatprep.subr.bf16.mxu0 %v3058_v1 }
  0xa5   : > { %2882 = vmatpush3.bf16.msra.mxu1 %v3000_v44 }
  0xa6   : > { %2786 = vmatmul.mubr.bf16.gmra.mrb[64].mxu0 %v1407_v51  ;;  %2875 = vmatprep.subr.bf16.mxu1 %v3058_v1 }
  0xa7   : > { %2822 = vmatmul.mubr.bf16.gmra.mrb[64].mxu1 %v1632_v55  ;;  %2842 = vmatpush3.bf16.msra.mxu0 %v3003_v52 }
  0xa8   : > { %2789 = vmatprep.mubr.msk.bf16.mxu0 %vm3059_vm0, %v3058_v1  ;;  %2825 = vmatprep.mubr.msk.bf16.mxu1 %vm3059_vm0, %v3058_v1 }
  0xa9   : > { %2843 = vmatprep.subr.bf16.mxu0 %v3058_v1  ;;  %2883 = vmatpush3.bf16.msra.mxu1 %v3003_v52 }
  0xaa   : > { %2876 = vmatprep.subr.bf16.mxu1 %v3058_v1 }
  0xab   : > { %2844 = vmatpush3.bf16.msra.mxu0 %v3006_v60 }
  0xac   : > { %2845 = vmatprep.subr.bf16.mxu0 %v3058_v1 }
  0xad   : > { %2884 = vmatpush3.bf16.msra.mxu1 %v3006_v60 }
  0xae   : > { %2790 = vmatmul.mubr.bf16.gmra.mrb[68].mxu0 %v1415_v2  ;;  %2877 = vmatprep.subr.bf16.mxu1 %v3058_v1 }
  0xaf   : > { %2826 = vmatmul.mubr.bf16.gmra.mrb[68].mxu1 %v1640_v6  ;;  %2846 = vmatpush3.bf16.msra.mxu0 %v3007_v3 }
  0xb0   : > { %2793 = vmatprep.mubr.msk.bf16.mxu0 %vm3059_vm0, %v3058_v1  ;;  %2829 = vmatprep.mubr.msk.bf16.mxu1 %vm3059_vm0, %v3058_v1 }
  0xb1   : > { %2885 = vmatpush3.bf16.msra.mxu1 %v3007_v3  ;;  %2847 = vmatprep.subr.bf16.mxu0 %v3058_v1 }
  0xb2   : > { %2878 = vmatprep.subr.bf16.mxu1 %v3058_v1 }
  0xb3   : > { %2848 = vmatpush3.bf16.msra.mxu0 %v3010_v12 }
  0xb4   : > { %2849 = vmatprep.subr.bf16.mxu0 %v3058_v1 }
  0xb5   : > { %2886 = vmatpush3.bf16.msra.mxu1 %v3010_v12 }
  0xb6   : > { %2794 = vmatmul.mubr.bf16.gmra.mrb[72].mxu0 %v1423_v15  ;;  %2879 = vmatprep.subr.bf16.mxu1 %v3058_v1 }
  0xb7   : > { %2830 = vmatmul.mubr.bf16.gmra.mrb[72].mxu1 %v1648_v16  ;;  %2797 = vmatprep.mubr.msk.bf16.mxu0 %vm3059_vm0, %v3058_v1 }
  0xb8   : > { %2833 = vmatprep.mubr.msk.bf16.mxu1 %vm3059_vm0, %v3058_v1  ;;  %2850 = vmatpush3.bf16.msra.mxu0 %v3011_v18 }
  0xb9   : > { %2887 = vmatpush3.bf16.msra.mxu1 %v3011_v18  ;;  %2851 = vmatprep.subr.bf16.mxu0 %v3058_v1 }
  0xba   : > { %2880 = vmatprep.subr.bf16.mxu1 %v3058_v1 }
  0xbc   : > { %2852 = vmatpush3.bf16.msra.mxu0 %v3012_v21 }
  0xbd   : > { %2888 = vmatpush3.bf16.msra.mxu1 %v3012_v21 }
  0xbe   : > { %2798 = vmatmul.mubr.bf16.gmra.mrb[76].mxu0 %v1426_v23 }
  0xbf   : > { %2834 = vmatmul.mubr.bf16.gmra.mrb[76].mxu1 %v1651_v24  ;;  %2853 = vmatprep.mubr.msk.bf16.mxu0 %vm3059_vm0, %v3058_v1 }
  0xc0   : > { %2865 = vmatprep.mubr.msk.bf16.mxu1 %vm3059_vm0, %v3058_v1 }
  0xc6   : > { %2854 = vmatmul.mubr.bf16.vlgmr.msra.gmra.mrb[80].mxu0 %v1810_v30 }
  0xc7   : > { %2866 = vmatmul.mubr.bf16.vlgmr.msra.gmra.mrb[80].mxu1 %v1816_v8  ;;  %2857 = vmatprep.mubr.msk.bf16.mxu0 %vm3059_vm0, %v3058_v1 }
  0xc8   : > { %2869 = vmatprep.mubr.msk.bf16.mxu1 %vm3059_vm0, %v3058_v1 }
  0xce   : > { %2858 = vmatmul.mubr.bf16.gmra.mrb[84].mxu0 %v1812_v17 }
  0xcf   : > { %2870 = vmatmul.mubr.bf16.gmra.mrb[84].mxu1 %v1815_v29  ;;  %2861 = vmatprep.mubr.msk.bf16.mxu0 %vm3059_vm0, %v3058_v1 }
  0xd6   : > { %2862 = vmatmul.mubr.bf16.gmra.mrb[88].mxu0 %v1814_v32 }
  0xf9   : > { %v333_v34 = vpop.f32.mrb[0].mxu0 }
  0xfa   : > { %v481_v35 = vpop.f32.mrb[0].mxu1  ;;  %v2567_v36 = vpop.f32.mrb[1].mxu0 }
  0xfb   : > { %v482_v37 = vadd.f32 %v481_v35, %v333_v34  ;;  %v2603_v38 = vpop.f32.mrb[1].mxu1  ;;  %v336_v39 = vpop.f32.mrb[2].mxu0 }
  0xfc   : > { %v484_v40 = vpop.f32.mrb[2].mxu1  ;;  %v2568_v41 = vpop.f32.mrb[3].mxu0 }
  0xfd   : > { %v485_v33 = vadd.f32 %v484_v40, %v336_v39  ;;  %v2604_v42 = vpop.f32.mrb[3].mxu1 }
 0x101   : > { %v341_v43 = vpop.f32.mrb[4].mxu0 }
 0x102   : > { %v489_v44 = vpop.f32.mrb[4].mxu1  ;;  %v2571_v45 = vpop.f32.mrb[5].mxu0 }
 0x103   : > { %v490_v46 = vadd.f32 %v489_v44, %v341_v43  ;;  %v2607_v47 = vpop.f32.mrb[5].mxu1  ;;  %v344_v48 = vpop.f32.mrb[6].mxu0 }
 0x104   : > { %v492_v49 = vpop.f32.mrb[6].mxu1  ;;  %v2572_v1 = vpop.f32.mrb[7].mxu0 }
 0x105   : > { %v493_v50 = vadd.f32 %v492_v49, %v344_v48  ;;  %v2608_v51 = vpop.f32.mrb[7].mxu1 }
 0x109   : > { %v349_v52 = vpop.f32.mrb[8].mxu0 }
 0x10a   : > { %v497_v53 = vpop.f32.mrb[8].mxu1  ;;  %v2575_v54 = vpop.f32.mrb[9].mxu0 }
 0x10b   : > { %v498_v55 = vadd.f32 %v497_v53, %v349_v52  ;;  %v2611_v56 = vpop.f32.mrb[9].mxu1  ;;  %v352_v57 = vpop.f32.mrb[10].mxu0 }
 0x10c   : > { %v500_v58 = vpop.f32.mrb[10].mxu1  ;;  %v2576_v59 = vpop.f32.mrb[11].mxu0 }
 0x10d   : > { %v501_v60 = vadd.f32 %v500_v58, %v352_v57  ;;  %v2612_v61 = vpop.f32.mrb[11].mxu1 }
 0x111   : > { %v357_v62 = vpop.f32.mrb[12].mxu0 }
 0x112   : > { %v505_v63 = vpop.f32.mrb[12].mxu1  ;;  %v2579_v0 = vpop.f32.mrb[13].mxu0 }
 0x113   : > { %v506_v2 = vadd.f32 %v505_v63, %v357_v62  ;;  %v2615_v3 = vpop.f32.mrb[13].mxu1  ;;  %v360_v4 = vpop.f32.mrb[14].mxu0 }
 0x114   : > { %v508_v5 = vpop.f32.mrb[14].mxu1  ;;  %v2580_v6 = vpop.f32.mrb[15].mxu0 }
 0x115   : > { %v509_v7 = vadd.f32 %v508_v5, %v360_v4  ;;  %v2616_v9 = vpop.f32.mrb[15].mxu1 }
 0x119   : > { %v365_v10 = vpop.f32.mrb[16].mxu0 }
 0x11a   : > { %v2583_v11 = vpop.f32.mrb[17].mxu0  ;;  %v513_v12 = vpop.f32.mrb[16].mxu1 }
 0x11b   : > { %v514_v13 = vadd.f32 %v513_v12, %v365_v10  ;;  %v368_v14 = vpop.f32.mrb[18].mxu0  ;;  %v2619_v15 = vpop.f32.mrb[17].mxu1 }
 0x11c   : > { %v2584_v16 = vpop.f32.mrb[19].mxu0  ;;  %v516_v18 = vpop.f32.mrb[18].mxu1 }
 0x11d   : > { %v2620_v19 = vpop.f32.mrb[19].mxu1 }
 0x121   : > { %v698_v20 = vpop.f32.mrb[20].mxu0 }
 0x122   : > { %v736_v21 = vadd.f32 %v698_v20, %v482_v37  ;;  %v2639_v22 = vpop.f32.mrb[21].mxu0  ;;  %v881_v23 = vpop.f32.mrb[20].mxu1 }
 0x123   : > { %v701_v24 = vpop.f32.mrb[22].mxu0  ;;  %v2675_v25 = vpop.f32.mrb[21].mxu1 }
 0x124   : > { %v737_v26 = vadd.f32 %v701_v24, %v485_v33  ;;  %v919_v27 = vadd.f32 %v881_v23, %v736_v21  ;;  %v2640_v28 = vpop.f32.mrb[23].mxu0  ;;  %v884_v29 = vpop.f32.mrb[22].mxu1 }
 0x125   : > { %v2676_v30 = vpop.f32.mrb[23].mxu1 }
 0x126   : > { %v920_v8 = vadd.f32 %v884_v29, %v737_v26 }
 0x129   : > { %v706_v31 = vpop.f32.mrb[24].mxu0 }
 0x12a   : > { %v738_v17 = vadd.f32 %v706_v31, %v490_v46  ;;  %v2643_v32 = vpop.f32.mrb[25].mxu0  ;;  %v889_v34 = vpop.f32.mrb[24].mxu1 }
 0x12b   : > { %v709_v35 = vpop.f32.mrb[26].mxu0  ;;  %v2679_v36 = vpop.f32.mrb[25].mxu1 }
 0x12c   : > { %v739_v38 = vadd.f32 %v709_v35, %v493_v50  ;;  %v921_v39 = vadd.f32 %v889_v34, %v738_v17  ;;  %v2644_v40 = vpop.f32.mrb[27].mxu0  ;;  %v892_v37 = vpop.f32.mrb[26].mxu1 }
 0x12d   : > { %v2680_v41 = vpop.f32.mrb[27].mxu1 }
 0x12e   : > { %v922_v42 = vadd.f32 %v892_v37, %v739_v38 }
 0x131   : > { %v714_v43 = vpop.f32.mrb[28].mxu0 }
 0x132   : > { %v740_v44 = vadd.f32 %v714_v43, %v498_v55  ;;  %v2647_v33 = vpop.f32.mrb[29].mxu0  ;;  %v897_v45 = vpop.f32.mrb[28].mxu1 }
 0x133   : > { %v717_v47 = vpop.f32.mrb[30].mxu0  ;;  %v2683_v48 = vpop.f32.mrb[29].mxu1 }
 0x134   : > { %v741_v49 = vadd.f32 %v717_v47, %v501_v60  ;;  %v923_v1 = vadd.f32 %v897_v45, %v740_v44  ;;  %v2648_v51 = vpop.f32.mrb[31].mxu0  ;;  %v900_v46 = vpop.f32.mrb[30].mxu1 }
 0x135   : > { %v2684_v52 = vpop.f32.mrb[31].mxu1 }
 0x136   : > { %v924_v53 = vadd.f32 %v900_v46, %v741_v49 }
 0x139   : > { %v722_v54 = vpop.f32.mrb[32].mxu0 }
 0x13a   : > { %v742_v56 = vadd.f32 %v722_v54, %v506_v2  ;;  %v2651_v50 = vpop.f32.mrb[33].mxu0  ;;  %v905_v57 = vpop.f32.mrb[32].mxu1 }
 0x13b   : > { %v725_v58 = vpop.f32.mrb[34].mxu0  ;;  %v2687_v59 = vpop.f32.mrb[33].mxu1 }
 0x13c   : > { %v743_v61 = vadd.f32 %v725_v58, %v509_v7  ;;  %v925_v62 = vadd.f32 %v905_v57, %v742_v56  ;;  %v2652_v63 = vpop.f32.mrb[35].mxu0  ;;  %v908_v55 = vpop.f32.mrb[34].mxu1 }
 0x13d   : > { %v2688_v0 = vpop.f32.mrb[35].mxu1 }
 0x13e   : > { %v926_v3 = vadd.f32 %v908_v55, %v743_v61 }
 0x141   : > { %v730_v4 = vpop.f32.mrb[36].mxu0 }
 0x142   : > { %v744_v5 = vadd.f32 %v730_v4, %v514_v13  ;;  %v2655_v60 = vpop.f32.mrb[37].mxu0  ;;  %v913_v6 = vpop.f32.mrb[36].mxu1 }
 0x143   : > { %v733_v9 = vpop.f32.mrb[38].mxu0  ;;  %v2691_v10 = vpop.f32.mrb[37].mxu1 }
 0x144   : > { %v927_v11 = vadd.f32 %v913_v6, %v744_v5  ;;  %v2656_v12 = vpop.f32.mrb[39].mxu0  ;;  %v916_v14 = vpop.f32.mrb[38].mxu1 }
 0x145   : > { %v2692_v2 = vpop.f32.mrb[39].mxu1 }
 0x149   : > { %v1064_v15 = vpop.f32.mrb[40].mxu0 }
 0x14a   : > { %v1102_v16 = vadd.f32 %v1064_v15, %v919_v27  ;;  %v2711_v18 = vpop.f32.mrb[41].mxu0  ;;  %v1289_v19 = vpop.f32.mrb[40].mxu1 }
 0x14b   : > { %v1067_v7 = vpop.f32.mrb[42].mxu0  ;;  %v2747_v20 = vpop.f32.mrb[41].mxu1 }
 0x14c   : > { %v1103_v21 = vadd.f32 %v1067_v7, %v920_v8  ;;  %v1327_v22 = vadd.f32 %v1289_v19, %v1102_v16  ;;  %v2712_v23 = vpop.f32.mrb[43].mxu0  ;;  %v1292_v24 = vpop.f32.mrb[42].mxu1 }
 0x14d   : > { %v2748_v25 = vpop.f32.mrb[43].mxu1 }
 0x14e   : > { %v1328_v13 = vadd.f32 %v1292_v24, %v1103_v21 }
 0x151   : > { %v1072_v26 = vpop.f32.mrb[44].mxu0 }
 0x152   : > { %v1104_v28 = vadd.f32 %v1072_v26, %v921_v39  ;;  %v2715_v29 = vpop.f32.mrb[45].mxu0  ;;  %v1297_v30 = vpop.f32.mrb[44].mxu1 }
 0x153   : > { %v1075_v31 = vpop.f32.mrb[46].mxu0  ;;  %v2751_v17 = vpop.f32.mrb[45].mxu1 }
 0x154   : > { %v1105_v32 = vadd.f32 %v1075_v31, %v922_v42  ;;  %v1329_v34 = vadd.f32 %v1297_v30, %v1104_v28  ;;  %v2716_v35 = vpop.f32.mrb[47].mxu0  ;;  %v1300_v27 = vpop.f32.mrb[46].mxu1 }
 0x155   : > { %v2752_v36 = vpop.f32.mrb[47].mxu1 }
 0x156   : > { %v1330_v38 = vadd.f32 %v1300_v27, %v1105_v32 }
 0x159   : > { %v1080_v40 = vpop.f32.mrb[48].mxu0 }
 0x15a   : > { %v1106_v37 = vadd.f32 %v1080_v40, %v923_v1  ;;  %v2719_v8 = vpop.f32.mrb[49].mxu0  ;;  %v1305_v41 = vpop.f32.mrb[48].mxu1 }
 0x15b   : > { %v1083_v43 = vpop.f32.mrb[50].mxu0  ;;  %v2755_v44 = vpop.f32.mrb[49].mxu1 }
 0x15c   : > { %v1107_v33 = vadd.f32 %v1083_v43, %v924_v53  ;;  %v1331_v45 = vadd.f32 %v1305_v41, %v1106_v37  ;;  %v2720_v47 = vpop.f32.mrb[51].mxu0  ;;  %v1308_v39 = vpop.f32.mrb[50].mxu1 }
 0x15d   : > { %v2756_v48 = vpop.f32.mrb[51].mxu1 }
 0x15e   : > { %v1332_v49 = vadd.f32 %v1308_v39, %v1107_v33 }
 0x161   : > { %v1088_v51 = vpop.f32.mrb[52].mxu0 }
 0x162   : > { %v1108_v46 = vadd.f32 %v1088_v51, %v925_v62  ;;  %v2723_v42 = vpop.f32.mrb[53].mxu0  ;;  %v1313_v52 = vpop.f32.mrb[52].mxu1 }
 0x163   : > { %v1091_v54 = vpop.f32.mrb[54].mxu0  ;;  %v2759_v56 = vpop.f32.mrb[53].mxu1 }
 0x164   : > { %v1109_v50 = vadd.f32 %v1091_v54, %v926_v3  ;;  %v1333_v57 = vadd.f32 %v1313_v52, %v1108_v46  ;;  %v2724_v58 = vpop.f32.mrb[55].mxu0  ;;  %v1316_v1 = vpop.f32.mrb[54].mxu1 }
 0x165   : > { %v2760_v59 = vpop.f32.mrb[55].mxu1 }
 0x166   : > { %v1334_v61 = vadd.f32 %v1316_v1, %v1109_v50 }
 0x169   : > { %v1096_v63 = vpop.f32.mrb[56].mxu0 }
 0x16a   : > { %v1110_v55 = vadd.f32 %v1096_v63, %v927_v11  ;;  %v2727_v53 = vpop.f32.mrb[57].mxu0  ;;  %v1321_v0 = vpop.f32.mrb[56].mxu1 }
 0x16b   : > { %v1099_v4 = vpop.f32.mrb[58].mxu0  ;;  %v2763_v5 = vpop.f32.mrb[57].mxu1 }
 0x16c   : > { %v1335_v60 = vadd.f32 %v1321_v0, %v1110_v55  ;;  %v2728_v6 = vpop.f32.mrb[59].mxu0  ;;  %v1324_v9 = vpop.f32.mrb[58].mxu1 }
 0x16d   : > { %v2764_v62 = vpop.f32.mrb[59].mxu1 }
 0x171   : > { %v1514_v10 = vpop.f32.mrb[60].mxu0 }
 0x172   : > { %v1552_v12 = vadd.f32 %v1514_v10, %v1327_v22  ;;  %v2783_v14 = vpop.f32.mrb[61].mxu0  ;;  %v1739_v2 = vpop.f32.mrb[60].mxu1 }
 0x173   : > { %v1517_v3 = vpop.f32.mrb[62].mxu0  ;;  %v2819_v15 = vpop.f32.mrb[61].mxu1 }
 0x174   : > { %v1553_v16 = vadd.f32 %v1517_v3, %v1328_v13  ;;  %v1777_v18 = vadd.f32 %v1739_v2, %v1552_v12  ;;  %v2784_v19 = vpop.f32.mrb[63].mxu0  ;;  %v1742_v7 = vpop.f32.mrb[62].mxu1 }
 0x175   : > { %v2820_v20 = vpop.f32.mrb[63].mxu1 }
 0x176   : > { %v1778_v11 = vadd.f32 %v1742_v7, %v1553_v16 }
 0x179   : > { %v1522_v21 = vpop.f32.mrb[64].mxu0 }
 0x17a   : > { %v1554_v23 = vadd.f32 %v1522_v21, %v1329_v34  ;;  %v2787_v24 = vpop.f32.mrb[65].mxu0  ;;  %v1747_v25 = vpop.f32.mrb[64].mxu1 }
 0x17b   : > { %v1525_v26 = vpop.f32.mrb[66].mxu0  ;;  %v2823_v28 = vpop.f32.mrb[65].mxu1 }
 0x17c   : > { %v1555_v29 = vadd.f32 %v1525_v26, %v1330_v38  ;;  %v3564_v30 = vadd.f32 %v1747_v25, %v1554_v23  ;;  %v2788_v22 = vpop.f32.mrb[67].mxu0  ;;  %v1750_v31 = vpop.f32.mrb[66].mxu1 }
 0x17d   : > { %v2824_v17 = vpop.f32.mrb[67].mxu1 }
 0x17e   : > { %v3566_v32 = vadd.f32 %v1750_v31, %v1555_v29 }
 0x181   : > { %v1530_v13 = vpop.f32.mrb[68].mxu0 }
 0x182   : > { %v1556_v35 = vadd.f32 %v1530_v13, %v1331_v45  ;;  %v2791_v27 = vpop.f32.mrb[69].mxu0  ;;  %v1755_v36 = vpop.f32.mrb[68].mxu1 }
 0x183   : > { %v1533_v40 = vpop.f32.mrb[70].mxu0  ;;  %v2827_v37 = vpop.f32.mrb[69].mxu1 }
 0x184   : > { %v1557_v8 = vadd.f32 %v1533_v40, %v1332_v49  ;;  %v3568_v34 = vadd.f32 %v1755_v36, %v1556_v35  ;;  %v2792_v41 = vpop.f32.mrb[71].mxu0  ;;  %v1758_v43 = vpop.f32.mrb[70].mxu1 }
 0x185   : > { %v2828_v44 = vpop.f32.mrb[71].mxu1 }
 0x186   : > { %v3570_v38 = vadd.f32 %v1758_v43, %v1557_v8 }
 0x189   : > { %v1538_v33 = vpop.f32.mrb[72].mxu0 }
 0x18a   : > { %v1558_v47 = vadd.f32 %v1538_v33, %v1333_v57  ;;  %v2795_v39 = vpop.f32.mrb[73].mxu0  ;;  %v1763_v48 = vpop.f32.mrb[72].mxu1 }
 0x18b   : > { %v1541_v51 = vpop.f32.mrb[74].mxu0  ;;  %v2831_v46 = vpop.f32.mrb[73].mxu1 }
 0x18c   : > { %v1559_v42 = vadd.f32 %v1541_v51, %v1334_v61  ;;  %v1783_v45 = vadd.f32 %v1763_v48, %v1558_v47  ;;  %v2796_v52 = vpop.f32.mrb[75].mxu0  ;;  %v1766_v54 = vpop.f32.mrb[74].mxu1  ;;  %v2379_v61 = vld [vmem:[%s3616_s2] ss:$0 sm:$0xff] }
 0x18d   : > { %v2832_v56 = vpop.f32.mrb[75].mxu1 }
 0x18e   : > { %v1784_v50 = vadd.f32 %v1766_v54, %v1559_v42 }
 0x191   : > { %v1546_v49 = vpop.f32.mrb[76].mxu0 }
 0x192   : > { %v1560_v58 = vadd.f32 %v1546_v49, %v1335_v60  ;;  %v2799_v1 = vpop.f32.mrb[77].mxu0  ;;  %v1771_v59 = vpop.f32.mrb[76].mxu1 }
 0x193   : > { %v1549_v63 = vpop.f32.mrb[78].mxu0  ;;  %v2835_v55 = vpop.f32.mrb[77].mxu1 }
 0x194   : > { %v1785_v53 = vadd.f32 %v1771_v59, %v1560_v58  ;;  %v2800_v0 = vpop.f32.mrb[79].mxu0  ;;  %v1774_v4 = vpop.f32.mrb[78].mxu1 }
 0x195   : > { %v2836_v57 = vpop.f32.mrb[79].mxu1 }
 0x199   : > { %v1904_v5 = vpop.f32.mrb[80].mxu0 }
 0x19a   : > { %v1942_v6 = vadd.f32 %v1904_v5, %v1777_v18  ;;  %v1928_v9 = vpop.f32.mrb[80].mxu1  ;;  %v2855_v62 = vpop.f32.mrb[81].mxu0 }
 0x19b   : > { %v1948_v10 = vadd.f32 %v1928_v9, %v1783_v45  ;;  %v2867_v12 = vpop.f32.mrb[81].mxu1  ;;  %v1907_v14 = vpop.f32.mrb[82].mxu0 }
 0x19c   : > { %v3575_v60 = vadd.f32 %v2379_v61, %v1942_v6  ;;  %v1943_v2 = vadd.f32 %v1907_v14, %v1778_v11  ;;  %v1931_v3 = vpop.f32.mrb[82].mxu1  ;;  %v2856_v15 = vpop.f32.mrb[83].mxu0 }
 0x19d   : > { %v3577_v16 = vadd.f32 %v2379_v61, %v1948_v10  ;;  %v1949_v19 = vadd.f32 %v1931_v3, %v1784_v50  ;;  %v2868_v7 = vpop.f32.mrb[83].mxu1 }
 0x19e   : > { %v2380_v20 = vmul.f32 -1.442695, %v3575_v60  ;;  %v3580_v21 = vadd.f32 %v2379_v61, %v1943_v2 }
 0x19f   : > { %v2386_v18 = vmul.f32 -1.442695, %v3577_v16  ;;  %v3583_v23 = vadd.f32 %v2379_v61, %v1949_v19 }
 0x1a0   : > { %3014 = vpow2.f32 %v2380_v20  ;;  %v2381_v24 = vmul.f32 -1.442695, %v3580_v21 }
 0x1a1   : > { %3016 = vpow2.f32 %v2386_v18  ;;  %v2387_v11 = vmul.f32 -1.442695, %v3583_v23  ;;  %v1912_v25 = vpop.f32.mrb[84].mxu0 }
 0x1a2   : > { %3018 = vpow2.f32 %v2381_v24  ;;  %v1944_v26 = vadd.f32 %v1912_v25, %v3564_v30  ;;  %v1936_v28 = vpop.f32.mrb[84].mxu1  ;;  %v2859_v29 = vpop.f32.mrb[85].mxu0 }
 0x1a3   : > { %3020 = vpow2.f32 %v2387_v11  ;;  %v1950_v22 = vadd.f32 %v1936_v28, %v1785_v53  ;;  %v1915_v31 = vpop.f32.mrb[86].mxu0  ;;  %v2871_v17 = vpop.f32.mrb[85].mxu1 }
 0x1a4   : > { %v3588_v13 = vadd.f32 %v2379_v61, %v1944_v26  ;;  %v1945_v35 = vadd.f32 %v1915_v31, %v3566_v32  ;;  %v2860_v27 = vpop.f32.mrb[87].mxu0  ;;  %v1939_v36 = vpop.f32.mrb[86].mxu1 }
 0x1a5   : > { %v3591_v40 = vadd.f32 %v2379_v61, %v1950_v22  ;;  %v2872_v37 = vpop.f32.mrb[87].mxu1 }
 0x1a6   : > { %v2382_v8 = vmul.f32 -1.442695, %v3588_v13  ;;  %v3594_v41 = vadd.f32 %v2379_v61, %v1945_v35 }
 0x1a7   : > { %v2388_v30 = vmul.f32 -1.442695, %v3591_v40 }
 0x1a8   : > { %3022 = vpow2.f32 %v2382_v8  ;;  %v2383_v43 = vmul.f32 -1.442695, %v3594_v41 }
 0x1a9   : > { %3024 = vpow2.f32 %v2388_v30  ;;  %v1920_v44 = vpop.f32.mrb[88].mxu0 }
 0x1aa   : > { %v3015_v33 = vpop.eup %3014  ;;  %3026 = vpow2.f32 %v2383_v43  ;;  %v1946_v32 = vadd.f32 %v1920_v44, %v3568_v34  ;;  %v2863_v47 = vpop.f32.mrb[89].mxu0 }
 0x1ab   : > { %v3017_v39 = vpop.eup %3016  ;;  %v1994_v48 = vadd.f32 1.0, %v3015_v33  ;;  %v1923_v51 = vpop.f32.mrb[90].mxu0 }
 0x1ac   : > { %v3019_v46 = vpop.eup %3018  ;;  %v2000_v42 = vadd.f32 1.0, %v3017_v39  ;;  %v1962_v45 = vadd.f32 %v2379_v61, %v1946_v32  ;;  %v1947_v52 = vadd.f32 %v1923_v51, %v3570_v38  ;;  %v2864_v54 = vpop.f32.mrb[91].mxu0 }
 0x1ad   : > { %v3021_v56 = vpop.eup %3020  ;;  %3028 = vrcp.f32 %v1994_v48  ;;  %v1995_v50 = vadd.f32 1.0, %v3019_v46 }
 0x1ae   : > { %3030 = vrcp.f32 %v2000_v42  ;;  %v2001_v49 = vadd.f32 1.0, %v3021_v56  ;;  %v2384_v58 = vmul.f32 -1.442695, %v1962_v45  ;;  %v1963_v1 = vadd.f32 %v2379_v61, %v1947_v52 }
 0x1af   : > { %3032 = vrcp.f32 %v1995_v50 }
 0x1b0   : > { %3034 = vrcp.f32 %v2001_v49  ;;  %v2385_v34 = vmul.f32 -1.442695, %v1963_v1 }
 0x1b1   : > { %3036 = vpow2.f32 %v2384_v58 }
 0x1b2   : > { %v3023_v59 = vpop.eup %3022  ;;  %3038 = vpow2.f32 %v2385_v34 }
 0x1b3   : > { %v3025_v63 = vpop.eup %3024  ;;  %v1996_v55 = vadd.f32 1.0, %v3023_v59 }
 0x1b4   : > { %v3027_v53 = vpop.eup %3026  ;;  %v2002_v0 = vadd.f32 1.0, %v3025_v63 }
 0x1b5   : > { %3040 = vrcp.f32 %v1996_v55  ;;  %v1997_v38 = vadd.f32 1.0, %v3027_v53 }
 0x1b6   : > { %3042 = vrcp.f32 %v2002_v0 }
 0x1b7   : > { %v3029_v4 = vpop.eup %3028  ;;  %3044 = vrcp.f32 %v1997_v38 }
 0x1b8   : > { %v3031_v57 = vpop.eup %3030  ;;  %v2021_v61 = vmul.f32 %v3029_v4, %v3575_v60 }
 0x1b9   : > { %v3033_v5 = vpop.eup %3032  ;;  %v2027_v10 = vmul.f32 %v3031_v57, %v3577_v16 }
 0x1ba   : > { %v3035_v6 = vpop.eup %3034  ;;  %v2022_v9 = vmul.f32 %v3033_v5, %v3580_v21 }
 0x1bb   : > { %v3037_v62 = vpop.eup %3036  ;;  %v2028_v12 = vmul.f32 %v3035_v6, %v3583_v23 }
 0x1bc   : > { %v3039_v14 = vpop.eup %3038  ;;  %v2412_v2 = vpack.c.bf16 %v2022_v9, %v2021_v61  ;;  %v1998_v3 = vadd.f32 1.0, %v3037_v62 }
 0x1bd   : > { %v2427_v15 = vpack.c.bf16 %v2028_v12, %v2027_v10  ;;  %v1999_v19 = vadd.f32 1.0, %v3039_v14 }
 0x1be   : > { %2413 = vst [vmem:[%s170_s21] sm:$0xff] %v2412_v2   ;;  %3046 = vrcp.f32 %v1998_v3 }
 0x1bf   : > { %v3041_v7 = vpop.eup %3040  ;;  %2431 = vst [vmem:[%s170_s21 + $0x18] sm:$0xff] %v2427_v15   ;;  %3048 = vrcp.f32 %v1999_v19 }
 0x1c0   : > { %v3043_v60 = vpop.eup %3042  ;;  %v2023_v21 = vmul.f32 %v3041_v7, %v3588_v13 }
 0x1c1   : > { %v3045_v20 = vpop.eup %3044  ;;  %v2029_v16 = vmul.f32 %v3043_v60, %v3591_v40 }
 0x1c2   : > { %v2024_v18 = vmul.f32 %v3045_v20, %v3594_v41 }
 0x1c3   : > { %v2408_v24 = vpack.c.bf16 %v2029_v16, %v2029_v16 }
 0x1c4   : > { %v2417_v23 = vpack.c.bf16 %v2024_v18, %v2023_v21 }
 0x1c5   : > { %2075 = vst [vmem:[%s170_s21 + $0x20] sm:$0xf] %v2408_v24 }
 0x1c6   : > { %2429 = vst [vmem:[%s170_s21 + $0x8] sm:$0xff] %v2417_v23  }
 0x1c8   : > { %v3047_v11 = vpop.eup %3046 }
 0x1c9   : > { %v3049_v25 = vpop.eup %3048  ;;  %v2025_v26 = vmul.f32 %v3047_v11, %v1962_v45 }
 0x1ca   : > { %v2026_v28 = vmul.f32 %v3049_v25, %v1963_v1 }
 0x1cc   : > { %v2422_v29 = vpack.c.bf16 %v2026_v28, %v2025_v26 }
 0x1ce   : > { %2430 = vst [vmem:[%s170_s21 + $0x10] sm:$0xff] %v2422_v29  }
 0x1cf PF: > { %s13_s12 = sadd.s32 1, %s3056_s12  }
 0x1d0   : > { %p10_p4 = scmp.ge.s32.totalorder %s13_s12, 4  }
 0x1d2   :  { %12 = sbr.rel (!%p10_p4) target bundleno = 1 (0x1), region = 70 }

// kernel: viewpoint_forward.13
= control target key start
LH: loop header
LB: loop body
LE: loop exit
PB: predicated region body
PF: predicated region fallthrough
CT: control target
= control target key end

     0   :  { %s825_s12 = smov 0   ;;  %s1021_s0 = inlined_call_operand.vmem [shape: bf16[2,30,1024], index: 0, kind: input, shape index: {}]   ;;  %s1022_s1 = inlined_call_operand.vmem [shape: f32[9,256], index: 1, kind: input, shape index: {}]   ;;  %s1023_s2 = inlined_call_operand.vmem [shape: f32[1,256], index: 2, kind: input, shape index: {}]   ;;  %s1024_s3 = inlined_call_operand.vmem [shape: bf16[2,20,256], index: 3, kind: output, shape index: {}]  }
   0x1 LB: > { %s733_s13 = sadd.s32 4294967295, %s803_s12   ;;  %p737_p0 = scmp.ge.s32.totalorder %s803_s12, 1  ;;  %s803_s12 = sphi %s825_s12, %s13_s12  }
   0x2   : > { %p137_p1 = scmp.lt.s32.totalorder %s803_s12, 3 }
   0x4   : > { %p138_p2 = pnand %p737_p0, %p137_p1 }
   0x5   : > { %p161_p3 = scmp.lt.s32.totalorder (!%p138_p2), %s733_s13, 1  ;;  %v182_v0 = vlaneseq (!%p138_p2)  ;;  %v180_v2 = vld [vmem:[%s1022_s1] ss:$8 sm:$0x3] (!%p138_p2)  ;;  %vm266_vm0 = vcmask (!%p138_p2), 1046528   ;;  %vm445_vm1 = vcmask (!%p138_p2), 1042432  }
   0x6   : > { %141 = sbr.rel (%p138_p2) target bundleno = 112 (0x70), region = 32  ;;  %v741_v3 = vld [vmem:[%s1022_s1 + $0x1] ss:$8 sm:$0x3] (!%p138_p2)  ;;  %vm568_vm2 = vcmask (!%p138_p2), 1041408  }
   0x7   : > { %v183_v1 = vshrl.u32 (!%p138_p2), %v182_v0, 7  ;;  %v742_v37 = vld [vmem:[%s1022_s1 + $0x2] ss:$8 sm:$0x3] (!%p138_p2) }
   0x9   : > { %v842_v4 = vsub.s32 (!%p138_p2), 0, %v183_v1  ;;  %v844_v5 = vsub.s32 (!%p138_p2), 1, %v183_v1  ;;  %v743_v1 = vld [vmem:[%s1022_s1 + $0x3] ss:$8 sm:$0x3] (!%p138_p2) }
   0xb   : > { %v185_v9 = vrot.slane (!%p138_p2), %v180_v2, %v842_v4  ;;  %v189_v10 = vrot.slane (!%p138_p2), %v180_v2, %v844_v5  ;;  %v219_v11 = vrot.slane (!%p138_p2), %v741_v3, %v842_v4  ;;  %v223_v12 = vrot.slane (!%p138_p2), %v741_v3, %v844_v5 }
   0xc   : > { %v247_v49 = vrot.slane (!%p138_p2), %v742_v37, %v842_v4  ;;  %v251_v50 = vrot.slane (!%p138_p2), %v742_v37, %v844_v5 }
   0xd   : > { %s1026_s13 = smov (!%p161_p3, %s733_s13), 1 }
   0xe   : > { %s760_s18 = sshll.u32 %s1026_s13, 7  ;;  %s764_s11 = smul.u32 24, %s1026_s13 }
   0xf   : > { %s849_s21 = scalar_lea.vmem %s1021_s0, %s760_s18 }
  0x10   : > { %v171_v6 = vld [vmem:[%s849_s21] sm:$0xff]  ;;  %v204_v17 = vld [vmem:[%s849_s21 + $0x8] sm:$0xff]  ;;  %v880_v42 = vld [vmem:[%s849_s21 + $0x10] sm:$0xff]  ;;  %s170_s16 = scalar_lea.vmem %s1024_s3, %s764_s11 }
  0x11   : > { %v172_v7 = vld [vmem:[%s849_s21 + $0x20] sm:$0xff]  ;;  %v174_v13 = vunpack.c.l.bf16 %v171_v6  ;;  %v175_v14 = vunpack.c.h.bf16 %v171_v6  ;;  %v864_v18 = vld [vmem:[%s849_s21 + $0x28] sm:$0xff]  ;;  %v207_v22 = vunpack.c.l.bf16 %v204_v17  ;;  %v208_v23 = vunpack.c.h.bf16 %v204_v17  ;;  %v885_v51 = vld [vmem:[%s849_s21 + $0x30] sm:$0xff] }
  0x12   : > { %v173_v8 = vld [vmem:[%s849_s21 + $0x40] sm:$0x33]  ;;  %v858_v15 = vunpack.c.l.bf16 %v172_v7  ;;  %v860_v16 = vunpack.c.h.bf16 %v172_v7  ;;  %v206_v21 = vld [vmem:[%s849_s21 + $0x48] sm:$0x33]  ;;  %v209_v31 = vunpack.c.l.bf16 %v864_v18  ;;  %v210_v32 = vunpack.c.h.bf16 %v864_v18  ;;  %v291_v60 = vld [vmem:[%s849_s21 + $0x50] sm:$0x33] }
  0x13   : > { %v178_v19 = vunpack.c.l.bf16 %v173_v8  ;;  %v179_v20 = vunpack.c.h.bf16 %v173_v8  ;;  %v192_v24 = vmul.f32 %v185_v9, %v174_v13  ;;  %v193_v25 = vmul.f32 %v189_v10, %v175_v14  ;;  %v238_v28 = vld [vmem:[%s849_s21 + $0x40] sm:$0x77]  ;;  %v325_v37 = vld [vmem:[%s849_s21 + $0x58] sm:$0x33] }
  0x14   : > { %v194_v26 = vmul.f32 %v185_v9, %v858_v15  ;;  %v195_v27 = vmul.f32 %v189_v10, %v860_v16  ;;  %v211_v33 = vunpack.c.l.bf16 %v206_v21  ;;  %v212_v34 = vunpack.c.h.bf16 %v206_v21 }
  0x15   : > { %v196_v29 = vmul.f32 %v185_v9, %v178_v19  ;;  %v197_v30 = vmul.f32 %v189_v10, %v179_v20  ;;  %v226_v35 = vmul.f32 %v219_v11, %v207_v22  ;;  %v227_v36 = vmul.f32 %v223_v12, %v208_v23  ;;  %v323_v23 = vld [vmem:[%s849_s21 + $0x18] sm:$0xff] }
  0x16   : > { %v228_v38 = vmul.f32 %v219_v11, %v209_v31  ;;  %v229_v39 = vmul.f32 %v223_v12, %v210_v32  ;;  %v239_v40 = vunpack.c.l.bf16 %v238_v28  ;;  %v240_v41 = vunpack.c.h.bf16 %v238_v28 }
  0x17   : > { %v230_v43 = vmul.f32 %v219_v11, %v211_v33  ;;  %v231_v44 = vmul.f32 %v223_v12, %v212_v34  ;;  %v232_v45 = vadd.f32 %v226_v35, %v192_v24  ;;  %v233_v46 = vadd.f32 %v227_v36, %v193_v25  ;;  %v324_v34 = vld [vmem:[%s849_s21 + $0x38] sm:$0xff] }
  0x18   : > { %v234_v47 = vadd.f32 %v228_v38, %v194_v26  ;;  %v235_v48 = vadd.f32 %v229_v39, %v195_v27  ;;  %v292_v54 = vunpack.c.l.bf16 %v880_v42  ;;  %v293_v55 = vunpack.c.h.bf16 %v880_v42 }
  0x19   : > { %v236_v52 = vadd.f32 %v230_v43, %v196_v29  ;;  %v237_v53 = vadd.f32 %v231_v44, %v197_v30  ;;  %v254_v56 = vmul.f32 %v247_v49, %v174_v13  ;;  %v255_v57 = vmul.f32 %v251_v50, %v175_v14 }
  0x1a   : > { %v256_v58 = vmul.f32 %v247_v49, %v858_v15  ;;  %v257_v59 = vmul.f32 %v251_v50, %v860_v16  ;;  %v258_v61 = vmul.f32 %v247_v49, %v239_v40  ;;  %v259_v62 = vmul.f32 %v251_v50, %v240_v41  ;;  %v744_v40 = vld [vmem:[%s1022_s1 + $0x4] ss:$8 sm:$0x3] }
  0x1b   : > { %v294_v63 = vunpack.c.l.bf16 %v885_v51  ;;  %v295_v0 = vunpack.c.h.bf16 %v885_v51  ;;  %v267_v2 = vrot.slane %v254_v56, 1  ;;  %v270_v6 = vrot.slane %v255_v57, 1 }
  0x1c   : > { %v268_v3 = vrot.slane %v256_v58, 1  ;;  %v271_v7 = vrot.slane %v257_v59, 1  ;;  %v273_v8 = vrot.slane %v258_v61, 1  ;;  %v275_v9 = vrot.slane %v259_v62, 1 }
  0x1d   : > { %v296_v10 = vunpack.c.l.bf16 %v291_v60  ;;  %v297_v11 = vunpack.c.h.bf16 %v291_v60  ;;  %v304_v14 = vrot.slane %v743_v1, %v842_v4  ;;  %v308_v17 = vrot.slane %v743_v1, %v844_v5 }
  0x1e   : > { %v269_v12 = vsel %vm266_vm0, %v267_v2, %v268_v3  ;;  %v272_v13 = vsel %vm266_vm0, %v270_v6, %v271_v7  ;;  %v274_v19 = vsel %vm266_vm0, %v268_v3, %v273_v8  ;;  %v276_v20 = vsel %vm266_vm0, %v271_v7, %v275_v9 }
  0x1f   : > { %v283_v21 = vadd.f32 %v269_v12, %v232_v45  ;;  %v284_v22 = vadd.f32 %v272_v13, %v233_v46  ;;  %v285_v24 = vadd.f32 %v274_v19, %v234_v47  ;;  %v286_v25 = vadd.f32 %v276_v20, %v235_v48  ;;  %v357_v46 = vld [vmem:[%s849_s21 + $0x50] sm:$0x77]  ;;  %v745_v47 = vld [vmem:[%s1022_s1 + $0x5] ss:$8 sm:$0x3] }
  0x20   : > { %v287_v26 = vadd.f32 %v273_v8, %v236_v52  ;;  %v288_v27 = vadd.f32 %v275_v9, %v237_v53  ;;  %v311_v28 = vmul.f32 %v304_v14, %v292_v54  ;;  %v312_v29 = vmul.f32 %v308_v17, %v293_v55  ;;  %v407_v20 = vld [vmem:[%s849_s21] sm:$0xcc] }
  0x21   : > { %v313_v30 = vmul.f32 %v304_v14, %v294_v63  ;;  %v314_v33 = vmul.f32 %v308_v17, %v295_v0  ;;  %v315_v35 = vmul.f32 %v304_v14, %v296_v10  ;;  %v316_v36 = vmul.f32 %v308_v17, %v297_v11 }
  0x22   : > { %v326_v38 = vunpack.c.l.bf16 %v323_v23  ;;  %v327_v39 = vunpack.c.h.bf16 %v323_v23  ;;  %v317_v41 = vadd.f32 %v311_v28, %v283_v21  ;;  %v318_v43 = vadd.f32 %v312_v29, %v284_v22 }
  0x23   : > { %v319_v44 = vadd.f32 %v313_v30, %v285_v24  ;;  %v320_v45 = vadd.f32 %v314_v33, %v286_v25  ;;  %v321_v48 = vadd.f32 %v315_v35, %v287_v26  ;;  %v322_v49 = vadd.f32 %v316_v36, %v288_v27  ;;  %v938_v27 = vld [vmem:[%s849_s21 + $0x60] sm:$0x11]  ;;  %v746_v35 = vld [vmem:[%s1022_s1 + $0x6] ss:$8 sm:$0x3] }
  0x24   : > { %v328_v50 = vunpack.c.l.bf16 %v324_v34  ;;  %v329_v52 = vunpack.c.h.bf16 %v324_v34  ;;  %v330_v53 = vunpack.c.l.bf16 %v325_v37  ;;  %v331_v56 = vunpack.c.h.bf16 %v325_v37 }
  0x25   : > { %v338_v57 = vrot.slane %v744_v40, %v842_v4  ;;  %v342_v58 = vrot.slane %v744_v40, %v844_v5  ;;  %v358_v59 = vunpack.c.l.bf16 %v357_v46  ;;  %v359_v60 = vunpack.c.h.bf16 %v357_v46  ;;  %v472_v40 = vld [vmem:[%s849_s21 + $0x8] sm:$0xcc] }
  0x26   : > { %v366_v61 = vrot.slane %v745_v47, %v842_v4  ;;  %v370_v62 = vrot.slane %v745_v47, %v844_v5  ;;  %v410_v51 = vunpack.c.l.bf16 %v407_v20 }
  0x27   : > { %v345_v1 = vmul.f32 %v338_v57, %v326_v38  ;;  %v346_v2 = vmul.f32 %v342_v58, %v327_v39  ;;  %v347_v3 = vmul.f32 %v338_v57, %v328_v50  ;;  %v348_v6 = vmul.f32 %v342_v58, %v329_v52 }
  0x28   : > { %v349_v7 = vmul.f32 %v338_v57, %v330_v53  ;;  %v350_v8 = vmul.f32 %v342_v58, %v331_v56  ;;  %v373_v9 = vmul.f32 %v366_v61, %v292_v54  ;;  %v374_v10 = vmul.f32 %v370_v62, %v293_v55  ;;  %v935_v54 = vld [vmem:[%s849_s21 + $0x40] sm:$0xff] }
  0x29   : > { %v351_v11 = vadd.f32 %v345_v1, %v317_v41  ;;  %v352_v12 = vadd.f32 %v346_v2, %v318_v43  ;;  %v353_v13 = vadd.f32 %v347_v3, %v319_v44  ;;  %v354_v14 = vadd.f32 %v348_v6, %v320_v45  ;;  %v473_v41 = vld [vmem:[%s849_s21 + $0x48] sm:$0xff] }
  0x2a   : > { %v375_v17 = vmul.f32 %v366_v61, %v294_v63  ;;  %v376_v19 = vmul.f32 %v370_v62, %v295_v0  ;;  %v377_v21 = vmul.f32 %v366_v61, %v358_v59  ;;  %v378_v22 = vmul.f32 %v370_v62, %v359_v60  ;;  %v747_v6 = vld [vmem:[%s1022_s1 + $0x7] ss:$8 sm:$0x3] }
  0x2b   : > { %v385_v23 = vrot.slane %v373_v9, 1  ;;  %v388_v24 = vrot.slane %v374_v10, 1  ;;  %v355_v42 = vadd.f32 %v349_v7, %v321_v48  ;;  %v356_v55 = vadd.f32 %v350_v8, %v322_v49 }
  0x2c   : > { %v386_v25 = vrot.slane %v375_v17, 1  ;;  %v389_v26 = vrot.slane %v376_v19, 1  ;;  %v391_v63 = vrot.slane %v377_v21, 1  ;;  %v393_v28 = vrot.slane %v378_v22, 1 }
  0x2d   : > { %v411_v0 = vunpack.c.h.bf16 %v407_v20  ;;  %v412_v33 = vunpack.c.l.bf16 %v935_v54  ;;  %v413_v34 = vunpack.c.h.bf16 %v935_v54  ;;  %v414_v38 = vunpack.c.l.bf16 %v938_v27 }
  0x2e   : > { %v387_v29 = vsel %vm266_vm0, %v385_v23, %v386_v25  ;;  %v390_v30 = vsel %vm266_vm0, %v388_v24, %v389_v26  ;;  %v392_v36 = vsel %vm266_vm0, %v386_v25, %v391_v63  ;;  %v394_v37 = vsel %vm266_vm0, %v389_v26, %v393_v28 }
  0x2f   : > { %v415_v39 = vunpack.c.h.bf16 %v938_v27  ;;  %v401_v43 = vadd.f32 %v387_v29, %v351_v11  ;;  %v402_v44 = vadd.f32 %v390_v30, %v352_v12  ;;  %v403_v45 = vadd.f32 %v392_v36, %v353_v13  ;;  %v474_v11 = vld [vmem:[%s849_s21 + $0x68] sm:$0x11] }
  0x30   : > { %v404_v46 = vadd.f32 %v394_v37, %v354_v14  ;;  %v405_v47 = vadd.f32 %v391_v63, %v355_v42  ;;  %v406_v48 = vadd.f32 %v393_v28, %v356_v55  ;;  %v422_v49 = vrot.slane %v746_v35, %v842_v4 }
  0x31   : > { %v426_v50 = vrot.slane %v746_v35, %v844_v5  ;;  %v475_v52 = vunpack.c.l.bf16 %v472_v40  ;;  %v476_v53 = vunpack.c.h.bf16 %v472_v40  ;;  %v477_v56 = vunpack.c.l.bf16 %v473_v41 }
  0x32   : > { %v478_v57 = vunpack.c.h.bf16 %v473_v41  ;;  %v429_v58 = vmul.f32 %v422_v49, %v410_v51  ;;  %v431_v60 = vmul.f32 %v422_v49, %v858_v15  ;;  %v433_v62 = vmul.f32 %v422_v49, %v412_v33 }
  0x33   : > { %v430_v59 = vmul.f32 %v426_v50, %v411_v0  ;;  %v432_v61 = vmul.f32 %v426_v50, %v860_v16  ;;  %v434_v1 = vmul.f32 %v426_v50, %v413_v34  ;;  %v435_v2 = vmul.f32 %v422_v49, %v414_v38 }
  0x34   : > { %v436_v3 = vmul.f32 %v426_v50, %v415_v39  ;;  %v446_v7 = vrot.slane %v429_v58, 5  ;;  %v447_v8 = vrot.slane %v431_v60, 5  ;;  %v452_v12 = vrot.slane %v433_v62, 5 }
  0x35   : > { %v449_v9 = vrot.slane %v430_v59, 5  ;;  %v450_v10 = vrot.slane %v432_v61, 5  ;;  %v454_v13 = vrot.slane %v434_v1, 5  ;;  %v456_v14 = vrot.slane %v435_v2, 5  ;;  %v536_v59 = vld [vmem:[%s849_s21] sm:$0x88] }
  0x36   : > { %v458_v17 = vrot.slane %v436_v3, 5  ;;  %v448_v19 = vsel %vm445_vm1, %v446_v7, %v447_v8  ;;  %v487_v21 = vrot.slane %v747_v6, %v842_v4  ;;  %v491_v22 = vrot.slane %v747_v6, %v844_v5 }
  0x37   : > { %v451_v20 = vsel %vm445_vm1, %v449_v9, %v450_v10  ;;  %v453_v23 = vsel %vm445_vm1, %v447_v8, %v452_v12  ;;  %v455_v24 = vsel %vm445_vm1, %v450_v10, %v454_v13  ;;  %v479_v42 = vunpack.c.l.bf16 %v474_v11 }
  0x38   : > { %v480_v55 = vunpack.c.h.bf16 %v474_v11  ;;  %v457_v25 = vsel %vm445_vm1, %v452_v12, %v456_v14  ;;  %v459_v26 = vsel %vm445_vm1, %v454_v13, %v458_v17  ;;  %v466_v63 = vadd.f32 %v448_v19, %v401_v43 }
  0x39   : > { %v467_v28 = vadd.f32 %v451_v20, %v402_v44  ;;  %v468_v51 = vadd.f32 %v453_v23, %v403_v45  ;;  %v469_v0 = vadd.f32 %v455_v24, %v404_v46  ;;  %v494_v29 = vmul.f32 %v487_v21, %v475_v52  ;;  %v595_v23 = vld [vmem:[%s1023_s2] sm:$0x3] }
  0x3a   : > { %v495_v30 = vmul.f32 %v491_v22, %v476_v53  ;;  %v496_v35 = vmul.f32 %v487_v21, %v209_v31  ;;  %v497_v36 = vmul.f32 %v491_v22, %v210_v32  ;;  %v498_v37 = vmul.f32 %v487_v21, %v477_v56 }
  0x3b   : > { %v499_v40 = vmul.f32 %v491_v22, %v478_v57  ;;  %v500_v41 = vmul.f32 %v487_v21, %v479_v42  ;;  %v501_v49 = vmul.f32 %v491_v22, %v480_v55  ;;  %v510_v50 = vrot.slane %v494_v29, 5  ;;  %v748_v57 = vld [vmem:[%s1022_s1 + $0x10] ss:$8 sm:$0x3] }
  0x3c   : > { %v513_v58 = vrot.slane %v495_v30, 5  ;;  %v511_v60 = vrot.slane %v496_v35, 5  ;;  %v514_v43 = vrot.slane %v497_v36, 5  ;;  %v516_v44 = vrot.slane %v498_v37, 5 }
  0x3d   : > { %v518_v45 = vrot.slane %v499_v40, 5  ;;  %v470_v46 = vadd.f32 %v457_v25, %v405_v47  ;;  %v471_v52 = vadd.f32 %v459_v26, %v406_v48  ;;  %v520_v53 = vrot.slane %v500_v41, 5 }
  0x3e   : > { %v522_v61 = vrot.slane %v501_v49, 5  ;;  %v512_v31 = vsel %vm445_vm1, %v510_v50, %v511_v60  ;;  %v515_v18 = vsel %vm445_vm1, %v513_v58, %v514_v43  ;;  %v537_v32 = vunpack.c.l.bf16 %v536_v59 }
  0x3f   : > { %v538_v56 = vunpack.c.h.bf16 %v536_v59  ;;  %v517_v62 = vsel %vm445_vm1, %v511_v60, %v516_v44  ;;  %v519_v1 = vsel %vm445_vm1, %v514_v43, %v518_v45  ;;  %v521_v2 = vsel %vm445_vm1, %v516_v44, %v520_v53 }
  0x40   : > { %v523_v47 = vsel %vm445_vm1, %v518_v45, %v522_v61  ;;  %v530_v48 = vadd.f32 %v512_v31, %v466_v63  ;;  %v531_v3 = vadd.f32 %v515_v18, %v467_v28  ;;  %v545_v6 = vrot.slane %v748_v57, %v842_v4 }
  0x41   : > { %v549_v7 = vrot.slane %v748_v57, %v844_v5  ;;  %v532_v8 = vadd.f32 %v517_v62, %v468_v51  ;;  %v533_v9 = vadd.f32 %v519_v1, %v469_v0  ;;  %v534_v10 = vadd.f32 %v521_v2, %v470_v46 }
  0x42   : > { %v535_v11 = vadd.f32 %v523_v47, %v471_v52  ;;  %v552_v12 = vmul.f32 %v545_v6, %v537_v32  ;;  %v554_v14 = vmul.f32 %v545_v6, %v858_v15  ;;  %v556_v19 = vmul.f32 %v545_v6, %v412_v33 }
  0x43   : > { %v553_v13 = vmul.f32 %v549_v7, %v538_v56  ;;  %v555_v17 = vmul.f32 %v549_v7, %v860_v16  ;;  %v557_v20 = vmul.f32 %v549_v7, %v413_v34  ;;  %v558_v21 = vmul.f32 %v545_v6, %v414_v38 }
  0x44   : > { %v559_v22 = vmul.f32 %v549_v7, %v415_v39  ;;  %v569_v24 = vrot.slane %v552_v12, 6  ;;  %v570_v15 = vrot.slane %v554_v14, 6  ;;  %v575_v55 = vrot.slane %v556_v19, 6 }
  0x45   : > { %v572_v42 = vrot.slane %v553_v13, 6  ;;  %v573_v16 = vrot.slane %v555_v17, 6  ;;  %v577_v25 = vrot.slane %v557_v20, 6  ;;  %v579_v33 = vrot.slane %v558_v21, 6 }
  0x46   : > { %v581_v26 = vrot.slane %v559_v22, 6  ;;  %v571_v54 = vsel %vm568_vm2, %v569_v24, %v570_v15  ;;  %v600_v38 = vrot.slane %v595_v23, %v842_v4  ;;  %v604_v27 = vrot.slane %v595_v23, %v844_v5 }
  0x47   : > { %v574_v34 = vsel %vm568_vm2, %v572_v42, %v573_v16  ;;  %v576_v39 = vsel %vm568_vm2, %v570_v15, %v575_v55  ;;  %v578_v63 = vsel %vm568_vm2, %v573_v16, %v577_v25  ;;  %v580_v28 = vsel %vm568_vm2, %v575_v55, %v579_v33 }
  0x48   : > { %v582_v51 = vsel %vm568_vm2, %v577_v25, %v581_v26  ;;  %v589_v0 = vadd.f32 %v571_v54, %v530_v48  ;;  %v590_v29 = vadd.f32 %v574_v34, %v531_v3  ;;  %v591_v30 = vadd.f32 %v576_v39, %v532_v8 }
  0x49   : > { %v592_v35 = vadd.f32 %v578_v63, %v533_v9  ;;  %v593_v36 = vadd.f32 %v580_v28, %v534_v10  ;;  %v594_v37 = vadd.f32 %v582_v51, %v535_v11 }
  0x4a   : > { %v607_v40 = vadd.f32 %v600_v38, %v589_v0  ;;  %v608_v41 = vadd.f32 %v604_v27, %v590_v29  ;;  %v609_v49 = vadd.f32 %v600_v38, %v591_v30 }
  0x4b   : > { %v610_v4 = vadd.f32 %v604_v27, %v592_v35  ;;  %v611_v50 = vadd.f32 %v600_v38, %v593_v36  ;;  %v612_v5 = vadd.f32 %v604_v27, %v594_v37 }
  0x4c   : > { %v749_v58 = vmul.f32 -1.442695, %v607_v40  ;;  %v750_v59 = vmul.f32 -1.442695, %v608_v41  ;;  %v751_v60 = vmul.f32 -1.442695, %v609_v49 }
  0x4d   : > { %v752_v43 = vmul.f32 -1.442695, %v610_v4  ;;  %v753_v44 = vmul.f32 -1.442695, %v611_v50  ;;  %v754_v45 = vmul.f32 -1.442695, %v612_v5 }
  0x4e   : > { %773 = vpow2.f32 %v749_v58 }
  0x4f   : > { %775 = vpow2.f32 %v750_v59 }
  0x50   : > { %777 = vpow2.f32 %v751_v60 }
  0x51   : > { %779 = vpow2.f32 %v752_v43 }
  0x52   : > { %781 = vpow2.f32 %v753_v44 }
  0x53   : > { %783 = vpow2.f32 %v754_v45 }
  0x58   : > { %v774_v46 = vpop.eup %773 }
  0x59   : > { %v776_v52 = vpop.eup %775  ;;  %v631_v53 = vadd.f32 1.0, %v774_v46 }
  0x5a   : > { %v778_v61 = vpop.eup %777  ;;  %v632_v31 = vadd.f32 1.0, %v776_v52 }
  0x5b   : > { %v780_v18 = vpop.eup %779  ;;  %v633_v32 = vadd.f32 1.0, %v778_v61  ;;  %785 = vrcp.f32 %v631_v53 }
  0x5c   : > { %v782_v56 = vpop.eup %781  ;;  %v634_v57 = vadd.f32 1.0, %v780_v18  ;;  %787 = vrcp.f32 %v632_v31 }
  0x5d   : > { %v784_v62 = vpop.eup %783  ;;  %v635_v1 = vadd.f32 1.0, %v782_v56  ;;  %789 = vrcp.f32 %v633_v32 }
  0x5e   : > { %v636_v2 = vadd.f32 1.0, %v784_v62  ;;  %791 = vrcp.f32 %v634_v57 }
  0x5f   : > { %793 = vrcp.f32 %v635_v1 }
  0x60   : > { %795 = vrcp.f32 %v636_v2 }
  0x65   : > { %v786_v47 = vpop.eup %785 }
  0x66   : > { %v788_v48 = vpop.eup %787  ;;  %v649_v3 = vmul.f32 %v786_v47, %v607_v40 }
  0x67   : > { %v790_v6 = vpop.eup %789  ;;  %v650_v7 = vmul.f32 %v788_v48, %v608_v41 }
  0x68   : > { %v792_v8 = vpop.eup %791  ;;  %v651_v9 = vmul.f32 %v790_v6, %v609_v49 }
  0x69   : > { %v794_v10 = vpop.eup %793  ;;  %v652_v11 = vmul.f32 %v792_v8, %v610_v4  ;;  %v761_v12 = vpack.c.bf16 %v650_v7, %v649_v3 }
  0x6a   : > { %v796_v13 = vpop.eup %795  ;;  %v653_v14 = vmul.f32 %v794_v10, %v611_v50 }
  0x6b   : > { %v654_v17 = vmul.f32 %v796_v13, %v612_v5  ;;  %v762_v19 = vpack.c.bf16 %v652_v11, %v651_v9  ;;  %675 = vst [vmem:[%s170_s16] sm:$0xff] %v761_v12 }
  0x6d   : > { %v763_v20 = vpack.c.bf16 %v654_v17, %v653_v14  ;;  %676 = vst [vmem:[%s170_s16 + $0x8] sm:$0xff] %v762_v19 }
  0x6f   : > { %677 = vst [vmem:[%s170_s16 + $0x10] sm:$0x33] %v763_v20 }
  0x70 PF: > { %s13_s12 = sadd.s32 1, %s803_s12  }
  0x71   : > { %p10_p4 = scmp.ge.s32.totalorder %s13_s12, 4  }
  0x73   :  { %12 = sbr.rel (!%p10_p4) target bundleno = 1 (0x1), region = 70 }

// kernel: viewpoint_forward.14
= control target key start
LH: loop header
LB: loop body
LE: loop exit
PB: predicated region body
PF: predicated region fallthrough
CT: control target
= control target key end

     0   :  { %s1142_s24 = smov 0   ;;  %s1340_s0 = inlined_call_operand.vmem [shape: bf16[2,16,256], index: 0, kind: input, shape index: {}]   ;;  %s1341_s1 = inlined_call_operand.vmem [shape: bf16[256,128], index: 1, kind: input, shape index: {}]   ;;  %s1342_s2 = inlined_call_operand.vmem [shape: f32[1,128], index: 2, kind: input, shape index: {}]   ;;  %s1343_s3 = inlined_call_operand.vmem [shape: bf16[128,256], index: 3, kind: input, shape index: {}]   ;;  %s1344_s4 = inlined_call_operand.vmem [shape: f32[1,256], index: 4, kind: input, shape index: {}]   ;;  %s1345_s5 = inlined_call_operand.vmem [shape: bf16[256,128], index: 5, kind: input, shape index: {}]   ;;  %s1346_s6 = inlined_call_operand.vmem [shape: f32[1,128], index: 6, kind: input, shape index: {}]   ;;  %s1347_s7 = inlined_call_operand.vmem [shape: bf16[2,16,128], index: 7, kind: output, shape index: {}]  }
   0x1 LB: > { %s898_s25 = sadd.s32 4294967295, %s1099_s24   ;;  %p902_p0 = scmp.ge.s32.totalorder %s1099_s24, 1  ;;  %s1099_s24 = sphi %s1142_s24, %s17_s24  }
   0x2   : > { %p237_p1 = scmp.lt.s32.totalorder %s1099_s24, 3 }
   0x4   : > { %p238_p2 = pnand %p902_p0, %p237_p1 }
   0x5   : > { %v1025_v0 = vld [vmem:[%s1341_s1 + $0x40] sm:$0xff] (!%p238_p2)   ;;  %v1027_v2 = vld [vmem:[%s1341_s1 + $0x48] sm:$0xff] (!%p238_p2)   ;;  %p269_p3 = scmp.lt.s32.totalorder (!%p238_p2), %s898_s25, 1  ;;  %v1029_v4 = vld [vmem:[%s1341_s1 + $0x50] sm:$0xff] (!%p238_p2)   ;;  %v1101_v53 = vmov (!%p238_p2), 0  }
   0x6   : > { %241 = sbr.rel (%p238_p2) target bundleno = 755 (0x2f3), region = 48  ;;  %v1026_v1 = vld [vmem:[%s1341_s1] sm:$0xff] (!%p238_p2)   ;;  %972 = vmatprep.subr.bf16.mxu0 (!%p238_p2), %v1025_v0  ;;  %v1028_v3 = vld [vmem:[%s1341_s1 + $0x8] sm:$0xff] (!%p238_p2)   ;;  %v1030_v5 = vld [vmem:[%s1341_s1 + $0x10] sm:$0xff] (!%p238_p2)   ;;  %622 = vmatprep.mubr.bf16.mxu1 (!%p238_p2), %v1101_v53 }
   0x7   : > { %973 = vmatpush3.bf16.msra.mxu0 (!%p238_p2), %v1026_v1  ;;  %v1031_v6 = vld [vmem:[%s1341_s1 + $0x58] sm:$0xff] (!%p238_p2)   ;;  %v1033_v8 = vld [vmem:[%s1341_s1 + $0x60] sm:$0xff] (!%p238_p2)   ;;  %v1035_v10 = vld [vmem:[%s1341_s1 + $0x68] sm:$0xff] (!%p238_p2)  }
   0x8   : > { %974 = vmatprep.subr.bf16.mxu0 (!%p238_p2), %v1027_v2  ;;  %v1032_v7 = vld [vmem:[%s1341_s1 + $0x18] sm:$0xff] (!%p238_p2)   ;;  %v1034_v9 = vld [vmem:[%s1341_s1 + $0x20] sm:$0xff] (!%p238_p2)   ;;  %v1036_v13 = vld [vmem:[%s1341_s1 + $0x28] sm:$0xff] (!%p238_p2)  }
   0x9   : > { %v1037_v18 = vld [vmem:[%s1341_s1 + $0x70] sm:$0xff] (!%p238_p2)   ;;  %v1039_v24 = vld [vmem:[%s1341_s1 + $0x78] sm:$0xff] (!%p238_p2)   ;;  %v1041_v40 = vld [vmem:[%s1343_s3 + $0x4] ss:$8 sps:$4 sm:$0xff] (!%p238_p2)  }
   0xa   : > { %v1038_v21 = vld [vmem:[%s1341_s1 + $0x30] sm:$0xff] (!%p238_p2)   ;;  %v1040_v27 = vld [vmem:[%s1341_s1 + $0x38] sm:$0xff] (!%p238_p2)   ;;  %v1043_v41 = vld [vmem:[%s1343_s3] ss:$8 sps:$4 sm:$0xff] (!%p238_p2)   ;;  %590 = vmatprep.subr.bf16.mxu1 (!%p238_p2), %v1041_v40 }
   0xb   : > { %975 = vmatpush3.bf16.msra.mxu0 (!%p238_p2), %v1028_v3  ;;  %591 = vmatpush1.bf16.msra.mxu1 (!%p238_p2), %v1043_v41  ;;  %v1044_v42 = vld [vmem:[%s1343_s3 + $0x14] ss:$8 sps:$4 sm:$0xff] (!%p238_p2)   ;;  %v1046_v43 = vld [vmem:[%s1343_s3 + $0x10] ss:$8 sps:$4 sm:$0xff] (!%p238_p2)   ;;  %v1047_v44 = vld [vmem:[%s1343_s3 + $0x24] ss:$8 sps:$4 sm:$0xff] (!%p238_p2)  }
   0xc   : > { %976 = vmatprep.subr.bf16.mxu0 (!%p238_p2), %v1029_v4  ;;  %592 = vmatprep.subr.bf16.mxu1 (!%p238_p2), %v1044_v42  ;;  %v1049_v45 = vld [vmem:[%s1343_s3 + $0x20] ss:$8 sps:$4 sm:$0xff] (!%p238_p2)   ;;  %v1050_v46 = vld [vmem:[%s1343_s3 + $0x34] ss:$8 sps:$4 sm:$0xff] (!%p238_p2)   ;;  %v1052_v47 = vld [vmem:[%s1343_s3 + $0x30] ss:$8 sps:$4 sm:$0xff] (!%p238_p2)  }
   0xd   : > { %s1349_s25 = smov (!%p269_p3, %s898_s25), 1  ;;  %v1053_v48 = vld [vmem:[%s1343_s3 + $0x44] ss:$8 sps:$4 sm:$0xff]   ;;  %v1055_v49 = vld [vmem:[%s1343_s3 + $0x40] ss:$8 sps:$4 sm:$0xff]  }
   0xe   : > { %s963_s17 = sshll.u32 %s1349_s25, 4  ;;  %v1056_v50 = vld [vmem:[%s1343_s3 + $0x54] ss:$8 sps:$4 sm:$0xff]   ;;  %v1058_v51 = vld [vmem:[%s1343_s3 + $0x50] ss:$8 sps:$4 sm:$0xff]   ;;  %s964_s27 = sshll.u32 %s1349_s25, 3 }
   0xf   : > { %977 = vmatpush3.bf16.msra.mxu0 %v1030_v5  ;;  %s273_s26 = scalar_lea.vmem %s1340_s0, %s963_s17  ;;  %593 = vmatpush1.bf16.msra.mxu1 %v1046_v43  ;;  %v1059_v52 = vld [vmem:[%s1343_s3 + $0x64] ss:$8 sps:$4 sm:$0xff]   ;;  %v1061_v54 = vld [vmem:[%s1343_s3 + $0x60] ss:$8 sps:$4 sm:$0xff]   ;;  %v1062_v55 = vld [vmem:[%s1343_s3 + $0x74] ss:$8 sps:$4 sm:$0xff]   ;;  %s278_s30 = scalar_lea.vmem %s1347_s7, %s964_s27 }
  0x10   : > { %978 = vmatprep.subr.bf16.mxu0 %v1031_v6  ;;  %v1189_v11 = vld [vmem:[%s273_s26] sm:$0xff]  ;;  %v1191_v12 = vld [vmem:[%s273_s26 + $0x8] sm:$0xff]  ;;  %594 = vmatprep.subr.bf16.mxu1 %v1047_v44  ;;  %v1064_v56 = vld [vmem:[%s1343_s3 + $0x70] ss:$8 sps:$4 sm:$0xff]  }
  0x11   : > { %v282_v14 = vunpack.c.l.bf16 %v1189_v11  ;;  %v283_v15 = vunpack.c.h.bf16 %v1189_v11  ;;  %v284_v16 = vunpack.c.l.bf16 %v1191_v12  ;;  %v285_v17 = vunpack.c.h.bf16 %v1191_v12  ;;  %v337_v58 = vld [vmem:[%s1342_s2] sm:$0x1] }
  0x12   : > { %v1065_v6 = vld [vmem:[%s1345_s5 + $0x40] sm:$0xff]  }
  0x13   : > { %979 = vmatpush3.bf16.msra.mxu0 %v1032_v7  ;;  %v293_v19 = vadd.f32 %v285_v17, %v283_v15  ;;  %v286_v20 = vadd.f32 %v284_v16, %v282_v14  ;;  %595 = vmatpush1.bf16.msra.mxu1 %v1049_v45  ;;  %v1066_v7 = vld [vmem:[%s1345_s5] sm:$0xff]  }
  0x14   : > { %980 = vmatprep.subr.bf16.mxu0 %v1033_v8  ;;  %596 = vmatprep.subr.bf16.mxu1 %v1050_v46  ;;  %v1067_v8 = vld [vmem:[%s1345_s5 + $0x48] sm:$0xff]  }
  0x15   : > { %v294_v22 = vrot.slane %v293_v19, 4  ;;  %v287_v23 = vrot.slane %v286_v20, 4 }
  0x17   : > { %981 = vmatpush3.bf16.msra.mxu0 %v1034_v9  ;;  %v295_v25 = vadd.f32 %v294_v22, %v293_v19  ;;  %v288_v26 = vadd.f32 %v287_v23, %v286_v20  ;;  %597 = vmatpush1.bf16.msra.mxu1 %v1052_v47  ;;  %v1068_v9 = vld [vmem:[%s1345_s5 + $0x8] sm:$0xff]   ;;  %v1072_v19 = vld [vmem:[%s1345_s5 + $0x18] sm:$0xff]   ;;  %v1073_v20 = vld [vmem:[%s1345_s5 + $0x60] sm:$0xff]  }
  0x18   : > { %982 = vmatprep.subr.bf16.mxu0 %v1035_v10  ;;  %598 = vmatprep.subr.bf16.mxu1 %v1053_v48  ;;  %v1069_v10 = vld [vmem:[%s1345_s5 + $0x50] sm:$0xff]   ;;  %v1075_v22 = vld [vmem:[%s1345_s5 + $0x68] sm:$0xff]  }
  0x19   : > { %v296_v28 = vrot.slane %v295_v25, 2  ;;  %v289_v29 = vrot.slane %v288_v26, 2  ;;  %v1076_v23 = vld [vmem:[%s1345_s5 + $0x28] sm:$0xff]  }
  0x1b   : > { %983 = vmatpush3.bf16.msra.mxu0 %v1036_v13  ;;  %v297_v30 = vadd.f32 %v296_v28, %v295_v25  ;;  %v290_v31 = vadd.f32 %v289_v29, %v288_v26  ;;  %599 = vmatpush1.bf16.msra.mxu1 %v1055_v49  ;;  %v1070_v13 = vld [vmem:[%s1345_s5 + $0x10] sm:$0xff]   ;;  %v1079_v26 = vld [vmem:[%s1345_s5 + $0x78] sm:$0xff]   ;;  %v580_v28 = vlaneseq }
  0x1c   : > { %984 = vmatprep.subr.bf16.mxu0 %v1037_v18  ;;  %600 = vmatprep.subr.bf16.mxu1 %v1056_v50  ;;  %v1071_v18 = vld [vmem:[%s1345_s5 + $0x58] sm:$0xff]   ;;  %v1078_v25 = vld [vmem:[%s1345_s5 + $0x30] sm:$0xff]  }
  0x1d   : > { %v298_v32 = vrot.slane %v297_v30, 1  ;;  %v291_v33 = vrot.slane %v290_v31, 1  ;;  %v581_v29 = vshrl.u32 %v580_v28, 7 }
  0x1f   : > { %985 = vmatpush3.bf16.msra.mxu0 %v1038_v21  ;;  %v299_v34 = vadd.f32 %v298_v32, %v297_v30  ;;  %v292_v35 = vadd.f32 %v291_v33, %v290_v31  ;;  %601 = vmatpush1.bf16.msra.mxu1 %v1058_v51  ;;  %v1074_v21 = vld [vmem:[%s1345_s5 + $0x20] sm:$0xff]   ;;  %v582_v30 = vsub.s32 0, %v581_v29  ;;  %v586_v32 = vsub.s32 1, %v581_v29 }
  0x20   : > { %986 = vmatprep.subr.bf16.mxu0 %v1039_v24  ;;  %602 = vmatprep.subr.bf16.mxu1 %v1059_v52  ;;  %v1077_v24 = vld [vmem:[%s1345_s5 + $0x70] sm:$0xff]   ;;  %v498_v31 = vld [vmem:[%s1344_s4] sm:$0x3] }
  0x21   : > { %v302_v36 = vmul.f32 0.0625, %v299_v34  ;;  %v301_v37 = vmul.f32 0.0625, %v292_v35  ;;  %v583_v33 = vrot.slane %v498_v31, %v582_v30  ;;  %v587_v34 = vrot.slane %v498_v31, %v586_v32 }
  0x23   : > { %987 = vmatpush3.bf16.msra.mxu0 %v1040_v27  ;;  %v304_v38 = vpack.c.bf16 %v302_v36, %v302_v36  ;;  %v303_v39 = vpack.c.bf16 %v301_v37, %v301_v37  ;;  %603 = vmatpush1.bf16.msra.mxu1 %v1061_v54  ;;  %v1080_v27 = vld [vmem:[%s1345_s5 + $0x38] sm:$0xff]  }
  0x24   : > { %604 = vmatprep.subr.bf16.mxu1 %v1062_v55  ;;  %994 = vmatprep.subr.bf16.mxu0 %v1065_v6 }
  0x25   : > { %466 = vmatprep.mubr.bf16.mxu0 %v304_v38 }
  0x26   : > { %467 = vmatmul.mubr.bf16.vlgmr.msra.gmra.mrb[0].mxu0 %v303_v39 }
  0x27   : > { %605 = vmatpush1.bf16.msra.mxu1 %v1064_v56  ;;  %995 = vmatpush3.bf16.msra.mxu0 %v1066_v7 }
  0x28   : > { %996 = vmatprep.subr.bf16.mxu0 %v1067_v8 }
  0x2b   : > { %997 = vmatpush3.bf16.msra.mxu0 %v1068_v9 }
  0x2c   : > { %998 = vmatprep.subr.bf16.mxu0 %v1069_v10 }
  0x2f   : > { %999 = vmatpush3.bf16.msra.mxu0 %v1070_v13 }
  0x30   : > { %1000 = vmatprep.subr.bf16.mxu0 %v1071_v18 }
  0x33   : > { %1001 = vmatpush3.bf16.msra.mxu0 %v1072_v19 }
  0x34   : > { %1002 = vmatprep.subr.bf16.mxu0 %v1073_v20 }
  0x37   : > { %1003 = vmatpush3.bf16.msra.mxu0 %v1074_v21 }
  0x38   : > { %1004 = vmatprep.subr.bf16.mxu0 %v1075_v22 }
  0x3b   : > { %1005 = vmatpush3.bf16.msra.mxu0 %v1076_v23 }
  0x3c   : > { %1006 = vmatprep.subr.bf16.mxu0 %v1077_v24 }
  0x3f   : > { %1007 = vmatpush3.bf16.msra.mxu0 %v1078_v25 }
  0x40   : > { %1008 = vmatprep.subr.bf16.mxu0 %v1079_v26 }
  0x43   : > { %1009 = vmatpush3.bf16.msra.mxu0 %v1080_v27 }
  0xf9   : > { %v988_v57 = vpop.f32.mrb[0].mxu0 }
  0xfa   : > { %v989_v59 = vpop.f32.mrb[1].mxu0 }
  0xfb   : > { %v990_v60 = vadd.f32 %v989_v59, %v988_v57  ;;  %v991_v61 = vpop.f32.mrb[2].mxu0 }
  0xfc   : > { %v992_v62 = vpop.f32.mrb[3].mxu0 }
  0xfd   : > { %v469_v63 = vadd.f32 %v990_v60, %v337_v58 }
  0xff   : > { %v923_v0 = vmul.f32 -1.442695, %v469_v63 }
 0x101   : > { %1081 = vpow2.f32 %v923_v0 }
 0x10b   : > { %v1082_v1 = vpop.eup %1081 }
 0x10c   : > { %v477_v2 = vadd.f32 1.0, %v1082_v1 }
 0x10e   : > { %1083 = vrcp.f32 %v477_v2 }
 0x118   : > { %v1084_v3 = vpop.eup %1083 }
 0x119   : > { %v480_v4 = vmul.f32 %v1084_v3, %v469_v63 }
 0x11b   : > { %v481_v5 = vpack.c.bf16 %v480_v4, %v480_v4 }
 0x11d   : > { %623 = vmatmul.mubr.bf16.vlgmr.msra.gmra.mrb[0].mxu1 %v481_v5 }
 0x1f0   : > { %v624_v35 = vpop.f32.mrb[0].mxu1 }
 0x1f1   : > { %v625_v36 = vadd.f32 %v624_v35, %v583_v33  ;;  %v626_v37 = vpop.f32.mrb[1].mxu1 }
 0x1f2   : > { %v627_v38 = vadd.f32 %v626_v37, %v587_v34  ;;  %v628_v39 = vpop.f32.mrb[2].mxu1 }
 0x1f3   : > { %v940_v40 = vmul.f32 -1.442695, %v625_v36  ;;  %v629_v41 = vpop.f32.mrb[3].mxu1 }
 0x1f4   : > { %v941_v42 = vmul.f32 -1.442695, %v627_v38 }
 0x1f5   : > { %1085 = vpow2.f32 %v940_v40 }
 0x1f6   : > { %1087 = vpow2.f32 %v941_v42 }
 0x1ff   : > { %v1086_v43 = vpop.eup %1085 }
 0x200   : > { %v1088_v44 = vpop.eup %1087  ;;  %v637_v45 = vadd.f32 1.0, %v1086_v43 }
 0x201   : > { %v638_v46 = vadd.f32 1.0, %v1088_v44 }
 0x202   : > { %1089 = vrcp.f32 %v637_v45 }
 0x203   : > { %1091 = vrcp.f32 %v638_v46 }
 0x20c   : > { %v1090_v47 = vpop.eup %1089 }
 0x20d   : > { %v1092_v48 = vpop.eup %1091  ;;  %v646_v49 = vrot.slane %v1090_v47, %v582_v30 }
 0x20e   : > { %v650_v50 = vrot.slane %v1092_v48, %v582_v30 }
 0x20f   : > { %v651_v51 = vmul.f32 %v646_v49, %v282_v14  ;;  %v653_v52 = vmul.f32 %v646_v49, %v284_v16  ;;  %v942_v14 = vld [vmem:[%s1346_s6] ss:$0 sm:$0xff] }
 0x210   : > { %v652_v53 = vmul.f32 %v650_v50, %v283_v15  ;;  %v654_v54 = vmul.f32 %v650_v50, %v285_v17 }
 0x211   : > { %v655_v56 = vpack.c.bf16 %v653_v52, %v651_v51 }
 0x212   : > { %v656_v55 = vpack.c.bf16 %v654_v54, %v652_v53 }
 0x214   : > { %824 = vmatprep.mubr.bf16.mxu0 %v656_v55 }
 0x215   : > { %825 = vmatmul.mubr.bf16.vlgmr.msra.gmra.mrb[4].mxu0 %v655_v56 }
 0x2e8   : > { %v1010_v57 = vpop.f32.mrb[4].mxu0 }
 0x2e9   : > { %v1011_v58 = vpop.f32.mrb[5].mxu0 }
 0x2ea   : > { %v1012_v59 = vadd.f32 %v1011_v58, %v1010_v57  ;;  %v1013_v60 = vpop.f32.mrb[6].mxu0 }
 0x2eb   : > { %v1014_v61 = vpop.f32.mrb[7].mxu0 }
 0x2ec   : > { %v1015_v16 = vadd.f32 %v1014_v61, %v1013_v60  ;;  %v827_v11 = vadd.f32 %v1012_v59, %v942_v14 }
 0x2ee   : > { %v830_v15 = vadd.f32 %v1015_v16, %v942_v14 }
 0x2f0   : > { %v970_v12 = vpack.c.bf16 %v830_v15, %v827_v11 }
 0x2f2   : > { %971 = vst [vmem:[%s278_s30] sm:$0xff] %v970_v12  }
 0x2f3 PF: > { %s17_s24 = sadd.s32 1, %s1099_s24  }
 0x2f4   : > { %p14_p4 = scmp.ge.s32.totalorder %s17_s24, 4  }
 0x2f6   :  { %16 = sbr.rel (!%p14_p4) target bundleno = 1 (0x1), region = 78 }

// kernel: viewpoint_forward.15
= control target key start
LH: loop header
LB: loop body
LE: loop exit
PB: predicated region body
PF: predicated region fallthrough
CT: control target
= control target key end

     0   :  { %10 = vsyncpa [#allocation3], 0  ;;  %s946_s0 = inlined_call_operand.vmem [shape: bf16[2,16,128], index: 0, kind: input, shape index: {}]   ;;  %s947_s1 = inlined_call_operand.vmem [shape: bf16[128,128], index: 1, kind: input, shape index: {}]   ;;  %s948_s2 = inlined_call_operand.vmem [shape: f32[1,128], index: 2, kind: input, shape index: {}]   ;;  %s949_s3 = inlined_call_operand.vmem [shape: bf16[128,128], index: 3, kind: input, shape index: {}]   ;;  %s950_s4 = inlined_call_operand.vmem [shape: f32[1,128], index: 4, kind: input, shape index: {}]   ;;  %s951_s5 = inlined_call_operand.hbm [shape: f32[2,1,128], index: 5, kind: output, shape index: {}]  }
   0x1   :  { %12 = vsyncpa [#allocation3 + $0x1], 0  ;;  %s792_s18 = smov 0   ;;  %s794_s19 = smov 0  }
   0x2   :  { %s796_s20 = smov 0   ;;  %s798_s21 = smov 0  }
   0x3 LB: > { %s813_s22 = sadd.s32 4294967295, %s757_s21   ;;  %s541_s23 = sadd.s32 4294967294, %s757_s21   ;;  %s757_s21 = sphi %s798_s21, %s957_s21   ;;  %s753_s20 = sphi %s796_s20, %s956_s20   ;;  %s749_s19 = sphi %s794_s19, %s955_s19   ;;  %s745_s18 = sphi %s792_s18, %s954_s18  }
   0x4   : > { %s817_s24 = sadd.s32 1, %s757_s21   ;;  %s135_s25 = sadd.s32 1, %s753_s20 }
   0x5   : > { %s132_s26 = ssub.s32 %s757_s21, %s817_s24  ;;  %p145_p0 = scmp.ne.s32.totalorder %s753_s20, %s749_s19 }
   0x6   : > { %p133_p1 = scmp.eq.s32.totalorder %s132_s26, 0  ;;  %p146_p2 = scmp.eq.s32.totalorder %s813_s22, 1 }
   0x7   : > { %p151_p3 = scmp.ne.s32.totalorder %s749_s19, %s745_s18  ;;  %p152_p4 = scmp.eq.s32.totalorder %s541_s23, 1 }
   0x8   : > { %s828_s27 = scalar_select %p133_p1, %s753_s20, %s135_s25  }
   0x9   : > { %p830_p5 = por %p146_p2, %p145_p0  ;;  %p834_p6 = por %p152_p4, %p151_p3 }
   0xa   : > { %p544_p7 = scmp.ge.s32.totalorder %s757_s21, 1  ;;  %p190_p8 = scmp.lt.s32.totalorder %s757_s21, 3 }
   0xc   : > { %p191_p9 = pnand %p544_p7, %p190_p8 }
   0xd   : > { %v670_v0 = vld [vmem:[%s947_s1] sm:$0xff] (!%p191_p9)   ;;  %v759_v1 = vmov (!%p191_p9), 0.0   ;;  %v671_v2 = vld [vmem:[%s947_s1 + $0x8] sm:$0xff] (!%p191_p9)   ;;  %vm760_vm0 = vmmov (!%p191_p9), 0   ;;  %p217_p10 = scmp.lt.s32.totalorder (!%p191_p9), %s813_s22, 1  ;;  %v672_v3 = vld [vmem:[%s947_s1 + $0x10] sm:$0xff] (!%p191_p9)  }
   0xe   : > { %194 = sbr.rel (%p191_p9) target bundleno = 536 (0x218), region = 40  ;;  %589 = vmatprep.subr.bf16.mxu0 (!%p191_p9), %v759_v1  ;;  %609 = vmatprep.subr.bf16.mxu1 (!%p191_p9), %v759_v1  ;;  %v673_v4 = vld [vmem:[%s947_s1 + $0x18] sm:$0xff] (!%p191_p9)   ;;  %v674_v5 = vld [vmem:[%s947_s1 + $0x20] sm:$0xff] (!%p191_p9)   ;;  %v675_v6 = vld [vmem:[%s947_s1 + $0x28] sm:$0xff] (!%p191_p9)   ;;  %s567_s16 = sshll.u32 (!%p191_p9), %s813_s22, 4 }
   0xf   : > { %590 = vmatpush3.bf16.msra.mxu0 (!%p191_p9), %v670_v0  ;;  %605 = vmatprep.mubr.msk.bf16.mxu0 (!%p191_p9), %vm760_vm0, %v759_v1  ;;  %v676_v7 = vld [vmem:[%s947_s1 + $0x30] sm:$0xff] (!%p191_p9)   ;;  %v677_v8 = vld [vmem:[%s947_s1 + $0x38] sm:$0xff] (!%p191_p9)   ;;  %v679_v10 = vld [vmem:[%s949_s3] sm:$0xff] (!%p191_p9)   ;;  %s904_s26 = scalar_lea.hbm (!%p191_p9), %s951_s5, %s567_s16  ;;  %s761_s6 = smov (!%p191_p9), [#allocation2]  }
  0x10   : > { %591 = vmatprep.subr.bf16.mxu0 (!%p191_p9), %v759_v1  ;;  %625 = vmatprep.mubr.msk.bf16.mxu1 (!%p191_p9), %vm760_vm0, %v759_v1  ;;  %v680_v11 = vld [vmem:[%s949_s3 + $0x8] sm:$0xff] (!%p191_p9)   ;;  %v681_v12 = vld [vmem:[%s949_s3 + $0x10] sm:$0xff] (!%p191_p9)   ;;  %v682_v13 = vld [vmem:[%s949_s3 + $0x18] sm:$0xff] (!%p191_p9)   ;;  %s699_s7 = sshll.u32 (!%p191_p9), %s761_s6, 4  ;;  %s700_s7 = int_to_ptr.vmem [resolvable:$false] %s699_s7 }
  0x11   : > { %610 = vmatpush3.bf16.msra.mxu1 (!%p191_p9), %v679_v10  ;;  %v683_v14 = vld [vmem:[%s949_s3 + $0x20] sm:$0xff] (!%p191_p9)   ;;  %v684_v15 = vld [vmem:[%s949_s3 + $0x28] sm:$0xff] (!%p191_p9)   ;;  %v685_v16 = vld [vmem:[%s949_s3 + $0x30] sm:$0xff] (!%p191_p9)   ;;  %s701_s8 = scalar_lea.vmem (!%p191_p9), %s700_s7, 32 }
  0x12   : > { %611 = vmatprep.subr.bf16.mxu1 (!%p191_p9), %v759_v1  ;;  %v686_v17 = vld [vmem:[%s949_s3 + $0x38] sm:$0xff] (!%p191_p9)   ;;  %v547_v18 = vld [vmem:[%s948_s2] ss:$0 sm:$0xff] (!%p191_p9) }
  0x13   : > { %592 = vmatpush3.bf16.msra.mxu0 (!%p191_p9), %v671_v2  ;;  %v383_v44 = vld [vmem:[%s950_s4] sm:$0x1] (!%p191_p9) }
  0x14   : > { %593 = vmatprep.subr.bf16.mxu0 (!%p191_p9), %v759_v1 }
  0x15   : > { %s218_s9 = scalar_select %p217_p10, %s813_s22, 1  ;;  %612 = vmatpush3.bf16.msra.mxu1 %v680_v11 }
  0x16   : > { %613 = vmatprep.subr.bf16.mxu1 %v759_v1 }
  0x17   : > { %s570_s12 = sshll.u32 %s218_s9, 3  ;;  %594 = vmatpush3.bf16.msra.mxu0 %v672_v3 }
  0x18   : > { %s221_s15 = scalar_lea.vmem %s946_s0, %s570_s12  ;;  %595 = vmatprep.subr.bf16.mxu0 %v759_v1  ;;  %s215_s12 = sand.u32 1, %s749_s19  }
  0x19   : > { %v678_v9 = vld [vmem:[%s221_s15] sm:$0xff]   ;;  %614 = vmatpush3.bf16.msra.mxu1 %v681_v12  ;;  %s216_s15 = scalar_lea.vmem [#allocation2], %s215_s12  ;;  %s474_s30 = scalar_lea.sflag [#allocation3], %s215_s12 }
  0x1a   : > { %615 = vmatprep.subr.bf16.mxu1 %v759_v1  ;;  %s486_s17 = sshll.u32 %s216_s15, 4  ;;  %s906_s17 = int_to_ptr.vmem [resolvable:$true] %s486_s17 }
  0x1b   : > { %596 = vmatpush3.bf16.msra.mxu0 %v673_v4  ;;  %s695_s22 = scalar_lea.vmem %s906_s17, 16  ;;  %p702_p0 = scmp.lt.s32.totalorder %s906_s17, %s700_s7 }
  0x1c   : > { %597 = vmatprep.subr.bf16.mxu0 %v759_v1  ;;  %p696_p11 = scmp.ne.s32.totalorder %s906_s17, %s695_s22  ;;  %p703_p1 = scmp.lt.s32.totalorder %s701_s8, %s695_s22 }
  0x1d   : > { %616 = vmatpush3.bf16.msra.mxu1 %v682_v13 }
  0x1e   : > { %617 = vmatprep.subr.bf16.mxu1 %v759_v1  ;;  %p697_p12 = pnand %p696_p11, %p830_p5  ;;  %p704_p2 = por %p703_p1, %p702_p0 }
  0x1f   : > { %598 = vmatpush3.bf16.msra.mxu0 %v674_v5 }
  0x20   : > { %599 = vmatprep.subr.bf16.mxu0 %v759_v1  ;;  %p698_p13 = pneg %p697_p12 }
  0x21   : > { %618 = vmatpush3.bf16.msra.mxu1 %v683_v14 }
  0x22   : > { %619 = vmatprep.subr.bf16.mxu1 %v759_v1  ;;  %p705_p3 = pnand %p704_p2, %p698_p13 }
  0x23   : > { %600 = vmatpush3.bf16.msra.mxu0 %v675_v6 }
  0x24   : > { %601 = vmatprep.subr.bf16.mxu0 %v759_v1 }
  0x25   : > { %620 = vmatpush3.bf16.msra.mxu1 %v684_v15 }
  0x26   : > { %621 = vmatprep.subr.bf16.mxu1 %v759_v1 }
  0x27   : > { %602 = vmatpush3.bf16.msra.mxu0 %v676_v7 }
  0x28   : > { %603 = vmatprep.subr.bf16.mxu0 %v759_v1 }
  0x29   : > { %622 = vmatpush3.bf16.msra.mxu1 %v685_v16 }
  0x2a   : > { %623 = vmatprep.subr.bf16.mxu1 %v759_v1 }
  0x2b   : > { %604 = vmatpush3.bf16.msra.mxu0 %v677_v8 }
  0x2d   : > { %624 = vmatpush3.bf16.msra.mxu1 %v686_v17 }
  0x2e   : > { %606 = vmatmul.mubr.bf16.vlgmr.msra.gmra.mrb[0].mxu0 %v678_v9 }
 0x101   : > { %v336_v19 = vpop.f32.mrb[0].mxu0 }
 0x102   : > { %v337_v20 = vadd.f32 %v547_v18, %v336_v19  ;;  %v607_v21 = vpop.f32.mrb[1].mxu0 }
 0x103   : > { %v339_v22 = vpop.f32.mrb[2].mxu0 }
 0x104   : > { %v557_v23 = vmul.f32 -1.442695, %v337_v20  ;;  %v340_v24 = vadd.f32 %v547_v18, %v339_v22  ;;  %v608_v25 = vpop.f32.mrb[3].mxu0 }
 0x106   : > { %687 = vpow2.f32 %v557_v23  ;;  %v558_v26 = vmul.f32 -1.442695, %v340_v24 }
 0x108   : > { %689 = vpow2.f32 %v558_v26 }
 0x110   : > { %v688_v27 = vpop.eup %687 }
 0x111   : > { %v349_v28 = vadd.f32 1.0, %v688_v27 }
 0x112   : > { %v690_v29 = vpop.eup %689 }
 0x113   : > { %691 = vrcp.f32 %v349_v28  ;;  %v350_v30 = vadd.f32 1.0, %v690_v29 }
 0x115   : > { %693 = vrcp.f32 %v350_v30 }
 0x11d   : > { %v692_v31 = vpop.eup %691 }
 0x11e   : > { %v355_v33 = vmul.f32 %v692_v31, %v337_v20 }
 0x11f   : > { %v694_v32 = vpop.eup %693 }
 0x120   : > { %v356_v34 = vmul.f32 %v694_v32, %v340_v24 }
 0x122   : > { %v357_v35 = vadd.f32 %v356_v34, %v355_v33 }
 0x124   : > { %v358_v36 = vrot.slane %v357_v35, 4 }
 0x126   : > { %v359_v37 = vadd.f32 %v358_v36, %v357_v35 }
 0x128   : > { %v360_v38 = vrot.slane %v359_v37, 2 }
 0x12a   : > { %v361_v39 = vadd.f32 %v360_v38, %v359_v37 }
 0x12c   : > { %v362_v40 = vrot.slane %v361_v39, 1 }
 0x12e   : > { %v363_v41 = vadd.f32 %v362_v40, %v361_v39 }
 0x130   : > { %v365_v42 = vmul.f32 0.0625, %v363_v41 }
 0x132   : > { %v366_v43 = vpack.c.bf16 %v365_v42, %v365_v42 }
 0x134   : > { %626 = vmatmul.mubr.bf16.vlgmr.msra.gmra.mrb[0].mxu1 %v366_v43 }
 0x207   : > { %v466_v45 = vpop.f32.mrb[0].mxu1 }
 0x208   : > { %v467_v46 = vadd.f32 %v466_v45, %v383_v44  ;;  %v627_v47 = vpop.f32.mrb[1].mxu1 }
 0x209   : > { %v469_v48 = vpop.f32.mrb[2].mxu1 }
 0x20a   : > { %472 = vst [vmem:[%s216_s15] sm:$0x1] %v467_v46  ;;  %v628_v49 = vpop.f32.mrb[3].mxu1 }
 0x20b   : > { %708 = shalt.err (!%p705_p3)
}
 0x20c   : > { %s709_s9 = scalar_lea.hbm %s904_s26, 16  ;;  %s713_s12 = scalar_lea.hbm %s951_s5, 32 }
 0x20d   : > { %p710_p4 = scmp.ne.s32.totalorder %s904_s26, %s709_s9  ;;  %p714_p9 = scmp.lt.u32.totalorder %s904_s26, %s951_s5 }
 0x20e   : > { %p715_p10 = scmp.lt.u32.totalorder %s713_s12, %s709_s9  ;;  %p717_p12 = scmp.lt.u32.totalorder %s709_s9, %s904_s26 }
 0x20f   : > { %p711_p7 = pnand %p710_p4, %p830_p5 }
 0x210   : > { %p716_p11 = por %p715_p10, %p714_p9 }
 0x211   : > { %p712_p8 = pneg %p711_p7 }
 0x212   : > { %p718_p13 = por %p717_p12, %p716_p11 }
 0x214   : > { %p719_p0 = pnand %p718_p13, %p712_p8 }
 0x216   : > { %722 = shalt.err (!%p719_p0)
}
 0x217   : > { %629 = dma.vmem_to_hbm [thread:$0]  (%p830_p5), %s906_s17, 16, %s904_s26, %s474_s30  }
 0x218 PF: > { %p635_p1 = scmp.ge.s32.totalorder %s757_s21, 2  ;;  %s498_s16 = sand.u32 1, %s745_s18  }
 0x219   : > { %s499_s15 = scalar_lea.sflag [#allocation3], %s498_s16 }
 0x21a   : > { %p632_p2 = pnand %p635_p1, %p834_p6 }
 0x21c   : > { %740 = dma.done.wait (!%p632_p2), %s499_s15, 16  }
 0x21d   : > { %742 = vsyncadd (!%p632_p2), %s499_s15, 4294967280  ;;  %p15_p3 = scmp.ge.s32.totalorder %s817_s24, 4   ;;  %s954_s18 = smov %s749_s19 }
 0x21e   : > { %s955_s19 = smov %s753_s20  ;;  %s956_s20 = smov %s828_s27 }
 0x21f   : > { %s957_s21 = smov %s817_s24  ;;  %17 = sbr.rel (!%p15_p3) target bundleno = 3 (0x3), region = 75 }
 0x226   :  { %503 = vsyncpa [#allocation3], 1 }
 0x227   :  { %505 = vsyncpa [#allocation3 + $0x1], 1 }

</bundles_post_ra>
